<compile_context>
chip_gen: v6e
topology: v6e:2x2x1
jax: 0.10.0
libtpu: 0.0.40
codegen_flags: <defaults>
</compile_context>

<pallas_src>
import math

import numpy as np
import jax
import jax.numpy as jnp
from jax.experimental import pallas as pl
from jax.experimental.pallas import tpu as pltpu


def prepare_weight(weight, n_fold):
    """PyTorch ConvTranspose2d weight (CI, CO=1, K, K) -> (K, K, n_fold*CI):
    spatially flipped, reordered as [kw, kh, ci], and tiled n_fold times along the lane
    (channel) axis so the folded batch images share one weight slab.
    Call-invariant: compute once, outside the hot path."""
    w_flip = weight[:, 0, ::-1, ::-1]            # (CI, K, K): w_flip[ci,kh,kw] = w[ci,0,K-1-kh,K-1-kw]
    w_t = jnp.transpose(w_flip, (2, 1, 0))       # (K, K, CI) indexed [kw, kh, ci]
    return jnp.tile(w_t, (1, 1, n_fold))         # (K, K, n_fold*CI)


def hisconv_forward(x, w_tiled, bias):
    """x: (N, CI, H, W) float32 (NCHW, matches PyTorch).
    w_tiled: (K, K, N*CI) float32 from prepare_weight(weight, N).
    bias: (1,) float32.
    Returns (N, 1, H+K-1, W+K-1) float32 (NCHW)."""
    N, CI, H, W = x.shape
    K = w_tiled.shape[0]
    C = w_tiled.shape[2]
    assert C == N * CI, (C, N, CI)
    P = K - 1
    OH, OW = H + P, W + P
    Hp, Wp = H + 2 * P, W + 2 * P

    # Fold batch into the channel/lane axis: x_fold[h, w, n*CI + ci] = x[n, ci, h, w].
    # 2 * 64 = 128 channels -> exactly one full vreg lane dimension.
    x_fold = jnp.transpose(x, (2, 3, 0, 1)).reshape(H, W, N * CI)

    def kernel(x_ref, w_ref, b_ref, o_ref, xp_ref):
        # x_ref:  (H, W, C)   VMEM   | w_ref: (K, K, C) VMEM, indexed [kw, kh, c]
        # b_ref:  (1,)        SMEM   | o_ref: (N, 1, OH, OW) VMEM
        # xp_ref: (Hp, Wp, C) VMEM scratch: zero-padded folded image built in-kernel.
        #
        # Zero only the pad ring; the interior is fully overwritten below (grid is a
        # single invocation, so there is no stale-scratch hazard).
        xp_ref[0:P, :, :] = jnp.zeros((P, Wp, C), jnp.float32)           # top rows
        xp_ref[P + H:Hp, :, :] = jnp.zeros((P, Wp, C), jnp.float32)      # bottom rows
        xp_ref[P:P + H, 0:P, :] = jnp.zeros((H, P, C), jnp.float32)      # left strip
        xp_ref[P:P + H, P + W:Wp, :] = jnp.zeros((H, P, C), jnp.float32)  # right strip
        xp_ref[P:P + H, P:P + W, :] = x_ref[...]                         # interior

        # Fully statically-unrolled tap loop (49 taps): each window has compile-time
        # row/sublane offsets and streams straight from VMEM into a mul+add; only the
        # ~20-vreg accumulator stays live.  Pure VPU work (MXU skipped: CO == 1).
        acc = jnp.zeros((OH, OW, C), jnp.float32)
        for kw in range(K):
            for kh in range(K):
                win = xp_ref[kh:kh + OH, kw:kw + OW, :]   # (OH, OW, C), static offsets
                acc = acc + win * w_ref[kw, kh]           # (C,) weight broadcast over sublanes

        # One 64-lane channel reduction per folded batch image, only at the very end.
        b = b_ref[0]
        for n in range(N):
            lo = n * CI
            o_ref[n, 0] = (jnp.sum(acc[:, :, lo:lo + CI], axis=-1) + b).astype(o_ref.dtype)

    return pl.pallas_call(
        kernel,
        out_shape=jax.ShapeDtypeStruct((N, 1, OH, OW), jnp.float32),
        # grid == (): single invocation on one TensorCore (total work is ~1 us; a 2-TC
        # split on v7x would cost more in coordination than it saves).
        in_specs=[
            pl.BlockSpec(memory_space=pltpu.MemorySpace.VMEM),   # x_fold (H, W, C)
            pl.BlockSpec(memory_space=pltpu.MemorySpace.VMEM),   # w_tiled (K, K, C)
            pl.BlockSpec(memory_space=pltpu.MemorySpace.SMEM),   # bias (1,)
        ],
        out_specs=pl.BlockSpec(memory_space=pltpu.MemorySpace.VMEM),
        scratch_shapes=[pltpu.VMEM((Hp, Wp, C), jnp.float32)],   # ~200 KiB: fits every gen
    )(x_fold, w_tiled, bias)


def ref_conv_transpose_np(x, w, b):
    """Direct scatter definition of ConvTranspose2d (stride=1, pad=0)."""
    x = np.asarray(x); w = np.asarray(w); b = np.asarray(b)
    N, CI, H, W = x.shape
    _, CO, K, _ = w.shape
    OH, OW = H + K - 1, W + K - 1
    out = np.zeros((N, CO, OH, OW), np.float32)
    for n in range(N):
        for ci in range(CI):
            for i in range(H):
                for j in range(W):
                    out[n, :, i:i + K, j:j + K] += x[n, ci, i, j] * w[ci]
    return out + b.reshape(1, CO, 1, 1)


if __name__ == "__main__":
    N, CI, H, W = 2, 64, 4, 5   # matches the module's sample input torch.rand(2, 64, 4, 5)
    CO, K = 1, 7

    key = jax.random.PRNGKey(0)
    kx, kw_key, kb = jax.random.split(key, 3)

    x = jax.random.uniform(kx, (N, CI, H, W), dtype=jnp.float32)
    # same shapes / uniform(-1/sqrt(fan), +1/sqrt(fan)) style as PyTorch defaults
    bound = 1.0 / math.sqrt(CI * K * K)
    weight = jax.random.uniform(kw_key, (CI, CO, K, K), dtype=jnp.float32,
                                minval=-bound, maxval=bound)
    bias = jax.random.uniform(kb, (CO,), dtype=jnp.float32,
                              minval=-bound, maxval=bound)

    # weight prep (flip + transpose + lane tiling) is call-invariant: done once
    w_tiled = jax.block_until_ready(prepare_weight(weight, N))

    forward = jax.jit(hisconv_forward)
    out = forward(x, w_tiled, bias)
    out = jax.block_until_ready(out)

    assert out.shape == (N, CO, H + K - 1, W + K - 1), out.shape

    ref = ref_conv_transpose_np(x, weight, bias)
    np.testing.assert_allclose(np.asarray(out), ref, rtol=1e-4, atol=1e-4)

    print("KERNEL_OK")
</pallas_src>

<mosaic_0001>
module attributes {stable_mosaic.version = 11 : i64} {
  func.func @kernel(%arg0: memref<4x5x128xf32, #tpu.memory_space<vmem>>, %arg1: memref<7x7x128xf32, #tpu.memory_space<vmem>>, %arg2: memref<1xf32, #tpu.memory_space<smem>>, %arg3: memref<2x1x10x11xf32, #tpu.memory_space<vmem>>, %arg4: memref<16x17x128xf32, #tpu.memory_space<vmem>>) attributes {dimension_semantics = [], scalar_prefetch = 0 : i64, scratch_operands = 1 : i64, tpu.core_type = #tpu.core_type<tc>} {
    %cst = arith.constant 0.000000e+00 : f32
    %0 = vector.broadcast %cst : f32 to vector<6x17x128xf32>
    %c0 = arith.constant 0 : index
    %c0_0 = arith.constant 0 : index
    %c0_1 = arith.constant 0 : index
    %1 = vector.load %arg4[%c0, %c0_0, %c0_1] : memref<16x17x128xf32, #tpu.memory_space<vmem>>, vector<6x17x128xf32>
    tpu.vector_store %arg4[%c0, %c0_0, %c0_1], %0 {strides = array<i32>} : memref<16x17x128xf32, #tpu.memory_space<vmem>>, vector<6x17x128xf32>,
    %cst_2 = arith.constant 0.000000e+00 : f32
    %2 = vector.broadcast %cst_2 : f32 to vector<6x17x128xf32>
    %c10 = arith.constant 10 : index
    %c0_3 = arith.constant 0 : index
    %c0_4 = arith.constant 0 : index
    %3 = vector.load %arg4[%c10, %c0_3, %c0_4] : memref<16x17x128xf32, #tpu.memory_space<vmem>>, vector<6x17x128xf32>
    tpu.vector_store %arg4[%c10, %c0_3, %c0_4], %2 {strides = array<i32>} : memref<16x17x128xf32, #tpu.memory_space<vmem>>, vector<6x17x128xf32>,
    %cst_5 = arith.constant 0.000000e+00 : f32
    %4 = vector.broadcast %cst_5 : f32 to vector<4x6x128xf32>
    %c6 = arith.constant 6 : index
    %c0_6 = arith.constant 0 : index
    %c0_7 = arith.constant 0 : index
    %5 = vector.load %arg4[%c6, %c0_6, %c0_7] : memref<16x17x128xf32, #tpu.memory_space<vmem>>, vector<4x6x128xf32>
    tpu.vector_store %arg4[%c6, %c0_6, %c0_7], %4 {strides = array<i32>} : memref<16x17x128xf32, #tpu.memory_space<vmem>>, vector<4x6x128xf32>,
    %cst_8 = arith.constant 0.000000e+00 : f32
    %6 = vector.broadcast %cst_8 : f32 to vector<4x6x128xf32>
    %c6_9 = arith.constant 6 : index
    %c11 = arith.constant 11 : index
    %c0_10 = arith.constant 0 : index
    %7 = vector.load %arg4[%c6_9, %c11, %c0_10] : memref<16x17x128xf32, #tpu.memory_space<vmem>>, vector<4x6x128xf32>
    tpu.vector_store %arg4[%c6_9, %c11, %c0_10], %6 {strides = array<i32>} : memref<16x17x128xf32, #tpu.memory_space<vmem>>, vector<4x6x128xf32>,
    %c0_11 = arith.constant 0 : index
    %c0_12 = arith.constant 0 : index
    %c0_13 = arith.constant 0 : index
    %8 = vector.load %arg0[%c0_11, %c0_12, %c0_13] : memref<4x5x128xf32, #tpu.memory_space<vmem>>, vector<4x5x128xf32>
    %c6_14 = arith.constant 6 : index
    %c6_15 = arith.constant 6 : index
    %c0_16 = arith.constant 0 : index
    %9 = vector.load %arg4[%c6_14, %c6_15, %c0_16] : memref<16x17x128xf32, #tpu.memory_space<vmem>>, vector<4x5x128xf32>
    tpu.vector_store %arg4[%c6_14, %c6_15, %c0_16], %8 {strides = array<i32>} : memref<16x17x128xf32, #tpu.memory_space<vmem>>, vector<4x5x128xf32>,
    %cst_17 = arith.constant 0.000000e+00 : f32
    %10 = vector.broadcast %cst_17 : f32 to vector<10x11x128xf32>
    %c0_18 = arith.constant 0 : index
    %c0_19 = arith.constant 0 : index
    %c0_20 = arith.constant 0 : index
    %11 = vector.load %arg4[%c0_18, %c0_19, %c0_20] : memref<16x17x128xf32, #tpu.memory_space<vmem>>, vector<10x11x128xf32>
    %c0_21 = arith.constant 0 : index
    %c0_22 = arith.constant 0 : index
    %c0_23 = arith.constant 0 : index
    %12 = vector.load %arg1[%c0_21, %c0_22, %c0_23] : memref<7x7x128xf32, #tpu.memory_space<vmem>>, vector<1x1x128xf32>
    %13 = vector.shape_cast %12 : vector<1x1x128xf32> to vector<128xf32>
    %14 = vector.shape_cast %13 : vector<128xf32> to vector<1x1x128xf32>
    %15 = vector.broadcast %14 : vector<1x1x128xf32> to vector<10x11x128xf32>
    %16 = arith.mulf %11, %15 : vector<10x11x128xf32>
    %17 = arith.addf %10, %16 : vector<10x11x128xf32>
    %c1 = arith.constant 1 : index
    %c0_24 = arith.constant 0 : index
    %c0_25 = arith.constant 0 : index
    %18 = vector.load %arg4[%c1, %c0_24, %c0_25] : memref<16x17x128xf32, #tpu.memory_space<vmem>>, vector<10x11x128xf32>
    %c0_26 = arith.constant 0 : index
    %c1_27 = arith.constant 1 : index
    %c0_28 = arith.constant 0 : index
    %19 = vector.load %arg1[%c0_26, %c1_27, %c0_28] : memref<7x7x128xf32, #tpu.memory_space<vmem>>, vector<1x1x128xf32>
    %20 = vector.shape_cast %19 : vector<1x1x128xf32> to vector<128xf32>
    %21 = vector.shape_cast %20 : vector<128xf32> to vector<1x1x128xf32>
    %22 = vector.broadcast %21 : vector<1x1x128xf32> to vector<10x11x128xf32>
    %23 = arith.mulf %18, %22 : vector<10x11x128xf32>
    %24 = arith.addf %17, %23 : vector<10x11x128xf32>
    %c2 = arith.constant 2 : index
    %c0_29 = arith.constant 0 : index
    %c0_30 = arith.constant 0 : index
    %25 = vector.load %arg4[%c2, %c0_29, %c0_30] : memref<16x17x128xf32, #tpu.memory_space<vmem>>, vector<10x11x128xf32>
    %c0_31 = arith.constant 0 : index
    %c2_32 = arith.constant 2 : index
    %c0_33 = arith.constant 0 : index
    %26 = vector.load %arg1[%c0_31, %c2_32, %c0_33] : memref<7x7x128xf32, #tpu.memory_space<vmem>>, vector<1x1x128xf32>
    %27 = vector.shape_cast %26 : vector<1x1x128xf32> to vector<128xf32>
    %28 = vector.shape_cast %27 : vector<128xf32> to vector<1x1x128xf32>
    %29 = vector.broadcast %28 : vector<1x1x128xf32> to vector<10x11x128xf32>
    %30 = arith.mulf %25, %29 : vector<10x11x128xf32>
    %31 = arith.addf %24, %30 : vector<10x11x128xf32>
    %c3 = arith.constant 3 : index
    %c0_34 = arith.constant 0 : index
    %c0_35 = arith.constant 0 : index
    %32 = vector.load %arg4[%c3, %c0_34, %c0_35] : memref<16x17x128xf32, #tpu.memory_space<vmem>>, vector<10x11x128xf32>
    %c0_36 = arith.constant 0 : index
    %c3_37 = arith.constant 3 : index
    %c0_38 = arith.constant 0 : index
    %33 = vector.load %arg1[%c0_36, %c3_37, %c0_38] : memref<7x7x128xf32, #tpu.memory_space<vmem>>, vector<1x1x128xf32>
    %34 = vector.shape_cast %33 : vector<1x1x128xf32> to vector<128xf32>
    %35 = vector.shape_cast %34 : vector<128xf32> to vector<1x1x128xf32>
    %36 = vector.broadcast %35 : vector<1x1x128xf32> to vector<10x11x128xf32>
    %37 = arith.mulf %32, %36 : vector<10x11x128xf32>
    %38 = arith.addf %31, %37 : vector<10x11x128xf32>
    %c4 = arith.constant 4 : index
    %c0_39 = arith.constant 0 : index
    %c0_40 = arith.constant 0 : index
    %39 = vector.load %arg4[%c4, %c0_39, %c0_40] : memref<16x17x128xf32, #tpu.memory_space<vmem>>, vector<10x11x128xf32>
    %c0_41 = arith.constant 0 : index
    %c4_42 = arith.constant 4 : index
    %c0_43 = arith.constant 0 : index
    %40 = vector.load %arg1[%c0_41, %c4_42, %c0_43] : memref<7x7x128xf32, #tpu.memory_space<vmem>>, vector<1x1x128xf32>
    %41 = vector.shape_cast %40 : vector<1x1x128xf32> to vector<128xf32>
    %42 = vector.shape_cast %41 : vector<128xf32> to vector<1x1x128xf32>
    %43 = vector.broadcast %42 : vector<1x1x128xf32> to vector<10x11x128xf32>
    %44 = arith.mulf %39, %43 : vector<10x11x128xf32>
    %45 = arith.addf %38, %44 : vector<10x11x128xf32>
    %c5 = arith.constant 5 : index
    %c0_44 = arith.constant 0 : index
    %c0_45 = arith.constant 0 : index
    %46 = vector.load %arg4[%c5, %c0_44, %c0_45] : memref<16x17x128xf32, #tpu.memory_space<vmem>>, vector<10x11x128xf32>
    %c0_46 = arith.constant 0 : index
    %c5_47 = arith.constant 5 : index
    %c0_48 = arith.constant 0 : index
    %47 = vector.load %arg1[%c0_46, %c5_47, %c0_48] : memref<7x7x128xf32, #tpu.memory_space<vmem>>, vector<1x1x128xf32>
    %48 = vector.shape_cast %47 : vector<1x1x128xf32> to vector<128xf32>
    %49 = vector.shape_cast %48 : vector<128xf32> to vector<1x1x128xf32>
    %50 = vector.broadcast %49 : vector<1x1x128xf32> to vector<10x11x128xf32>
    %51 = arith.mulf %46, %50 : vector<10x11x128xf32>
    %52 = arith.addf %45, %51 : vector<10x11x128xf32>
    %c6_49 = arith.constant 6 : index
    %c0_50 = arith.constant 0 : index
    %c0_51 = arith.constant 0 : index
    %53 = vector.load %arg4[%c6_49, %c0_50, %c0_51] : memref<16x17x128xf32, #tpu.memory_space<vmem>>, vector<10x11x128xf32>
    %c0_52 = arith.constant 0 : index
    %c6_53 = arith.constant 6 : index
    %c0_54 = arith.constant 0 : index
    %54 = vector.load %arg1[%c0_52, %c6_53, %c0_54] : memref<7x7x128xf32, #tpu.memory_space<vmem>>, vector<1x1x128xf32>
    %55 = vector.shape_cast %54 : vector<1x1x128xf32> to vector<128xf32>
    %56 = vector.shape_cast %55 : vector<128xf32> to vector<1x1x128xf32>
    %57 = vector.broadcast %56 : vector<1x1x128xf32> to vector<10x11x128xf32>
    %58 = arith.mulf %53, %57 : vector<10x11x128xf32>
    %59 = arith.addf %52, %58 : vector<10x11x128xf32>
    %c0_55 = arith.constant 0 : index
    %c1_56 = arith.constant 1 : index
    %c0_57 = arith.constant 0 : index
    %60 = vector.load %arg4[%c0_55, %c1_56, %c0_57] : memref<16x17x128xf32, #tpu.memory_space<vmem>>, vector<10x11x128xf32>
    %c1_58 = arith.constant 1 : index
    %c0_59 = arith.constant 0 : index
    %c0_60 = arith.constant 0 : index
    %61 = vector.load %arg1[%c1_58, %c0_59, %c0_60] : memref<7x7x128xf32, #tpu.memory_space<vmem>>, vector<1x1x128xf32>
    %62 = vector.shape_cast %61 : vector<1x1x128xf32> to vector<128xf32>
    %63 = vector.shape_cast %62 : vector<128xf32> to vector<1x1x128xf32>
    %64 = vector.broadcast %63 : vector<1x1x128xf32> to vector<10x11x128xf32>
    %65 = arith.mulf %60, %64 : vector<10x11x128xf32>
    %66 = arith.addf %59, %65 : vector<10x11x128xf32>
    %c1_61 = arith.constant 1 : index
    %c1_62 = arith.constant 1 : index
    %c0_63 = arith.constant 0 : index
    %67 = vector.load %arg4[%c1_61, %c1_62, %c0_63] : memref<16x17x128xf32, #tpu.memory_space<vmem>>, vector<10x11x128xf32>
    %c1_64 = arith.constant 1 : index
    %c1_65 = arith.constant 1 : index
    %c0_66 = arith.constant 0 : index
    %68 = vector.load %arg1[%c1_64, %c1_65, %c0_66] : memref<7x7x128xf32, #tpu.memory_space<vmem>>, vector<1x1x128xf32>
    %69 = vector.shape_cast %68 : vector<1x1x128xf32> to vector<128xf32>
    %70 = vector.shape_cast %69 : vector<128xf32> to vector<1x1x128xf32>
    %71 = vector.broadcast %70 : vector<1x1x128xf32> to vector<10x11x128xf32>
    %72 = arith.mulf %67, %71 : vector<10x11x128xf32>
    %73 = arith.addf %66, %72 : vector<10x11x128xf32>
    %c2_67 = arith.constant 2 : index
    %c1_68 = arith.constant 1 : index
    %c0_69 = arith.constant 0 : index
    %74 = vector.load %arg4[%c2_67, %c1_68, %c0_69] : memref<16x17x128xf32, #tpu.memory_space<vmem>>, vector<10x11x128xf32>
    %c1_70 = arith.constant 1 : index
    %c2_71 = arith.constant 2 : index
    %c0_72 = arith.constant 0 : index
    %75 = vector.load %arg1[%c1_70, %c2_71, %c0_72] : memref<7x7x128xf32, #tpu.memory_space<vmem>>, vector<1x1x128xf32>
    %76 = vector.shape_cast %75 : vector<1x1x128xf32> to vector<128xf32>
    %77 = vector.shape_cast %76 : vector<128xf32> to vector<1x1x128xf32>
    %78 = vector.broadcast %77 : vector<1x1x128xf32> to vector<10x11x128xf32>
    %79 = arith.mulf %74, %78 : vector<10x11x128xf32>
    %80 = arith.addf %73, %79 : vector<10x11x128xf32>
    %c3_73 = arith.constant 3 : index
    %c1_74 = arith.constant 1 : index
    %c0_75 = arith.constant 0 : index
    %81 = vector.load %arg4[%c3_73, %c1_74, %c0_75] : memref<16x17x128xf32, #tpu.memory_space<vmem>>, vector<10x11x128xf32>
    %c1_76 = arith.constant 1 : index
    %c3_77 = arith.constant 3 : index
    %c0_78 = arith.constant 0 : index
    %82 = vector.load %arg1[%c1_76, %c3_77, %c0_78] : memref<7x7x128xf32, #tpu.memory_space<vmem>>, vector<1x1x128xf32>
    %83 = vector.shape_cast %82 : vector<1x1x128xf32> to vector<128xf32>
    %84 = vector.shape_cast %83 : vector<128xf32> to vector<1x1x128xf32>
    %85 = vector.broadcast %84 : vector<1x1x128xf32> to vector<10x11x128xf32>
    %86 = arith.mulf %81, %85 : vector<10x11x128xf32>
    %87 = arith.addf %80, %86 : vector<10x11x128xf32>
    %c4_79 = arith.constant 4 : index
    %c1_80 = arith.constant 1 : index
    %c0_81 = arith.constant 0 : index
    %88 = vector.load %arg4[%c4_79, %c1_80, %c0_81] : memref<16x17x128xf32, #tpu.memory_space<vmem>>, vector<10x11x128xf32>
    %c1_82 = arith.constant 1 : index
    %c4_83 = arith.constant 4 : index
    %c0_84 = arith.constant 0 : index
    %89 = vector.load %arg1[%c1_82, %c4_83, %c0_84] : memref<7x7x128xf32, #tpu.memory_space<vmem>>, vector<1x1x128xf32>
    %90 = vector.shape_cast %89 : vector<1x1x128xf32> to vector<128xf32>
    %91 = vector.shape_cast %90 : vector<128xf32> to vector<1x1x128xf32>
    %92 = vector.broadcast %91 : vector<1x1x128xf32> to vector<10x11x128xf32>
    %93 = arith.mulf %88, %92 : vector<10x11x128xf32>
    %94 = arith.addf %87, %93 : vector<10x11x128xf32>
    %c5_85 = arith.constant 5 : index
    %c1_86 = arith.constant 1 : index
    %c0_87 = arith.constant 0 : index
    %95 = vector.load %arg4[%c5_85, %c1_86, %c0_87] : memref<16x17x128xf32, #tpu.memory_space<vmem>>, vector<10x11x128xf32>
    %c1_88 = arith.constant 1 : index
    %c5_89 = arith.constant 5 : index
    %c0_90 = arith.constant 0 : index
    %96 = vector.load %arg1[%c1_88, %c5_89, %c0_90] : memref<7x7x128xf32, #tpu.memory_space<vmem>>, vector<1x1x128xf32>
    %97 = vector.shape_cast %96 : vector<1x1x128xf32> to vector<128xf32>
    %98 = vector.shape_cast %97 : vector<128xf32> to vector<1x1x128xf32>
    %99 = vector.broadcast %98 : vector<1x1x128xf32> to vector<10x11x128xf32>
    %100 = arith.mulf %95, %99 : vector<10x11x128xf32>
    %101 = arith.addf %94, %100 : vector<10x11x128xf32>
    %c6_91 = arith.constant 6 : index
    %c1_92 = arith.constant 1 : index
    %c0_93 = arith.constant 0 : index
    %102 = vector.load %arg4[%c6_91, %c1_92, %c0_93] : memref<16x17x128xf32, #tpu.memory_space<vmem>>, vector<10x11x128xf32>
    %c1_94 = arith.constant 1 : index
    %c6_95 = arith.constant 6 : index
    %c0_96 = arith.constant 0 : index
    %103 = vector.load %arg1[%c1_94, %c6_95, %c0_96] : memref<7x7x128xf32, #tpu.memory_space<vmem>>, vector<1x1x128xf32>
    %104 = vector.shape_cast %103 : vector<1x1x128xf32> to vector<128xf32>
    %105 = vector.shape_cast %104 : vector<128xf32> to vector<1x1x128xf32>
    %106 = vector.broadcast %105 : vector<1x1x128xf32> to vector<10x11x128xf32>
    %107 = arith.mulf %102, %106 : vector<10x11x128xf32>
    %108 = arith.addf %101, %107 : vector<10x11x128xf32>
    %c0_97 = arith.constant 0 : index
    %c2_98 = arith.constant 2 : index
    %c0_99 = arith.constant 0 : index
    %109 = vector.load %arg4[%c0_97, %c2_98, %c0_99] : memref<16x17x128xf32, #tpu.memory_space<vmem>>, vector<10x11x128xf32>
    %c2_100 = arith.constant 2 : index
    %c0_101 = arith.constant 0 : index
    %c0_102 = arith.constant 0 : index
    %110 = vector.load %arg1[%c2_100, %c0_101, %c0_102] : memref<7x7x128xf32, #tpu.memory_space<vmem>>, vector<1x1x128xf32>
    %111 = vector.shape_cast %110 : vector<1x1x128xf32> to vector<128xf32>
    %112 = vector.shape_cast %111 : vector<128xf32> to vector<1x1x128xf32>
    %113 = vector.broadcast %112 : vector<1x1x128xf32> to vector<10x11x128xf32>
    %114 = arith.mulf %109, %113 : vector<10x11x128xf32>
    %115 = arith.addf %108, %114 : vector<10x11x128xf32>
    %c1_103 = arith.constant 1 : index
    %c2_104 = arith.constant 2 : index
    %c0_105 = arith.constant 0 : index
    %116 = vector.load %arg4[%c1_103, %c2_104, %c0_105] : memref<16x17x128xf32, #tpu.memory_space<vmem>>, vector<10x11x128xf32>
    %c2_106 = arith.constant 2 : index
    %c1_107 = arith.constant 1 : index
    %c0_108 = arith.constant 0 : index
    %117 = vector.load %arg1[%c2_106, %c1_107, %c0_108] : memref<7x7x128xf32, #tpu.memory_space<vmem>>, vector<1x1x128xf32>
    %118 = vector.shape_cast %117 : vector<1x1x128xf32> to vector<128xf32>
    %119 = vector.shape_cast %118 : vector<128xf32> to vector<1x1x128xf32>
    %120 = vector.broadcast %119 : vector<1x1x128xf32> to vector<10x11x128xf32>
    %121 = arith.mulf %116, %120 : vector<10x11x128xf32>
    %122 = arith.addf %115, %121 : vector<10x11x128xf32>
    %c2_109 = arith.constant 2 : index
    %c2_110 = arith.constant 2 : index
    %c0_111 = arith.constant 0 : index
    %123 = vector.load %arg4[%c2_109, %c2_110, %c0_111] : memref<16x17x128xf32, #tpu.memory_space<vmem>>, vector<10x11x128xf32>
    %c2_112 = arith.constant 2 : index
    %c2_113 = arith.constant 2 : index
    %c0_114 = arith.constant 0 : index
    %124 = vector.load %arg1[%c2_112, %c2_113, %c0_114] : memref<7x7x128xf32, #tpu.memory_space<vmem>>, vector<1x1x128xf32>
    %125 = vector.shape_cast %124 : vector<1x1x128xf32> to vector<128xf32>
    %126 = vector.shape_cast %125 : vector<128xf32> to vector<1x1x128xf32>
    %127 = vector.broadcast %126 : vector<1x1x128xf32> to vector<10x11x128xf32>
    %128 = arith.mulf %123, %127 : vector<10x11x128xf32>
    %129 = arith.addf %122, %128 : vector<10x11x128xf32>
    %c3_115 = arith.constant 3 : index
    %c2_116 = arith.constant 2 : index
    %c0_117 = arith.constant 0 : index
    %130 = vector.load %arg4[%c3_115, %c2_116, %c0_117] : memref<16x17x128xf32, #tpu.memory_space<vmem>>, vector<10x11x128xf32>
    %c2_118 = arith.constant 2 : index
    %c3_119 = arith.constant 3 : index
    %c0_120 = arith.constant 0 : index
    %131 = vector.load %arg1[%c2_118, %c3_119, %c0_120] : memref<7x7x128xf32, #tpu.memory_space<vmem>>, vector<1x1x128xf32>
    %132 = vector.shape_cast %131 : vector<1x1x128xf32> to vector<128xf32>
    %133 = vector.shape_cast %132 : vector<128xf32> to vector<1x1x128xf32>
    %134 = vector.broadcast %133 : vector<1x1x128xf32> to vector<10x11x128xf32>
    %135 = arith.mulf %130, %134 : vector<10x11x128xf32>
    %136 = arith.addf %129, %135 : vector<10x11x128xf32>
    %c4_121 = arith.constant 4 : index
    %c2_122 = arith.constant 2 : index
    %c0_123 = arith.constant 0 : index
    %137 = vector.load %arg4[%c4_121, %c2_122, %c0_123] : memref<16x17x128xf32, #tpu.memory_space<vmem>>, vector<10x11x128xf32>
    %c2_124 = arith.constant 2 : index
    %c4_125 = arith.constant 4 : index
    %c0_126 = arith.constant 0 : index
    %138 = vector.load %arg1[%c2_124, %c4_125, %c0_126] : memref<7x7x128xf32, #tpu.memory_space<vmem>>, vector<1x1x128xf32>
    %139 = vector.shape_cast %138 : vector<1x1x128xf32> to vector<128xf32>
    %140 = vector.shape_cast %139 : vector<128xf32> to vector<1x1x128xf32>
    %141 = vector.broadcast %140 : vector<1x1x128xf32> to vector<10x11x128xf32>
    %142 = arith.mulf %137, %141 : vector<10x11x128xf32>
    %143 = arith.addf %136, %142 : vector<10x11x128xf32>
    %c5_127 = arith.constant 5 : index
    %c2_128 = arith.constant 2 : index
    %c0_129 = arith.constant 0 : index
    %144 = vector.load %arg4[%c5_127, %c2_128, %c0_129] : memref<16x17x128xf32, #tpu.memory_space<vmem>>, vector<10x11x128xf32>
    %c2_130 = arith.constant 2 : index
    %c5_131 = arith.constant 5 : index
    %c0_132 = arith.constant 0 : index
    %145 = vector.load %arg1[%c2_130, %c5_131, %c0_132] : memref<7x7x128xf32, #tpu.memory_space<vmem>>, vector<1x1x128xf32>
    %146 = vector.shape_cast %145 : vector<1x1x128xf32> to vector<128xf32>
    %147 = vector.shape_cast %146 : vector<128xf32> to vector<1x1x128xf32>
    %148 = vector.broadcast %147 : vector<1x1x128xf32> to vector<10x11x128xf32>
    %149 = arith.mulf %144, %148 : vector<10x11x128xf32>
    %150 = arith.addf %143, %149 : vector<10x11x128xf32>
    %c6_133 = arith.constant 6 : index
    %c2_134 = arith.constant 2 : index
    %c0_135 = arith.constant 0 : index
    %151 = vector.load %arg4[%c6_133, %c2_134, %c0_135] : memref<16x17x128xf32, #tpu.memory_space<vmem>>, vector<10x11x128xf32>
    %c2_136 = arith.constant 2 : index
    %c6_137 = arith.constant 6 : index
    %c0_138 = arith.constant 0 : index
    %152 = vector.load %arg1[%c2_136, %c6_137, %c0_138] : memref<7x7x128xf32, #tpu.memory_space<vmem>>, vector<1x1x128xf32>
    %153 = vector.shape_cast %152 : vector<1x1x128xf32> to vector<128xf32>
    %154 = vector.shape_cast %153 : vector<128xf32> to vector<1x1x128xf32>
    %155 = vector.broadcast %154 : vector<1x1x128xf32> to vector<10x11x128xf32>
    %156 = arith.mulf %151, %155 : vector<10x11x128xf32>
    %157 = arith.addf %150, %156 : vector<10x11x128xf32>
    %c0_139 = arith.constant 0 : index
    %c3_140 = arith.constant 3 : index
    %c0_141 = arith.constant 0 : index
    %158 = vector.load %arg4[%c0_139, %c3_140, %c0_141] : memref<16x17x128xf32, #tpu.memory_space<vmem>>, vector<10x11x128xf32>
    %c3_142 = arith.constant 3 : index
    %c0_143 = arith.constant 0 : index
    %c0_144 = arith.constant 0 : index
    %159 = vector.load %arg1[%c3_142, %c0_143, %c0_144] : memref<7x7x128xf32, #tpu.memory_space<vmem>>, vector<1x1x128xf32>
    %160 = vector.shape_cast %159 : vector<1x1x128xf32> to vector<128xf32>
    %161 = vector.shape_cast %160 : vector<128xf32> to vector<1x1x128xf32>
    %162 = vector.broadcast %161 : vector<1x1x128xf32> to vector<10x11x128xf32>
    %163 = arith.mulf %158, %162 : vector<10x11x128xf32>
    %164 = arith.addf %157, %163 : vector<10x11x128xf32>
    %c1_145 = arith.constant 1 : index
    %c3_146 = arith.constant 3 : index
    %c0_147 = arith.constant 0 : index
    %165 = vector.load %arg4[%c1_145, %c3_146, %c0_147] : memref<16x17x128xf32, #tpu.memory_space<vmem>>, vector<10x11x128xf32>
    %c3_148 = arith.constant 3 : index
    %c1_149 = arith.constant 1 : index
    %c0_150 = arith.constant 0 : index
    %166 = vector.load %arg1[%c3_148, %c1_149, %c0_150] : memref<7x7x128xf32, #tpu.memory_space<vmem>>, vector<1x1x128xf32>
    %167 = vector.shape_cast %166 : vector<1x1x128xf32> to vector<128xf32>
    %168 = vector.shape_cast %167 : vector<128xf32> to vector<1x1x128xf32>
    %169 = vector.broadcast %168 : vector<1x1x128xf32> to vector<10x11x128xf32>
    %170 = arith.mulf %165, %169 : vector<10x11x128xf32>
    %171 = arith.addf %164, %170 : vector<10x11x128xf32>
    %c2_151 = arith.constant 2 : index
    %c3_152 = arith.constant 3 : index
    %c0_153 = arith.constant 0 : index
    %172 = vector.load %arg4[%c2_151, %c3_152, %c0_153] : memref<16x17x128xf32, #tpu.memory_space<vmem>>, vector<10x11x128xf32>
    %c3_154 = arith.constant 3 : index
    %c2_155 = arith.constant 2 : index
    %c0_156 = arith.constant 0 : index
    %173 = vector.load %arg1[%c3_154, %c2_155, %c0_156] : memref<7x7x128xf32, #tpu.memory_space<vmem>>, vector<1x1x128xf32>
    %174 = vector.shape_cast %173 : vector<1x1x128xf32> to vector<128xf32>
    %175 = vector.shape_cast %174 : vector<128xf32> to vector<1x1x128xf32>
    %176 = vector.broadcast %175 : vector<1x1x128xf32> to vector<10x11x128xf32>
    %177 = arith.mulf %172, %176 : vector<10x11x128xf32>
    %178 = arith.addf %171, %177 : vector<10x11x128xf32>
    %c3_157 = arith.constant 3 : index
    %c3_158 = arith.constant 3 : index
    %c0_159 = arith.constant 0 : index
    %179 = vector.load %arg4[%c3_157, %c3_158, %c0_159] : memref<16x17x128xf32, #tpu.memory_space<vmem>>, vector<10x11x128xf32>
    %c3_160 = arith.constant 3 : index
    %c3_161 = arith.constant 3 : index
    %c0_162 = arith.constant 0 : index
    %180 = vector.load %arg1[%c3_160, %c3_161, %c0_162] : memref<7x7x128xf32, #tpu.memory_space<vmem>>, vector<1x1x128xf32>
    %181 = vector.shape_cast %180 : vector<1x1x128xf32> to vector<128xf32>
    %182 = vector.shape_cast %181 : vector<128xf32> to vector<1x1x128xf32>
    %183 = vector.broadcast %182 : vector<1x1x128xf32> to vector<10x11x128xf32>
    %184 = arith.mulf %179, %183 : vector<10x11x128xf32>
    %185 = arith.addf %178, %184 : vector<10x11x128xf32>
    %c4_163 = arith.constant 4 : index
    %c3_164 = arith.constant 3 : index
    %c0_165 = arith.constant 0 : index
    %186 = vector.load %arg4[%c4_163, %c3_164, %c0_165] : memref<16x17x128xf32, #tpu.memory_space<vmem>>, vector<10x11x128xf32>
    %c3_166 = arith.constant 3 : index
    %c4_167 = arith.constant 4 : index
    %c0_168 = arith.constant 0 : index
    %187 = vector.load %arg1[%c3_166, %c4_167, %c0_168] : memref<7x7x128xf32, #tpu.memory_space<vmem>>, vector<1x1x128xf32>
    %188 = vector.shape_cast %187 : vector<1x1x128xf32> to vector<128xf32>
    %189 = vector.shape_cast %188 : vector<128xf32> to vector<1x1x128xf32>
    %190 = vector.broadcast %189 : vector<1x1x128xf32> to vector<10x11x128xf32>
    %191 = arith.mulf %186, %190 : vector<10x11x128xf32>
    %192 = arith.addf %185, %191 : vector<10x11x128xf32>
    %c5_169 = arith.constant 5 : index
    %c3_170 = arith.constant 3 : index
    %c0_171 = arith.constant 0 : index
    %193 = vector.load %arg4[%c5_169, %c3_170, %c0_171] : memref<16x17x128xf32, #tpu.memory_space<vmem>>, vector<10x11x128xf32>
    %c3_172 = arith.constant 3 : index
    %c5_173 = arith.constant 5 : index
    %c0_174 = arith.constant 0 : index
    %194 = vector.load %arg1[%c3_172, %c5_173, %c0_174] : memref<7x7x128xf32, #tpu.memory_space<vmem>>, vector<1x1x128xf32>
    %195 = vector.shape_cast %194 : vector<1x1x128xf32> to vector<128xf32>
    %196 = vector.shape_cast %195 : vector<128xf32> to vector<1x1x128xf32>
    %197 = vector.broadcast %196 : vector<1x1x128xf32> to vector<10x11x128xf32>
    %198 = arith.mulf %193, %197 : vector<10x11x128xf32>
    %199 = arith.addf %192, %198 : vector<10x11x128xf32>
    %c6_175 = arith.constant 6 : index
    %c3_176 = arith.constant 3 : index
    %c0_177 = arith.constant 0 : index
    %200 = vector.load %arg4[%c6_175, %c3_176, %c0_177] : memref<16x17x128xf32, #tpu.memory_space<vmem>>, vector<10x11x128xf32>
    %c3_178 = arith.constant 3 : index
    %c6_179 = arith.constant 6 : index
    %c0_180 = arith.constant 0 : index
    %201 = vector.load %arg1[%c3_178, %c6_179, %c0_180] : memref<7x7x128xf32, #tpu.memory_space<vmem>>, vector<1x1x128xf32>
    %202 = vector.shape_cast %201 : vector<1x1x128xf32> to vector<128xf32>
    %203 = vector.shape_cast %202 : vector<128xf32> to vector<1x1x128xf32>
    %204 = vector.broadcast %203 : vector<1x1x128xf32> to vector<10x11x128xf32>
    %205 = arith.mulf %200, %204 : vector<10x11x128xf32>
    %206 = arith.addf %199, %205 : vector<10x11x128xf32>
    %c0_181 = arith.constant 0 : index
    %c4_182 = arith.constant 4 : index
    %c0_183 = arith.constant 0 : index
    %207 = vector.load %arg4[%c0_181, %c4_182, %c0_183] : memref<16x17x128xf32, #tpu.memory_space<vmem>>, vector<10x11x128xf32>
    %c4_184 = arith.constant 4 : index
    %c0_185 = arith.constant 0 : index
    %c0_186 = arith.constant 0 : index
    %208 = vector.load %arg1[%c4_184, %c0_185, %c0_186] : memref<7x7x128xf32, #tpu.memory_space<vmem>>, vector<1x1x128xf32>
    %209 = vector.shape_cast %208 : vector<1x1x128xf32> to vector<128xf32>
    %210 = vector.shape_cast %209 : vector<128xf32> to vector<1x1x128xf32>
    %211 = vector.broadcast %210 : vector<1x1x128xf32> to vector<10x11x128xf32>
    %212 = arith.mulf %207, %211 : vector<10x11x128xf32>
    %213 = arith.addf %206, %212 : vector<10x11x128xf32>
    %c1_187 = arith.constant 1 : index
    %c4_188 = arith.constant 4 : index
    %c0_189 = arith.constant 0 : index
    %214 = vector.load %arg4[%c1_187, %c4_188, %c0_189] : memref<16x17x128xf32, #tpu.memory_space<vmem>>, vector<10x11x128xf32>
    %c4_190 = arith.constant 4 : index
    %c1_191 = arith.constant 1 : index
    %c0_192 = arith.constant 0 : index
    %215 = vector.load %arg1[%c4_190, %c1_191, %c0_192] : memref<7x7x128xf32, #tpu.memory_space<vmem>>, vector<1x1x128xf32>
    %216 = vector.shape_cast %215 : vector<1x1x128xf32> to vector<128xf32>
    %217 = vector.shape_cast %216 : vector<128xf32> to vector<1x1x128xf32>
    %218 = vector.broadcast %217 : vector<1x1x128xf32> to vector<10x11x128xf32>
    %219 = arith.mulf %214, %218 : vector<10x11x128xf32>
    %220 = arith.addf %213, %219 : vector<10x11x128xf32>
    %c2_193 = arith.constant 2 : index
    %c4_194 = arith.constant 4 : index
    %c0_195 = arith.constant 0 : index
    %221 = vector.load %arg4[%c2_193, %c4_194, %c0_195] : memref<16x17x128xf32, #tpu.memory_space<vmem>>, vector<10x11x128xf32>
    %c4_196 = arith.constant 4 : index
    %c2_197 = arith.constant 2 : index
    %c0_198 = arith.constant 0 : index
    %222 = vector.load %arg1[%c4_196, %c2_197, %c0_198] : memref<7x7x128xf32, #tpu.memory_space<vmem>>, vector<1x1x128xf32>
    %223 = vector.shape_cast %222 : vector<1x1x128xf32> to vector<128xf32>
    %224 = vector.shape_cast %223 : vector<128xf32> to vector<1x1x128xf32>
    %225 = vector.broadcast %224 : vector<1x1x128xf32> to vector<10x11x128xf32>
    %226 = arith.mulf %221, %225 : vector<10x11x128xf32>
    %227 = arith.addf %220, %226 : vector<10x11x128xf32>
    %c3_199 = arith.constant 3 : index
    %c4_200 = arith.constant 4 : index
    %c0_201 = arith.constant 0 : index
    %228 = vector.load %arg4[%c3_199, %c4_200, %c0_201] : memref<16x17x128xf32, #tpu.memory_space<vmem>>, vector<10x11x128xf32>
    %c4_202 = arith.constant 4 : index
    %c3_203 = arith.constant 3 : index
    %c0_204 = arith.constant 0 : index
    %229 = vector.load %arg1[%c4_202, %c3_203, %c0_204] : memref<7x7x128xf32, #tpu.memory_space<vmem>>, vector<1x1x128xf32>
    %230 = vector.shape_cast %229 : vector<1x1x128xf32> to vector<128xf32>
    %231 = vector.shape_cast %230 : vector<128xf32> to vector<1x1x128xf32>
    %232 = vector.broadcast %231 : vector<1x1x128xf32> to vector<10x11x128xf32>
    %233 = arith.mulf %228, %232 : vector<10x11x128xf32>
    %234 = arith.addf %227, %233 : vector<10x11x128xf32>
    %c4_205 = arith.constant 4 : index
    %c4_206 = arith.constant 4 : index
    %c0_207 = arith.constant 0 : index
    %235 = vector.load %arg4[%c4_205, %c4_206, %c0_207] : memref<16x17x128xf32, #tpu.memory_space<vmem>>, vector<10x11x128xf32>
    %c4_208 = arith.constant 4 : index
    %c4_209 = arith.constant 4 : index
    %c0_210 = arith.constant 0 : index
    %236 = vector.load %arg1[%c4_208, %c4_209, %c0_210] : memref<7x7x128xf32, #tpu.memory_space<vmem>>, vector<1x1x128xf32>
    %237 = vector.shape_cast %236 : vector<1x1x128xf32> to vector<128xf32>
    %238 = vector.shape_cast %237 : vector<128xf32> to vector<1x1x128xf32>
    %239 = vector.broadcast %238 : vector<1x1x128xf32> to vector<10x11x128xf32>
    %240 = arith.mulf %235, %239 : vector<10x11x128xf32>
    %241 = arith.addf %234, %240 : vector<10x11x128xf32>
    %c5_211 = arith.constant 5 : index
    %c4_212 = arith.constant 4 : index
    %c0_213 = arith.constant 0 : index
    %242 = vector.load %arg4[%c5_211, %c4_212, %c0_213] : memref<16x17x128xf32, #tpu.memory_space<vmem>>, vector<10x11x128xf32>
    %c4_214 = arith.constant 4 : index
    %c5_215 = arith.constant 5 : index
    %c0_216 = arith.constant 0 : index
    %243 = vector.load %arg1[%c4_214, %c5_215, %c0_216] : memref<7x7x128xf32, #tpu.memory_space<vmem>>, vector<1x1x128xf32>
    %244 = vector.shape_cast %243 : vector<1x1x128xf32> to vector<128xf32>
    %245 = vector.shape_cast %244 : vector<128xf32> to vector<1x1x128xf32>
    %246 = vector.broadcast %245 : vector<1x1x128xf32> to vector<10x11x128xf32>
    %247 = arith.mulf %242, %246 : vector<10x11x128xf32>
    %248 = arith.addf %241, %247 : vector<10x11x128xf32>
    %c6_217 = arith.constant 6 : index
    %c4_218 = arith.constant 4 : index
    %c0_219 = arith.constant 0 : index
    %249 = vector.load %arg4[%c6_217, %c4_218, %c0_219] : memref<16x17x128xf32, #tpu.memory_space<vmem>>, vector<10x11x128xf32>
    %c4_220 = arith.constant 4 : index
    %c6_221 = arith.constant 6 : index
    %c0_222 = arith.constant 0 : index
    %250 = vector.load %arg1[%c4_220, %c6_221, %c0_222] : memref<7x7x128xf32, #tpu.memory_space<vmem>>, vector<1x1x128xf32>
    %251 = vector.shape_cast %250 : vector<1x1x128xf32> to vector<128xf32>
    %252 = vector.shape_cast %251 : vector<128xf32> to vector<1x1x128xf32>
    %253 = vector.broadcast %252 : vector<1x1x128xf32> to vector<10x11x128xf32>
    %254 = arith.mulf %249, %253 : vector<10x11x128xf32>
    %255 = arith.addf %248, %254 : vector<10x11x128xf32>
    %c0_223 = arith.constant 0 : index
    %c5_224 = arith.constant 5 : index
    %c0_225 = arith.constant 0 : index
    %256 = vector.load %arg4[%c0_223, %c5_224, %c0_225] : memref<16x17x128xf32, #tpu.memory_space<vmem>>, vector<10x11x128xf32>
    %c5_226 = arith.constant 5 : index
    %c0_227 = arith.constant 0 : index
    %c0_228 = arith.constant 0 : index
    %257 = vector.load %arg1[%c5_226, %c0_227, %c0_228] : memref<7x7x128xf32, #tpu.memory_space<vmem>>, vector<1x1x128xf32>
    %258 = vector.shape_cast %257 : vector<1x1x128xf32> to vector<128xf32>
    %259 = vector.shape_cast %258 : vector<128xf32> to vector<1x1x128xf32>
    %260 = vector.broadcast %259 : vector<1x1x128xf32> to vector<10x11x128xf32>
    %261 = arith.mulf %256, %260 : vector<10x11x128xf32>
    %262 = arith.addf %255, %261 : vector<10x11x128xf32>
    %c1_229 = arith.constant 1 : index
    %c5_230 = arith.constant 5 : index
    %c0_231 = arith.constant 0 : index
    %263 = vector.load %arg4[%c1_229, %c5_230, %c0_231] : memref<16x17x128xf32, #tpu.memory_space<vmem>>, vector<10x11x128xf32>
    %c5_232 = arith.constant 5 : index
    %c1_233 = arith.constant 1 : index
    %c0_234 = arith.constant 0 : index
    %264 = vector.load %arg1[%c5_232, %c1_233, %c0_234] : memref<7x7x128xf32, #tpu.memory_space<vmem>>, vector<1x1x128xf32>
    %265 = vector.shape_cast %264 : vector<1x1x128xf32> to vector<128xf32>
    %266 = vector.shape_cast %265 : vector<128xf32> to vector<1x1x128xf32>
    %267 = vector.broadcast %266 : vector<1x1x128xf32> to vector<10x11x128xf32>
    %268 = arith.mulf %263, %267 : vector<10x11x128xf32>
    %269 = arith.addf %262, %268 : vector<10x11x128xf32>
    %c2_235 = arith.constant 2 : index
    %c5_236 = arith.constant 5 : index
    %c0_237 = arith.constant 0 : index
    %270 = vector.load %arg4[%c2_235, %c5_236, %c0_237] : memref<16x17x128xf32, #tpu.memory_space<vmem>>, vector<10x11x128xf32>
    %c5_238 = arith.constant 5 : index
    %c2_239 = arith.constant 2 : index
    %c0_240 = arith.constant 0 : index
    %271 = vector.load %arg1[%c5_238, %c2_239, %c0_240] : memref<7x7x128xf32, #tpu.memory_space<vmem>>, vector<1x1x128xf32>
    %272 = vector.shape_cast %271 : vector<1x1x128xf32> to vector<128xf32>
    %273 = vector.shape_cast %272 : vector<128xf32> to vector<1x1x128xf32>
    %274 = vector.broadcast %273 : vector<1x1x128xf32> to vector<10x11x128xf32>
    %275 = arith.mulf %270, %274 : vector<10x11x128xf32>
    %276 = arith.addf %269, %275 : vector<10x11x128xf32>
    %c3_241 = arith.constant 3 : index
    %c5_242 = arith.constant 5 : index
    %c0_243 = arith.constant 0 : index
    %277 = vector.load %arg4[%c3_241, %c5_242, %c0_243] : memref<16x17x128xf32, #tpu.memory_space<vmem>>, vector<10x11x128xf32>
    %c5_244 = arith.constant 5 : index
    %c3_245 = arith.constant 3 : index
    %c0_246 = arith.constant 0 : index
    %278 = vector.load %arg1[%c5_244, %c3_245, %c0_246] : memref<7x7x128xf32, #tpu.memory_space<vmem>>, vector<1x1x128xf32>
    %279 = vector.shape_cast %278 : vector<1x1x128xf32> to vector<128xf32>
    %280 = vector.shape_cast %279 : vector<128xf32> to vector<1x1x128xf32>
    %281 = vector.broadcast %280 : vector<1x1x128xf32> to vector<10x11x128xf32>
    %282 = arith.mulf %277, %281 : vector<10x11x128xf32>
    %283 = arith.addf %276, %282 : vector<10x11x128xf32>
    %c4_247 = arith.constant 4 : index
    %c5_248 = arith.constant 5 : index
    %c0_249 = arith.constant 0 : index
    %284 = vector.load %arg4[%c4_247, %c5_248, %c0_249] : memref<16x17x128xf32, #tpu.memory_space<vmem>>, vector<10x11x128xf32>
    %c5_250 = arith.constant 5 : index
    %c4_251 = arith.constant 4 : index
    %c0_252 = arith.constant 0 : index
    %285 = vector.load %arg1[%c5_250, %c4_251, %c0_252] : memref<7x7x128xf32, #tpu.memory_space<vmem>>, vector<1x1x128xf32>
    %286 = vector.shape_cast %285 : vector<1x1x128xf32> to vector<128xf32>
    %287 = vector.shape_cast %286 : vector<128xf32> to vector<1x1x128xf32>
    %288 = vector.broadcast %287 : vector<1x1x128xf32> to vector<10x11x128xf32>
    %289 = arith.mulf %284, %288 : vector<10x11x128xf32>
    %290 = arith.addf %283, %289 : vector<10x11x128xf32>
    %c5_253 = arith.constant 5 : index
    %c5_254 = arith.constant 5 : index
    %c0_255 = arith.constant 0 : index
    %291 = vector.load %arg4[%c5_253, %c5_254, %c0_255] : memref<16x17x128xf32, #tpu.memory_space<vmem>>, vector<10x11x128xf32>
    %c5_256 = arith.constant 5 : index
    %c5_257 = arith.constant 5 : index
    %c0_258 = arith.constant 0 : index
    %292 = vector.load %arg1[%c5_256, %c5_257, %c0_258] : memref<7x7x128xf32, #tpu.memory_space<vmem>>, vector<1x1x128xf32>
    %293 = vector.shape_cast %292 : vector<1x1x128xf32> to vector<128xf32>
    %294 = vector.shape_cast %293 : vector<128xf32> to vector<1x1x128xf32>
    %295 = vector.broadcast %294 : vector<1x1x128xf32> to vector<10x11x128xf32>
    %296 = arith.mulf %291, %295 : vector<10x11x128xf32>
    %297 = arith.addf %290, %296 : vector<10x11x128xf32>
    %c6_259 = arith.constant 6 : index
    %c5_260 = arith.constant 5 : index
    %c0_261 = arith.constant 0 : index
    %298 = vector.load %arg4[%c6_259, %c5_260, %c0_261] : memref<16x17x128xf32, #tpu.memory_space<vmem>>, vector<10x11x128xf32>
    %c5_262 = arith.constant 5 : index
    %c6_263 = arith.constant 6 : index
    %c0_264 = arith.constant 0 : index
    %299 = vector.load %arg1[%c5_262, %c6_263, %c0_264] : memref<7x7x128xf32, #tpu.memory_space<vmem>>, vector<1x1x128xf32>
    %300 = vector.shape_cast %299 : vector<1x1x128xf32> to vector<128xf32>
    %301 = vector.shape_cast %300 : vector<128xf32> to vector<1x1x128xf32>
    %302 = vector.broadcast %301 : vector<1x1x128xf32> to vector<10x11x128xf32>
    %303 = arith.mulf %298, %302 : vector<10x11x128xf32>
    %304 = arith.addf %297, %303 : vector<10x11x128xf32>
    %c0_265 = arith.constant 0 : index
    %c6_266 = arith.constant 6 : index
    %c0_267 = arith.constant 0 : index
    %305 = vector.load %arg4[%c0_265, %c6_266, %c0_267] : memref<16x17x128xf32, #tpu.memory_space<vmem>>, vector<10x11x128xf32>
    %c6_268 = arith.constant 6 : index
    %c0_269 = arith.constant 0 : index
    %c0_270 = arith.constant 0 : index
    %306 = vector.load %arg1[%c6_268, %c0_269, %c0_270] : memref<7x7x128xf32, #tpu.memory_space<vmem>>, vector<1x1x128xf32>
    %307 = vector.shape_cast %306 : vector<1x1x128xf32> to vector<128xf32>
    %308 = vector.shape_cast %307 : vector<128xf32> to vector<1x1x128xf32>
    %309 = vector.broadcast %308 : vector<1x1x128xf32> to vector<10x11x128xf32>
    %310 = arith.mulf %305, %309 : vector<10x11x128xf32>
    %311 = arith.addf %304, %310 : vector<10x11x128xf32>
    %c1_271 = arith.constant 1 : index
    %c6_272 = arith.constant 6 : index
    %c0_273 = arith.constant 0 : index
    %312 = vector.load %arg4[%c1_271, %c6_272, %c0_273] : memref<16x17x128xf32, #tpu.memory_space<vmem>>, vector<10x11x128xf32>
    %c6_274 = arith.constant 6 : index
    %c1_275 = arith.constant 1 : index
    %c0_276 = arith.constant 0 : index
    %313 = vector.load %arg1[%c6_274, %c1_275, %c0_276] : memref<7x7x128xf32, #tpu.memory_space<vmem>>, vector<1x1x128xf32>
    %314 = vector.shape_cast %313 : vector<1x1x128xf32> to vector<128xf32>
    %315 = vector.shape_cast %314 : vector<128xf32> to vector<1x1x128xf32>
    %316 = vector.broadcast %315 : vector<1x1x128xf32> to vector<10x11x128xf32>
    %317 = arith.mulf %312, %316 : vector<10x11x128xf32>
    %318 = arith.addf %311, %317 : vector<10x11x128xf32>
    %c2_277 = arith.constant 2 : index
    %c6_278 = arith.constant 6 : index
    %c0_279 = arith.constant 0 : index
    %319 = vector.load %arg4[%c2_277, %c6_278, %c0_279] : memref<16x17x128xf32, #tpu.memory_space<vmem>>, vector<10x11x128xf32>
    %c6_280 = arith.constant 6 : index
    %c2_281 = arith.constant 2 : index
    %c0_282 = arith.constant 0 : index
    %320 = vector.load %arg1[%c6_280, %c2_281, %c0_282] : memref<7x7x128xf32, #tpu.memory_space<vmem>>, vector<1x1x128xf32>
    %321 = vector.shape_cast %320 : vector<1x1x128xf32> to vector<128xf32>
    %322 = vector.shape_cast %321 : vector<128xf32> to vector<1x1x128xf32>
    %323 = vector.broadcast %322 : vector<1x1x128xf32> to vector<10x11x128xf32>
    %324 = arith.mulf %319, %323 : vector<10x11x128xf32>
    %325 = arith.addf %318, %324 : vector<10x11x128xf32>
    %c3_283 = arith.constant 3 : index
    %c6_284 = arith.constant 6 : index
    %c0_285 = arith.constant 0 : index
    %326 = vector.load %arg4[%c3_283, %c6_284, %c0_285] : memref<16x17x128xf32, #tpu.memory_space<vmem>>, vector<10x11x128xf32>
    %c6_286 = arith.constant 6 : index
    %c3_287 = arith.constant 3 : index
    %c0_288 = arith.constant 0 : index
    %327 = vector.load %arg1[%c6_286, %c3_287, %c0_288] : memref<7x7x128xf32, #tpu.memory_space<vmem>>, vector<1x1x128xf32>
    %328 = vector.shape_cast %327 : vector<1x1x128xf32> to vector<128xf32>
    %329 = vector.shape_cast %328 : vector<128xf32> to vector<1x1x128xf32>
    %330 = vector.broadcast %329 : vector<1x1x128xf32> to vector<10x11x128xf32>
    %331 = arith.mulf %326, %330 : vector<10x11x128xf32>
    %332 = arith.addf %325, %331 : vector<10x11x128xf32>
    %c4_289 = arith.constant 4 : index
    %c6_290 = arith.constant 6 : index
    %c0_291 = arith.constant 0 : index
    %333 = vector.load %arg4[%c4_289, %c6_290, %c0_291] : memref<16x17x128xf32, #tpu.memory_space<vmem>>, vector<10x11x128xf32>
    %c6_292 = arith.constant 6 : index
    %c4_293 = arith.constant 4 : index
    %c0_294 = arith.constant 0 : index
    %334 = vector.load %arg1[%c6_292, %c4_293, %c0_294] : memref<7x7x128xf32, #tpu.memory_space<vmem>>, vector<1x1x128xf32>
    %335 = vector.shape_cast %334 : vector<1x1x128xf32> to vector<128xf32>
    %336 = vector.shape_cast %335 : vector<128xf32> to vector<1x1x128xf32>
    %337 = vector.broadcast %336 : vector<1x1x128xf32> to vector<10x11x128xf32>
    %338 = arith.mulf %333, %337 : vector<10x11x128xf32>
    %339 = arith.addf %332, %338 : vector<10x11x128xf32>
    %c5_295 = arith.constant 5 : index
    %c6_296 = arith.constant 6 : index
    %c0_297 = arith.constant 0 : index
    %340 = vector.load %arg4[%c5_295, %c6_296, %c0_297] : memref<16x17x128xf32, #tpu.memory_space<vmem>>, vector<10x11x128xf32>
    %c6_298 = arith.constant 6 : index
    %c5_299 = arith.constant 5 : index
    %c0_300 = arith.constant 0 : index
    %341 = vector.load %arg1[%c6_298, %c5_299, %c0_300] : memref<7x7x128xf32, #tpu.memory_space<vmem>>, vector<1x1x128xf32>
    %342 = vector.shape_cast %341 : vector<1x1x128xf32> to vector<128xf32>
    %343 = vector.shape_cast %342 : vector<128xf32> to vector<1x1x128xf32>
    %344 = vector.broadcast %343 : vector<1x1x128xf32> to vector<10x11x128xf32>
    %345 = arith.mulf %340, %344 : vector<10x11x128xf32>
    %346 = arith.addf %339, %345 : vector<10x11x128xf32>
    %c6_301 = arith.constant 6 : index
    %c6_302 = arith.constant 6 : index
    %c0_303 = arith.constant 0 : index
    %347 = vector.load %arg4[%c6_301, %c6_302, %c0_303] : memref<16x17x128xf32, #tpu.memory_space<vmem>>, vector<10x11x128xf32>
    %c6_304 = arith.constant 6 : index
    %c6_305 = arith.constant 6 : index
    %c0_306 = arith.constant 0 : index
    %348 = vector.load %arg1[%c6_304, %c6_305, %c0_306] : memref<7x7x128xf32, #tpu.memory_space<vmem>>, vector<1x1x128xf32>
    %349 = vector.shape_cast %348 : vector<1x1x128xf32> to vector<128xf32>
    %350 = vector.shape_cast %349 : vector<128xf32> to vector<1x1x128xf32>
    %351 = vector.broadcast %350 : vector<1x1x128xf32> to vector<10x11x128xf32>
    %352 = arith.mulf %347, %351 : vector<10x11x128xf32>
    %353 = arith.addf %346, %352 : vector<10x11x128xf32>
    %c0_307 = arith.constant 0 : index
    %354 = memref.load %arg2[%c0_307] : memref<1xf32, #tpu.memory_space<smem>>
    %355 = vector.extract_strided_slice %353 {offsets = [0, 0, 0], sizes = [10, 11, 64], strides = [1, 1, 1]} : vector<10x11x128xf32> to vector<10x11x64xf32>
    %cst_308 = arith.constant dense<0.000000e+00> : vector<10x11xf32>
    %356 = vector.multi_reduction <add>, %355, %cst_308 [2] : vector<10x11x64xf32> to vector<10x11xf32>
    %357 = vector.broadcast %354 : f32 to vector<10x11xf32>
    %358 = arith.addf %356, %357 : vector<10x11xf32>
    %c0_309 = arith.constant 0 : index
    %c0_310 = arith.constant 0 : index
    %c0_311 = arith.constant 0 : index
    %c0_312 = arith.constant 0 : index
    %359 = vector.load %arg3[%c0_309, %c0_310, %c0_311, %c0_312] : memref<2x1x10x11xf32, #tpu.memory_space<vmem>>, vector<1x1x10x11xf32>
    %360 = vector.shape_cast %359 : vector<1x1x10x11xf32> to vector<10x11xf32>
    %361 = vector.shape_cast %358 : vector<10x11xf32> to vector<1x1x10x11xf32>
    tpu.vector_store %arg3[%c0_309, %c0_310, %c0_311, %c0_312], %361 {strides = array<i32>} : memref<2x1x10x11xf32, #tpu.memory_space<vmem>>, vector<1x1x10x11xf32>,
    %362 = vector.extract_strided_slice %353 {offsets = [0, 0, 64], sizes = [10, 11, 64], strides = [1, 1, 1]} : vector<10x11x128xf32> to vector<10x11x64xf32>
    %cst_313 = arith.constant dense<0.000000e+00> : vector<10x11xf32>
    %363 = vector.multi_reduction <add>, %362, %cst_313 [2] : vector<10x11x64xf32> to vector<10x11xf32>
    %364 = vector.broadcast %354 : f32 to vector<10x11xf32>
    %365 = arith.addf %363, %364 : vector<10x11xf32>
    %c1_314 = arith.constant 1 : index
    %c0_315 = arith.constant 0 : index
    %c0_316 = arith.constant 0 : index
    %c0_317 = arith.constant 0 : index
    %366 = vector.load %arg3[%c1_314, %c0_315, %c0_316, %c0_317] : memref<2x1x10x11xf32, #tpu.memory_space<vmem>>, vector<1x1x10x11xf32>
    %367 = vector.shape_cast %366 : vector<1x1x10x11xf32> to vector<10x11xf32>
    %368 = vector.shape_cast %365 : vector<10x11xf32> to vector<1x1x10x11xf32>
    tpu.vector_store %arg3[%c1_314, %c0_315, %c0_316, %c0_317], %368 {strides = array<i32>} : memref<2x1x10x11xf32, #tpu.memory_space<vmem>>, vector<1x1x10x11xf32>,
    return
  }
}

</mosaic_0001>

<bundles_post_ra>
// kernel: hisconv_forward.1
= control target key start
LH: loop header
LB: loop body
LE: loop exit
PB: predicated region body
PF: predicated region fallthrough
CT: control target
= control target key end

     0   :  { %v4044_v0 = vmov 0.0   ;;  %s4045_s6 = smov 64   ;;  %vm3266_vm0 = vcmask 523264   ;;  %vm3270_vm1 = vcmask 518144   ;;  %vm3380_vm2 = vcmask 130112   ;;  %s7879_s0 = inlined_call_operand.vmem [shape: f32[4,5,128], index: 0, kind: input, shape index: {}]   ;;  %s7880_s1 = inlined_call_operand.vmem [shape: f32[7,7,128], index: 1, kind: input, shape index: {}]   ;;  %s7881_s2 = inlined_call_operand.<no memory space> [shape: f32[1], index: 2, kind: input, shape index: {}]   ;;  %s7882_s3 = inlined_call_operand.vmem [shape: f32[2,1,10,11], index: 3, kind: output, shape index: {}]  }
   0x1   :  { %15 = vst [vmem:[#allocation2] sm:$0xff] %v4044_v0  ;;  %16 = vst [vmem:[#allocation2 + $0x8] sm:$0xff] %v4044_v0  ;;  %v61_v1 = vld [vmem:[%s7879_s0] sm:$0x1f]  ;;  %v62_v2 = vld [vmem:[%s7879_s0 + $0x8] sm:$0x1f] }
   0x2   :  { %18 = vst [vmem:[#allocation2 + $0x18] sm:$0xff] %v4044_v0  ;;  %19 = vst [vmem:[#allocation2 + $0x20] sm:$0xff] %v4044_v0  ;;  %v63_v3 = vld [vmem:[%s7879_s0 + $0x10] sm:$0x1f]  ;;  %v64_v4 = vld [vmem:[%s7879_s0 + $0x18] sm:$0x1f] }
   0x3   :  { %21 = vst [vmem:[#allocation2 + $0x30] sm:$0xff] %v4044_v0  ;;  %22 = vst [vmem:[#allocation2 + $0x38] sm:$0xff] %v4044_v0  ;;  %v3771_v5 = vld [vmem:[%s7880_s1] ss:$0 sm:$0xff]  ;;  %v3772_v6 = vld [vmem:[%s7880_s1 + $0x1] ss:$0 sm:$0xff] }
   0x4   :  { %24 = vst [vmem:[#allocation2 + $0x48] sm:$0xff] %v4044_v0  ;;  %25 = vst [vmem:[#allocation2 + $0x50] sm:$0xff] %v4044_v0  ;;  %v94_v7 = vmul.f32 0.0, %v3771_v5  ;;  %v160_v8 = vmul.f32 0.0, %v3772_v6  ;;  %v4087_v9 = vld [vmem:[%s7880_s1 + $0x2] ss:$0 sm:$0xff] }
   0x5   :  { %27 = vst [vmem:[#allocation2 + $0x60] sm:$0xff] %v4044_v0  ;;  %28 = vst [vmem:[#allocation2 + $0x68] sm:$0xff] %v4044_v0  ;;  %v4092_v10 = vld [vmem:[%s7880_s1 + $0x3] ss:$0 sm:$0xff]  ;;  %v226_v11 = vmul.f32 0.0, %v4087_v9  ;;  %vm3463_vm3 = vcmask 1041409  }
   0x6   :  { %30 = vst [vmem:[#allocation2 + $0x78] sm:$0xff] %v4044_v0  ;;  %31 = vst [vmem:[#allocation2 + $0x80] sm:$0xff] %v4044_v0  ;;  %v180_v12 = vadd.f32 %v160_v8, %v94_v7  ;;  %v292_v13 = vmul.f32 0.0, %v4092_v10  ;;  %v4099_v14 = vld [vmem:[%s7880_s1 + $0x4] ss:$0 sm:$0xff]  ;;  %vm3465_vm4 = vcmask 1042434  }
   0x7   :  { %53 = vst [vmem:[#allocation2 + $0x90] sm:$0x3f] %v4044_v0  ;;  %54 = vst [vmem:[#allocation2 + $0xa8] sm:$0x3f] %v4044_v0  ;;  %v4106_v16 = vld [vmem:[%s7880_s1 + $0x5] ss:$0 sm:$0xff] }
   0x8   :  { %55 = vst [vmem:[#allocation2 + $0xc0] sm:$0x3f] %v4044_v0  ;;  %56 = vst [vmem:[#allocation2 + $0xd8] sm:$0x3f] %v4044_v0  ;;  %v4101_v15 = vadd.f32 %v226_v11, %v180_v12  ;;  %v358_v17 = vmul.f32 0.0, %v4099_v14  ;;  %v424_v19 = vmul.f32 0.0, %v4106_v16 }
   0x9   :  { %57 = vst [vmem:[#allocation2 + $0x9b] sm:$0x3f] %v4044_v0  ;;  %17 = vst [vmem:[#allocation2 + $0x10] sm:$0x1] %v4044_v0  ;;  %v4116_v20 = vld [vmem:[%s7880_s1 + $0x6] ss:$0 sm:$0xff] }
   0xa   :  { %20 = vst [vmem:[#allocation2 + $0x28] sm:$0x1] %v4044_v0  ;;  %23 = vst [vmem:[#allocation2 + $0x40] sm:$0x1] %v4044_v0  ;;  %v4110_v18 = vadd.f32 %v292_v13, %v4101_v15  ;;  %v70_v21 = vld [vmem:[#allocation2 + $0x8] sm:$0x7] }
   0xb   :  { %26 = vst [vmem:[#allocation2 + $0x58] sm:$0x1] %v4044_v0  ;;  %29 = vst [vmem:[#allocation2 + $0x70] sm:$0x1] %v4044_v0  ;;  %v136_v22 = vld [vmem:[#allocation2 + $0x20] sm:$0x7]  ;;  %v95_v29 = vmul.f32 %v3771_v5, %v70_v21 }
   0xc   :  { %32 = vst [vmem:[#allocation2 + $0x88] sm:$0x1] %v4044_v0  ;;  %34 = vst [vmem:[#allocation2 + $0xf0] sm:$0xff] %v4044_v0  ;;  %v4119_v23 = vadd.f32 %v358_v17, %v4110_v18  ;;  %v529_v25 = vld [vmem:[#allocation2 + $0x1] sm:$0xff]  ;;  %v161_v30 = vmul.f32 %v3772_v6, %v136_v22  ;;  %v202_v31 = vld [vmem:[#allocation2 + $0x38] sm:$0x7] }
   0xd   :  { %35 = vst [vmem:[#allocation2 + $0xf8] sm:$0xff] %v4044_v0  ;;  %36 = vst [vmem:[#allocation2 + $0x100] sm:$0x1] %v4044_v0  ;;  %v4126_v26 = vld [vmem:[%s7880_s1 + $0x8] ss:$0 sm:$0xff]  ;;  %v4131_v33 = vld [vmem:[#allocation2 + $0x19] sm:$0xff]  ;;  %v227_v40 = vmul.f32 %v4087_v9, %v202_v31 }
   0xe   :  { %37 = vst [vmem:[#allocation2 + $0x108] sm:$0xff] %v4044_v0  ;;  %38 = vst [vmem:[#allocation2 + $0x110] sm:$0xff] %v4044_v0  ;;  %v444_v27 = vadd.f32 %v424_v19, %v4119_v23  ;;  %v555_v34 = vmul.f32 %v4126_v26, %v529_v25  ;;  %v4137_v35 = vld [vmem:[%s7880_s1 + $0x9] ss:$0 sm:$0xff]  ;;  %v4139_v36 = vld [vmem:[#allocation2 + $0x31] sm:$0xff]  ;;  %v181_v39 = vadd.f32 %v161_v30, %v95_v29  ;;  %vm3467_vm5 = vcmask 1043459  }
   0xf   :  { %39 = vst [vmem:[#allocation2 + $0x118] sm:$0x1] %v4044_v0  ;;  %40 = vst [vmem:[#allocation2 + $0x120] sm:$0xff] %v4044_v0  ;;  %v4144_v37 = vld [vmem:[%s7880_s1 + $0xa] ss:$0 sm:$0xff]  ;;  %v620_v42 = vmul.f32 %v4137_v35, %v4131_v33  ;;  %v4156_v45 = vld [vmem:[#allocation2 + $0x61] sm:$0xff] }
  0x10   :  { %41 = vst [vmem:[#allocation2 + $0x128] sm:$0xff] %v4044_v0  ;;  %42 = vst [vmem:[#allocation2 + $0x130] sm:$0x1] %v4044_v0  ;;  %v4147_v41 = vld [vmem:[#allocation2 + $0x49] sm:$0xff]  ;;  %v685_v46 = vmul.f32 %v4144_v37, %v4139_v36  ;;  %v72_v50 = vld [vmem:[#allocation2 + $0x20] sm:$0x7]  ;;  %v247_v54 = vadd.f32 %v227_v40, %v181_v39 }
  0x11   :  { %43 = vst [vmem:[#allocation2 + $0x138] sm:$0xff] %v4044_v0  ;;  %44 = vst [vmem:[#allocation2 + $0x140] sm:$0xff] %v4044_v0  ;;  %v4154_v43 = vld [vmem:[%s7880_s1 + $0xb] ss:$0 sm:$0xff]  ;;  %v268_v44 = vld [vmem:[#allocation2 + $0x50] sm:$0x7]  ;;  %v97_v61 = vmul.f32 %v3771_v5, %v72_v50 }
  0x12   :  { %45 = vst [vmem:[#allocation2 + $0x148] sm:$0x1] %v4044_v0  ;;  %46 = vst [vmem:[#allocation2 + $0x150] sm:$0xff] %v4044_v0  ;;  %v4163_v47 = vld [vmem:[%s7880_s1 + $0xc] ss:$0 sm:$0xff]  ;;  %v4170_v52 = vld [vmem:[#allocation2 + $0x79] sm:$0xff]  ;;  %v750_v53 = vmul.f32 %v4154_v43, %v4147_v41  ;;  %v293_v55 = vmul.f32 %v4092_v10, %v268_v44 }
  0x13   :  { %47 = vst [vmem:[#allocation2 + $0x158] sm:$0xff] %v4044_v0  ;;  %48 = vst [vmem:[#allocation2 + $0x160] sm:$0x1] %v4044_v0  ;;  %v4168_v49 = vld [vmem:[%s7880_s1 + $0xd] ss:$0 sm:$0xff]  ;;  %v815_v57 = vmul.f32 %v4163_v47, %v4156_v45  ;;  %v4196_v19 = vld [vmem:[#allocation2 + $0x1a] sm:$0xff] }
  0x14   :  { %49 = vst [vmem:[#allocation2 + $0x168] sm:$0xff] %v4044_v0  ;;  %50 = vst [vmem:[#allocation2 + $0x170] sm:$0xff] %v4044_v0  ;;  %v138_v51 = vld [vmem:[#allocation2 + $0x38] sm:$0x7]  ;;  %v334_v58 = vld [vmem:[#allocation2 + $0x68] sm:$0x7]  ;;  %v313_v7 = vadd.f32 %v293_v55, %v247_v54 }
  0x15   :  { %51 = vst [vmem:[#allocation2 + $0x178] sm:$0x1] %v4044_v0  ;;  %58 = vst [vmem:[#allocation2 + $0xb3] sm:$0x3f] %v4044_v0  ;;  %v4182_v60 = vld [vmem:[%s7880_s1 + $0xe] ss:$0 sm:$0xff]  ;;  %v163_v62 = vmul.f32 %v3772_v6, %v138_v51  ;;  %v359_v11 = vmul.f32 %v4099_v14, %v334_v58 }
  0x16   :  { %59 = vst [vmem:[#allocation2 + $0xcb] sm:$0x3f] %v4044_v0  ;;  %60 = vst [vmem:[#allocation2 + $0xe3] sm:$0x3f] %v4044_v0  ;;  %v204_v63 = vld [vmem:[#allocation2 + $0x50] sm:$0x7] }
  0x17   :  { %65 = vst [vmem:[#allocation2 + $0x96] sm:$0x1f] %v61_v1  ;;  %66 = vst [vmem:[#allocation2 + $0xae] sm:$0x1f] %v62_v2  ;;  %v880_v1 = vmul.f32 %v4168_v49, %v4170_v52  ;;  %v270_v2 = vld [vmem:[#allocation2 + $0x68] sm:$0x7]  ;;  %v229_v6 = vmul.f32 %v4087_v9, %v204_v63  ;;  %v183_v25 = vadd.f32 %v163_v62, %v97_v61 }
  0x18   :  { %67 = vst [vmem:[#allocation2 + $0xc6] sm:$0x1f] %v63_v3  ;;  %68 = vst [vmem:[#allocation2 + $0xde] sm:$0x1f] %v64_v4  ;;  %v985_v3 = vld [vmem:[#allocation2 + $0x2] sm:$0xff]  ;;  %v4228_v54 = vld [vmem:[#allocation2 + $0x4a] sm:$0xff] }
  0x19   :  { %v4189_v4 = vld [vmem:[%s7880_s1 + $0x10] ss:$0 sm:$0xff]  ;;  %v400_v17 = vld [vmem:[#allocation2 + $0x80] sm:$0x7]  ;;  %v4201_v21 = vld [vmem:[%s7880_s1 + $0x11] ss:$0 sm:$0xff] }
  0x1a   :  { %v1011_v30 = vmul.f32 %v4189_v4, %v985_v3  ;;  %v336_v31 = vld [vmem:[#allocation2 + $0x80] sm:$0x7]  ;;  %v4217_v39 = vld [vmem:[%s7880_s1 + $0x12] ss:$0 sm:$0xff]  ;;  %v425_v44 = vmul.f32 %v4106_v16, %v400_v17  ;;  %v687_v17 = vmul.f32 %v4144_v37, %v4147_v41  ;;  %vm3469_vm6 = vcmask 1044484  }
  0x1b   :  { %v4237_v58 = vmul.f32 %v4099_v14, %v336_v31  ;;  %vm3471_vm7 = vcmask 1045509   ;;  %vm3473_vm8 = vcmask 1046534   ;;  %vm3475_vm9 = vcmask 1047559  }
  0x1c   :  { %vm3480_vm10 = vcmask 89088   ;;  %vm3482_vm11 = vcmask 82944  }
  0x1e   :  { %v4121_v24 = vld [vmem:[#allocation2 + $0x90] sm:$0xff]  ;;  %v339_v8 = vld [vmem:[#allocation2 + $0xa8] sm:$0xff]  ;;  %v465_v50 = vld [vmem:[#allocation2 + $0x98] sm:$0x7] }
  0x1f   :  { %v489_v28 = vmul.f32 %v4116_v20, %v4121_v24  ;;  %v4177_v59 = vld [vmem:[#allocation2 + $0x91] sm:$0xff]  ;;  %v364_v13 = vmul.f32 %v4099_v14, %v339_v8  ;;  %v298_v22 = vmul.f32 %v4092_v10, %v4121_v24  ;;  %v426_v40 = vmul.f32 %v4106_v16, %v4121_v24 }
  0x20   :  { %v945_v5 = vmul.f32 %v4182_v60, %v4177_v59  ;;  %v470_v29 = vld [vmem:[#allocation2 + $0xd8] sm:$0xff]  ;;  %v467_v63 = vld [vmem:[#allocation2 + $0xb0] sm:$0x7] }
  0x21   :  { %v509_v32 = vadd.f32 %v489_v28, %v444_v27  ;;  %v295_v27 = vmul.f32 %v4092_v10, %v270_v2  ;;  %v4206_v28 = vld [vmem:[#allocation2 + $0xc0] sm:$0xff]  ;;  %v318_v10 = vadd.f32 %v298_v22, %v4101_v15  ;;  %v495_v51 = vmul.f32 %v4116_v20, %v470_v29  ;;  %v4233_v15 = vld [vmem:[%s7880_s1 + $0x13] ss:$0 sm:$0xff] }
  0x22   :  { %v4259_v22 = vld [vmem:[#allocation2 + $0x7a] sm:$0xff]  ;;  %v4270_v31 = vmul.f32 %v4116_v20, %v467_v63  ;;  %v1441_v63 = vld [vmem:[#allocation2 + $0x3] sm:$0xff] }
  0x23   :  { %v575_v38 = vadd.f32 %v555_v34, %v509_v32  ;;  %v430_v32 = vmul.f32 %v4106_v16, %v4206_v28  ;;  %v491_v34 = vmul.f32 %v4116_v20, %v339_v8  ;;  %v384_v55 = vadd.f32 %v364_v13, %v318_v10 }
  0x24   :  { %v626_v13 = vmul.f32 %v4137_v35, %v4156_v45  ;;  %v691_v10 = vmul.f32 %v4144_v37, %v4170_v52 }
  0x25   :  { %v640_v48 = vadd.f32 %v620_v42, %v575_v38  ;;  %v4212_v38 = vld [vmem:[#allocation2 + $0x32] sm:$0xff]  ;;  %v379_v42 = vadd.f32 %v359_v11, %v313_v7  ;;  %v450_v2 = vadd.f32 %v430_v32, %v384_v55  ;;  %v490_v11 = vmul.f32 %v4116_v20, %v465_v50  ;;  %v532_v50 = vld [vmem:[#allocation2 + $0x21] sm:$0x7] }
  0x26   :  { %v1141_v62 = vmul.f32 %v4217_v39, %v4212_v38 }
  0x27   :  { %v705_v56 = vadd.f32 %v685_v46, %v640_v48  ;;  %v1076_v48 = vmul.f32 %v4201_v21, %v4196_v19  ;;  %v445_v7 = vadd.f32 %v425_v44, %v379_v42  ;;  %v515_v29 = vadd.f32 %v495_v51, %v450_v2  ;;  %v4281_v42 = vld [vmem:[%s7880_s1 + $0x16] ss:$0 sm:$0xff] }
  0x29   :  { %v770_v0 = vadd.f32 %v750_v53, %v705_v56  ;;  %v557_v53 = vmul.f32 %v4126_v26, %v4131_v33  ;;  %v446_v56 = vadd.f32 %v426_v40, %v4119_v23  ;;  %v561_v33 = vmul.f32 %v4126_v26, %v4147_v41  ;;  %v4250_v23 = vld [vmem:[%s7880_s1 + $0x14] ss:$0 sm:$0xff] }
  0x2a   :  { %v4276_v40 = vld [vmem:[#allocation2 + $0x92] sm:$0xff] }
  0x2b   :  { %v835_v12 = vadd.f32 %v815_v57, %v770_v0  ;;  %v249_v57 = vadd.f32 %v229_v6, %v183_v25  ;;  %v622_v0 = vmul.f32 %v4137_v35, %v4139_v36  ;;  %v511_v3 = vadd.f32 %v491_v34, %v446_v56  ;;  %v530_v6 = vld [vmem:[#allocation2 + $0x9] sm:$0x7]  ;;  %v4264_v25 = vld [vmem:[%s7880_s1 + $0x15] ss:$0 sm:$0xff] }
  0x2c   :  { %v581_v44 = vadd.f32 %v561_v33, %v515_v29  ;;  %v556_v51 = vmul.f32 %v4126_v26, %v530_v6  ;;  %v1336_v56 = vmul.f32 %v4264_v25, %v4259_v22  ;;  %v4291_v33 = vld [vmem:[%s7880_s1 + $0x18] ss:$0 sm:$0xff]  ;;  %v4310_v6 = vld [vmem:[#allocation2 + $0xa9] sm:$0xff]  ;;  %v882_v29 = vmul.f32 %v4168_v49, %v4177_v59 }
  0x2d   :  { %v900_v9 = vadd.f32 %v880_v1, %v835_v12  ;;  %v4245_v1 = vld [vmem:[#allocation2 + $0x62] sm:$0xff]  ;;  %8314 = vst [vmem:[#allocation4_spill] sm:$0xff] %v4310_v6 }
  0x2e   :  { %v1271_v34 = vmul.f32 %v4250_v23, %v4245_v1 }
  0x2f   :  { %v965_v46 = vadd.f32 %v945_v5, %v900_v9  ;;  %v1206_v5 = vmul.f32 %v4233_v15, %v4228_v54  ;;  %v577_v9 = vadd.f32 %v557_v53, %v511_v3  ;;  %v596_v53 = vld [vmem:[#allocation2 + $0x21] sm:$0x7]  ;;  %v817_v3 = vmul.f32 %v4163_v47, %v4170_v52 }
  0x30   :  { %v4313_v52 = vmul.f32 %v4126_v26, %v532_v50  ;;  %v4340_v50 = vld [vmem:[%s7880_s1 + $0x1c] ss:$0 sm:$0xff] }
  0x31   :  { %v1031_v61 = vadd.f32 %v1011_v30, %v965_v46  ;;  %v4267_v30 = vmul.f32 %v4106_v16, %v339_v8  ;;  %v642_v8 = vadd.f32 %v622_v0, %v577_v9  ;;  %v752_v46 = vmul.f32 %v4154_v43, %v4156_v45  ;;  %8319 = vst [vmem:[#allocation9_spill] sm:$0xff] %v4340_v50 }
  0x32   :  { %v646_v0 = vadd.f32 %v626_v13, %v581_v44  ;;  %8315 = vst [vmem:[#allocation5_spill] sm:$0xff] %v4313_v52  ;;  %v4322_v13 = vld [vmem:[#allocation2 + $0x4b] sm:$0xff]  ;;  %v1467_v44 = vmul.f32 %v4291_v33, %v1441_v63  ;;  %v947_v63 = vmul.f32 %v4182_v60, %v4310_v6  ;;  %v4411_v6 = vld [vmem:[%s7880_s1 + $0x23] ss:$0 sm:$0xff] }
  0x33   :  { %v1096_v12 = vadd.f32 %v1076_v48, %v1031_v61  ;;  %v510_v48 = vadd.f32 %v490_v11, %v445_v7  ;;  %v315_v61 = vadd.f32 %v295_v27, %v249_v57  ;;  %v707_v2 = vadd.f32 %v687_v17, %v642_v8  ;;  %v4301_v57 = vld [vmem:[#allocation2 + $0x1b] sm:$0xff]  ;;  %v4335_v8 = vld [vmem:[#allocation2 + $0x63] sm:$0xff] }
  0x34   :  { %v4297_v7 = vmul.f32 %v4116_v20, %v4206_v28  ;;  %v1401_v27 = vmul.f32 %v4281_v42, %v4276_v40  ;;  %v4315_v20 = vld [vmem:[#allocation2 + $0x33] sm:$0xff]  ;;  %v4327_v17 = vld [vmem:[%s7880_s1 + $0x1b] ss:$0 sm:$0xff]  ;;  %8318 = vst [vmem:[#allocation8_spill] sm:$0xff] %v4335_v8 }
  0x35   :  { %v1161_v32 = vadd.f32 %v1141_v62, %v1096_v12  ;;  %v598_v62 = vld [vmem:[#allocation2 + $0x39] sm:$0x7]  ;;  %8316 = vst [vmem:[#allocation6_spill] sm:$0xff] %v4327_v17  ;;  %v576_v9 = vadd.f32 %v556_v51, %v510_v48  ;;  %v4350_v59 = vadd.f32 %v4237_v58, %v315_v61  ;;  %v4361_v51 = vld [vmem:[%s7880_s1 + $0x1e] ss:$0 sm:$0xff] }
  0x36   :  { %v4306_v12 = vld [vmem:[%s7880_s1 + $0x19] ss:$0 sm:$0xff]  ;;  %v4320_v28 = vld [vmem:[%s7880_s1 + $0x1a] ss:$0 sm:$0xff]  ;;  %8323 = vst [vmem:[#allocation13_spill] sm:$0xff] %v4361_v51  ;;  %v4375_v61 = vld [vmem:[#allocation2 + $0x1c] sm:$0xff] }
  0x37   :  { %v1226_v55 = vadd.f32 %v1206_v5, %v1161_v32  ;;  %v362_v5 = vmul.f32 %v4099_v14, %v4121_v24  ;;  %v4329_v14 = vadd.f32 %v691_v10, %v646_v0  ;;  %v772_v24 = vadd.f32 %v752_v46, %v707_v2  ;;  %v4347_v10 = vld [vmem:[%s7880_s1 + $0x1d] ss:$0 sm:$0xff]  ;;  %v4356_v48 = vld [vmem:[#allocation2 + $0x93] sm:$0xff]  ;;  %8326 = vst [vmem:[#allocation16_spill] sm:$0xff] %v4375_v61  ;;  %v4380_v2 = vld [vmem:[%s7880_s1 + $0x21] ss:$0 sm:$0xff] }
  0x38   :  { %v621_v32 = vmul.f32 %v4137_v35, %v596_v53  ;;  %8321 = vst [vmem:[#allocation11_spill] sm:$0xff] %v4347_v10  ;;  %v4354_v46 = vmul.f32 %v4126_v26, %v4139_v36  ;;  %8322 = vst [vmem:[#allocation12_spill] sm:$0xff] %v4356_v48  ;;  %v1897_v53 = vld [vmem:[#allocation2 + $0x4] sm:$0xff]  ;;  %v4366_v0 = vmul.f32 %v4137_v35, %v598_v62  ;;  %v4373_v36 = vld [vmem:[%s7880_s1 + $0x20] ss:$0 sm:$0xff] }
  0x39   :  { %v1291_v11 = vadd.f32 %v1271_v34, %v1226_v55  ;;  %8317 = vst [vmem:[#allocation7_spill] sm:$0xff] %v4329_v14  ;;  %v4342_v55 = vld [vmem:[#allocation2 + $0x7b] sm:$0xff]  ;;  %v1532_v26 = vmul.f32 %v4306_v12, %v4301_v57  ;;  %8325 = vst [vmem:[#allocation15_spill] sm:$0xff] %v4373_v36  ;;  %v4385_v62 = vmul.f32 %v4137_v35, %v4147_v41 }
  0x3a   :  { %8320 = vst [vmem:[#allocation10_spill] sm:$0xff] %v4342_v55  ;;  %8324 = vst [vmem:[#allocation14_spill] sm:$0xff] %v4366_v0  ;;  %v1597_v41 = vmul.f32 %v4320_v28, %v4315_v20  ;;  %v4413_v0 = vld [vmem:[#allocation2 + $0x64] sm:$0xff]  ;;  %v4435_v52 = vmul.f32 %v4361_v51, %v4356_v48  ;;  %v661_v51 = vld [vmem:[#allocation2 + $0x39] sm:$0x7] }
  0x3b   :  { %v1356_v34 = vadd.f32 %v1336_v56, %v1291_v11  ;;  %v837_v56 = vadd.f32 %v817_v3, %v772_v24  ;;  %8327 = vst [vmem:[#allocation17_spill] sm:$0xff] %v4380_v2  ;;  %v382_v3 = vadd.f32 %v362_v5, %v4110_v18  ;;  %v4389_v11 = vmul.f32 %v4144_v37, %v4156_v45  ;;  %v4396_v24 = vld [vmem:[%s7880_s1 + $0x22] ss:$0 sm:$0xff]  ;;  %v726_v48 = vld [vmem:[#allocation2 + $0x51] sm:$0x7] }
  0x3c   :  { %8330 = vst [vmem:[#allocation20_spill] sm:$0xff] %v4396_v24  ;;  %v1013_v18 = vmul.f32 %v4189_v4, %v4196_v19  ;;  %v4402_v5 = vadd.f32 %v621_v32, %v576_v9  ;;  %v1662_v45 = vmul.f32 %v4327_v17, %v4322_v13  ;;  %v4418_v19 = vld [vmem:[%s7880_s1 + $0x24] ss:$0 sm:$0xff]  ;;  %v1792_v9 = vmul.f32 %v4347_v10, %v4342_v55  ;;  %v4424_v32 = vld [vmem:[#allocation2 + $0x7c] sm:$0xff]  ;;  %v4440_v10 = vld [vmem:[#allocation2 + $0x94] sm:$0xff] }
  0x3d   :  { %v1421_v58 = vadd.f32 %v1401_v27, %v1356_v34  ;;  %8328 = vst [vmem:[#allocation18_spill] sm:$0xff] %v4389_v11  ;;  %v4391_v27 = vld [vmem:[#allocation2 + $0x34] sm:$0xff]  ;;  %v4398_v34 = vld [vmem:[#allocation2 + $0x4c] sm:$0xff]  ;;  %v902_v14 = vadd.f32 %v882_v29, %v837_v56  ;;  %8331 = vst [vmem:[#allocation21_spill] sm:$0xff] %v4418_v19  ;;  %v1727_v29 = vmul.f32 %v4340_v50, %v4335_v8 }
  0x3e   :  { %8329 = vst [vmem:[#allocation19_spill] sm:$0xff] %v4391_v27  ;;  %8332 = vst [vmem:[#allocation22_spill] sm:$0xff] %v4424_v32  ;;  %v402_v56 = vld [vmem:[#allocation2 + $0x98] sm:$0x7]  ;;  %v1078_v17 = vmul.f32 %v4201_v21, %v4212_v38  ;;  %v4438_v50 = vmul.f32 %v4373_v36, %v1897_v53  ;;  %v4445_v55 = vld [vmem:[%s7880_s1 + $0x26] ss:$0 sm:$0xff]  ;;  %v4450_v38 = vmul.f32 %v4380_v2, %v4375_v61 }
  0x3f   :  { %v1487_v35 = vadd.f32 %v1467_v44, %v1421_v58  ;;  %v4429_v44 = vld [vmem:[%s7880_s1 + $0x25] ss:$0 sm:$0xff]  ;;  %v967_v58 = vadd.f32 %v947_v63, %v902_v14  ;;  %8334 = vst [vmem:[#allocation24_spill] sm:$0xff] %v4440_v10  ;;  %8335 = vst [vmem:[#allocation25_spill] sm:$0xff] %v4445_v55  ;;  %v448_v14 = vadd.f32 %v4267_v30, %v382_v3  ;;  %v4459_v53 = vld [vmem:[%s7880_s1 + $0x28] ss:$0 sm:$0xff] }
  0x40   :  { %8333 = vst [vmem:[#allocation23_spill] sm:$0xff] %v4429_v44  ;;  %v2353_v8 = vld [vmem:[#allocation2 + $0x5] sm:$0xff]  ;;  %v4454_v63 = vmul.f32 %v4396_v24, %v4391_v27  ;;  %8336 = vst [vmem:[#allocation26_spill] sm:$0xff] %v4459_v53  ;;  %v1143_v3 = vmul.f32 %v4217_v39, %v4228_v54  ;;  %v4472_v24 = vmul.f32 %v4411_v6, %v4398_v34  ;;  %v4478_v36 = vld [vmem:[#allocation2 + $0x35] sm:$0xff] }
  0x41   :  { %v1552_v11 = vadd.f32 %v1532_v26, %v1487_v35  ;;  %v4461_v26 = vld [vmem:[#allocation2 + $0x1d] sm:$0xff]  ;;  %v4466_v35 = vld [vmem:[%s7880_s1 + $0x29] ss:$0 sm:$0xff]  ;;  %v1033_v30 = vadd.f32 %v1013_v18, %v967_v58  ;;  %v4476_v27 = vmul.f32 %v4418_v19, %v4413_v0  ;;  %v427_v61 = vmul.f32 %v4106_v16, %v402_v56  ;;  %v4499_v16 = vld [vmem:[%s7880_s1 + $0x2b] ss:$0 sm:$0xff] }
  0x42   :  { %8337 = vst [vmem:[#allocation27_spill] sm:$0xff] %v4466_v35  ;;  %v4483_v18 = vmul.f32 %v4429_v44, %v4424_v32  ;;  %v4487_v54 = vmul.f32 %v4445_v55, %v4440_v10  ;;  %8341 = vst [vmem:[#allocation31_spill] sm:$0xff] %v4499_v16  ;;  %v1208_v58 = vmul.f32 %v4233_v15, %v4245_v1  ;;  %v4510_v19 = vld [vmem:[#allocation2 + $0x65] sm:$0xff]  ;;  %v4523_v1 = vld [vmem:[%s7880_s1 + $0x2d] ss:$0 sm:$0xff] }
  0x43   :  { %v1617_v2 = vadd.f32 %v1597_v41, %v1552_v11  ;;  %v4492_v11 = vld [vmem:[%s7880_s1 + $0x2a] ss:$0 sm:$0xff]  ;;  %v4494_v41 = vld [vmem:[#allocation2 + $0x4d] sm:$0xff]  ;;  %v1098_v56 = vadd.f32 %v1078_v17, %v1033_v30  ;;  %v4504_v55 = vmul.f32 %v4459_v53, %v2353_v8  ;;  %v4508_v10 = vmul.f32 %v4466_v35, %v4461_v26  ;;  %v4516_v17 = vld [vmem:[%s7880_s1 + $0x2c] ss:$0 sm:$0xff]  ;;  %8344 = vst [vmem:[#allocation34_spill] sm:$0xff] %v4523_v1 }
  0x44   :  { %8338 = vst [vmem:[#allocation28_spill] sm:$0xff] %v4487_v54  ;;  %8339 = vst [vmem:[#allocation29_spill] sm:$0xff] %v4492_v11  ;;  %v513_v32 = vadd.f32 %v4297_v7, %v448_v14  ;;  %v791_v54 = vld [vmem:[#allocation2 + $0x69] sm:$0x7]  ;;  %v4518_v30 = vld [vmem:[#allocation2 + $0x7d] sm:$0xff]  ;;  %v751_v7 = vmul.f32 %v4154_v43, %v726_v48  ;;  %v4531_v35 = vmul.f32 %v4492_v11, %v4478_v36 }
  0x45   :  { %8340 = vst [vmem:[#allocation30_spill] sm:$0xff] %v4494_v41  ;;  %v1682_v44 = vadd.f32 %v1662_v45, %v1617_v2  ;;  %8342 = vst [vmem:[#allocation32_spill] sm:$0xff] %v4508_v10  ;;  %v1163_v8 = vadd.f32 %v1143_v3, %v1098_v56  ;;  %v1273_v2 = vmul.f32 %v4250_v23, %v4259_v22  ;;  %v4537_v53 = vld [vmem:[#allocation2 + $0x95] sm:$0xff]  ;;  %v4540_v56 = vld [vmem:[#allocation2 + $0xaa] sm:$0xff] }
  0x46   :  { %8343 = vst [vmem:[#allocation33_spill] sm:$0xff] %v4516_v17  ;;  %v686_v45 = vmul.f32 %v4144_v37, %v661_v51  ;;  %8345 = vst [vmem:[#allocation35_spill] sm:$0xff] %v4531_v35  ;;  %v4535_v10 = vmul.f32 %v4499_v16, %v4494_v41  ;;  %v447_v3 = vadd.f32 %v427_v61, %v4350_v59  ;;  %v856_v22 = vld [vmem:[#allocation2 + $0x81] sm:$0x7]  ;;  %v4545_v48 = vld [vmem:[%s7880_s1 + $0x2e] ss:$0 sm:$0xff] }
  0x47   :  { %v1747_v14 = vadd.f32 %v1727_v29, %v1682_v44  ;;  %8347 = vst [vmem:[#allocation37_spill] sm:$0xff] %v4540_v56  ;;  %8348 = vst [vmem:[#allocation38_spill] sm:$0xff] %v4545_v48  ;;  %v2809_v51 = vld [vmem:[#allocation2 + $0x6] sm:$0xff]  ;;  %v4550_v29 = vld [vmem:[%s7880_s1 + $0x30] ss:$0 sm:$0xff]  ;;  %v1228_v44 = vadd.f32 %v1208_v58, %v1163_v8  ;;  %v816_v61 = vmul.f32 %v4163_v47, %v791_v54 }
  0x48   :  { %8346 = vst [vmem:[#allocation36_spill] sm:$0xff] %v4535_v10  ;;  %8349 = vst [vmem:[#allocation39_spill] sm:$0xff] %v4550_v29  ;;  %v1338_v10 = vmul.f32 %v4264_v25, %v4276_v40  ;;  %v706_v59 = vadd.f32 %v686_v45, %v4402_v5  ;;  %v4558_v35 = vmul.f32 %v4516_v17, %v4510_v19  ;;  %v4564_v41 = vld [vmem:[#allocation2 + $0x1e] sm:$0xff]  ;;  %v921_v8 = vld [vmem:[#allocation2 + $0x99] sm:$0x7] }
  0x49   :  { %v1812_v16 = vadd.f32 %v1792_v9, %v1747_v14  ;;  %v4562_v11 = vmul.f32 %v4523_v1, %v4518_v30  ;;  %v579_v58 = vadd.f32 %v4354_v46, %v513_v32  ;;  %v4570_v40 = vld [vmem:[%s7880_s1 + $0x31] ss:$0 sm:$0xff]  ;;  %v4572_v5 = vld [vmem:[#allocation2 + $0x36] sm:$0xff]  ;;  %v4577_v9 = vld [vmem:[%s7880_s1 + $0x32] ss:$0 sm:$0xff]  ;;  %v1293_v54 = vadd.f32 %v1273_v2, %v1228_v44 }
  0x4a   :  { %8350 = vst [vmem:[#allocation40_spill] sm:$0xff] %v4558_v35  ;;  %8352 = vst [vmem:[#allocation42_spill] sm:$0xff] %v4570_v40  ;;  %v1403_v45 = vmul.f32 %v4281_v42, %v4540_v56  ;;  %v771_v14 = vadd.f32 %v751_v7, %v706_v59  ;;  %v881_v46 = vmul.f32 %v4168_v49, %v856_v22  ;;  %v4590_v1 = vld [vmem:[#allocation2 + $0x4e] sm:$0xff]  ;;  %v986_v2 = vld [vmem:[#allocation2 + $0xa] sm:$0x7] }
  0x4b   :  { %8351 = vst [vmem:[#allocation41_spill] sm:$0xff] %v4562_v11  ;;  %8353 = vst [vmem:[#allocation43_spill] sm:$0xff] %v4577_v9  ;;  %v1877_v32 = vadd.f32 %v4435_v52, %v1812_v16  ;;  %v4585_v11 = vmul.f32 %v4545_v48, %v4537_v53  ;;  %v4588_v35 = vmul.f32 %v4550_v29, %v2809_v51  ;;  %v4596_v7 = vld [vmem:[%s7880_s1 + $0x33] ss:$0 sm:$0xff]  ;;  %v4598_v22 = vld [vmem:[#allocation2 + $0x66] sm:$0xff] }
  0x4c   :  { %8356 = vst [vmem:[#allocation46_spill] sm:$0xff] %v4590_v1  ;;  %v512_v17 = vadd.f32 %v4270_v31, %v447_v3  ;;  %8357 = vst [vmem:[#allocation47_spill] sm:$0xff] %v4596_v7  ;;  %v4603_v52 = vld [vmem:[%s7880_s1 + $0x34] ss:$0 sm:$0xff]  ;;  %v1358_v16 = vadd.f32 %v1338_v10, %v1293_v54  ;;  %v1469_v51 = vmul.f32 %v4291_v33, %v4301_v57  ;;  %v1052_v54 = vld [vmem:[#allocation2 + $0x22] sm:$0x7] }
  0x4d   :  { %8354 = vst [vmem:[#allocation44_spill] sm:$0xff] %v4585_v11  ;;  %8355 = vst [vmem:[#allocation45_spill] sm:$0xff] %v4588_v35  ;;  %v836_v44 = vadd.f32 %v816_v61, %v771_v14  ;;  %v946_v31 = vmul.f32 %v4182_v60, %v921_v8  ;;  %v1943_v3 = vadd.f32 %v4438_v50, %v1877_v32  ;;  %v4617_v35 = vld [vmem:[#allocation2 + $0x7e] sm:$0xff]  ;;  %v4623_v57 = vld [vmem:[%s7880_s1 + $0x35] ss:$0 sm:$0xff] }
  0x4e   :  { %8358 = vst [vmem:[#allocation48_spill] sm:$0xff] %v4598_v22  ;;  %8359 = vst [vmem:[#allocation49_spill] sm:$0xff] %v4603_v52  ;;  %v4611_v59 = vmul.f32 %v4570_v40, %v4564_v41  ;;  %v4615_v56 = vmul.f32 %v4577_v9, %v4572_v5  ;;  %v644_v10 = vadd.f32 %v4385_v62, %v579_v58  ;;  %v4625_v61 = vld [vmem:[#allocation2 + $0x96] sm:$0xff] }
  0x4f   :  { %8362 = vst [vmem:[#allocation52_spill] sm:$0xff] %v4617_v35  ;;  %8363 = vst [vmem:[#allocation53_spill] sm:$0xff] %v4623_v57  ;;  %v4630_v50 = vld [vmem:[%s7880_s1 + $0x36] ss:$0 sm:$0xff]  ;;  %v1423_v8 = vadd.f32 %v1403_v45, %v1358_v16  ;;  %v1534_v14 = vmul.f32 %v4306_v12, %v4315_v20  ;;  %v901_v32 = vadd.f32 %v881_v46, %v836_v44  ;;  %v1117_v45 = vld [vmem:[#allocation2 + $0x3a] sm:$0x7] }
  0x50   :  { %8360 = vst [vmem:[#allocation50_spill] sm:$0xff] %v4611_v59  ;;  %8361 = vst [vmem:[#allocation51_spill] sm:$0xff] %v4615_v56  ;;  %v1012_v62 = vmul.f32 %v4189_v4, %v986_v2  ;;  %v2008_v58 = vadd.f32 %v4450_v38, %v1943_v3  ;;  %v4638_v56 = vmul.f32 %v4596_v7, %v4590_v1  ;;  %v8368_v16 = vld [vmem:[#allocation5_spill] sm:$0xff]  ;;  %v8383_v7 = vld [vmem:[#allocation15_spill] sm:$0xff] }
  0x51   :  { %8364 = vst [vmem:[#allocation54_spill] sm:$0xff] %v4625_v61  ;;  %8365 = vst [vmem:[#allocation55_spill] sm:$0xff] %v4630_v50  ;;  %v4642_v59 = vmul.f32 %v4603_v52, %v4598_v22  ;;  %v1599_v11 = vmul.f32 %v4320_v28, %v4322_v13  ;;  %v578_v9 = vadd.f32 %v8368_v16, %v512_v17  ;;  %v4647_v46 = vld [vmem:[#allocation2 + $0xab] sm:$0xff]  ;;  %v8384_v22 = vld [vmem:[#allocation19_spill] sm:$0xff] }
  0x52   :  { %8366 = vst [vmem:[#allocation56_spill] sm:$0xff] %v4638_v56  ;;  %v1489_v20 = vadd.f32 %v1469_v51, %v1423_v8  ;;  %8369 = vst [vmem:[#allocation5_spill] sm:$0xff] %v4647_v46  ;;  %v966_v2 = vadd.f32 %v946_v31, %v901_v32  ;;  %v1077_v38 = vmul.f32 %v4201_v21, %v1052_v54  ;;  %v8372_v13 = vld [vmem:[#allocation18_spill] sm:$0xff]  ;;  %v8374_v8 = vld [vmem:[#allocation8_spill] sm:$0xff] }
  0x53   :  { %8367 = vst [vmem:[#allocation57_spill] sm:$0xff] %v4642_v59  ;;  %v2073_v44 = vadd.f32 %v4454_v63, %v2008_v58  ;;  %v4653_v3 = vmul.f32 %v4623_v57, %v4617_v35  ;;  %v4657_v59 = vmul.f32 %v4630_v50, %v4625_v61  ;;  %v4660_v56 = vadd.f32 %v8372_v13, %v644_v10  ;;  %v1182_v17 = vld [vmem:[#allocation2 + $0x52] sm:$0x7]  ;;  %v1247_v63 = vld [vmem:[#allocation2 + $0x6a] sm:$0x7]  ;;  %v8378_v35 = vld [vmem:[#allocation12_spill] sm:$0xff] }
  0x54   :  { %v1554_v51 = vadd.f32 %v1534_v14, %v1489_v20  ;;  %v8375_v16 = vld [vmem:[#allocation6_spill] sm:$0xff]  ;;  %v1032_v32 = vadd.f32 %v1012_v62, %v966_v2  ;;  %v1142_v54 = vmul.f32 %v4217_v39, %v1117_v45  ;;  %v8379_v50 = vld [vmem:[#allocation11_spill] sm:$0xff]  ;;  %v8380_v10 = vld [vmem:[#allocation13_spill] sm:$0xff]  ;;  %v1207_v45 = vmul.f32 %v4233_v15, %v1182_v17 }
  0x55   :  { %8370 = vst [vmem:[#allocation58_spill] sm:$0xff] %v4653_v3  ;;  %8371 = vst [vmem:[#allocation59_spill] sm:$0xff] %v4657_v59  ;;  %v1664_v31 = vmul.f32 %v8375_v16, %v8374_v8  ;;  %v2138_v58 = vadd.f32 %v4472_v24, %v2073_v44  ;;  %v8376_v57 = vld [vmem:[#allocation10_spill] sm:$0xff]  ;;  %v8377_v3 = vld [vmem:[#allocation9_spill] sm:$0xff]  ;;  %v1794_v59 = vmul.f32 %v8379_v50, %v8378_v35 }
  0x56   :  { %8373 = vst [vmem:[#allocation18_spill] sm:$0xff] %v4660_v56  ;;  %v1729_v52 = vmul.f32 %v8377_v3, %v8376_v57  ;;  %v1859_v13 = vmul.f32 %v8380_v10, %v4647_v46  ;;  %v663_v56 = vld [vmem:[#allocation2 + $0x51] sm:$0x7]  ;;  %v728_v14 = vld [vmem:[#allocation2 + $0x69] sm:$0x7]  ;;  %v1619_v8 = vadd.f32 %v1599_v11, %v1554_v51  ;;  %v1097_v62 = vadd.f32 %v1077_v38, %v1032_v32  ;;  %v8382_v44 = vld [vmem:[#allocation16_spill] sm:$0xff] }
  0x57   :  { %v8381_v20 = vld [vmem:[#allocation14_spill] sm:$0xff]  ;;  %v1312_v2 = vld [vmem:[#allocation2 + $0x82] sm:$0x7]  ;;  %v2203_v24 = vadd.f32 %v4476_v27, %v2138_v58  ;;  %v1925_v57 = vmul.f32 %v8383_v7, %v8382_v44  ;;  %v8385_v1 = vld [vmem:[#allocation17_spill] sm:$0xff]  ;;  %v1272_v50 = vmul.f32 %v4250_v23, %v1247_v63  ;;  %v688_v11 = vmul.f32 %v4144_v37, %v663_v56 }
  0x58   :  { %v643_v61 = vadd.f32 %v8381_v20, %v578_v9  ;;  %v1990_v35 = vmul.f32 %v8385_v1, %v8384_v22  ;;  %v793_v46 = vld [vmem:[#allocation2 + $0x81] sm:$0x7]  ;;  %v1684_v10 = vadd.f32 %v1664_v31, %v1619_v8  ;;  %v1162_v3 = vadd.f32 %v1142_v54, %v1097_v62  ;;  %v1377_v40 = vld [vmem:[#allocation2 + $0x9a] sm:$0x7]  ;;  %v4690_v31 = vld [vmem:[#allocation2 + $0xac] sm:$0xff] }
  0x59   :  { %v753_v9 = vmul.f32 %v4154_v43, %v728_v14  ;;  %v2268_v38 = vadd.f32 %v4483_v18, %v2203_v24  ;;  %v8386_v27 = vld [vmem:[#allocation20_spill] sm:$0xff]  ;;  %v4687_v51 = vmul.f32 %v4411_v6, %v4413_v0  ;;  %v1337_v22 = vmul.f32 %v4264_v25, %v1312_v2  ;;  %v858_v32 = vld [vmem:[#allocation2 + $0x99] sm:$0x7]  ;;  %8387 = vst [vmem:[#allocation8_spill] sm:$0xff] %v4690_v31  ;;  %v1442_v58 = vld [vmem:[#allocation2 + $0xb] sm:$0x7] }
  0x5a   :  { %v2055_v17 = vmul.f32 %v8386_v27, %v4398_v34  ;;  %v1749_v63 = vadd.f32 %v1729_v52, %v1684_v10  ;;  %v1227_v54 = vadd.f32 %v1207_v45, %v1162_v3  ;;  %v708_v37 = vadd.f32 %v688_v11, %v643_v61  ;;  %v8388_v14 = vld [vmem:[#allocation28_spill] sm:$0xff]  ;;  %v8389_v20 = vld [vmem:[#allocation22_spill] sm:$0xff]  ;;  %v8390_v8 = vld [vmem:[#allocation21_spill] sm:$0xff] }
  0x5b   :  { %v818_v56 = vmul.f32 %v4163_v47, %v793_v46  ;;  %v2333_v18 = vadd.f32 %v8388_v14, %v2268_v38  ;;  %v4696_v34 = vmul.f32 %v8390_v8, %v8389_v20  ;;  %v8391_v62 = vld [vmem:[#allocation24_spill] sm:$0xff]  ;;  %v8392_v0 = vld [vmem:[#allocation23_spill] sm:$0xff]  ;;  %v1402_v2 = vmul.f32 %v4281_v42, %v1377_v40  ;;  %v923_v52 = vld [vmem:[#allocation2 + $0xb1] sm:$0x7] }
  0x5c   :  { %v4700_v24 = vmul.f32 %v8392_v0, %v8391_v62  ;;  %v1814_v10 = vadd.f32 %v1794_v59, %v1749_v63  ;;  %v1292_v44 = vadd.f32 %v1272_v50, %v1227_v54  ;;  %v1508_v3 = vld [vmem:[#allocation2 + $0x23] sm:$0x7]  ;;  %v773_v45 = vadd.f32 %v753_v9, %v708_v37  ;;  %v8393_v11 = vld [vmem:[#allocation25_spill] sm:$0xff]  ;;  %v8394_v14 = vld [vmem:[#allocation26_spill] sm:$0xff] }
  0x5d   :  { %v883_v61 = vmul.f32 %v4168_v49, %v858_v32  ;;  %v2399_v46 = vadd.f32 %v4504_v55, %v2333_v18  ;;  %v4707_v38 = vmul.f32 %v8393_v11, %v4690_v31  ;;  %v4711_v20 = vmul.f32 %v8394_v14, %v4461_v26  ;;  %v988_v40 = vld [vmem:[#allocation2 + $0x22] sm:$0x7]  ;;  %v1573_v50 = vld [vmem:[#allocation2 + $0x3b] sm:$0x7]  ;;  %v8397_v18 = vld [vmem:[#allocation30_spill] sm:$0xff] }
  0x5e   :  { %v1468_v62 = vmul.f32 %v4291_v33, %v1442_v58  ;;  %v1879_v0 = vadd.f32 %v1859_v13, %v1814_v10  ;;  %v1357_v59 = vadd.f32 %v1337_v22, %v1292_v44  ;;  %v838_v63 = vadd.f32 %v818_v56, %v773_v45  ;;  %v8395_v32 = vld [vmem:[#allocation32_spill] sm:$0xff]  ;;  %v8396_v55 = vld [vmem:[#allocation27_spill] sm:$0xff]  ;;  %v8398_v31 = vld [vmem:[#allocation29_spill] sm:$0xff] }
  0x5f   :  { %v948_v9 = vmul.f32 %v4182_v60, %v923_v52  ;;  %v2464_v54 = vadd.f32 %v8395_v32, %v2399_v46  ;;  %v4718_v37 = vmul.f32 %v8396_v55, %v4478_v36  ;;  %v4722_v11 = vmul.f32 %v8398_v31, %v8397_v18  ;;  %v1054_v58 = vld [vmem:[#allocation2 + $0x3a] sm:$0x7]  ;;  %v4725_v13 = vld [vmem:[#allocation2 + $0xad] sm:$0xff] }
  0x60   :  { %v1533_v26 = vmul.f32 %v4306_v12, %v1508_v3  ;;  %v1945_v14 = vadd.f32 %v1925_v57, %v1879_v0  ;;  %8399 = vst [vmem:[#allocation6_spill] sm:$0xff] %v4725_v13  ;;  %v1422_v22 = vadd.f32 %v1402_v2, %v1357_v59  ;;  %v1638_v56 = vld [vmem:[#allocation2 + $0x53] sm:$0x7]  ;;  %v903_v10 = vadd.f32 %v883_v61, %v838_v63  ;;  %v8400_v44 = vld [vmem:[#allocation35_spill] sm:$0xff]  ;;  %v8402_v32 = vld [vmem:[#allocation33_spill] sm:$0xff] }
  0x61   :  { %v1014_v52 = vmul.f32 %v4189_v4, %v988_v40  ;;  %v2529_v45 = vadd.f32 %v8400_v44, %v2464_v54  ;;  %v8401_v36 = vld [vmem:[#allocation31_spill] sm:$0xff]  ;;  %v4735_v18 = vmul.f32 %v8402_v32, %v4518_v30  ;;  %v1598_v3 = vmul.f32 %v4320_v28, %v1573_v50  ;;  %v1119_v57 = vld [vmem:[#allocation2 + $0x52] sm:$0x7]  ;;  %v1703_v2 = vld [vmem:[#allocation2 + $0x6b] sm:$0x7] }
  0x62   :  { %v4731_v46 = vmul.f32 %v8401_v36, %v4510_v19  ;;  %v2010_v0 = vadd.f32 %v1990_v35, %v1945_v14  ;;  %v1488_v31 = vadd.f32 %v1468_v62, %v1422_v22  ;;  %v968_v59 = vadd.f32 %v948_v9, %v903_v10  ;;  %v8403_v40 = vld [vmem:[#allocation36_spill] sm:$0xff]  ;;  %v8404_v54 = vld [vmem:[#allocation34_spill] sm:$0xff]  ;;  %v1184_v50 = vld [vmem:[#allocation2 + $0x6a] sm:$0x7] }
  0x63   :  { %v1079_v61 = vmul.f32 %v4201_v21, %v1054_v58  ;;  %v2594_v63 = vadd.f32 %v8403_v40, %v2529_v45  ;;  %v4742_v44 = vmul.f32 %v8404_v54, %v4537_v53  ;;  %v4746_v19 = vmul.f32 %v4545_v48, %v4725_v13  ;;  %v1768_v14 = vld [vmem:[#allocation2 + $0x83] sm:$0x7]  ;;  %v8406_v53 = vld [vmem:[#allocation42_spill] sm:$0xff]  ;;  %v8408_v40 = vld [vmem:[#allocation9_spill] sm:$0xff] }
  0x64   :  { %v1663_v30 = vmul.f32 %v8375_v16, %v1638_v56  ;;  %v2075_v32 = vadd.f32 %v2055_v17, %v2010_v0  ;;  %v1553_v35 = vadd.f32 %v1533_v26, %v1488_v31  ;;  %v1034_v62 = vadd.f32 %v1014_v52, %v968_v59  ;;  %v8405_v58 = vld [vmem:[#allocation40_spill] sm:$0xff]  ;;  %v1833_v26 = vld [vmem:[#allocation2 + $0x9b] sm:$0x7]  ;;  %v8409_v0 = vld [vmem:[#allocation41_spill] sm:$0xff] }
  0x65   :  { %v1144_v9 = vmul.f32 %v4217_v39, %v1119_v57  ;;  %v2659_v22 = vadd.f32 %v8405_v58, %v2594_v63  ;;  %v4753_v10 = vmul.f32 %v4550_v29, %v4564_v41  ;;  %v4757_v45 = vmul.f32 %v8406_v53, %v4572_v5  ;;  %v1249_v56 = vld [vmem:[#allocation2 + $0x82] sm:$0x7]  ;;  %v8410_v63 = vld [vmem:[#allocation46_spill] sm:$0xff]  ;;  %v8411_v58 = vld [vmem:[#allocation43_spill] sm:$0xff] }
  0x66   :  { %v1728_v13 = vmul.f32 %v8408_v40, %v1703_v2  ;;  %v2140_v17 = vadd.f32 %v4687_v51, %v2075_v32  ;;  %v1618_v31 = vadd.f32 %v1598_v3, %v1553_v35  ;;  %v1099_v52 = vadd.f32 %v1079_v61, %v1034_v62  ;;  %v8413_v29 = vld [vmem:[#allocation48_spill] sm:$0xff]  ;;  %v8414_v48 = vld [vmem:[#allocation47_spill] sm:$0xff]  ;;  %v1898_v3 = vld [vmem:[#allocation2 + $0xc] sm:$0x7] }
  0x67   :  { %8407 = vst [vmem:[#allocation10_spill] sm:$0xff] %v4757_v45  ;;  %v1209_v57 = vmul.f32 %v4233_v15, %v1184_v50  ;;  %v2724_v59 = vadd.f32 %v8409_v0, %v2659_v22  ;;  %v4765_v41 = vmul.f32 %v8411_v58, %v8410_v63  ;;  %v4769_v5 = vmul.f32 %v8414_v48, %v8413_v29  ;;  %v8416_v53 = vld [vmem:[#allocation11_spill] sm:$0xff]  ;;  %v1379_v35 = vld [vmem:[#allocation2 + $0xb2] sm:$0x7]  ;;  %v8417_v22 = vld [vmem:[#allocation44_spill] sm:$0xff] }
  0x68   :  { %v1793_v2 = vmul.f32 %v8416_v53, %v1768_v14  ;;  %v1314_v54 = vld [vmem:[#allocation2 + $0x9a] sm:$0x7]  ;;  %v2205_v51 = vadd.f32 %v4696_v34, %v2140_v17  ;;  %v1683_v32 = vadd.f32 %v1663_v30, %v1618_v31  ;;  %v1164_v61 = vadd.f32 %v1144_v9, %v1099_v52  ;;  %v8418_v63 = vld [vmem:[#allocation52_spill] sm:$0xff]  ;;  %v8419_v58 = vld [vmem:[#allocation49_spill] sm:$0xff] }
  0x69   :  { %8412 = vst [vmem:[#allocation12_spill] sm:$0xff] %v4765_v41  ;;  %8415 = vst [vmem:[#allocation14_spill] sm:$0xff] %v4769_v5  ;;  %v1274_v50 = vmul.f32 %v4250_v23, %v1249_v56  ;;  %v729_v62 = vld [vmem:[#allocation2 + $0x79] sm:$0xff]  ;;  %v2789_v0 = vadd.f32 %v8417_v22, %v2724_v59  ;;  %v4777_v41 = vmul.f32 %v8419_v58, %v8418_v63  ;;  %v8421_v29 = vld [vmem:[#allocation54_spill] sm:$0xff] }
  0x6a   :  { %v8422_v48 = vld [vmem:[#allocation53_spill] sm:$0xff]  ;;  %v4784_v34 = vld [vmem:[#allocation2 + $0x91] sm:$0xff]  ;;  %v2270_v30 = vadd.f32 %v4700_v24, %v2205_v51  ;;  %v1748_v9 = vadd.f32 %v1728_v13, %v1683_v32  ;;  %v1964_v56 = vld [vmem:[#allocation2 + $0x24] sm:$0x7]  ;;  %v1229_v17 = vadd.f32 %v1209_v57, %v1164_v61  ;;  %v1339_v31 = vmul.f32 %v4264_v25, %v1314_v54 }
  0x6b   :  { %8420 = vst [vmem:[#allocation16_spill] sm:$0xff] %v4777_v41  ;;  %v4781_v5 = vmul.f32 %v8422_v48, %v8421_v29  ;;  %v8424_v14 = vld [vmem:[#allocation13_spill] sm:$0xff]  ;;  %v1924_v22 = vmul.f32 %v8383_v7, %v1898_v3  ;;  %v1404_v63 = vmul.f32 %v4281_v42, %v1379_v35  ;;  %v1444_v58 = vld [vmem:[#allocation2 + $0x23] sm:$0x7]  ;;  %v754_v29 = vmul.f32 %v4154_v43, %v729_v62  ;;  %v8426_v54 = vld [vmem:[#allocation50_spill] sm:$0xff] }
  0x6c   :  { %v1858_v45 = vmul.f32 %v8424_v14, %v1833_v26  ;;  %v8425_v52 = vld [vmem:[#allocation45_spill] sm:$0xff]  ;;  %v2335_v26 = vadd.f32 %v4707_v38, %v2270_v30  ;;  %v1813_v48 = vadd.f32 %v1793_v2, %v1748_v9  ;;  %v1294_v41 = vadd.f32 %v1274_v50, %v1229_v17  ;;  %v1510_v32 = vld [vmem:[#allocation2 + $0x3b] sm:$0x7]  ;;  %v8427_v3 = vld [vmem:[#allocation18_spill] sm:$0xff] }
  0x6d   :  { %8423 = vst [vmem:[#allocation15_spill] sm:$0xff] %v4781_v5  ;;  %v2855_v59 = vadd.f32 %v8425_v52, %v2789_v0  ;;  %v2029_v5 = vld [vmem:[#allocation2 + $0x3c] sm:$0x7]  ;;  %v819_v24 = vmul.f32 %v4163_v47, %v4784_v34  ;;  %v4795_v13 = vld [vmem:[#allocation2 + $0xc1] sm:$0xff]  ;;  %v1989_v51 = vmul.f32 %v8385_v1, %v1964_v56  ;;  %v774_v61 = vadd.f32 %v754_v29, %v8427_v3  ;;  %v2094_v62 = vld [vmem:[#allocation2 + $0x54] sm:$0x7] }
  0x6e   :  { %v8428_v35 = vld [vmem:[#allocation4_spill] sm:$0xff]  ;;  %v2401_v38 = vadd.f32 %v4711_v20, %v2335_v26  ;;  %v1878_v2 = vadd.f32 %v1858_v45, %v1813_v48  ;;  %v1359_v50 = vadd.f32 %v1339_v31, %v1294_v41  ;;  %v1470_v0 = vmul.f32 %v4291_v33, %v1444_v58  ;;  %v989_v47 = vld [vmem:[#allocation2 + $0x32] sm:$0xff]  ;;  %v1055_v45 = vld [vmem:[#allocation2 + $0x4a] sm:$0xff] }
  0x6f   :  { %v2920_v57 = vadd.f32 %v8426_v54, %v2855_v59  ;;  %v884_v43 = vmul.f32 %v4168_v49, %v8428_v35  ;;  %v8429_v30 = vld [vmem:[#allocation51_spill] sm:$0xff]  ;;  %v2054_v17 = vmul.f32 %v8386_v27, %v2029_v5  ;;  %v1575_v52 = vld [vmem:[#allocation2 + $0x53] sm:$0x7]  ;;  %v839_v56 = vadd.f32 %v819_v24, %v774_v61  ;;  %v2159_v54 = vld [vmem:[#allocation2 + $0x6c] sm:$0x7] }
  0x70   :  { %v949_v59 = vmul.f32 %v4182_v60, %v4795_v13  ;;  %v2466_v29 = vadd.f32 %v4718_v37, %v2401_v38  ;;  %v1944_v49 = vadd.f32 %v1924_v22, %v1878_v2  ;;  %v1424_v20 = vadd.f32 %v1404_v63, %v1359_v50  ;;  %v8430_v41 = vld [vmem:[#allocation56_spill] sm:$0xff]  ;;  %v1640_v26 = vld [vmem:[#allocation2 + $0x6b] sm:$0x7]  ;;  %v2289_v50 = vld [vmem:[#allocation2 + $0x9c] sm:$0x7] }
  0x71   :  { %v2985_v9 = vadd.f32 %v8429_v30, %v2920_v57  ;;  %v1535_v48 = vmul.f32 %v4306_v12, %v1510_v32  ;;  %v2119_v31 = vmul.f32 %v4411_v6, %v2094_v62  ;;  %v904_v57 = vadd.f32 %v884_v43, %v839_v56  ;;  %v2224_v60 = vld [vmem:[#allocation2 + $0x84] sm:$0x7]  ;;  %v8431_v63 = vld [vmem:[#allocation57_spill] sm:$0xff]  ;;  %v1770_v56 = vld [vmem:[#allocation2 + $0x9b] sm:$0x7] }
  0x72   :  { %v1015_v5 = vmul.f32 %v4189_v4, %v989_v47  ;;  %v2531_v24 = vadd.f32 %v4722_v11, %v2466_v29  ;;  %v2009_v3 = vadd.f32 %v1989_v51, %v1944_v49  ;;  %v1490_v61 = vadd.f32 %v1470_v0, %v1424_v20  ;;  %v4815_v22 = vld [vmem:[#allocation2 + $0x62] sm:$0xff]  ;;  %v4822_v0 = vld [vmem:[#allocation2 + $0x7a] sm:$0xff]  ;;  %v8432_v47 = vld [vmem:[#allocation58_spill] sm:$0xff] }
  0x73   :  { %v3050_v58 = vadd.f32 %v8430_v41, %v2985_v9  ;;  %v1600_v37 = vmul.f32 %v4320_v28, %v1575_v52  ;;  %v2184_v35 = vmul.f32 %v8390_v8, %v2159_v54  ;;  %v1705_v38 = vld [vmem:[#allocation2 + $0x83] sm:$0x7]  ;;  %v969_v2 = vadd.f32 %v949_v59, %v904_v57  ;;  %v8433_v9 = vld [vmem:[#allocation23_spill] sm:$0xff]  ;;  %v4829_v49 = vld [vmem:[#allocation2 + $0xae] sm:$0xff] }
  0x74   :  { %v1080_v62 = vmul.f32 %v4201_v21, %v1055_v45  ;;  %v2596_v43 = vadd.f32 %v4731_v46, %v2531_v24  ;;  %v2074_v4 = vadd.f32 %v2054_v17, %v2009_v3  ;;  %v1555_v11 = vadd.f32 %v1535_v48, %v1490_v61  ;;  %v2354_v17 = vld [vmem:[#allocation2 + $0xd] sm:$0x7]  ;;  %v4832_v48 = vld [vmem:[#allocation2 + $0x92] sm:$0xff]  ;;  %v2485_v3 = vld [vmem:[#allocation2 + $0x3d] sm:$0x7] }
  0x75   :  { %v3115_v32 = vadd.f32 %v8431_v63, %v3050_v58  ;;  %v1665_v51 = vmul.f32 %v8375_v16, %v1640_v26  ;;  %v2249_v52 = vmul.f32 %v8433_v9, %v2224_v60  ;;  %v1035_v29 = vadd.f32 %v1015_v5, %v969_v2  ;;  %v8434_v45 = vld [vmem:[#allocation59_spill] sm:$0xff]  ;;  %v8436_v58 = vld [vmem:[#allocation25_spill] sm:$0xff]  ;;  %v1835_v57 = vld [vmem:[#allocation2 + $0xb3] sm:$0x7] }
  0x76   :  { %v1145_v59 = vmul.f32 %v4217_v39, %v4815_v22  ;;  %v2661_v21 = vadd.f32 %v4735_v18, %v2596_v43  ;;  %v2139_v46 = vadd.f32 %v2119_v31, %v2074_v4  ;;  %v1620_v54 = vadd.f32 %v1600_v37, %v1555_v11  ;;  %v2420_v31 = vld [vmem:[#allocation2 + $0x25] sm:$0x7]  ;;  %v8437_v37 = vld [vmem:[#allocation55_spill] sm:$0xff]  ;;  %v2550_v43 = vld [vmem:[#allocation2 + $0x55] sm:$0x7] }
  0x77   :  { %v3180_v30 = vadd.f32 %v8432_v47, %v3115_v32  ;;  %v1730_v20 = vmul.f32 %v8408_v40, %v1705_v38  ;;  %v2314_v26 = vmul.f32 %v8436_v58, %v2289_v50  ;;  %v1100_v5 = vadd.f32 %v1080_v62, %v1035_v29  ;;  %v8438_v32 = vld [vmem:[#allocation26_spill] sm:$0xff]  ;;  %v1900_v2 = vld [vmem:[#allocation2 + $0x24] sm:$0x7]  ;;  %v2615_v4 = vld [vmem:[#allocation2 + $0x6d] sm:$0x7] }
  0x78   :  { %v1210_v39 = vmul.f32 %v4233_v15, %v4822_v0  ;;  %v2726_v18 = vadd.f32 %v4742_v44, %v2661_v21  ;;  %v2204_v24 = vadd.f32 %v2184_v35, %v2139_v46  ;;  %v1685_v60 = vadd.f32 %v1665_v51, %v1620_v54  ;;  %v4853_v51 = vld [vmem:[#allocation2 + $0xc2] sm:$0xff]  ;;  %v1966_v29 = vld [vmem:[#allocation2 + $0x3c] sm:$0x7] }
  0x79   :  { %v4835_v41 = vadd.f32 %v8434_v45, %v3180_v30  ;;  %v1795_v61 = vmul.f32 %v8416_v53, %v1770_v56  ;;  %v4846_v63 = vmul.f32 %v8437_v37, %v4829_v49  ;;  %v2380_v38 = vmul.f32 %v8438_v32, %v2354_v17  ;;  %v8439_v30 = vld [vmem:[#allocation29_spill] sm:$0xff]  ;;  %v2745_v17 = vld [vmem:[#allocation2 + $0x9d] sm:$0x7]  ;;  %v1445_v45 = vld [vmem:[#allocation2 + $0x33] sm:$0xff] }
  0x7a   :  { %v1165_v15 = vadd.f32 %v1145_v59, %v1100_v5  ;;  %v1275_v44 = vmul.f32 %v4250_v23, %v4832_v48  ;;  %v2791_v35 = vadd.f32 %v4746_v19, %v2726_v18  ;;  %v2269_v62 = vadd.f32 %v2249_v52, %v2204_v24  ;;  %v8440_v59 = vld [vmem:[#allocation37_spill] sm:$0xff]  ;;  %v2680_v52 = vld [vmem:[#allocation2 + $0x85] sm:$0x7]  ;;  %v2031_v24 = vld [vmem:[#allocation2 + $0x54] sm:$0x7] }
  0x7b   :  { %8435 = vst [vmem:[#allocation19_spill] sm:$0xff] %v4835_v41  ;;  %3504 = vrot.lane.b32.xlu0 %v4835_v41, %s4045_s6  ;;  %v1750_v50 = vadd.f32 %v1730_v20, %v1685_v60  ;;  %v1860_v11 = vmul.f32 %v8424_v14, %v1835_v57  ;;  %v2445_v47 = vmul.f32 %v8396_v55, %v2420_v31  ;;  %v8441_v5 = vld [vmem:[#allocation33_spill] sm:$0xff] }
  0x7c   :  { %v2510_v56 = vmul.f32 %v8439_v30, %v2485_v3  ;;  %v1230_v21 = vadd.f32 %v1210_v39, %v1165_v15  ;;  %v1340_v46 = vmul.f32 %v4264_v25, %v8440_v59  ;;  %v2857_v23 = vadd.f32 %v4753_v10, %v2791_v35  ;;  %v8442_v3 = vld [vmem:[#allocation10_spill] sm:$0xff] }
  0x7d   :  { %v2334_v19 = vadd.f32 %v2314_v26, %v2269_v62  ;;  %v1815_v54 = vadd.f32 %v1795_v61, %v1750_v50  ;;  %v1926_v20 = vmul.f32 %v8383_v7, %v1900_v2  ;;  %v2575_v57 = vmul.f32 %v8401_v36, %v2550_v43  ;;  %v2810_v10 = vld [vmem:[#allocation2 + $0xe] sm:$0x7] }
  0x7e   :  { %v2640_v18 = vmul.f32 %v8441_v5, %v2615_v4  ;;  %v1295_v31 = vadd.f32 %v1275_v44, %v1230_v21  ;;  %v1405_v39 = vmul.f32 %v4281_v42, %v4853_v51  ;;  %v2922_v25 = vadd.f32 %v8442_v3, %v2857_v23  ;;  %v2096_v61 = vld [vmem:[#allocation2 + $0x6c] sm:$0x7]  ;;  %v8444_v2 = vld [vmem:[#allocation34_spill] sm:$0xff]  ;;  %v74_v21 = vld [vmem:[#allocation2 + $0x38] sm:$0x7] }
  0x7f   :  { %v2400_v60 = vadd.f32 %v2380_v38, %v2334_v19  ;;  %v1880_v26 = vadd.f32 %v1860_v11, %v1815_v54  ;;  %v1991_v15 = vmul.f32 %v8385_v1, %v1966_v29  ;;  %v4867_v35 = vld [vmem:[#allocation2 + $0x4b] sm:$0xff]  ;;  %v2705_v62 = vmul.f32 %v8444_v2, %v2680_v52  ;;  %v8446_v42 = vld [vmem:[#allocation12_spill] sm:$0xff]  ;;  %v206_v54 = vld [vmem:[#allocation2 + $0x68] sm:$0x7] }
  0x80   :  { %8443 = vst [vmem:[#allocation17_spill] sm:$0xff] %v4867_v35  ;;  %v8445_v43 = vld [vmem:[#allocation38_spill] sm:$0xff]  ;;  %v1360_v4 = vadd.f32 %v1340_v46, %v1295_v31  ;;  %v1471_v44 = vmul.f32 %v4291_v33, %v1445_v45  ;;  %v2987_v59 = vadd.f32 %v8446_v42, %v2922_v25  ;;  %v2056_v11 = vmul.f32 %v8386_v27, %v2031_v24  ;;  %v4876_v19 = vld [vmem:[#allocation2 + $0x63] sm:$0xff]  ;;  %v8448_v3 = vld [vmem:[#allocation39_spill] sm:$0xff] }
  0x81   :  { %v4871_v50 = vmul.f32 %v8445_v43, %v2745_v17  ;;  %v2465_v23 = vadd.f32 %v2445_v47, %v2400_v60  ;;  %v1946_v38 = vadd.f32 %v1926_v20, %v1880_v26  ;;  %8447 = vst [vmem:[#allocation20_spill] sm:$0xff] %v4876_v19  ;;  %v140_v29 = vld [vmem:[#allocation2 + $0x50] sm:$0x7]  ;;  %v4879_v41 = vmul.f32 %v8448_v3, %v2810_v10  ;;  %v2161_v17 = vld [vmem:[#allocation2 + $0x84] sm:$0x7]  ;;  %v4885_v25 = vld [vmem:[#allocation2 + $0x7b] sm:$0xff] }
  0x82   :  { %v2121_v52 = vmul.f32 %v4411_v6, %v2096_v61  ;;  %v1425_v46 = vadd.f32 %v1405_v39, %v1360_v4  ;;  %v1536_v33 = vmul.f32 %v4306_v12, %v4867_v35  ;;  %v8449_v45 = vld [vmem:[#allocation14_spill] sm:$0xff]  ;;  %v4890_v24 = vld [vmem:[%s7880_s1] ss:$0 sm:$0xff]  ;;  %v2226_v26 = vld [vmem:[#allocation2 + $0x9c] sm:$0x7]  ;;  %v1601_v39 = vmul.f32 %v4320_v28, %v4876_v19 }
  0x83   :  { %v3052_v31 = vadd.f32 %v8449_v45, %v2987_v59  ;;  %v2530_v47 = vadd.f32 %v2510_v56, %v2465_v23  ;;  %v2011_v20 = vadd.f32 %v1991_v15, %v1946_v38  ;;  %v99_v60 = vmul.f32 %v4890_v24, %v74_v21  ;;  %v272_v10 = vld [vmem:[#allocation2 + $0x80] sm:$0x7]  ;;  %v4909_v23 = vld [vmem:[#allocation2 + $0x93] sm:$0xff]  ;;  %v4916_v35 = vld [vmem:[%s7880_s1 + $0x3] ss:$0 sm:$0xff] }
  0x84   :  { %v1491_v61 = vadd.f32 %v1471_v44, %v1425_v46  ;;  %v4898_v12 = vld [vmem:[%s7880_s1 + $0x1] ss:$0 sm:$0xff]  ;;  %v4904_v15 = vld [vmem:[%s7880_s1 + $0x2] ss:$0 sm:$0xff]  ;;  %v2186_v28 = vmul.f32 %v8390_v8, %v2161_v17  ;;  %8451 = vst [vmem:[#allocation28_spill] sm:$0xff] %v4909_v23  ;;  %8452 = vst [vmem:[#allocation22_spill] sm:$0xff] %v4916_v35 }
  0x85   :  { %v165_v56 = vmul.f32 %v4898_v12, %v140_v29  ;;  %v231_v4 = vmul.f32 %v4904_v15, %v206_v54  ;;  %v8450_v21 = vld [vmem:[#allocation16_spill] sm:$0xff]  ;;  %v2595_v44 = vadd.f32 %v2575_v57, %v2530_v47  ;;  %v2076_v59 = vadd.f32 %v2056_v11, %v2011_v20  ;;  %v338_v38 = vld [vmem:[#allocation2 + $0x98] sm:$0x7]  ;;  %v2291_v46 = vld [vmem:[#allocation2 + $0xb4] sm:$0x7] }
  0x86   :  { %v3117_v42 = vadd.f32 %v8450_v21, %v3052_v31  ;;  %v1556_v45 = vadd.f32 %v1536_v33, %v1491_v61  ;;  %v1666_v29 = vmul.f32 %v8375_v16, %v4885_v25  ;;  %v297_v54 = vmul.f32 %v4916_v35, %v272_v10  ;;  %v8453_v57 = vld [vmem:[#allocation15_spill] sm:$0xff]  ;;  %v404_v20 = vld [vmem:[#allocation2 + $0xb0] sm:$0x7]  ;;  %v2876_v21 = vld [vmem:[#allocation2 + $0x26] sm:$0x7] }
  0x87   :  { %v185_v19 = vadd.f32 %v165_v56, %v99_v60  ;;  %v2660_v31 = vadd.f32 %v2640_v18, %v2595_v44  ;;  %v2141_v17 = vadd.f32 %v2121_v52, %v2076_v59  ;;  %v2251_v47 = vmul.f32 %v8433_v9, %v2226_v26  ;;  %v2356_v33 = vld [vmem:[#allocation2 + $0x25] sm:$0x7]  ;;  %v4926_v56 = vld [vmem:[%s7880_s1 + $0x4] ss:$0 sm:$0xff]  ;;  %v2941_v59 = vld [vmem:[#allocation2 + $0x3e] sm:$0x7] }
  0x88   :  { %v3182_v11 = vadd.f32 %v8453_v57, %v3117_v42  ;;  %v1621_v61 = vadd.f32 %v1601_v39, %v1556_v45  ;;  %v1731_v16 = vmul.f32 %v8408_v40, %v4909_v23  ;;  %8454 = vst [vmem:[#allocation21_spill] sm:$0xff] %v4926_v56  ;;  %v363_v10 = vmul.f32 %v4926_v56, %v338_v38  ;;  %v4933_v44 = vld [vmem:[#allocation2 + $0xc3] sm:$0xff]  ;;  %v2422_v40 = vld [vmem:[#allocation2 + $0x3d] sm:$0x7] }
  0x89   :  { %v251_v60 = vadd.f32 %v231_v4, %v185_v19  ;;  %v2725_v52 = vadd.f32 %v2705_v62, %v2660_v31  ;;  %v2206_v26 = vadd.f32 %v2186_v28, %v2141_v17  ;;  %v2316_v42 = vmul.f32 %v8436_v58, %v2291_v46  ;;  %8456 = vst [vmem:[#allocation32_spill] sm:$0xff] %v4933_v44  ;;  %v469_v39 = vld [vmem:[#allocation2 + $0xc8] sm:$0x7]  ;;  %v4940_v38 = vld [vmem:[%s7880_s1 + $0x5] ss:$0 sm:$0xff]  ;;  %v8459_v28 = vld [vmem:[#allocation42_spill] sm:$0xff] }
  0x8a   :  { %v4930_v18 = vadd.f32 %v4846_v63, %v3182_v11  ;;  %v1686_v19 = vadd.f32 %v1666_v29, %v1621_v61  ;;  %v8457_v4 = vld [vmem:[#allocation5_spill] sm:$0xff]  ;;  %8458 = vst [vmem:[#allocation27_spill] sm:$0xff] %v4940_v38  ;;  %v429_v63 = vmul.f32 %v4940_v38, %v404_v20  ;;  %v2901_v46 = vmul.f32 %v8459_v28, %v2876_v21  ;;  %v1901_v31 = vld [vmem:[#allocation2 + $0x34] sm:$0xff]  ;;  %v4953_v20 = vld [vmem:[%s7880_s1 + $0x6] ss:$0 sm:$0xff] }
  0x8b   :  { %v1796_v45 = vmul.f32 %v8416_v53, %v8457_v4  ;;  %v317_v57 = vadd.f32 %v297_v54, %v251_v60  ;;  %v2790_v62 = vadd.f32 %v4871_v50, %v2725_v52  ;;  %v2271_v11 = vadd.f32 %v2251_v47, %v2206_v26  ;;  %v534_v53 = vld [vmem:[#allocation2 + $0x39] sm:$0x7]  ;;  %v3006_v54 = vld [vmem:[#allocation2 + $0x56] sm:$0x7]  ;;  %8460 = vst [vmem:[#allocation30_spill] sm:$0xff] %v4953_v20 }
  0x8c   :  { %8455 = vst [vmem:[#allocation24_spill] sm:$0xff] %v4930_v18  ;;  %3508 = vrot.lane.b32.xlu1 %v4930_v18, %s4045_s6  ;;  %v2382_v29 = vmul.f32 %v8438_v32, %v2356_v33  ;;  %v2487_v17 = vld [vmem:[#allocation2 + $0x55] sm:$0x7]  ;;  %v1751_v61 = vadd.f32 %v1731_v16, %v1686_v19  ;;  %v1861_v60 = vmul.f32 %v8424_v14, %v4933_v44  ;;  %v8461_v21 = vld [vmem:[#allocation43_spill] sm:$0xff]  ;;  %v4959_v18 = vld [vmem:[#allocation2 + $0x4c] sm:$0xff] }
  0x8d   :  { %v383_v4 = vadd.f32 %v363_v10, %v317_v57  ;;  %v494_v50 = vmul.f32 %v4953_v20, %v469_v39  ;;  %v2856_v47 = vadd.f32 %v4879_v41, %v2790_v62  ;;  %v2966_v33 = vmul.f32 %v8461_v21, %v2941_v59  ;;  %8462 = vst [vmem:[#allocation35_spill] sm:$0xff] %v4959_v18  ;;  %v600_v16 = vld [vmem:[#allocation2 + $0x51] sm:$0x7]  ;;  %v3071_v19 = vld [vmem:[#allocation2 + $0x6e] sm:$0x7]  ;;  %v4970_v20 = vld [vmem:[#allocation2 + $0x64] sm:$0xff] }
  0x8e   :  { %v2336_v52 = vadd.f32 %v2316_v42, %v2271_v11  ;;  %v2447_v26 = vmul.f32 %v8396_v55, %v2422_v40  ;;  %v2552_v14 = vld [vmem:[#allocation2 + $0x6d] sm:$0x7]  ;;  %v1816_v10 = vadd.f32 %v1796_v45, %v1751_v61  ;;  %v1927_v57 = vmul.f32 %v8383_v7, %v1901_v31  ;;  %v4965_v39 = vld [vmem:[%s7880_s1 + $0x8] ss:$0 sm:$0xff]  ;;  %v8464_v42 = vld [vmem:[#allocation47_spill] sm:$0xff] }
  0x8f   :  { %v449_v44 = vadd.f32 %v429_v63, %v383_v4  ;;  %8463 = vst [vmem:[#allocation31_spill] sm:$0xff] %v4965_v39  ;;  %v560_v41 = vmul.f32 %v4965_v39, %v534_v53  ;;  %v2921_v59 = vadd.f32 %v2901_v46, %v2856_v47  ;;  %v3031_v62 = vmul.f32 %v8464_v42, %v3006_v54  ;;  %v665_v23 = vld [vmem:[#allocation2 + $0x69] sm:$0x7]  ;;  %v3136_v45 = vld [vmem:[#allocation2 + $0x86] sm:$0x7] }
  0x90   :  { %v2402_v40 = vadd.f32 %v2382_v29, %v2336_v52  ;;  %v2512_v11 = vmul.f32 %v8439_v30, %v2487_v17  ;;  %v2617_v61 = vld [vmem:[#allocation2 + $0x85] sm:$0x7]  ;;  %v1881_v7 = vadd.f32 %v1861_v60, %v1816_v10  ;;  %v1992_v63 = vmul.f32 %v8385_v1, %v4959_v18  ;;  %v4977_v53 = vld [vmem:[%s7880_s1 + $0x9] ss:$0 sm:$0xff]  ;;  %v4982_v52 = vld [vmem:[#allocation2 + $0x7c] sm:$0xff] }
  0x91   :  { %v514_v31 = vadd.f32 %v494_v50, %v449_v44  ;;  %8465 = vst [vmem:[#allocation36_spill] sm:$0xff] %v4977_v53  ;;  %v625_v46 = vmul.f32 %v4977_v53, %v600_v16  ;;  %v2986_v29 = vadd.f32 %v2966_v33, %v2921_v59  ;;  %v8466_v54 = vld [vmem:[#allocation49_spill] sm:$0xff]  ;;  %v2577_v47 = vmul.f32 %v8401_v36, %v2552_v14  ;;  %v730_v60 = vld [vmem:[#allocation2 + $0x81] sm:$0x7]  ;;  %v3201_v10 = vld [vmem:[#allocation2 + $0x9e] sm:$0x7] }
  0x92   :  { %v3096_v17 = vmul.f32 %v8466_v54, %v3071_v19  ;;  %v2467_v4 = vadd.f32 %v2447_v26, %v2402_v40  ;;  %v2682_v39 = vld [vmem:[#allocation2 + $0x9d] sm:$0x7]  ;;  %v1947_v1 = vadd.f32 %v1927_v57, %v1881_v7  ;;  %v2057_v44 = vmul.f32 %v8386_v27, %v4970_v20  ;;  %v4989_v16 = vld [vmem:[%s7880_s1 + $0xa] ss:$0 sm:$0xff]  ;;  %v4994_v40 = vld [vmem:[#allocation2 + $0x94] sm:$0xff] }
  0x93   :  { %v580_v50 = vadd.f32 %v560_v41, %v514_v31  ;;  %v690_v33 = vmul.f32 %v4989_v16, %v665_v23  ;;  %v3051_v26 = vadd.f32 %v3031_v62, %v2986_v29  ;;  %v8467_v19 = vld [vmem:[#allocation53_spill] sm:$0xff]  ;;  %v2642_v59 = vmul.f32 %v8441_v5, %v2617_v61  ;;  %v795_v57 = vld [vmem:[#allocation2 + $0x99] sm:$0x7]  ;;  %v2747_v7 = vld [vmem:[#allocation2 + $0xb5] sm:$0x7] }
  0x94   :  { %v3161_v36 = vmul.f32 %v8467_v19, %v3136_v45  ;;  %v2532_v14 = vadd.f32 %v2512_v11, %v2467_v4  ;;  %v2012_v18 = vadd.f32 %v1992_v63, %v1947_v1  ;;  %v2122_v27 = vmul.f32 %v4411_v6, %v4982_v52  ;;  %v5001_v31 = vld [vmem:[%s7880_s1 + $0xb] ss:$0 sm:$0xff]  ;;  %v860_v61 = vld [vmem:[#allocation2 + $0xb1] sm:$0x7]  ;;  %v2812_v29 = vld [vmem:[#allocation2 + $0x26] sm:$0x7] }
  0x95   :  { %v645_v41 = vadd.f32 %v625_v46, %v580_v50  ;;  %8468 = vst [vmem:[#allocation40_spill] sm:$0xff] %v5001_v31  ;;  %v755_v23 = vmul.f32 %v5001_v31, %v730_v60  ;;  %v3116_v62 = vadd.f32 %v3096_v17, %v3051_v26  ;;  %v3226_v11 = vmul.f32 %v8437_v37, %v3201_v10  ;;  %v5011_v4 = vld [vmem:[%s7880_s1 + $0xc] ss:$0 sm:$0xff]  ;;  %v5015_v10 = vld [vmem:[#allocation2 + $0xc4] sm:$0xff] }
  0x96   :  { %v2597_v5 = vadd.f32 %v2577_v47, %v2532_v14  ;;  %v2707_v45 = vmul.f32 %v8444_v2, %v2682_v39  ;;  %v2077_v63 = vadd.f32 %v2057_v44, %v2012_v18  ;;  %v2187_v6 = vmul.f32 %v8390_v8, %v4994_v40  ;;  %8469 = vst [vmem:[#allocation9_spill] sm:$0xff] %v5011_v4  ;;  %v925_v2 = vld [vmem:[#allocation2 + $0xc9] sm:$0x7]  ;;  %v2878_v39 = vld [vmem:[#allocation2 + $0x3e] sm:$0x7] }
  0x97   :  { %v710_v46 = vadd.f32 %v690_v33, %v645_v41  ;;  %v820_v60 = vmul.f32 %v5011_v4, %v795_v57  ;;  %v3181_v17 = vadd.f32 %v3161_v36, %v3116_v62  ;;  %v2772_v47 = vmul.f32 %v8445_v43, %v2747_v7  ;;  %8470 = vst [vmem:[#allocation41_spill] sm:$0xff] %v5015_v10  ;;  %v2943_v18 = vld [vmem:[#allocation2 + $0x56] sm:$0x7]  ;;  %v8471_v50 = vld [vmem:[#allocation8_spill] sm:$0xff]  ;;  %v5022_v14 = vld [vmem:[%s7880_s1 + $0xd] ss:$0 sm:$0xff] }
  0x98   :  { %v2662_v1 = vadd.f32 %v2642_v59, %v2597_v5  ;;  %v2142_v44 = vadd.f32 %v2122_v27, %v2077_v63  ;;  %v2252_v8 = vmul.f32 %v8433_v9, %v8471_v50  ;;  %v2357_v33 = vld [vmem:[#allocation2 + $0x35] sm:$0xff]  ;;  %v885_v36 = vmul.f32 %v5022_v14, %v860_v61  ;;  %v5030_v9 = vld [vmem:[#allocation2 + $0x4d] sm:$0xff]  ;;  %v3073_v50 = vld [vmem:[#allocation2 + $0x86] sm:$0x7] }
  0x99   :  { %v775_v26 = vadd.f32 %v755_v23, %v710_v46  ;;  %v5025_v59 = vadd.f32 %v3226_v11, %v3181_v17  ;;  %v2838_v57 = vmul.f32 %v8448_v3, %v2812_v29  ;;  %v990_v7 = vld [vmem:[#allocation2 + $0x3a] sm:$0x7]  ;;  %v2317_v27 = vmul.f32 %v8436_v58, %v5015_v10  ;;  %8473 = vst [vmem:[#allocation48_spill] sm:$0xff] %v5030_v9  ;;  %v5035_v62 = vld [vmem:[%s7880_s1 + $0xe] ss:$0 sm:$0xff]  ;;  %v5045_v46 = vld [vmem:[#allocation2 + $0x65] sm:$0xff] }
  0x9a   :  { %v2727_v43 = vadd.f32 %v2707_v45, %v2662_v1  ;;  %v2207_v41 = vadd.f32 %v2187_v6, %v2142_v44  ;;  %v950_v5 = vmul.f32 %v5035_v62, %v925_v2  ;;  %v1056_v11 = vld [vmem:[#allocation2 + $0x52] sm:$0x7]  ;;  %v5038_v61 = vld [vmem:[#allocation2 + $0xa9] sm:$0xff]  ;;  %v2903_v45 = vmul.f32 %v8459_v28, %v2878_v39  ;;  %8475 = vst [vmem:[#allocation44_spill] sm:$0xff] %v5045_v46  ;;  %v5065_v44 = vld [vmem:[#allocation2 + $0xd9] sm:$0xff] }
  0x9b   :  { %8472 = vst [vmem:[#allocation46_spill] sm:$0xff] %v5025_v59  ;;  %v840_v23 = vadd.f32 %v820_v60, %v775_v26  ;;  %8474 = vst [vmem:[#allocation11_spill] sm:$0xff] %v5038_v61  ;;  %3506 = vrot.lane.b32.xlu0 %v5025_v59, %s4045_s6  ;;  %v2968_v58 = vmul.f32 %v8461_v21, %v2943_v18  ;;  %v2383_v29 = vmul.f32 %v8438_v32, %v2357_v33  ;;  %v3008_v63 = vld [vmem:[#allocation2 + $0x6e] sm:$0x7]  ;;  %v1121_v2 = vld [vmem:[#allocation2 + $0x6a] sm:$0x7] }
  0x9c   :  { %v2792_v3 = vadd.f32 %v2772_v47, %v2727_v43  ;;  %v2272_v6 = vadd.f32 %v2252_v8, %v2207_v41  ;;  %v5050_v17 = vld [vmem:[%s7880_s1 + $0x10] ss:$0 sm:$0xff]  ;;  %v756_v28 = vmul.f32 %v5001_v31, %v4784_v34  ;;  %v2448_v32 = vmul.f32 %v8396_v55, %v5030_v9  ;;  %v5060_v21 = vld [vmem:[%s7880_s1 + $0x11] ss:$0 sm:$0xff]  ;;  %8478 = vst [vmem:[#allocation13_spill] sm:$0xff] %v5065_v44  ;;  %v5067_v33 = vld [vmem:[#allocation2 + $0x7d] sm:$0xff] }
  0x9d   :  { %v905_v60 = vadd.f32 %v885_v36, %v840_v23  ;;  %8476 = vst [vmem:[#allocation52_spill] sm:$0xff] %v5050_v17  ;;  %v1016_v1 = vmul.f32 %v5050_v17, %v990_v7  ;;  %8477 = vst [vmem:[#allocation54_spill] sm:$0xff] %v5060_v21  ;;  %v1081_v39 = vmul.f32 %v5060_v21, %v1056_v11  ;;  %v1186_v26 = vld [vmem:[#allocation2 + $0x82] sm:$0x7]  ;;  %v8480_v36 = vld [vmem:[#allocation7_spill] sm:$0xff] }
  0x9e   :  { %v2858_v47 = vadd.f32 %v2838_v57, %v2792_v3  ;;  %v821_v18 = vmul.f32 %v5011_v4, %v5038_v61  ;;  %v2337_v8 = vadd.f32 %v2317_v27, %v2272_v6  ;;  %8479 = vst [vmem:[#allocation45_spill] sm:$0xff] %v5067_v33  ;;  %v776_v55 = vadd.f32 %v756_v28, %v8480_v36  ;;  %v5078_v23 = vld [vmem:[%s7880_s1 + $0x12] ss:$0 sm:$0xff]  ;;  %v5081_v3 = vld [vmem:[#allocation2 + $0x95] sm:$0xff]  ;;  %v5160_v59 = vld [vmem:[%s7880_s1 + $0x30] ss:$0 sm:$0xff] }
  0x9f   :  { %v970_v34 = vadd.f32 %v950_v5, %v905_v60  ;;  %v886_v43 = vmul.f32 %v5022_v14, %v4795_v13  ;;  %v3033_v7 = vmul.f32 %v8464_v42, %v3008_v63  ;;  %v2513_v41 = vmul.f32 %v8439_v30, %v5045_v46  ;;  %8481 = vst [vmem:[#allocation50_spill] sm:$0xff] %v5078_v23  ;;  %v3138_v5 = vld [vmem:[#allocation2 + $0x9e] sm:$0x7]  ;;  %v1251_v60 = vld [vmem:[#allocation2 + $0x9a] sm:$0x7] }
  0xa0   :  { %v2923_v57 = vadd.f32 %v2903_v45, %v2858_v47  ;;  %v1146_v27 = vmul.f32 %v5078_v23, %v1121_v2  ;;  %v2403_v11 = vadd.f32 %v2383_v29, %v2337_v8  ;;  %8482 = vst [vmem:[#allocation18_spill] sm:$0xff] %v5081_v3  ;;  %v841_v13 = vadd.f32 %v821_v18, %v776_v55  ;;  %v5089_v63 = vld [vmem:[%s7880_s1 + $0x2b] ss:$0 sm:$0xff]  ;;  %v5096_v29 = vld [vmem:[%s7880_s1 + $0x13] ss:$0 sm:$0xff] }
  0xa1   :  { %v1036_v6 = vadd.f32 %v1016_v1, %v970_v34  ;;  %v951_v42 = vmul.f32 %v5035_v62, %v5065_v44  ;;  %v3098_v30 = vmul.f32 %v8466_v54, %v3073_v50  ;;  %8483 = vst [vmem:[#allocation4_spill] sm:$0xff] %v5089_v63  ;;  %v2578_v2 = vmul.f32 %v5089_v63, %v5067_v33  ;;  %v3203_v28 = vld [vmem:[#allocation2 + $0xb6] sm:$0x7]  ;;  %v1316_v18 = vld [vmem:[#allocation2 + $0xb2] sm:$0x7]  ;;  %v3885_v50 = vld [vmem:[#allocation2 + $0x4a] sm:$0xff] }
  0xa2   :  { %v2988_v45 = vadd.f32 %v2968_v58, %v2923_v57  ;;  %8484 = vst [vmem:[#allocation51_spill] sm:$0xff] %v5096_v29  ;;  %v1211_v1 = vmul.f32 %v5096_v29, %v1186_v26  ;;  %v2468_v47 = vadd.f32 %v2448_v32, %v2403_v11  ;;  %v906_v54 = vadd.f32 %v886_v43, %v841_v13  ;;  %v5104_v55 = vld [vmem:[%s7880_s1 + $0x2c] ss:$0 sm:$0xff]  ;;  %v5111_v32 = vld [vmem:[%s7880_s1 + $0x14] ss:$0 sm:$0xff] }
  0xa3   :  { %v1101_v58 = vadd.f32 %v1081_v39, %v1036_v6  ;;  %v1017_v8 = vmul.f32 %v3885_v50, %v5050_v17  ;;  %v3163_v36 = vmul.f32 %v8467_v19, %v3138_v5  ;;  %v2643_v57 = vmul.f32 %v5104_v55, %v5081_v3  ;;  %8485 = vst [vmem:[#allocation56_spill] sm:$0xff] %v5111_v32  ;;  %v5114_v43 = vld [vmem:[#allocation2 + $0xc5] sm:$0xff]  ;;  %v8488_v50 = vld [vmem:[#allocation6_spill] sm:$0xff]  ;;  %v274_v33 = vld [vmem:[#allocation2 + $0x98] sm:$0x7] }
  0xa4   :  { %v3053_v34 = vadd.f32 %v3033_v7, %v2988_v45  ;;  %v1276_v39 = vmul.f32 %v5111_v32, %v1251_v60  ;;  %v2533_v26 = vadd.f32 %v2513_v41, %v2468_v47  ;;  %8486 = vst [vmem:[#allocation57_spill] sm:$0xff] %v5114_v43  ;;  %v1381_v19 = vld [vmem:[#allocation2 + $0xca] sm:$0x7]  ;;  %v971_v5 = vadd.f32 %v951_v42, %v906_v54  ;;  %v5122_v45 = vld [vmem:[%s7880_s1 + $0x2d] ss:$0 sm:$0xff] }
  0xa5   :  { %v1166_v7 = vadd.f32 %v1146_v27, %v1101_v58  ;;  %v1082_v11 = vmul.f32 %v5060_v21, %v4815_v22  ;;  %v3228_v13 = vmul.f32 %v8437_v37, %v3203_v28  ;;  %8487 = vst [vmem:[#allocation58_spill] sm:$0xff] %v5122_v45  ;;  %v2708_v60 = vmul.f32 %v5122_v45, %v8488_v50  ;;  %v5129_v41 = vld [vmem:[%s7880_s1 + $0x15] ss:$0 sm:$0xff]  ;;  %v2813_v22 = vld [vmem:[#allocation2 + $0x36] sm:$0xff]  ;;  %v5137_v54 = vld [vmem:[%s7880_s1 + $0x2e] ss:$0 sm:$0xff] }
  0xa6   :  { %v3118_v6 = vadd.f32 %v3098_v30, %v3053_v34  ;;  %8489 = vst [vmem:[#allocation23_spill] sm:$0xff] %v5129_v41  ;;  %v1341_v27 = vmul.f32 %v5129_v41, %v1316_v18  ;;  %v2598_v42 = vadd.f32 %v2578_v2, %v2533_v26  ;;  %v1446_v47 = vld [vmem:[#allocation2 + $0x3b] sm:$0x7]  ;;  %v1037_v37 = vadd.f32 %v1017_v8, %v971_v5  ;;  %v5144_v2 = vld [vmem:[%s7880_s1 + $0x16] ss:$0 sm:$0xff]  ;;  %v5147_v18 = vld [vmem:[#allocation2 + $0xaa] sm:$0xff] }
  0xa7   :  { %v1231_v30 = vadd.f32 %v1211_v1, %v1166_v7  ;;  %v1147_v28 = vmul.f32 %v5078_v23, %v4822_v0  ;;  %8490 = vst [vmem:[#allocation59_spill] sm:$0xff] %v5137_v54  ;;  %v2773_v34 = vmul.f32 %v5137_v54, %v5114_v43  ;;  %8491 = vst [vmem:[#allocation25_spill] sm:$0xff] %v5144_v2  ;;  %v5149_v0 = vld [vmem:[#allocation2 + $0x4e] sm:$0xff]  ;;  %v208_v43 = vld [vmem:[#allocation2 + $0x80] sm:$0x7] }
  0xa8   :  { %v3183_v58 = vadd.f32 %v3163_v36, %v3118_v6  ;;  %v1406_v1 = vmul.f32 %v5144_v2, %v1381_v19  ;;  %8492 = vst [vmem:[#allocation55_spill] sm:$0xff] %v5147_v18  ;;  %v2663_v8 = vadd.f32 %v2643_v57, %v2598_v42  ;;  %8493 = vst [vmem:[#allocation26_spill] sm:$0xff] %v5149_v0  ;;  %v5151_v36 = vld [vmem:[#allocation2 + $0x66] sm:$0xff]  ;;  %v1512_v7 = vld [vmem:[#allocation2 + $0x53] sm:$0x7] }
  0xa9   :  { %8494 = vst [vmem:[#allocation29_spill] sm:$0xff] %v5151_v36  ;;  %v1296_v26 = vadd.f32 %v1276_v39, %v1231_v30  ;;  %v1102_v5 = vadd.f32 %v1082_v11, %v1037_v37  ;;  %v1212_v6 = vmul.f32 %v5096_v29, %v4832_v48  ;;  %8496 = vst [vmem:[#allocation33_spill] sm:$0xff] %v5160_v59  ;;  %v5166_v57 = vld [vmem:[%s7880_s1 + $0x18] ss:$0 sm:$0xff]  ;;  %v5169_v42 = vld [vmem:[#allocation2 + $0x7e] sm:$0xff] }
  0xaa   :  { %v5155_v50 = vadd.f32 %v3228_v13, %v3183_v58  ;;  %v2839_v19 = vmul.f32 %v5160_v59, %v2813_v22  ;;  %8497 = vst [vmem:[#allocation10_spill] sm:$0xff] %v5166_v57  ;;  %v1472_v39 = vmul.f32 %v5166_v57, %v1446_v47  ;;  %v2728_v11 = vadd.f32 %v2708_v60, %v2663_v8  ;;  %v5171_v48 = vld [vmem:[#allocation2 + $0x96] sm:$0xff]  ;;  %v1577_v30 = vld [vmem:[#allocation2 + $0x6b] sm:$0x7]  ;;  %v5180_v22 = vld [vmem:[%s7880_s1 + $0x31] ss:$0 sm:$0xff] }
  0xab   :  { %8498 = vst [vmem:[#allocation34_spill] sm:$0xff] %v5169_v42  ;;  %8499 = vst [vmem:[#allocation38_spill] sm:$0xff] %v5171_v48  ;;  %v1361_v13 = vadd.f32 %v1341_v27, %v1296_v26  ;;  %v1167_v37 = vadd.f32 %v1147_v28, %v1102_v5  ;;  %v1277_v58 = vmul.f32 %v5111_v32, %v5147_v18  ;;  %v5187_v27 = vld [vmem:[%s7880_s1 + $0x32] ss:$0 sm:$0xff]  ;;  %v5194_v28 = vld [vmem:[%s7880_s1 + $0x19] ss:$0 sm:$0xff] }
  0xac   :  { %8495 = vst [vmem:[#allocation37_spill] sm:$0xff] %v5155_v50  ;;  %3510 = vrot.lane.b32.xlu1 %v5155_v50, %s4045_s6  ;;  %8500 = vst [vmem:[#allocation12_spill] sm:$0xff] %v5180_v22  ;;  %v2904_v60 = vmul.f32 %v5180_v22, %v5149_v0  ;;  %v2969_v47 = vmul.f32 %v5187_v27, %v5151_v36  ;;  %v1537_v8 = vmul.f32 %v5194_v28, %v1512_v7  ;;  %v1642_v26 = vld [vmem:[#allocation2 + $0x83] sm:$0x7]  ;;  %v5197_v5 = vld [vmem:[#allocation2 + $0xda] sm:$0xff] }
  0xad   :  { %8501 = vst [vmem:[#allocation39_spill] sm:$0xff] %v5187_v27  ;;  %8502 = vst [vmem:[#allocation14_spill] sm:$0xff] %v5194_v28  ;;  %v2793_v50 = vadd.f32 %v2773_v34, %v2728_v11  ;;  %v1426_v18 = vadd.f32 %v1406_v1, %v1361_v13  ;;  %v1232_v44 = vadd.f32 %v1212_v6, %v1167_v37  ;;  %v76_v0 = vld [vmem:[#allocation2 + $0x50] sm:$0x7]  ;;  %v142_v32 = vld [vmem:[#allocation2 + $0x68] sm:$0x7] }
  0xae   :  { %8503 = vst [vmem:[#allocation16_spill] sm:$0xff] %v5197_v5  ;;  %v1342_v61 = vmul.f32 %v5129_v41, %v4853_v51  ;;  %v5204_v36 = vld [vmem:[%s7880_s1 + $0x33] ss:$0 sm:$0xff]  ;;  %v5211_v34 = vld [vmem:[%s7880_s1 + $0x34] ss:$0 sm:$0xff]  ;;  %v1407_v3 = vmul.f32 %v5144_v2, %v5197_v5  ;;  %v101_v46 = vmul.f32 %v4890_v24, %v76_v0  ;;  %v8510_v5 = vld [vmem:[#allocation17_spill] sm:$0xff] }
  0xaf   :  { %8504 = vst [vmem:[#allocation15_spill] sm:$0xff] %v5204_v36  ;;  %v3034_v7 = vmul.f32 %v5204_v36, %v5169_v42  ;;  %8505 = vst [vmem:[#allocation5_spill] sm:$0xff] %v5211_v34  ;;  %v3099_v1 = vmul.f32 %v5211_v34, %v5171_v48  ;;  %v5218_v51 = vld [vmem:[%s7880_s1 + $0x35] ss:$0 sm:$0xff]  ;;  %v5227_v11 = vld [vmem:[%s7880_s1 + $0x1a] ss:$0 sm:$0xff]  ;;  %v2859_v37 = vadd.f32 %v2839_v19, %v2793_v50 }
  0xb0   :  { %8506 = vst [vmem:[#allocation42_spill] sm:$0xff] %v5218_v51  ;;  %v5222_v6 = vmul.f32 %v5218_v51, %v4829_v49  ;;  %8507 = vst [vmem:[#allocation43_spill] sm:$0xff] %v5227_v11  ;;  %v1602_v13 = vmul.f32 %v5227_v11, %v1577_v30  ;;  %v5230_v42 = vld [vmem:[#allocation2 + $0xc6] sm:$0xff]  ;;  %v1492_v48 = vadd.f32 %v1472_v39, %v1426_v18  ;;  %v1707_v41 = vld [vmem:[#allocation2 + $0x9b] sm:$0x7] }
  0xb1   :  { %8508 = vst [vmem:[#allocation47_spill] sm:$0xff] %v5230_v42  ;;  %v1297_v29 = vadd.f32 %v1277_v58, %v1232_v44  ;;  %v5237_v49 = vld [vmem:[%s7880_s1 + $0x1b] ss:$0 sm:$0xff]  ;;  %v167_v50 = vmul.f32 %v4898_v12, %v142_v32  ;;  %v233_v19 = vmul.f32 %v4904_v15, %v208_v43  ;;  %v2924_v18 = vadd.f32 %v2904_v60, %v2859_v37  ;;  %v1772_v44 = vld [vmem:[#allocation2 + $0xb3] sm:$0x7]  ;;  %v8513_v37 = vld [vmem:[#allocation20_spill] sm:$0xff] }
  0xb2   :  { %8509 = vst [vmem:[#allocation49_spill] sm:$0xff] %v5237_v49  ;;  %v1667_v23 = vmul.f32 %v5237_v49, %v1642_v26  ;;  %v1557_v39 = vadd.f32 %v1537_v8, %v1492_v48  ;;  %v1837_v30 = vld [vmem:[#allocation2 + $0xcb] sm:$0x7]  ;;  %v1473_v2 = vmul.f32 %v5166_v57, %v8510_v5  ;;  %v340_v9 = vld [vmem:[#allocation2 + $0xb0] sm:$0x7]  ;;  %v1538_v57 = vmul.f32 %v5194_v28, %v8513_v37 }
  0xb3   :  { %v1362_v58 = vadd.f32 %v1342_v61, %v1297_v29  ;;  %v5248_v21 = vld [vmem:[%s7880_s1 + $0x36] ss:$0 sm:$0xff]  ;;  %v5255_v32 = vld [vmem:[%s7880_s1 + $0x1c] ss:$0 sm:$0xff]  ;;  %v187_v61 = vadd.f32 %v167_v50, %v101_v46  ;;  %v299_v29 = vmul.f32 %v4916_v35, %v274_v33  ;;  %v2989_v48 = vadd.f32 %v2969_v47, %v2924_v18  ;;  %v406_v10 = vld [vmem:[#allocation2 + $0xc8] sm:$0x7] }
  0xb4   :  { %8511 = vst [vmem:[#allocation53_spill] sm:$0xff] %v5248_v21  ;;  %v3229_v0 = vmul.f32 %v5248_v21, %v5230_v42  ;;  %8512 = vst [vmem:[#allocation8_spill] sm:$0xff] %v5255_v32  ;;  %v1732_v43 = vmul.f32 %v5255_v32, %v1707_v41  ;;  %v1622_v60 = vadd.f32 %v1602_v13, %v1557_v39  ;;  %v1902_v8 = vld [vmem:[#allocation2 + $0x3c] sm:$0x7]  ;;  %v1968_v26 = vld [vmem:[#allocation2 + $0x54] sm:$0x7] }
  0xb5   :  { %v1427_v5 = vadd.f32 %v1407_v3, %v1362_v58  ;;  %v5264_v42 = vld [vmem:[%s7880_s1 + $0x1d] ss:$0 sm:$0xff]  ;;  %v5270_v46 = vld [vmem:[%s7880_s1 + $0x1e] ss:$0 sm:$0xff]  ;;  %v253_v41 = vadd.f32 %v233_v19, %v187_v61  ;;  %v365_v3 = vmul.f32 %v4926_v56, %v340_v9  ;;  %v3054_v47 = vadd.f32 %v3034_v7, %v2989_v48  ;;  %v2033_v50 = vld [vmem:[#allocation2 + $0x6c] sm:$0x7] }
  0xb6   :  { %8514 = vst [vmem:[#allocation7_spill] sm:$0xff] %v5264_v42  ;;  %v1797_v17 = vmul.f32 %v5264_v42, %v1772_v44  ;;  %8515 = vst [vmem:[#allocation6_spill] sm:$0xff] %v5270_v46  ;;  %v1862_v33 = vmul.f32 %v5270_v46, %v1837_v30  ;;  %v1687_v13 = vadd.f32 %v1667_v23, %v1622_v60  ;;  %v2098_v18 = vld [vmem:[#allocation2 + $0x84] sm:$0x7]  ;;  %v471_v37 = vld [vmem:[#allocation2 + $0xe0] sm:$0x7] }
  0xb7   :  { %v1493_v39 = vadd.f32 %v1473_v2, %v1427_v5  ;;  %v1603_v58 = vmul.f32 %v5227_v11, %v4885_v25  ;;  %v5279_v44 = vld [vmem:[%s7880_s1 + $0x20] ss:$0 sm:$0xff]  ;;  %v5285_v9 = vld [vmem:[%s7880_s1 + $0x21] ss:$0 sm:$0xff]  ;;  %v5288_v7 = vld [vmem:[#allocation2 + $0xab] sm:$0xff]  ;;  %v319_v2 = vadd.f32 %v299_v29, %v253_v41  ;;  %v431_v25 = vmul.f32 %v4940_v38, %v406_v10 }
  0xb8   :  { %8516 = vst [vmem:[#allocation17_spill] sm:$0xff] %v5279_v44  ;;  %v1928_v28 = vmul.f32 %v5279_v44, %v1902_v8  ;;  %8517 = vst [vmem:[#allocation20_spill] sm:$0xff] %v5285_v9  ;;  %v1993_v23 = vmul.f32 %v5285_v9, %v1968_v26  ;;  %v3119_v19 = vadd.f32 %v3099_v1, %v3054_v47  ;;  %v2163_v61 = vld [vmem:[#allocation2 + $0x9c] sm:$0x7]  ;;  %v2228_v48 = vld [vmem:[#allocation2 + $0xb4] sm:$0x7] }
  0xb9   :  { %8518 = vst [vmem:[#allocation60_spill] sm:$0xff] %v5288_v7  ;;  %v1752_v30 = vadd.f32 %v1732_v43, %v1687_v13  ;;  %v1558_v60 = vadd.f32 %v1538_v57, %v1493_v39  ;;  %v8519_v5 = vld [vmem:[#allocation28_spill] sm:$0xff]  ;;  %v536_v11 = vld [vmem:[#allocation2 + $0x51] sm:$0x7]  ;;  %v385_v57 = vadd.f32 %v365_v3, %v319_v2  ;;  %v2293_v13 = vld [vmem:[#allocation2 + $0xcc] sm:$0x7] }
  0xba   :  { %v1668_v8 = vmul.f32 %v5237_v49, %v8519_v5  ;;  %v5296_v56 = vld [vmem:[%s7880_s1 + $0x22] ss:$0 sm:$0xff]  ;;  %v5302_v10 = vld [vmem:[%s7880_s1 + $0x23] ss:$0 sm:$0xff]  ;;  %v8522_v43 = vld [vmem:[#allocation30_spill] sm:$0xff]  ;;  %v3184_v41 = vadd.f32 %v5222_v6, %v3119_v19 }
  0xbb   :  { %8520 = vst [vmem:[#allocation28_spill] sm:$0xff] %v5296_v56  ;;  %v2058_v26 = vmul.f32 %v5296_v56, %v2033_v50  ;;  %8521 = vst [vmem:[#allocation61_spill] sm:$0xff] %v5302_v10  ;;  %v5305_v1 = vmul.f32 %v5302_v10, %v2098_v18  ;;  %v496_v29 = vmul.f32 %v8522_v43, %v471_v37  ;;  %v2358_v39 = vld [vmem:[#allocation2 + $0x3d] sm:$0x7]  ;;  %v602_v49 = vld [vmem:[#allocation2 + $0x69] sm:$0x7] }
  0xbc   :  { %v1817_v47 = vadd.f32 %v1797_v17, %v1752_v30  ;;  %v1623_v5 = vadd.f32 %v1603_v58, %v1558_v60  ;;  %v1733_v50 = vmul.f32 %v5255_v32, %v5288_v7  ;;  %v5314_v38 = vld [vmem:[%s7880_s1 + $0x24] ss:$0 sm:$0xff]  ;;  %v5322_v6 = vld [vmem:[%s7880_s1 + $0x25] ss:$0 sm:$0xff]  ;;  %v2424_v3 = vld [vmem:[#allocation2 + $0x55] sm:$0x7]  ;;  %v451_v37 = vadd.f32 %v431_v25, %v385_v57 }
  0xbd   :  { %8523 = vst [vmem:[#allocation62_spill] sm:$0xff] %v5314_v38  ;;  %v5317_v18 = vmul.f32 %v5314_v38, %v2163_v61  ;;  %8524 = vst [vmem:[#allocation63_spill] sm:$0xff] %v5322_v6  ;;  %v5325_v17 = vmul.f32 %v5322_v6, %v2228_v48  ;;  %v5327_v58 = vld [vmem:[#allocation2 + $0xdb] sm:$0xff]  ;;  %v5330_v30 = vadd.f32 %v3229_v0, %v3184_v41  ;;  %v2489_v7 = vld [vmem:[#allocation2 + $0x6d] sm:$0x7] }
  0xbe   :  { %8525 = vst [vmem:[#allocation64_spill] sm:$0xff] %v5327_v58  ;;  %v8526_v2 = vld [vmem:[#allocation31_spill] sm:$0xff]  ;;  %v1882_v60 = vadd.f32 %v1862_v33, %v1817_v47  ;;  %v2554_v61 = vld [vmem:[#allocation2 + $0x85] sm:$0x7]  ;;  %v1688_v32 = vadd.f32 %v1668_v8, %v1623_v5  ;;  %v667_v38 = vld [vmem:[#allocation2 + $0x81] sm:$0x7]  ;;  %v516_v25 = vadd.f32 %v496_v29, %v451_v37  ;;  %v627_v8 = vmul.f32 %v4977_v53, %v602_v49 }
  0xbf   :  { %v562_v19 = vmul.f32 %v8526_v2, %v536_v11  ;;  %8527 = vst [vmem:[#allocation65_spill] sm:$0xff] %v5330_v30  ;;  %v8528_v43 = vld [vmem:[#allocation32_spill] sm:$0xff]  ;;  %v5345_v11 = vld [vmem:[%s7880_s1 + $0x28] ss:$0 sm:$0xff]  ;;  %v2619_v33 = vld [vmem:[#allocation2 + $0x9d] sm:$0x7]  ;;  %3512 = vrot.lane.b32.xlu0 %v5330_v30, %s4045_s6  ;;  %v1863_v29 = vmul.f32 %v5270_v46, %v5327_v58  ;;  %v5372_v37 = vmul.f32 %v5089_v63, %v2554_v61 }
  0xc0   :  { %v1798_v35 = vmul.f32 %v5264_v42, %v8528_v43  ;;  %v5337_v48 = vld [vmem:[%s7880_s1 + $0x26] ss:$0 sm:$0xff]  ;;  %8530 = vst [vmem:[#allocation66_spill] sm:$0xff] %v5345_v11  ;;  %v5348_v0 = vmul.f32 %v5345_v11, %v2358_v39  ;;  %v1948_v57 = vadd.f32 %v1928_v28, %v1882_v60  ;;  %v5356_v43 = vld [vmem:[%s7880_s1 + $0x29] ss:$0 sm:$0xff]  ;;  %v1753_v39 = vadd.f32 %v1733_v50, %v1688_v32  ;;  %v8534_v53 = vld [vmem:[#allocation35_spill] sm:$0xff] }
  0xc1   :  { %8529 = vst [vmem:[#allocation32_spill] sm:$0xff] %v5337_v48  ;;  %v5340_v6 = vmul.f32 %v5337_v48, %v2293_v13  ;;  %8531 = vst [vmem:[#allocation67_spill] sm:$0xff] %v5356_v43  ;;  %v5359_v41 = vmul.f32 %v5356_v43, %v2424_v3  ;;  %v2684_v47 = vld [vmem:[#allocation2 + $0xb5] sm:$0x7]  ;;  %v2749_v13 = vld [vmem:[#allocation2 + $0xcd] sm:$0x7]  ;;  %v582_v60 = vadd.f32 %v562_v19, %v516_v25 }
  0xc2   :  { %v732_v5 = vld [vmem:[#allocation2 + $0x99] sm:$0x7]  ;;  %v5366_v49 = vld [vmem:[%s7880_s1 + $0x2a] ss:$0 sm:$0xff]  ;;  %v2814_v3 = vld [vmem:[#allocation2 + $0x3e] sm:$0x7]  ;;  %v692_v30 = vmul.f32 %v4989_v16, %v667_v38  ;;  %v2013_v32 = vadd.f32 %v1993_v23, %v1948_v57  ;;  %v5376_v50 = vmul.f32 %v5104_v55, %v2619_v33  ;;  %v1818_v42 = vadd.f32 %v1798_v35, %v1753_v39 }
  0xc3   :  { %8532 = vst [vmem:[#allocation68_spill] sm:$0xff] %v5359_v41  ;;  %8533 = vst [vmem:[#allocation69_spill] sm:$0xff] %v5366_v49  ;;  %v5369_v28 = vmul.f32 %v5366_v49, %v2489_v7  ;;  %v2880_v58 = vld [vmem:[#allocation2 + $0x56] sm:$0x7]  ;;  %v2945_v46 = vld [vmem:[#allocation2 + $0x6e] sm:$0x7]  ;;  %v1929_v2 = vmul.f32 %v5279_v44, %v8534_v53  ;;  %v5381_v7 = vmul.f32 %v5122_v45, %v2684_v47 }
  0xc4   :  { %v797_v41 = vld [vmem:[#allocation2 + $0xb1] sm:$0x7]  ;;  %v5384_v61 = vmul.f32 %v5137_v54, %v2749_v13  ;;  %v3010_v19 = vld [vmem:[#allocation2 + $0x86] sm:$0x7]  ;;  %v647_v25 = vadd.f32 %v627_v8, %v582_v60  ;;  %v757_v38 = vmul.f32 %v5001_v31, %v732_v5  ;;  %v2078_v23 = vadd.f32 %v2058_v26, %v2013_v32  ;;  %v3075_v57 = vld [vmem:[#allocation2 + $0x9e] sm:$0x7] }
  0xc5   :  { %v5388_v33 = vmul.f32 %v5160_v59, %v2814_v3  ;;  %v3140_v35 = vld [vmem:[#allocation2 + $0xb6] sm:$0x7]  ;;  %v1883_v39 = vadd.f32 %v1863_v29, %v1818_v42  ;;  %v1994_v53 = vmul.f32 %v5285_v9, %v4970_v20  ;;  %v862_v44 = vld [vmem:[#allocation2 + $0xc9] sm:$0x7]  ;;  %v5393_v47 = vmul.f32 %v5180_v22, %v2880_v58  ;;  %v927_v20 = vld [vmem:[#allocation2 + $0xe1] sm:$0x7] }
  0xc6   :  { %v5396_v13 = vmul.f32 %v5187_v27, %v2945_v46  ;;  %v712_v8 = vadd.f32 %v692_v30, %v647_v25  ;;  %v822_v5 = vmul.f32 %v5011_v4, %v797_v41  ;;  %v2143_v26 = vadd.f32 %v5305_v1, %v2078_v23  ;;  %v5405_v29 = vld [vmem:[#allocation2 + $0x90] sm:$0xff]  ;;  %v5419_v23 = vld [vmem:[#allocation2] sm:$0xff] }
  0xc7   :  { %v5401_v3 = vmul.f32 %v5204_v36, %v3010_v19  ;;  %v1949_v60 = vadd.f32 %v1929_v2, %v1883_v39  ;;  %v2059_v42 = vmul.f32 %v5296_v56, %v4982_v52  ;;  %8536 = vst [vmem:[#allocation70_spill] sm:$0xff] %v5405_v29  ;;  %v5408_v58 = vmul.f32 %v5211_v34, %v3075_v57  ;;  %v3205_v30 = vld [vmem:[#allocation2 + $0xce] sm:$0x7]  ;;  %v992_v25 = vld [vmem:[#allocation2 + $0x52] sm:$0x7]  ;;  %v5427_v39 = vld [vmem:[#allocation2 + $0xdc] sm:$0xff] }
  0xc8   :  { %v5411_v46 = vmul.f32 %v5218_v51, %v3140_v35  ;;  %v5413_v41 = vld [vmem:[#allocation2 + $0xac] sm:$0xff]  ;;  %v777_v1 = vadd.f32 %v757_v38, %v712_v8  ;;  %v887_v32 = vmul.f32 %v5022_v14, %v862_v44  ;;  %v2208_v2 = vadd.f32 %v5317_v18, %v2143_v26  ;;  %8540 = vst [vmem:[#allocation74_spill] sm:$0xff] %v5419_v23  ;;  %v5440_v56 = vld [vmem:[#allocation2 + $0xc0] sm:$0xff] }
  0xc9   :  { %8535 = vst [vmem:[#allocation35_spill] sm:$0xff] %v5401_v3  ;;  %8537 = vst [vmem:[#allocation71_spill] sm:$0xff] %v5408_v58  ;;  %v2014_v19 = vadd.f32 %v1994_v53, %v1949_v60  ;;  %v2124_v52 = vmul.f32 %v5302_v10, %v4994_v40  ;;  %v5423_v57 = vmul.f32 %v5419_v23, %v4890_v24  ;;  %v5425_v35 = vld [vmem:[#allocation2 + $0xa8] sm:$0xff]  ;;  %v8545_v60 = vld [vmem:[#allocation62_spill] sm:$0xff] }
  0xca   :  { %8538 = vst [vmem:[#allocation72_spill] sm:$0xff] %v5411_v46  ;;  %8539 = vst [vmem:[#allocation73_spill] sm:$0xff] %v5413_v41  ;;  %v842_v38 = vadd.f32 %v822_v5, %v777_v1  ;;  %v952_v44 = vmul.f32 %v5035_v62, %v927_v20  ;;  %v168_v18 = vmul.f32 %v5419_v23, %v4898_v12  ;;  %v1058_v46 = vld [vmem:[#allocation2 + $0x6a] sm:$0x7]  ;;  %v8547_v20 = vld [vmem:[#allocation52_spill] sm:$0xff] }
  0xcb   :  { %8541 = vst [vmem:[#allocation75_spill] sm:$0xff] %v5423_v57  ;;  %8542 = vst [vmem:[#allocation76_spill] sm:$0xff] %v5425_v35  ;;  %v234_v40 = vmul.f32 %v4904_v15, %v5405_v29  ;;  %v2273_v53 = vadd.f32 %v5325_v17, %v2208_v2  ;;  %v5436_v8 = vmul.f32 %v5248_v21, %v3205_v30  ;;  %v8548_v9 = vld [vmem:[#allocation22_spill] sm:$0xff]  ;;  %v8549_v30 = vld [vmem:[#allocation41_spill] sm:$0xff] }
  0xcc   :  { %8543 = vst [vmem:[#allocation77_spill] sm:$0xff] %v5427_v39  ;;  %v2079_v26 = vadd.f32 %v2059_v42, %v2014_v19  ;;  %v2189_v10 = vmul.f32 %v8545_v60, %v5413_v41  ;;  %8546 = vst [vmem:[#allocation79_spill] sm:$0xff] %v5440_v56  ;;  %v907_v5 = vadd.f32 %v887_v32, %v842_v38  ;;  %v1123_v41 = vld [vmem:[#allocation2 + $0x82] sm:$0x7]  ;;  %v5451_v60 = vld [vmem:[#allocation2 + $0xd8] sm:$0xff] }
  0xcd   :  { %8544 = vst [vmem:[#allocation78_spill] sm:$0xff] %v5436_v8  ;;  %v1018_v1 = vmul.f32 %v8547_v20, %v992_v25  ;;  %v188_v58 = vadd.f32 %v168_v18, %v5423_v57  ;;  %v300_v29 = vmul.f32 %v8548_v9, %v5425_v35  ;;  %v2338_v17 = vadd.f32 %v5340_v6, %v2273_v53  ;;  %v8550_v8 = vld [vmem:[#allocation63_spill] sm:$0xff]  ;;  %v8552_v38 = vld [vmem:[#allocation54_spill] sm:$0xff]  ;;  %v8553_v18 = vld [vmem:[#allocation21_spill] sm:$0xff] }
  0xce   :  { %v2144_v2 = vadd.f32 %v2124_v52, %v2079_v26  ;;  %v2254_v42 = vmul.f32 %v8550_v8, %v8549_v30  ;;  %v2319_v19 = vmul.f32 %v5337_v48, %v5427_v39  ;;  %8551 = vst [vmem:[#allocation52_spill] sm:$0xff] %v5451_v60  ;;  %v972_v32 = vadd.f32 %v952_v44, %v907_v5  ;;  %v8554_v52 = vld [vmem:[#allocation48_spill] sm:$0xff]  ;;  %v1188_v39 = vld [vmem:[#allocation2 + $0x9a] sm:$0x7]  ;;  %v5461_v48 = vld [vmem:[#allocation2 + $0xad] sm:$0xff] }
  0xcf   :  { %v1083_v25 = vmul.f32 %v8552_v38, %v1058_v46  ;;  %v254_v3 = vadd.f32 %v234_v40, %v188_v58  ;;  %v366_v57 = vmul.f32 %v8553_v18, %v5440_v56  ;;  %v2404_v35 = vadd.f32 %v5348_v0, %v2338_v17  ;;  %v8555_v26 = vld [vmem:[#allocation44_spill] sm:$0xff]  ;;  %8556 = vst [vmem:[#allocation22_spill] sm:$0xff] %v5461_v48  ;;  %v8557_v44 = vld [vmem:[#allocation50_spill] sm:$0xff]  ;;  %v8558_v58 = vld [vmem:[#allocation27_spill] sm:$0xff] }
  0xd0   :  { %v2209_v6 = vadd.f32 %v2189_v10, %v2144_v2  ;;  %v2385_v53 = vmul.f32 %v5345_v11, %v8554_v52  ;;  %v2450_v30 = vmul.f32 %v5356_v43, %v8555_v26  ;;  %v1038_v8 = vadd.f32 %v1018_v1, %v972_v32  ;;  %v8559_v56 = vld [vmem:[#allocation68_spill] sm:$0xff]  ;;  %v8560_v10 = vld [vmem:[#allocation45_spill] sm:$0xff]  ;;  %v8561_v2 = vld [vmem:[#allocation18_spill] sm:$0xff] }
  0xd1   :  { %v1148_v5 = vmul.f32 %v8557_v44, %v1123_v41  ;;  %v320_v46 = vadd.f32 %v300_v29, %v254_v3  ;;  %v432_v40 = vmul.f32 %v8558_v58, %v5451_v60  ;;  %v2469_v18 = vadd.f32 %v8559_v56, %v2404_v35  ;;  %v1253_v26 = vld [vmem:[#allocation2 + $0xb2] sm:$0x7]  ;;  %v537_v43 = vld [vmem:[#allocation2 + $0x61] sm:$0xff]  ;;  %v8563_v32 = vld [vmem:[#allocation51_spill] sm:$0xff] }
  0xd2   :  { %v2274_v0 = vadd.f32 %v2254_v42, %v2209_v6  ;;  %v2515_v17 = vmul.f32 %v5366_v49, %v8560_v10  ;;  %v2580_v52 = vmul.f32 %v5089_v63, %v8561_v2  ;;  %v5471_v11 = vld [vmem:[#allocation2 + $0xdd] sm:$0xff]  ;;  %v1103_v1 = vadd.f32 %v1083_v25, %v1038_v8  ;;  %v8564_v29 = vld [vmem:[#allocation30_spill] sm:$0xff]  ;;  %v8566_v6 = vld [vmem:[#allocation57_spill] sm:$0xff] }
  0xd3   :  { %8562 = vst [vmem:[#allocation41_spill] sm:$0xff] %v5471_v11  ;;  %v1213_v41 = vmul.f32 %v8563_v32, %v1188_v39  ;;  %v386_v3 = vadd.f32 %v366_v57, %v320_v46  ;;  %v5476_v60 = vmul.f32 %v5419_v23, %v8564_v29  ;;  %v2534_v56 = vadd.f32 %v5369_v28, %v2469_v18  ;;  %v1318_v2 = vld [vmem:[#allocation2 + $0xca] sm:$0x7]  ;;  %v5485_v63 = vld [vmem:[#allocation2 + $0x79] sm:$0xff]  ;;  %v8570_v18 = vld [vmem:[#allocation26_spill] sm:$0xff] }
  0xd4   :  { %v2339_v35 = vadd.f32 %v2319_v19, %v2274_v0  ;;  %v2645_v42 = vmul.f32 %v5104_v55, %v5461_v48  ;;  %v5483_v10 = vmul.f32 %v5122_v45, %v8566_v6  ;;  %8567 = vst [vmem:[#allocation48_spill] sm:$0xff] %v5485_v63  ;;  %v1168_v8 = vadd.f32 %v1148_v5, %v1103_v1  ;;  %v8568_v39 = vld [vmem:[#allocation56_spill] sm:$0xff]  ;;  %v8569_v46 = vld [vmem:[#allocation31_spill] sm:$0xff]  ;;  %v5500_v5 = vld [vmem:[#allocation2 + $0xae] sm:$0xff] }
  0xd5   :  { %8565 = vst [vmem:[#allocation54_spill] sm:$0xff] %v5476_v60  ;;  %v1278_v57 = vmul.f32 %v8568_v39, %v1253_v26  ;;  %v452_v25 = vadd.f32 %v432_v40, %v386_v3  ;;  %v563_v23 = vmul.f32 %v8569_v46, %v537_v43  ;;  %v2599_v49 = vadd.f32 %v5372_v37, %v2534_v56  ;;  %v1383_v6 = vld [vmem:[#allocation2 + $0xe2] sm:$0x7]  ;;  %v5498_v48 = vld [vmem:[#allocation2 + $0x91] sm:$0xff]  ;;  %v78_v45 = vld [vmem:[#allocation2 + $0x68] sm:$0x7] }
  0xd6   :  { %v2405_v28 = vadd.f32 %v2385_v53, %v2339_v35  ;;  %v5492_v19 = vmul.f32 %v5137_v54, %v5471_v11  ;;  %v5496_v0 = vmul.f32 %v5160_v59, %v8570_v18  ;;  %8571 = vst [vmem:[#allocation44_spill] sm:$0xff] %v5498_v48  ;;  %8572 = vst [vmem:[#allocation50_spill] sm:$0xff] %v5500_v5  ;;  %v8573_v40 = vld [vmem:[#allocation23_spill] sm:$0xff]  ;;  %v8574_v37 = vld [vmem:[#allocation36_spill] sm:$0xff] }
  0xd7   :  { %v1233_v26 = vadd.f32 %v1213_v41, %v1168_v8  ;;  %v1343_v1 = vmul.f32 %v8573_v40, %v1318_v2  ;;  %v517_v43 = vadd.f32 %v5476_v60, %v452_v25  ;;  %v628_v53 = vmul.f32 %v8574_v37, %v5485_v63  ;;  %v8575_v35 = vld [vmem:[#allocation29_spill] sm:$0xff]  ;;  %v8576_v11 = vld [vmem:[#allocation34_spill] sm:$0xff]  ;;  %v5515_v41 = vld [vmem:[#allocation2 + $0xde] sm:$0xff] }
  0xd8   :  { %v2664_v3 = vadd.f32 %v5376_v50, %v2599_v49  ;;  %v2470_v56 = vadd.f32 %v2450_v30, %v2405_v28  ;;  %v5509_v18 = vmul.f32 %v5180_v22, %v8575_v35  ;;  %v5513_v59 = vmul.f32 %v5187_v27, %v8576_v11  ;;  %v1448_v54 = vld [vmem:[#allocation2 + $0x53] sm:$0x7]  ;;  %8577 = vst [vmem:[#allocation27_spill] sm:$0xff] %v5515_v41  ;;  %v8578_v8 = vld [vmem:[#allocation25_spill] sm:$0xff]  ;;  %v8582_v22 = vld [vmem:[#allocation11_spill] sm:$0xff] }
  0xd9   :  { %v1298_v2 = vadd.f32 %v1278_v57, %v1233_v26  ;;  %v1408_v25 = vmul.f32 %v8578_v8, %v1383_v6  ;;  %v583_v60 = vadd.f32 %v563_v23, %v517_v43  ;;  %v693_v63 = vmul.f32 %v4989_v16, %v5498_v48  ;;  %v8579_v30 = vld [vmem:[#allocation38_spill] sm:$0xff]  ;;  %v1514_v35 = vld [vmem:[#allocation2 + $0x6b] sm:$0x7]  ;;  %v5529_v27 = vld [vmem:[#allocation2 + $0xc1] sm:$0xff] }
  0xda   :  { %v2729_v49 = vadd.f32 %v5381_v7, %v2664_v3  ;;  %v2535_v50 = vadd.f32 %v2515_v17, %v2470_v56  ;;  %v5523_v28 = vmul.f32 %v5204_v36, %v8579_v30  ;;  %v5527_v11 = vmul.f32 %v5211_v34, %v5500_v5  ;;  %8580 = vst [vmem:[#allocation68_spill] sm:$0xff] %v5529_v27  ;;  %v8581_v6 = vld [vmem:[#allocation10_spill] sm:$0xff]  ;;  %v1579_v26 = vld [vmem:[#allocation2 + $0x83] sm:$0x7]  ;;  %v1644_v43 = vld [vmem:[#allocation2 + $0x9b] sm:$0x7] }
  0xdb   :  { %v1363_v57 = vadd.f32 %v1343_v1, %v1298_v2  ;;  %v1474_v23 = vmul.f32 %v8581_v6, %v1448_v54  ;;  %v648_v48 = vadd.f32 %v628_v53, %v583_v60  ;;  %v758_v7 = vmul.f32 %v5001_v31, %v8582_v22  ;;  %v8583_v56 = vld [vmem:[#allocation47_spill] sm:$0xff]  ;;  %v1709_v1 = vld [vmem:[#allocation2 + $0xb3] sm:$0x7]  ;;  %v1774_v36 = vld [vmem:[#allocation2 + $0xcb] sm:$0x7] }
  0xdc   :  { %v2794_v17 = vadd.f32 %v5384_v61, %v2729_v49  ;;  %v2600_v3 = vadd.f32 %v2580_v52, %v2535_v50  ;;  %v5537_v30 = vmul.f32 %v5218_v51, %v8583_v56  ;;  %v5541_v5 = vmul.f32 %v5248_v21, %v5515_v41  ;;  %v8584_v54 = vld [vmem:[#allocation14_spill] sm:$0xff]  ;;  %v1839_v60 = vld [vmem:[#allocation2 + $0xe3] sm:$0x7]  ;;  %v8585_v49 = vld [vmem:[#allocation43_spill] sm:$0xff] }
  0xdd   :  { %v1428_v2 = vadd.f32 %v1408_v25, %v1363_v57  ;;  %v1539_v34 = vmul.f32 %v8584_v54, %v1514_v35  ;;  %v713_v53 = vadd.f32 %v693_v63, %v648_v48  ;;  %v823_v22 = vmul.f32 %v5011_v4, %v5529_v27  ;;  %v8586_v56 = vld [vmem:[#allocation49_spill] sm:$0xff]  ;;  %v1904_v31 = vld [vmem:[#allocation2 + $0x54] sm:$0x7]  ;;  %v8588_v25 = vld [vmem:[#allocation8_spill] sm:$0xff] }
  0xde   :  { %v2860_v61 = vadd.f32 %v5388_v33, %v2794_v17  ;;  %v2665_v52 = vadd.f32 %v2645_v42, %v2600_v3  ;;  %v1604_v50 = vmul.f32 %v8585_v49, %v1579_v26  ;;  %v1669_v51 = vmul.f32 %v8586_v56, %v1644_v43  ;;  %v5549_v41 = vld [vmem:[#allocation2 + $0xf1] sm:$0xff]  ;;  %v8589_v54 = vld [vmem:[#allocation13_spill] sm:$0xff]  ;;  %v144_v3 = vld [vmem:[#allocation2 + $0x80] sm:$0x7] }
  0xdf   :  { %8587 = vst [vmem:[#allocation45_spill] sm:$0xff] %v5549_v41  ;;  %v1494_v21 = vadd.f32 %v1474_v23, %v1428_v2  ;;  %v1734_v57 = vmul.f32 %v8588_v25, %v1709_v1  ;;  %v778_v35 = vadd.f32 %v758_v7, %v713_v53  ;;  %v888_v63 = vmul.f32 %v5022_v14, %v8589_v54  ;;  %v993_v48 = vld [vmem:[#allocation2 + $0x62] sm:$0xff]  ;;  %v8590_v42 = vld [vmem:[#allocation7_spill] sm:$0xff]  ;;  %v8591_v17 = vld [vmem:[#allocation6_spill] sm:$0xff] }
  0xe0   :  { %v2925_v27 = vadd.f32 %v5393_v47, %v2860_v61  ;;  %v2730_v33 = vadd.f32 %v5483_v10, %v2665_v52  ;;  %v1799_v26 = vmul.f32 %v8590_v42, %v1774_v36  ;;  %v1864_v43 = vmul.f32 %v8591_v17, %v1839_v60  ;;  %v210_v56 = vld [vmem:[#allocation2 + $0x98] sm:$0x7]  ;;  %v8592_v23 = vld [vmem:[#allocation17_spill] sm:$0xff]  ;;  %v276_v61 = vld [vmem:[#allocation2 + $0xb0] sm:$0x7] }
  0xe1   :  { %v1559_v4 = vadd.f32 %v1539_v34, %v1494_v21  ;;  %v5559_v2 = vmul.f32 %v8592_v23, %v1904_v31  ;;  %v1970_v7 = vld [vmem:[#allocation2 + $0x6c] sm:$0x7]  ;;  %v843_v1 = vadd.f32 %v823_v22, %v778_v35  ;;  %v953_v54 = vmul.f32 %v5035_v62, %v5549_v41  ;;  %v5563_v53 = vld [vmem:[#allocation2 + $0x7a] sm:$0xff]  ;;  %v2035_v34 = vld [vmem:[#allocation2 + $0x84] sm:$0x7] }
  0xe2   :  { %8593 = vst [vmem:[#allocation18_spill] sm:$0xff] %v5563_v53  ;;  %v2990_v47 = vadd.f32 %v5396_v13, %v2925_v27  ;;  %v2795_v10 = vadd.f32 %v5492_v19, %v2730_v33  ;;  %v1019_v36 = vmul.f32 %v8547_v20, %v993_v48  ;;  %v103_v60 = vmul.f32 %v4890_v24, %v78_v45  ;;  %v5569_v52 = vld [vmem:[#allocation2 + $0x92] sm:$0xff]  ;;  %v8596_v13 = vld [vmem:[#allocation20_spill] sm:$0xff]  ;;  %v342_v24 = vld [vmem:[#allocation2 + $0xc8] sm:$0x7] }
  0xe3   :  { %v1624_v21 = vadd.f32 %v1604_v50, %v1559_v4  ;;  %v908_v31 = vadd.f32 %v888_v63, %v843_v1  ;;  %8594 = vst [vmem:[#allocation51_spill] sm:$0xff] %v5569_v52  ;;  %v169_v22 = vmul.f32 %v4898_v12, %v144_v3  ;;  %v235_v35 = vmul.f32 %v4904_v15, %v210_v56  ;;  %v8595_v41 = vld [vmem:[#allocation35_spill] sm:$0xff]  ;;  %v8598_v56 = vld [vmem:[#allocation28_spill] sm:$0xff] }
  0xe4   :  { %v3055_v23 = vadd.f32 %v8595_v41, %v2990_v47  ;;  %v2861_v27 = vadd.f32 %v5496_v0, %v2795_v10  ;;  %v1995_v19 = vmul.f32 %v8596_v13, %v1970_v7  ;;  %v1084_v48 = vmul.f32 %v8552_v38, %v5563_v53  ;;  %v2100_v4 = vld [vmem:[#allocation2 + $0x9c] sm:$0x7]  ;;  %v408_v3 = vld [vmem:[#allocation2 + $0xe0] sm:$0x7]  ;;  %v2165_v47 = vld [vmem:[#allocation2 + $0xb4] sm:$0x7] }
  0xe5   :  { %v1689_v45 = vadd.f32 %v1669_v51, %v1624_v21  ;;  %v973_v50 = vadd.f32 %v953_v54, %v908_v31  ;;  %v189_v63 = vadd.f32 %v169_v22, %v103_v60  ;;  %v301_v33 = vmul.f32 %v8548_v9, %v276_v61  ;;  %v8597_v1 = vld [vmem:[#allocation71_spill] sm:$0xff]  ;;  %v5586_v51 = vld [vmem:[#allocation2 + $0xc2] sm:$0xff] }
  0xe6   :  { %v3120_v12 = vadd.f32 %v8597_v1, %v3055_v23  ;;  %v2926_v15 = vadd.f32 %v5509_v18, %v2861_v27  ;;  %v5582_v41 = vmul.f32 %v8598_v56, %v2035_v34  ;;  %v1149_v0 = vmul.f32 %v8557_v44, %v5569_v52  ;;  %8599 = vst [vmem:[#allocation30_spill] sm:$0xff] %v5586_v51  ;;  %v8600_v60 = vld [vmem:[#allocation21_spill] sm:$0xff]  ;;  %v8601_v9 = vld [vmem:[#allocation72_spill] sm:$0xff]  ;;  %v8603_v34 = vld [vmem:[#allocation55_spill] sm:$0xff] }
  0xe7   :  { %v1754_v7 = vadd.f32 %v1734_v57, %v1689_v45  ;;  %v1039_v10 = vadd.f32 %v1019_v36, %v973_v50  ;;  %v255_v54 = vadd.f32 %v235_v35, %v189_v63  ;;  %v367_v21 = vmul.f32 %v8600_v60, %v342_v24  ;;  %v8602_v18 = vld [vmem:[#allocation61_spill] sm:$0xff]  ;;  %v473_v27 = vld [vmem:[#allocation2 + $0xf8] sm:$0x7]  ;;  %v2295_v45 = vld [vmem:[#allocation2 + $0xe4] sm:$0x7] }
  0xe8   :  { %v3185_v61 = vadd.f32 %v8601_v9, %v3120_v12  ;;  %v2991_v23 = vadd.f32 %v5513_v59, %v2926_v15  ;;  %v5592_v31 = vmul.f32 %v8602_v18, %v2100_v4  ;;  %v1214_v22 = vmul.f32 %v8563_v32, %v8603_v34  ;;  %v2230_v57 = vld [vmem:[#allocation2 + $0xcc] sm:$0x7]  ;;  %v8604_v63 = vld [vmem:[#allocation78_spill] sm:$0xff]  ;;  %v538_v60 = vld [vmem:[#allocation2 + $0x69] sm:$0x7] }
  0xe9   :  { %v1819_v1 = vadd.f32 %v1799_v26, %v1754_v7  ;;  %v1104_v36 = vadd.f32 %v1084_v48, %v1039_v10  ;;  %v321_v50 = vadd.f32 %v301_v33, %v255_v54  ;;  %v433_v35 = vmul.f32 %v8558_v58, %v408_v3  ;;  %v8606_v59 = vld [vmem:[#allocation62_spill] sm:$0xff]  ;;  %v2426_v7 = vld [vmem:[#allocation2 + $0x6d] sm:$0x7]  ;;  %v8608_v3 = vld [vmem:[#allocation63_spill] sm:$0xff] }
  0xea   :  { %v5598_v24 = vadd.f32 %v8604_v63, %v3185_v61  ;;  %v3056_v12 = vadd.f32 %v5523_v28, %v2991_v23  ;;  %v5602_v15 = vmul.f32 %v8606_v59, %v2165_v47  ;;  %v1279_v4 = vmul.f32 %v8568_v39, %v5586_v51  ;;  %v2360_v26 = vld [vmem:[#allocation2 + $0x55] sm:$0x7]  ;;  %v8609_v10 = vld [vmem:[#allocation32_spill] sm:$0xff]  ;;  %v2686_v51 = vld [vmem:[#allocation2 + $0xcd] sm:$0x7] }
  0xeb   :  { %v1884_v9 = vadd.f32 %v1864_v43, %v1819_v1  ;;  %v1169_v34 = vadd.f32 %v1149_v0, %v1104_v36  ;;  %v5606_v48 = vld [vmem:[#allocation2 + $0xf2] sm:$0xff]  ;;  %v387_v33 = vadd.f32 %v367_v21, %v321_v50  ;;  %v498_v58 = vmul.f32 %v8564_v29, %v473_v27  ;;  %v8610_v43 = vld [vmem:[#allocation16_spill] sm:$0xff]  ;;  %v2556_v1 = vld [vmem:[#allocation2 + $0x9d] sm:$0x7] }
  0xec   :  { %8605 = vst [vmem:[#allocation57_spill] sm:$0xff] %v5598_v24  ;;  %8607 = vst [vmem:[#allocation56_spill] sm:$0xff] %v5606_v48  ;;  %3514 = vrot.lane.b32.xlu1 %v5598_v24, %s4045_s6  ;;  %v3121_v28 = vadd.f32 %v5527_v11, %v3056_v12  ;;  %v5613_v47 = vmul.f32 %v8608_v3, %v2230_v57  ;;  %v5616_v54 = vmul.f32 %v8609_v10, %v2295_v45  ;;  %v604_v0 = vld [vmem:[#allocation2 + $0x81] sm:$0x7]  ;;  %v2491_v21 = vld [vmem:[#allocation2 + $0x85] sm:$0x7] }
  0xed   :  { %v1344_v61 = vmul.f32 %v8573_v40, %v8610_v43  ;;  %v1950_v23 = vadd.f32 %v5559_v2, %v1884_v9  ;;  %v1234_v29 = vadd.f32 %v1214_v22, %v1169_v34  ;;  %v1449_v27 = vld [vmem:[#allocation2 + $0x63] sm:$0xff]  ;;  %v453_v36 = vadd.f32 %v433_v35, %v387_v33  ;;  %v8611_v57 = vld [vmem:[#allocation66_spill] sm:$0xff]  ;;  %v8612_v45 = vld [vmem:[#allocation67_spill] sm:$0xff] }
  0xee   :  { %v564_v50 = vmul.f32 %v8569_v46, %v538_v60  ;;  %v3186_v11 = vadd.f32 %v5537_v30, %v3121_v28  ;;  %v5624_v63 = vmul.f32 %v8611_v57, %v2360_v26  ;;  %v5627_v12 = vmul.f32 %v8612_v45, %v2426_v7  ;;  %v2621_v24 = vld [vmem:[#allocation2 + $0xb5] sm:$0x7]  ;;  %v669_v2 = vld [vmem:[#allocation2 + $0x99] sm:$0x7]  ;;  %v2751_v22 = vld [vmem:[#allocation2 + $0xe5] sm:$0x7] }
  0xef   :  { %v1409_v43 = vmul.f32 %v8578_v8, %v5606_v48  ;;  %v2015_v9 = vadd.f32 %v1995_v19, %v1950_v23  ;;  %v1299_v34 = vadd.f32 %v1279_v4, %v1234_v29  ;;  %v5631_v35 = vld [vmem:[#allocation2 + $0x7b] sm:$0xff]  ;;  %v518_v46 = vadd.f32 %v498_v58, %v453_v36  ;;  %v8615_v26 = vld [vmem:[#allocation69_spill] sm:$0xff]  ;;  %v2816_v48 = vld [vmem:[#allocation2 + $0x56] sm:$0x7] }
  0xf0   :  { %8613 = vst [vmem:[#allocation31_spill] sm:$0xff] %v5631_v35  ;;  %v629_v30 = vmul.f32 %v8574_v37, %v604_v0  ;;  %v5635_v60 = vadd.f32 %v5541_v5, %v3186_v11  ;;  %v5638_v7 = vmul.f32 %v8615_v26, %v2491_v21  ;;  %v8616_v33 = vld [vmem:[#allocation4_spill] sm:$0xff]  ;;  %v1475_v19 = vmul.f32 %v8581_v6, %v1449_v27  ;;  %v734_v23 = vld [vmem:[#allocation2 + $0xb1] sm:$0x7]  ;;  %v2882_v29 = vld [vmem:[#allocation2 + $0x6e] sm:$0x7] }
  0xf1   :  { %v5641_v28 = vmul.f32 %v8616_v33, %v2556_v1  ;;  %v2080_v4 = vadd.f32 %v5582_v41, %v2015_v9  ;;  %v2947_v52 = vld [vmem:[#allocation2 + $0x86] sm:$0x7]  ;;  %v1364_v58 = vadd.f32 %v1344_v61, %v1299_v34  ;;  %v5645_v36 = vld [vmem:[#allocation2 + $0x93] sm:$0xff]  ;;  %v584_v37 = vadd.f32 %v564_v50, %v518_v46  ;;  %v799_v9 = vld [vmem:[#allocation2 + $0xc9] sm:$0x7] }
  0xf2   :  { %8614 = vst [vmem:[#allocation26_spill] sm:$0xff] %v5635_v60  ;;  %8617 = vst [vmem:[#allocation36_spill] sm:$0xff] %v5645_v36  ;;  %v694_v5 = vmul.f32 %v4989_v16, %v669_v2  ;;  %3516 = vrot.lane.b32.xlu0 %v5635_v60, %s4045_s6  ;;  %v5651_v0 = vmul.f32 %v5104_v55, %v2621_v24  ;;  %v8618_v21 = vld [vmem:[#allocation58_spill] sm:$0xff]  ;;  %v8619_v27 = vld [vmem:[#allocation59_spill] sm:$0xff] }
  0xf3   :  { %v5654_v1 = vmul.f32 %v8618_v21, %v2686_v51  ;;  %v5657_v11 = vmul.f32 %v8619_v27, %v2751_v22  ;;  %v8621_v41 = vld [vmem:[#allocation14_spill] sm:$0xff]  ;;  %v2145_v50 = vadd.f32 %v5592_v31, %v2080_v4  ;;  %v3012_v34 = vld [vmem:[#allocation2 + $0x9e] sm:$0x7]  ;;  %v1429_v46 = vadd.f32 %v1409_v43, %v1364_v58  ;;  %v8623_v6 = vld [vmem:[#allocation33_spill] sm:$0xff] }
  0xf4   :  { %v1540_v61 = vmul.f32 %v8621_v41, %v5631_v35  ;;  %v3077_v16 = vld [vmem:[#allocation2 + $0xb6] sm:$0x7]  ;;  %v3142_v2 = vld [vmem:[#allocation2 + $0xce] sm:$0x7]  ;;  %v649_v60 = vadd.f32 %v629_v30, %v584_v37  ;;  %v8622_v53 = vld [vmem:[#allocation40_spill] sm:$0xff]  ;;  %v5664_v8 = vmul.f32 %v8623_v6, %v2816_v48  ;;  %v1605_v35 = vmul.f32 %v8585_v49, %v5645_v36 }
  0xf5   :  { %8620 = vst [vmem:[#allocation29_spill] sm:$0xff] %v5657_v11  ;;  %v759_v24 = vmul.f32 %v8622_v53, %v734_v23  ;;  %v8625_v51 = vld [vmem:[#allocation12_spill] sm:$0xff]  ;;  %v8627_v22 = vld [vmem:[#allocation39_spill] sm:$0xff]  ;;  %v2210_v4 = vadd.f32 %v5602_v15, %v2145_v50  ;;  %v1495_v43 = vadd.f32 %v1475_v19, %v1429_v46  ;;  %v8631_v23 = vld [vmem:[#allocation9_spill] sm:$0xff] }
  0xf6   :  { %8624 = vst [vmem:[#allocation34_spill] sm:$0xff] %v5664_v8  ;;  %v5667_v40 = vmul.f32 %v8625_v51, %v2882_v29  ;;  %v5670_v11 = vmul.f32 %v8627_v22, %v2947_v52  ;;  %v864_v31 = vld [vmem:[#allocation2 + $0xe1] sm:$0x7]  ;;  %v3207_v41 = vld [vmem:[#allocation2 + $0xe6] sm:$0x7]  ;;  %v5677_v53 = vld [vmem:[#allocation2 + $0xf3] sm:$0xff]  ;;  %v714_v48 = vadd.f32 %v694_v5, %v649_v60  ;;  %v824_v58 = vmul.f32 %v8631_v23, %v799_v9 }
  0xf7   :  { %v5675_v30 = vld [vmem:[#allocation2 + $0xc3] sm:$0xff]  ;;  %8630 = vst [vmem:[#allocation8_spill] sm:$0xff] %v5677_v53  ;;  %v8632_v29 = vld [vmem:[#allocation15_spill] sm:$0xff]  ;;  %v2275_v46 = vadd.f32 %v5613_v47, %v2210_v4  ;;  %v1560_v8 = vadd.f32 %v1540_v61, %v1495_v43  ;;  %v889_v9 = vmul.f32 %v5022_v14, %v864_v31 }
  0xf8   :  { %8626 = vst [vmem:[#allocation38_spill] sm:$0xff] %v5667_v40  ;;  %8628 = vst [vmem:[#allocation11_spill] sm:$0xff] %v5670_v11  ;;  %v5681_v37 = vmul.f32 %v8632_v29, %v3012_v34  ;;  %v8633_v52 = vld [vmem:[#allocation5_spill] sm:$0xff]  ;;  %v8635_v40 = vld [vmem:[#allocation42_spill] sm:$0xff]  ;;  %v779_v5 = vadd.f32 %v759_v24, %v714_v48 }
  0xf9   :  { %8629 = vst [vmem:[#allocation47_spill] sm:$0xff] %v5675_v30  ;;  %v5684_v11 = vmul.f32 %v8633_v52, %v3077_v16  ;;  %v5687_v36 = vmul.f32 %v8635_v40, %v3142_v2  ;;  %v8637_v49 = vld [vmem:[#allocation60_spill] sm:$0xff]  ;;  %v8638_v15 = vld [vmem:[#allocation49_spill] sm:$0xff]  ;;  %v929_v19 = vld [vmem:[#allocation2 + $0xf9] sm:$0x7]  ;;  %v1735_v16 = vmul.f32 %v8588_v25, %v5675_v30  ;;  %v2340_v61 = vadd.f32 %v5616_v54, %v2275_v46 }
  0xfa   :  { %v1670_v50 = vmul.f32 %v8638_v15, %v8637_v49  ;;  %v1905_v22 = vld [vmem:[#allocation2 + $0x64] sm:$0xff]  ;;  %v5692_v60 = vld [vmem:[#allocation2 + $0x7c] sm:$0xff]  ;;  %v1865_v49 = vmul.f32 %v8591_v17, %v5677_v53  ;;  %v1625_v4 = vadd.f32 %v1605_v35, %v1560_v8  ;;  %v5705_v43 = vld [vmem:[#allocation2 + $0x94] sm:$0xff]  ;;  %v844_v24 = vadd.f32 %v824_v58, %v779_v5 }
  0xfb   :  { %8634 = vst [vmem:[#allocation13_spill] sm:$0xff] %v5684_v11  ;;  %8636 = vst [vmem:[#allocation7_spill] sm:$0xff] %v5687_v36  ;;  %v8640_v34 = vld [vmem:[#allocation53_spill] sm:$0xff]  ;;  %v8642_v2 = vld [vmem:[#allocation64_spill] sm:$0xff]  ;;  %v954_v14 = vmul.f32 %v5035_v62, %v929_v19  ;;  %v5711_v48 = vmul.f32 %v8596_v13, %v5692_v60 }
  0xfc   :  { %8639 = vst [vmem:[#allocation6_spill] sm:$0xff] %v5692_v60  ;;  %v5696_v23 = vmul.f32 %v8640_v34, %v3207_v41  ;;  %v1800_v36 = vmul.f32 %v8590_v42, %v8642_v2  ;;  %v994_v47 = vld [vmem:[#allocation2 + $0x6a] sm:$0x7]  ;;  %8643 = vst [vmem:[#allocation71_spill] sm:$0xff] %v5705_v43  ;;  %v1060_v30 = vld [vmem:[#allocation2 + $0x82] sm:$0x7]  ;;  %v1690_v58 = vadd.f32 %v1670_v50, %v1625_v4 }
  0xfd   :  { %v8644_v41 = vld [vmem:[#allocation17_spill] sm:$0xff]  ;;  %v5716_v2 = vld [vmem:[%s7880_s1 + $0x1] ss:$0 sm:$0xff]  ;;  %v8646_v53 = vld [vmem:[#allocation70_spill] sm:$0xff]  ;;  %v909_v46 = vadd.f32 %v889_v9, %v844_v24  ;;  %v1020_v5 = vmul.f32 %v8547_v20, %v994_v47  ;;  %v5733_v60 = vmul.f32 %v8598_v56, %v5705_v43 }
  0xfe   :  { %8641 = vst [vmem:[#allocation35_spill] sm:$0xff] %v5696_v23  ;;  %v1931_v31 = vmul.f32 %v8644_v41, %v1905_v22  ;;  %8645 = vst [vmem:[#allocation28_spill] sm:$0xff] %v5716_v2  ;;  %v170_v8 = vmul.f32 %v5716_v2, %v8646_v53  ;;  %v5723_v54 = vld [vmem:[%s7880_s1 + $0x2] ss:$0 sm:$0xff]  ;;  %v2406_v22 = vadd.f32 %v5624_v63, %v2340_v61  ;;  %v5728_v19 = vld [vmem:[#allocation2 + $0xc4] sm:$0xff] }
  0xff   :  { %8647 = vst [vmem:[#allocation21_spill] sm:$0xff] %v5723_v54  ;;  %v8648_v62 = vld [vmem:[#allocation76_spill] sm:$0xff]  ;;  %8649 = vst [vmem:[#allocation72_spill] sm:$0xff] %v5728_v19  ;;  %v8650_v53 = vld [vmem:[#allocation73_spill] sm:$0xff]  ;;  %v1755_v47 = vadd.f32 %v1735_v16, %v1690_v58  ;;  %v974_v24 = vadd.f32 %v954_v14, %v909_v46 }
 0x100   :  { %v236_v35 = vmul.f32 %v5723_v54, %v8648_v62  ;;  %v5737_v23 = vmul.f32 %v8602_v18, %v8650_v53  ;;  %v1125_v13 = vld [vmem:[#allocation2 + $0x9a] sm:$0x7]  ;;  %v5743_v63 = vld [vmem:[%s7880_s1 + $0x3] ss:$0 sm:$0xff]  ;;  %v2471_v20 = vadd.f32 %v5627_v12, %v2406_v22  ;;  %v2361_v4 = vld [vmem:[#allocation2 + $0x65] sm:$0xff]  ;;  %v1085_v62 = vmul.f32 %v8552_v38, %v1060_v30 }
 0x101   :  { %v8651_v2 = vld [vmem:[#allocation75_spill] sm:$0xff]  ;;  %v1190_v43 = vld [vmem:[#allocation2 + $0xb2] sm:$0x7]  ;;  %v5762_v12 = vld [vmem:[%s7880_s1 + $0x4] ss:$0 sm:$0xff]  ;;  %v1820_v30 = vadd.f32 %v1800_v36, %v1755_v47  ;;  %v1040_v46 = vadd.f32 %v1020_v5, %v974_v24 }
 0x102   :  { %v190_v11 = vadd.f32 %v170_v8, %v8651_v2  ;;  %v8652_v50 = vld [vmem:[#allocation79_spill] sm:$0xff]  ;;  %v5753_v2 = vmul.f32 %v8606_v59, %v5728_v19  ;;  %v8654_v8 = vld [vmem:[#allocation77_spill] sm:$0xff]  ;;  %v8655_v16 = vld [vmem:[#allocation52_spill] sm:$0xff]  ;;  %v2536_v38 = vadd.f32 %v5638_v7, %v2471_v20 }
 0x103   :  { %v302_v9 = vmul.f32 %v5743_v63, %v8652_v50  ;;  %v5748_v61 = vld [vmem:[#allocation2 + $0xf4] sm:$0xff]  ;;  %v5757_v53 = vmul.f32 %v8608_v3, %v8654_v8  ;;  %v368_v14 = vmul.f32 %v5762_v12, %v8655_v16  ;;  %v5767_v22 = vld [vmem:[#allocation2 + $0x7d] sm:$0xff]  ;;  %v1150_v50 = vmul.f32 %v8557_v44, %v1125_v13  ;;  %v1255_v8 = vld [vmem:[#allocation2 + $0xca] sm:$0x7] }
 0x104   :  { %8653 = vst [vmem:[#allocation55_spill] sm:$0xff] %v5748_v61  ;;  %v256_v18 = vadd.f32 %v236_v35, %v190_v11  ;;  %8656 = vst [vmem:[#allocation78_spill] sm:$0xff] %v5767_v22  ;;  %v5769_v58 = vld [vmem:[#allocation2 + $0x95] sm:$0xff]  ;;  %v5774_v11 = vmul.f32 %v8609_v10, %v5748_v61  ;;  %v5777_v35 = vmul.f32 %v8611_v57, %v2361_v4  ;;  %v5782_v7 = vld [vmem:[%s7880_s1 + $0x5] ss:$0 sm:$0xff] }
 0x105   :  { %8657 = vst [vmem:[#allocation62_spill] sm:$0xff] %v5769_v58  ;;  %8658 = vst [vmem:[#allocation63_spill] sm:$0xff] %v5782_v7  ;;  %v8659_v36 = vld [vmem:[#allocation74_spill] sm:$0xff]  ;;  %v2601_v44 = vadd.f32 %v5641_v28, %v2536_v38  ;;  %v1885_v13 = vadd.f32 %v1865_v49, %v1820_v30  ;;  %v5789_v5 = vld [vmem:[#allocation2 + $0xc5] sm:$0xff]  ;;  %v1105_v47 = vadd.f32 %v1085_v62, %v1040_v46 }
 0x106   :  { %v322_v19 = vadd.f32 %v302_v9, %v256_v18  ;;  %v5786_v20 = vmul.f32 %v5782_v7, %v8659_v36  ;;  %8661 = vst [vmem:[#allocation16_spill] sm:$0xff] %v5789_v5  ;;  %v1215_v4 = vmul.f32 %v8563_v32, %v1190_v43  ;;  %v5794_v18 = vmul.f32 %v8612_v45, %v5767_v22  ;;  %v8662_v24 = vld [vmem:[#allocation22_spill] sm:$0xff]  ;;  %v1320_v36 = vld [vmem:[#allocation2 + $0xe2] sm:$0x7]  ;;  %v2817_v32 = vld [vmem:[#allocation2 + $0x66] sm:$0xff] }
 0x107   :  { %v5798_v9 = vmul.f32 %v8615_v26, %v5769_v58  ;;  %v5802_v16 = vmul.f32 %v8616_v33, %v8662_v24  ;;  %v2666_v49 = vadd.f32 %v5651_v0, %v2601_v44  ;;  %v1951_v38 = vadd.f32 %v1931_v31, %v1885_v13  ;;  %v5805_v62 = vld [vmem:[#allocation2 + $0xf5] sm:$0xff]  ;;  %v8664_v58 = vld [vmem:[#allocation41_spill] sm:$0xff]  ;;  %v8665_v31 = vld [vmem:[#allocation48_spill] sm:$0xff] }
 0x108   :  { %8660 = vst [vmem:[#allocation32_spill] sm:$0xff] %v5786_v20  ;;  %v388_v28 = vadd.f32 %v368_v14, %v322_v19  ;;  %8663 = vst [vmem:[#allocation66_spill] sm:$0xff] %v5805_v62  ;;  %v1170_v43 = vadd.f32 %v1150_v50, %v1105_v47  ;;  %v1280_v30 = vmul.f32 %v8568_v39, %v1255_v8  ;;  %v1385_v33 = vld [vmem:[#allocation2 + $0xfa] sm:$0x7]  ;;  %v5820_v0 = vld [vmem:[%s7880_s1 + $0x8] ss:$0 sm:$0xff] }
 0x109   :  { %v5810_v46 = vmul.f32 %v5104_v55, %v5789_v5  ;;  %v5814_v22 = vmul.f32 %v8618_v21, %v8664_v58  ;;  %v565_v14 = vmul.f32 %v5820_v0, %v8665_v31  ;;  %v2731_v39 = vadd.f32 %v5654_v1, %v2666_v49  ;;  %v5826_v50 = vld [vmem:[#allocation2 + $0x7e] sm:$0xff]  ;;  %v5828_v8 = vld [vmem:[#allocation2 + $0x96] sm:$0xff]  ;;  %v5831_v13 = vld [vmem:[#allocation2 + $0xa9] sm:$0xff] }
 0x10a   :  { %v454_v19 = vadd.f32 %v5786_v20, %v388_v28  ;;  %v2016_v55 = vadd.f32 %v5711_v48, %v1951_v38  ;;  %8666 = vst [vmem:[#allocation67_spill] sm:$0xff] %v5826_v50  ;;  %8667 = vst [vmem:[#allocation69_spill] sm:$0xff] %v5828_v8  ;;  %v1235_v21 = vadd.f32 %v1215_v4, %v1170_v43  ;;  %v8668_v58 = vld [vmem:[#allocation23_spill] sm:$0xff]  ;;  %v1450_v28 = vld [vmem:[#allocation2 + $0x6b] sm:$0x7] }
 0x10b   :  { %v1345_v44 = vmul.f32 %v8668_v58, %v1320_v36  ;;  %8669 = vst [vmem:[#allocation4_spill] sm:$0xff] %v5831_v13  ;;  %v5835_v47 = vmul.f32 %v8619_v27, %v5805_v62  ;;  %v5838_v24 = vmul.f32 %v8623_v6, %v2817_v32  ;;  %v8670_v1 = vld [vmem:[#allocation54_spill] sm:$0xff]  ;;  %v5844_v48 = vld [vmem:[%s7880_s1 + $0x9] ss:$0 sm:$0xff]  ;;  %v8672_v4 = vld [vmem:[#allocation44_spill] sm:$0xff] }
 0x10c   :  { %v519_v49 = vadd.f32 %v8670_v1, %v454_v19  ;;  %8671 = vst [vmem:[#allocation58_spill] sm:$0xff] %v5844_v48  ;;  %v630_v36 = vmul.f32 %v5844_v48, %v8672_v4  ;;  %v8673_v38 = vld [vmem:[#allocation29_spill] sm:$0xff]  ;;  %v2081_v31 = vadd.f32 %v5733_v60, %v2016_v55  ;;  %v1300_v58 = vadd.f32 %v1280_v30, %v1235_v21  ;;  %v8676_v1 = vld [vmem:[#allocation39_spill] sm:$0xff]  ;;  %v1516_v5 = vld [vmem:[#allocation2 + $0x83] sm:$0x7] }
 0x10d   :  { %v2796_v43 = vadd.f32 %v8673_v38, %v2731_v39  ;;  %v5850_v27 = vld [vmem:[#allocation2 + $0xc6] sm:$0xff]  ;;  %v5855_v19 = vmul.f32 %v8625_v51, %v5826_v50  ;;  %v5859_v62 = vmul.f32 %v8676_v1, %v5828_v8  ;;  %v8678_v30 = vld [vmem:[#allocation34_spill] sm:$0xff]  ;;  %v1581_v8 = vld [vmem:[#allocation2 + $0x9b] sm:$0x7] }
 0x10e   :  { %8674 = vst [vmem:[#allocation59_spill] sm:$0xff] %v5850_v27  ;;  %v8675_v6 = vld [vmem:[#allocation25_spill] sm:$0xff]  ;;  %v585_v20 = vadd.f32 %v565_v14, %v519_v49  ;;  %v2146_v55 = vadd.f32 %v5737_v23, %v2081_v31  ;;  %v5870_v51 = vld [vmem:[#allocation2 + $0xf6] sm:$0xff]  ;;  %v1365_v21 = vadd.f32 %v1345_v44, %v1300_v58  ;;  %v5881_v1 = vmul.f32 %v8633_v52, %v5850_v27  ;;  %v8684_v44 = vld [vmem:[#allocation68_spill] sm:$0xff] }
 0x10f   :  { %v1410_v32 = vmul.f32 %v8675_v6, %v1385_v33  ;;  %v5864_v39 = vld [vmem:[%s7880_s1 + $0xa] ss:$0 sm:$0xff]  ;;  %v2862_v33 = vadd.f32 %v8678_v30, %v2796_v43  ;;  %8679 = vst [vmem:[#allocation33_spill] sm:$0xff] %v5870_v51  ;;  %v8680_v4 = vld [vmem:[#allocation10_spill] sm:$0xff]  ;;  %v5873_v6 = vld [vmem:[#allocation2 + $0xd9] sm:$0xff] }
 0x110   :  { %8677 = vst [vmem:[#allocation40_spill] sm:$0xff] %v5864_v39  ;;  %v695_v60 = vmul.f32 %v5864_v39, %v5831_v13  ;;  %v1476_v38 = vmul.f32 %v8680_v4, %v1450_v28  ;;  %8681 = vst [vmem:[#allocation12_spill] sm:$0xff] %v5873_v6  ;;  %v8682_v14 = vld [vmem:[#allocation50_spill] sm:$0xff]  ;;  %v650_v50 = vadd.f32 %v630_v36, %v585_v20  ;;  %v5886_v23 = vld [vmem:[%s7880_s1 + $0xb] ss:$0 sm:$0xff] }
 0x111   :  { %v5877_v49 = vmul.f32 %v8632_v29, %v8682_v14  ;;  %8683 = vst [vmem:[#allocation9_spill] sm:$0xff] %v5886_v23  ;;  %v760_v28 = vmul.f32 %v5886_v23, %v8684_v44  ;;  %v8685_v43 = vld [vmem:[#allocation38_spill] sm:$0xff]  ;;  %v2211_v58 = vadd.f32 %v5753_v2, %v2146_v55  ;;  %v1430_v29 = vadd.f32 %v1410_v32, %v1365_v21  ;;  %v1711_v52 = vld [vmem:[#allocation2 + $0xcb] sm:$0x7]  ;;  %v8687_v27 = vld [vmem:[#allocation27_spill] sm:$0xff] }
 0x112   :  { %v2927_v31 = vadd.f32 %v8685_v43, %v2862_v33  ;;  %v8686_v30 = vld [vmem:[#allocation14_spill] sm:$0xff]  ;;  %v5895_v20 = vmul.f32 %v8635_v40, %v8687_v27  ;;  %v5899_v36 = vmul.f32 %v8640_v34, %v5870_v51  ;;  %v1776_v13 = vld [vmem:[#allocation2 + $0xe3] sm:$0x7]  ;;  %v715_v61 = vadd.f32 %v695_v60, %v650_v50  ;;  %v5904_v33 = vld [vmem:[%s7880_s1 + $0xc] ss:$0 sm:$0xff] }
 0x113   :  { %v1541_v4 = vmul.f32 %v8686_v30, %v1516_v5  ;;  %v1646_v14 = vld [vmem:[#allocation2 + $0xb3] sm:$0x7]  ;;  %8689 = vst [vmem:[#allocation5_spill] sm:$0xff] %v5904_v33  ;;  %v825_v2 = vmul.f32 %v5904_v33, %v5873_v6  ;;  %v8690_v5 = vld [vmem:[#allocation11_spill] sm:$0xff]  ;;  %v2276_v55 = vadd.f32 %v5757_v53, %v2211_v58  ;;  %v1496_v40 = vadd.f32 %v1476_v38, %v1430_v29  ;;  %v1906_v34 = vld [vmem:[#allocation2 + $0x6c] sm:$0x7] }
 0x114   :  { %8688 = vst [vmem:[#allocation15_spill] sm:$0xff] %v5899_v36  ;;  %v2992_v32 = vadd.f32 %v8690_v5, %v2927_v31  ;;  %v8691_v27 = vld [vmem:[#allocation43_spill] sm:$0xff]  ;;  %v5911_v43 = vld [vmem:[#allocation2 + $0x109] sm:$0xff]  ;;  %v1671_v50 = vmul.f32 %v8638_v15, %v1646_v14  ;;  %v1736_v60 = vmul.f32 %v8588_v25, %v1711_v52  ;;  %v780_v30 = vadd.f32 %v760_v28, %v715_v61  ;;  %v80_v5 = vld [vmem:[#allocation2 + $0x80] sm:$0x7] }
 0x115   :  { %v1606_v21 = vmul.f32 %v8691_v27, %v1581_v8  ;;  %v1841_v44 = vld [vmem:[#allocation2 + $0xfb] sm:$0x7]  ;;  %8692 = vst [vmem:[#allocation42_spill] sm:$0xff] %v5911_v43  ;;  %v5918_v51 = vld [vmem:[%s7880_s1 + $0xd] ss:$0 sm:$0xff]  ;;  %v2341_v8 = vadd.f32 %v5774_v11, %v2276_v55  ;;  %v1561_v58 = vadd.f32 %v1541_v4, %v1496_v40  ;;  %v1801_v29 = vmul.f32 %v8590_v42, %v1776_v13 }
 0x116   :  { %8693 = vst [vmem:[#allocation60_spill] sm:$0xff] %v5918_v51  ;;  %v8694_v31 = vld [vmem:[#allocation45_spill] sm:$0xff]  ;;  %v3057_v38 = vadd.f32 %v5681_v37, %v2992_v32  ;;  %v146_v15 = vld [vmem:[#allocation2 + $0x98] sm:$0x7]  ;;  %v212_v14 = vld [vmem:[#allocation2 + $0xb0] sm:$0x7]  ;;  %v1866_v25 = vmul.f32 %v8591_v17, %v1841_v44  ;;  %v5927_v61 = vmul.f32 %v8644_v41, %v1906_v34  ;;  %v845_v52 = vadd.f32 %v825_v2, %v780_v30 }
 0x117   :  { %v890_v53 = vmul.f32 %v5918_v51, %v8694_v31  ;;  %v1972_v28 = vld [vmem:[#allocation2 + $0x84] sm:$0x7]  ;;  %v5932_v27 = vld [vmem:[%s7880_s1 + $0xe] ss:$0 sm:$0xff]  ;;  %v2407_v13 = vadd.f32 %v5777_v35, %v2341_v8  ;;  %v1626_v4 = vadd.f32 %v1606_v21, %v1561_v58  ;;  %v5941_v17 = vld [vmem:[%s7880_s1 + $0x10] ss:$0 sm:$0xff]  ;;  %v237_v30 = vmul.f32 %v5723_v54, %v212_v14 }
 0x118   :  { %8695 = vst [vmem:[#allocation49_spill] sm:$0xff] %v5932_v27  ;;  %v955_v37 = vmul.f32 %v5932_v27, %v5911_v43  ;;  %v8696_v11 = vld [vmem:[#allocation13_spill] sm:$0xff]  ;;  %8697 = vst [vmem:[#allocation53_spill] sm:$0xff] %v5941_v17  ;;  %v8698_v41 = vld [vmem:[#allocation18_spill] sm:$0xff] }
 0x119   :  { %v3122_v42 = vadd.f32 %v8696_v11, %v3057_v38  ;;  %v1021_v2 = vmul.f32 %v5941_v17, %v8698_v41  ;;  %v278_v32 = vld [vmem:[#allocation2 + $0xc8] sm:$0x7]  ;;  %v2037_v55 = vld [vmem:[#allocation2 + $0x9c] sm:$0x7]  ;;  %v910_v40 = vadd.f32 %v890_v53, %v845_v52  ;;  %v5948_v44 = vld [vmem:[%s7880_s1] ss:$0 sm:$0xff]  ;;  %v2472_v8 = vadd.f32 %v5794_v18, %v2407_v13 }
 0x11a   :  { %8699 = vst [vmem:[#allocation64_spill] sm:$0xff] %v5948_v44  ;;  %v105_v34 = vmul.f32 %v5948_v44, %v80_v5  ;;  %v8700_v35 = vld [vmem:[#allocation28_spill] sm:$0xff]  ;;  %v8701_v31 = vld [vmem:[#allocation7_spill] sm:$0xff]  ;;  %v1691_v58 = vadd.f32 %v1671_v50, %v1626_v4  ;;  %v5958_v53 = vld [vmem:[#allocation2 + $0xaa] sm:$0xff]  ;;  %v303_v18 = vmul.f32 %v5743_v63, %v278_v32 }
 0x11b   :  { %v171_v21 = vmul.f32 %v8700_v35, %v146_v15  ;;  %v3187_v38 = vadd.f32 %v8701_v31, %v3122_v42  ;;  %v8702_v11 = vld [vmem:[#allocation20_spill] sm:$0xff]  ;;  %8703 = vst [vmem:[#allocation17_spill] sm:$0xff] %v5958_v53  ;;  %v2102_v43 = vld [vmem:[#allocation2 + $0xb4] sm:$0x7]  ;;  %v2167_v6 = vld [vmem:[#allocation2 + $0xcc] sm:$0x7]  ;;  %v975_v36 = vadd.f32 %v955_v37, %v910_v40  ;;  %v2537_v13 = vadd.f32 %v5798_v9, %v2472_v8 }
 0x11c   :  { %v5956_v41 = vmul.f32 %v8702_v11, %v1972_v28  ;;  %v344_v52 = vld [vmem:[#allocation2 + $0xe0] sm:$0x7]  ;;  %v5963_v5 = vld [vmem:[%s7880_s1 + $0x11] ss:$0 sm:$0xff]  ;;  %v8705_v15 = vld [vmem:[#allocation51_spill] sm:$0xff]  ;;  %v1756_v4 = vadd.f32 %v1736_v60, %v1691_v58  ;;  %v5973_v31 = vmul.f32 %v8598_v56, %v2037_v55 }
 0x11d   :  { %8704 = vst [vmem:[#allocation70_spill] sm:$0xff] %v5963_v5  ;;  %v1086_v14 = vmul.f32 %v5963_v5, %v8705_v15  ;;  %v191_v42 = vadd.f32 %v171_v21, %v105_v34  ;;  %v8706_v50 = vld [vmem:[#allocation35_spill] sm:$0xff]  ;;  %v2232_v40 = vld [vmem:[#allocation2 + $0xe4] sm:$0x7]  ;;  %v1041_v54 = vadd.f32 %v1021_v2, %v975_v36  ;;  %v5978_v15 = vld [vmem:[%s7880_s1 + $0x12] ss:$0 sm:$0xff]  ;;  %v369_v21 = vmul.f32 %v5762_v12, %v344_v52 }
 0x11e   :  { %v5969_v28 = vadd.f32 %v8706_v50, %v3187_v38  ;;  %v410_v37 = vld [vmem:[#allocation2 + $0xf8] sm:$0x7]  ;;  %v2297_v11 = vld [vmem:[#allocation2 + $0xfc] sm:$0x7]  ;;  %8708 = vst [vmem:[#allocation73_spill] sm:$0xff] %v5978_v15  ;;  %v1151_v32 = vmul.f32 %v5978_v15, %v5958_v53  ;;  %v2602_v56 = vadd.f32 %v5802_v16, %v2537_v13  ;;  %v1821_v9 = vadd.f32 %v1801_v29, %v1756_v4  ;;  %v8709_v60 = vld [vmem:[#allocation61_spill] sm:$0xff] }
 0x11f   :  { %v257_v34 = vadd.f32 %v237_v30, %v191_v42  ;;  %v5987_v55 = vmul.f32 %v8709_v60, %v2102_v43  ;;  %v5990_v36 = vmul.f32 %v8606_v59, %v2167_v6  ;;  %v5992_v2 = vld [vmem:[#allocation2 + $0xda] sm:$0xff]  ;;  %v475_v38 = vld [vmem:[#allocation2 + $0x110] sm:$0x7]  ;;  %v2362_v8 = vld [vmem:[#allocation2 + $0x6d] sm:$0x7]  ;;  %v1106_v30 = vadd.f32 %v1086_v14, %v1041_v54 }
 0x120   :  { %8707 = vst [vmem:[#allocation76_spill] sm:$0xff] %v5969_v28  ;;  %3518 = vrot.lane.b32.xlu1 %v5969_v28, %s4045_s6  ;;  %8710 = vst [vmem:[#allocation75_spill] sm:$0xff] %v5992_v2  ;;  %v2428_v58 = vld [vmem:[#allocation2 + $0x85] sm:$0x7]  ;;  %v5997_v52 = vld [vmem:[%s7880_s1 + $0x13] ss:$0 sm:$0xff]  ;;  %v435_v43 = vmul.f32 %v5782_v7, %v410_v37  ;;  %v2667_v59 = vadd.f32 %v5810_v46, %v2602_v56  ;;  %v1886_v6 = vadd.f32 %v1866_v25, %v1821_v9 }
 0x121   :  { %8711 = vst [vmem:[#allocation79_spill] sm:$0xff] %v5997_v52  ;;  %v8712_v42 = vld [vmem:[#allocation30_spill] sm:$0xff]  ;;  %v323_v29 = vadd.f32 %v303_v18, %v257_v34  ;;  %v6004_v50 = vmul.f32 %v8608_v3, %v2232_v40  ;;  %v6007_v13 = vmul.f32 %v8609_v10, %v2297_v11  ;;  %v540_v54 = vld [vmem:[#allocation2 + $0x81] sm:$0x7]  ;;  %v2493_v14 = vld [vmem:[#allocation2 + $0x9d] sm:$0x7]  ;;  %v1171_v60 = vadd.f32 %v1151_v32, %v1106_v30 }
 0x122   :  { %v1216_v16 = vmul.f32 %v5997_v52, %v8712_v42  ;;  %v2558_v4 = vld [vmem:[#allocation2 + $0xb5] sm:$0x7]  ;;  %v6012_v42 = vld [vmem:[%s7880_s1 + $0x14] ss:$0 sm:$0xff]  ;;  %v6019_v3 = vld [vmem:[%s7880_s1 + $0x6] ss:$0 sm:$0xff]  ;;  %v2732_v25 = vadd.f32 %v5814_v22, %v2667_v59  ;;  %v1952_v37 = vadd.f32 %v5927_v61, %v1886_v6  ;;  %v6025_v40 = vmul.f32 %v8611_v57, %v2362_v8 }
 0x123   :  { %v1281_v18 = vmul.f32 %v6012_v42, %v5992_v2  ;;  %v389_v46 = vadd.f32 %v369_v21, %v323_v29  ;;  %v500_v10 = vmul.f32 %v6019_v3, %v475_v38  ;;  %v6028_v11 = vmul.f32 %v8612_v45, %v2428_v58  ;;  %v6030_v32 = vld [vmem:[#allocation2 + $0x10a] sm:$0xff]  ;;  %v606_v34 = vld [vmem:[#allocation2 + $0x99] sm:$0x7]  ;;  %v2688_v56 = vld [vmem:[#allocation2 + $0xe5] sm:$0x7] }
 0x124   :  { %8713 = vst [vmem:[#allocation77_spill] sm:$0xff] %v6030_v32  ;;  %v2623_v21 = vld [vmem:[#allocation2 + $0xcd] sm:$0x7]  ;;  %v1236_v9 = vadd.f32 %v1216_v16, %v1171_v60  ;;  %v6035_v38 = vld [vmem:[%s7880_s1 + $0x15] ss:$0 sm:$0xff]  ;;  %v8714_v22 = vld [vmem:[#allocation56_spill] sm:$0xff]  ;;  %v566_v57 = vmul.f32 %v5820_v0, %v540_v54  ;;  %v2797_v45 = vadd.f32 %v5835_v47, %v2732_v25  ;;  %v2017_v8 = vadd.f32 %v5956_v41, %v1952_v37 }
 0x125   :  { %v1346_v61 = vmul.f32 %v6035_v38, %v8714_v22  ;;  %v455_v30 = vadd.f32 %v435_v43, %v389_v46  ;;  %v6043_v58 = vmul.f32 %v8615_v26, %v2493_v14  ;;  %v6048_v16 = vld [vmem:[%s7880_s1 + $0x2b] ss:$0 sm:$0xff]  ;;  %v671_v59 = vld [vmem:[#allocation2 + $0xb1] sm:$0x7]  ;;  %v2753_v6 = vld [vmem:[#allocation2 + $0xfd] sm:$0x7]  ;;  %v631_v54 = vmul.f32 %v5844_v48, %v606_v34 }
 0x126   :  { %v6051_v29 = vmul.f32 %v6048_v16, %v2558_v4  ;;  %v2818_v43 = vld [vmem:[#allocation2 + $0x6e] sm:$0x7]  ;;  %v1301_v60 = vadd.f32 %v1281_v18, %v1236_v9  ;;  %v6056_v47 = vld [vmem:[%s7880_s1 + $0x16] ss:$0 sm:$0xff]  ;;  %v2863_v14 = vadd.f32 %v5838_v24, %v2797_v45  ;;  %v2082_v4 = vadd.f32 %v5973_v31, %v2017_v8  ;;  %v6066_v46 = vld [vmem:[%s7880_s1 + $0x2c] ss:$0 sm:$0xff] }
 0x127   :  { %v1411_v26 = vmul.f32 %v6056_v47, %v6030_v32  ;;  %v520_v41 = vadd.f32 %v500_v10, %v455_v30  ;;  %v6069_v18 = vmul.f32 %v6066_v46, %v2623_v21  ;;  %v6074_v25 = vld [vmem:[%s7880_s1 + $0x2d] ss:$0 sm:$0xff]  ;;  %v736_v37 = vld [vmem:[#allocation2 + $0xc9] sm:$0x7]  ;;  %v2884_v24 = vld [vmem:[#allocation2 + $0x86] sm:$0x7]  ;;  %v696_v45 = vmul.f32 %v5864_v39, %v671_v59 }
 0x128   :  { %8715 = vst [vmem:[#allocation52_spill] sm:$0xff] %v6074_v25  ;;  %v6077_v10 = vmul.f32 %v6074_v25, %v2688_v56  ;;  %v2949_v34 = vld [vmem:[#allocation2 + $0x9e] sm:$0x7]  ;;  %v1366_v31 = vadd.f32 %v1346_v61, %v1301_v60  ;;  %v6082_v9 = vld [vmem:[%s7880_s1 + $0x18] ss:$0 sm:$0xff]  ;;  %v2928_v8 = vadd.f32 %v5855_v19, %v2863_v14  ;;  %v2147_v56 = vadd.f32 %v5987_v55, %v2082_v4  ;;  %v6105_v59 = vld [vmem:[#allocation2 + $0xab] sm:$0xff] }
 0x129   :  { %v8716_v22 = vld [vmem:[#allocation31_spill] sm:$0xff]  ;;  %v586_v30 = vadd.f32 %v566_v57, %v520_v41  ;;  %v6092_v28 = vld [vmem:[%s7880_s1 + $0x2e] ss:$0 sm:$0xff]  ;;  %v6100_v60 = vld [vmem:[%s7880_s1 + $0x30] ss:$0 sm:$0xff]  ;;  %8719 = vst [vmem:[#allocation41_spill] sm:$0xff] %v6105_v59  ;;  %v761_v7 = vmul.f32 %v5886_v23, %v736_v37 }
 0x12a   :  { %v1477_v21 = vmul.f32 %v6082_v9, %v8716_v22  ;;  %8717 = vst [vmem:[#allocation74_spill] sm:$0xff] %v6092_v28  ;;  %v6095_v61 = vmul.f32 %v6092_v28, %v2753_v6  ;;  %8718 = vst [vmem:[#allocation22_spill] sm:$0xff] %v6100_v60  ;;  %v6103_v57 = vmul.f32 %v6100_v60, %v2818_v43  ;;  %v801_v19 = vld [vmem:[#allocation2 + $0xe1] sm:$0x7]  ;;  %v3014_v55 = vld [vmem:[#allocation2 + $0xb6] sm:$0x7] }
 0x12b   :  { %v1431_v41 = vadd.f32 %v1411_v26, %v1366_v31  ;;  %v6110_v14 = vld [vmem:[%s7880_s1 + $0x19] ss:$0 sm:$0xff]  ;;  %v8721_v6 = vld [vmem:[#allocation36_spill] sm:$0xff]  ;;  %v651_v22 = vadd.f32 %v631_v54, %v586_v30  ;;  %v2993_v32 = vadd.f32 %v5859_v62, %v2928_v8  ;;  %v2212_v43 = vadd.f32 %v5990_v36, %v2147_v56  ;;  %v6120_v2 = vld [vmem:[%s7880_s1 + $0x31] ss:$0 sm:$0xff] }
 0x12c   :  { %8720 = vst [vmem:[#allocation48_spill] sm:$0xff] %v6110_v14  ;;  %v1542_v4 = vmul.f32 %v6110_v14, %v8721_v6  ;;  %8722 = vst [vmem:[#allocation23_spill] sm:$0xff] %v6120_v2  ;;  %v6123_v26 = vmul.f32 %v6120_v2, %v2884_v24  ;;  %v6128_v31 = vld [vmem:[%s7880_s1 + $0x32] ss:$0 sm:$0xff]  ;;  %v6133_v37 = vld [vmem:[#allocation2 + $0xdb] sm:$0xff]  ;;  %v826_v6 = vmul.f32 %v5904_v33, %v801_v19 }
 0x12d   :  { %8723 = vst [vmem:[#allocation54_spill] sm:$0xff] %v6128_v31  ;;  %v6131_v54 = vmul.f32 %v6128_v31, %v2949_v34  ;;  %8724 = vst [vmem:[#allocation44_spill] sm:$0xff] %v6133_v37  ;;  %v866_v62 = vld [vmem:[#allocation2 + $0xf9] sm:$0x7]  ;;  %v1497_v36 = vadd.f32 %v1477_v21, %v1431_v41  ;;  %v6142_v8 = vld [vmem:[#allocation2 + $0x10b] sm:$0xff]  ;;  %v716_v56 = vadd.f32 %v696_v45, %v651_v22 }
 0x12e   :  { %v6138_v30 = vld [vmem:[%s7880_s1 + $0x1a] ss:$0 sm:$0xff]  ;;  %8726 = vst [vmem:[#allocation25_spill] sm:$0xff] %v6142_v8  ;;  %v3058_v34 = vadd.f32 %v5877_v49, %v2993_v32  ;;  %v2277_v53 = vadd.f32 %v6004_v50, %v2212_v43  ;;  %v6150_v21 = vld [vmem:[%s7880_s1 + $0x33] ss:$0 sm:$0xff] }
 0x12f   :  { %8725 = vst [vmem:[#allocation29_spill] sm:$0xff] %v6138_v30  ;;  %v1607_v24 = vmul.f32 %v6138_v30, %v6105_v59  ;;  %8727 = vst [vmem:[#allocation39_spill] sm:$0xff] %v6150_v21  ;;  %v6153_v41 = vmul.f32 %v6150_v21, %v3014_v55  ;;  %v6158_v59 = vld [vmem:[%s7880_s1 + $0x1b] ss:$0 sm:$0xff]  ;;  %v931_v22 = vld [vmem:[#allocation2 + $0x111] sm:$0x7]  ;;  %v1562_v49 = vadd.f32 %v1542_v4, %v1497_v36 }
 0x130   :  { %8728 = vst [vmem:[#allocation34_spill] sm:$0xff] %v6158_v59  ;;  %v8729_v45 = vld [vmem:[#allocation47_spill] sm:$0xff]  ;;  %v6169_v55 = vld [vmem:[#allocation2 + $0xac] sm:$0xff]  ;;  %v781_v43 = vadd.f32 %v761_v7, %v716_v56  ;;  %v891_v21 = vmul.f32 %v5918_v51, %v866_v62  ;;  %v3123_v31 = vadd.f32 %v5881_v1, %v3058_v34  ;;  %v2342_v2 = vadd.f32 %v6007_v13, %v2277_v53  ;;  %v8733_v36 = vld [vmem:[#allocation8_spill] sm:$0xff] }
 0x131   :  { %v1672_v19 = vmul.f32 %v6158_v59, %v8729_v45  ;;  %v6165_v50 = vld [vmem:[%s7880_s1 + $0x1c] ss:$0 sm:$0xff]  ;;  %8731 = vst [vmem:[#allocation50_spill] sm:$0xff] %v6169_v55  ;;  %v6177_v4 = vld [vmem:[%s7880_s1 + $0x1d] ss:$0 sm:$0xff]  ;;  %v1627_v1 = vadd.f32 %v1607_v24, %v1562_v49  ;;  %v8736_v13 = vld [vmem:[#allocation6_spill] sm:$0xff] }
 0x132   :  { %8730 = vst [vmem:[#allocation10_spill] sm:$0xff] %v6165_v50  ;;  %v1737_v32 = vmul.f32 %v6165_v50, %v6133_v37  ;;  %8732 = vst [vmem:[#allocation68_spill] sm:$0xff] %v6177_v4  ;;  %v1802_v45 = vmul.f32 %v6177_v4, %v8733_v36  ;;  %v6184_v37 = vld [vmem:[%s7880_s1 + $0x1e] ss:$0 sm:$0xff]  ;;  %v996_v62 = vld [vmem:[#allocation2 + $0x82] sm:$0x7]  ;;  %v846_v34 = vadd.f32 %v826_v6, %v781_v43 }
 0x133   :  { %8734 = vst [vmem:[#allocation38_spill] sm:$0xff] %v6184_v37  ;;  %v1867_v7 = vmul.f32 %v6184_v37, %v6142_v8  ;;  %v6191_v53 = vld [vmem:[%s7880_s1 + $0x20] ss:$0 sm:$0xff]  ;;  %v956_v36 = vmul.f32 %v5932_v27, %v931_v22  ;;  %v1062_v60 = vld [vmem:[#allocation2 + $0x9a] sm:$0x7]  ;;  %v81_v28 = vld [vmem:[#allocation2 + $0x90] sm:$0xff]  ;;  %v3188_v51 = vadd.f32 %v5895_v20, %v3123_v31  ;;  %v2408_v4 = vadd.f32 %v6025_v40, %v2342_v2 }
 0x134   :  { %8735 = vst [vmem:[#allocation14_spill] sm:$0xff] %v6191_v53  ;;  %v1933_v56 = vmul.f32 %v6191_v53, %v8736_v13  ;;  %v6201_v24 = vld [vmem:[%s7880_s1 + $0x21] ss:$0 sm:$0xff]  ;;  %v8738_v49 = vld [vmem:[#allocation71_spill] sm:$0xff]  ;;  %v6208_v6 = vld [vmem:[%s7880_s1 + $0x22] ss:$0 sm:$0xff]  ;;  %v1692_v20 = vadd.f32 %v1672_v19, %v1627_v1  ;;  %v911_v43 = vadd.f32 %v891_v21, %v846_v34  ;;  %v1022_v13 = vmul.f32 %v5941_v17, %v996_v62 }
 0x135   :  { %8737 = vst [vmem:[#allocation27_spill] sm:$0xff] %v6201_v24  ;;  %v1998_v8 = vmul.f32 %v6201_v24, %v8738_v49  ;;  %8739 = vst [vmem:[#allocation11_spill] sm:$0xff] %v6208_v6  ;;  %v6212_v22 = vmul.f32 %v6208_v6, %v6169_v55  ;;  %v6217_v2 = vld [vmem:[%s7880_s1 + $0x23] ss:$0 sm:$0xff]  ;;  %v1127_v49 = vld [vmem:[#allocation2 + $0xb2] sm:$0x7]  ;;  %v2473_v19 = vadd.f32 %v6028_v11, %v2408_v4 }
 0x136   :  { %8740 = vst [vmem:[#allocation43_spill] sm:$0xff] %v6217_v2  ;;  %v8741_v40 = vld [vmem:[#allocation72_spill] sm:$0xff]  ;;  %v6224_v24 = vld [vmem:[#allocation2 + $0xa8] sm:$0xff]  ;;  %v8743_v53 = vld [vmem:[#allocation15_spill] sm:$0xff]  ;;  %v1087_v1 = vmul.f32 %v5963_v5, %v1062_v60  ;;  %v976_v62 = vadd.f32 %v956_v36, %v911_v43  ;;  %v1152_v60 = vmul.f32 %v5978_v15, %v1127_v49 }
 0x137   :  { %v6221_v31 = vmul.f32 %v6217_v2, %v8741_v40  ;;  %8742 = vst [vmem:[#allocation45_spill] sm:$0xff] %v6224_v24  ;;  %v6227_v27 = vadd.f32 %v8743_v53, %v3188_v51  ;;  %v6231_v55 = vld [vmem:[#allocation2 + $0xc0] sm:$0xff]  ;;  %v6233_v6 = vld [vmem:[#allocation2 + $0xd8] sm:$0xff]  ;;  %v106_v40 = vmul.f32 %v5948_v44, %v81_v28  ;;  %v1757_v2 = vadd.f32 %v1737_v32, %v1692_v20  ;;  %v1192_v4 = vld [vmem:[#allocation2 + $0xca] sm:$0x7] }
 0x138   :  { %8745 = vst [vmem:[#allocation18_spill] sm:$0xff] %v6231_v55  ;;  %v6236_v21 = vld [vmem:[#allocation2 + $0xdc] sm:$0xff]  ;;  %v110_v34 = vmul.f32 %v5948_v44, %v6231_v55  ;;  %v112_v51 = vmul.f32 %v5948_v44, %v6233_v6  ;;  %v2538_v11 = vadd.f32 %v6043_v58, %v2473_v19  ;;  %v172_v28 = vmul.f32 %v8700_v35, %v6224_v24  ;;  %v8747_v44 = vld [vmem:[#allocation21_spill] sm:$0xff]  ;;  %v6257_v58 = vld [vmem:[%s7880_s1 + $0x24] ss:$0 sm:$0xff] }
 0x139   :  { %8744 = vst [vmem:[#allocation13_spill] sm:$0xff] %v6227_v27  ;;  %8746 = vst [vmem:[#allocation7_spill] sm:$0xff] %v6236_v21  ;;  %3520 = vrot.lane.b32.xlu0 %v6227_v27, %s4045_s6  ;;  %v176_v32 = vmul.f32 %v8700_v35, %v6233_v6  ;;  %v1822_v53 = vadd.f32 %v1802_v45, %v1757_v2  ;;  %v1042_v36 = vadd.f32 %v1022_v13, %v976_v62  ;;  %v3957_v20 = vld [vmem:[#allocation2] sm:$0xff]  ;;  %v1322_v24 = vld [vmem:[#allocation2 + $0xfa] sm:$0x7] }
 0x13a   :  { %v178_v43 = vmul.f32 %v3957_v20, %v8700_v35  ;;  %v238_v5 = vmul.f32 %v8747_v44, %v6231_v55  ;;  %v2603_v27 = vadd.f32 %v6051_v29, %v2538_v11  ;;  %v2193_v49 = vmul.f32 %v6257_v58, %v6236_v21  ;;  %v1257_v19 = vld [vmem:[#allocation2 + $0xe2] sm:$0x7] }
 0x13b   :  { %v192_v15 = vadd.f32 %v172_v28, %v106_v40  ;;  %v196_v45 = vadd.f32 %v176_v32, %v110_v34  ;;  %v1887_v2 = vadd.f32 %v1867_v7, %v1822_v53  ;;  %v1107_v13 = vadd.f32 %v1087_v1, %v1042_v36  ;;  %v1387_v40 = vld [vmem:[#allocation2 + $0x112] sm:$0x7]  ;;  %v6292_v36 = vld [vmem:[%s7880_s1 + $0x25] ss:$0 sm:$0xff] }
 0x13c   :  { %v1217_v62 = vmul.f32 %v5997_v52, %v1192_v4  ;;  %v198_v35 = vadd.f32 %v178_v43, %v112_v51  ;;  %v2668_v55 = vadd.f32 %v6069_v18, %v2603_v27  ;;  %v242_v29 = vmul.f32 %v3957_v20, %v8747_v44  ;;  %v8752_v43 = vld [vmem:[#allocation55_spill] sm:$0xff] }
 0x13d   :  { %v258_v11 = vadd.f32 %v238_v5, %v192_v15  ;;  %v304_v17 = vmul.f32 %v5743_v63, %v6233_v6  ;;  %v1953_v37 = vadd.f32 %v1933_v56, %v1887_v2  ;;  %v1172_v25 = vadd.f32 %v1152_v60, %v1107_v13  ;;  %v1452_v15 = vld [vmem:[#allocation2 + $0x83] sm:$0x7]  ;;  %v1583_v13 = vld [vmem:[#allocation2 + $0xb3] sm:$0x7] }
 0x13e   :  { %v1282_v21 = vmul.f32 %v6012_v42, %v1257_v19  ;;  %v6268_v7 = vmul.f32 %v3957_v20, %v5743_v63  ;;  %v2733_v1 = vadd.f32 %v6077_v10, %v2668_v55  ;;  %v262_v34 = vadd.f32 %v242_v29, %v196_v45  ;;  %v541_v10 = vld [vmem:[#allocation2 + $0x91] sm:$0xff]  ;;  %v3144_v45 = vld [vmem:[#allocation2 + $0xe6] sm:$0x7] }
 0x13f   :  { %v264_v51 = vadd.f32 %v242_v29, %v198_v35  ;;  %v324_v27 = vadd.f32 %v304_v17, %v258_v11  ;;  %v2018_v18 = vadd.f32 %v1998_v8, %v1953_v37  ;;  %v1237_v4 = vadd.f32 %v1217_v62, %v1172_v25  ;;  %v3079_v35 = vld [vmem:[#allocation2 + $0xce] sm:$0x7]  ;;  %v1518_v8 = vld [vmem:[#allocation2 + $0x9b] sm:$0x7]  ;;  %v8754_v62 = vld [vmem:[#allocation32_spill] sm:$0xff] }
 0x140   :  { %v1347_v5 = vmul.f32 %v6035_v38, %v1322_v24  ;;  %v6273_v28 = vmul.f32 %v3957_v20, %v5762_v12  ;;  %v2798_v56 = vadd.f32 %v6095_v61, %v2733_v1  ;;  %v1412_v60 = vmul.f32 %v6056_v47, %v1387_v40  ;;  %v6282_v25 = vld [vmem:[#allocation2 + $0x10c] sm:$0xff]  ;;  %v6307_v40 = vld [vmem:[%s7880_s1 + $0x34] ss:$0 sm:$0xff] }
 0x141   :  { %v328_v32 = vadd.f32 %v6268_v7, %v262_v34  ;;  %v6279_v53 = vadd.f32 %v6268_v7, %v264_v51  ;;  %v2083_v17 = vadd.f32 %v6212_v22, %v2018_v18  ;;  %8750 = vst [vmem:[#allocation35_spill] sm:$0xff] %v6282_v25  ;;  %v1302_v37 = vadd.f32 %v1282_v21, %v1237_v4  ;;  %v6313_v34 = vld [vmem:[%s7880_s1 + $0x26] ss:$0 sm:$0xff] }
 0x142   :  { %8748 = vst [vmem:[#allocation20_spill] sm:$0xff] %v6273_v28  ;;  %v390_v55 = vadd.f32 %v6273_v28, %v324_v27  ;;  %v6286_v24 = vmul.f32 %v3957_v20, %v6019_v3  ;;  %v2864_v61 = vadd.f32 %v6103_v57, %v2798_v56  ;;  %v2258_v19 = vmul.f32 %v6292_v36, %v8752_v43  ;;  %v6318_v27 = vld [vmem:[#allocation2 + $0xc1] sm:$0xff] }
 0x143   :  { %8749 = vst [vmem:[#allocation51_spill] sm:$0xff] %v6279_v53  ;;  %v1478_v22 = vmul.f32 %v6082_v9, %v1452_v15  ;;  %v6298_v21 = vadd.f32 %v6273_v28, %v328_v32  ;;  %v2148_v2 = vadd.f32 %v6221_v31, %v2083_v17  ;;  %v1367_v20 = vadd.f32 %v1347_v5, %v1302_v37  ;;  %v1648_v5 = vld [vmem:[#allocation2 + $0xcb] sm:$0x7]  ;;  %v8758_v56 = vld [vmem:[#allocation4_spill] sm:$0xff] }
 0x144   :  { %8751 = vst [vmem:[#allocation61_spill] sm:$0xff] %v6286_v24  ;;  %v456_v57 = vadd.f32 %v8754_v62, %v390_v55  ;;  %v567_v29 = vmul.f32 %v5820_v0, %v541_v10  ;;  %v2929_v11 = vadd.f32 %v6123_v26, %v2864_v61  ;;  %8755 = vst [vmem:[#allocation56_spill] sm:$0xff] %v6307_v40  ;;  %v3209_v26 = vld [vmem:[#allocation2 + $0xfe] sm:$0x7]  ;;  %v6338_v61 = vld [vmem:[#allocation2 + $0xad] sm:$0xff] }
 0x145   :  { %8753 = vst [vmem:[#allocation30_spill] sm:$0xff] %v6298_v21  ;;  %v3104_v1 = vmul.f32 %v6307_v40, %v3079_v35  ;;  %8756 = vst [vmem:[#allocation31_spill] sm:$0xff] %v6313_v34  ;;  %v2323_v31 = vmul.f32 %v6313_v34, %v6282_v25  ;;  %v1543_v51 = vmul.f32 %v6110_v14, %v1518_v8  ;;  %v6327_v35 = vld [vmem:[%s7880_s1 + $0x35] ss:$0 sm:$0xff]  ;;  %v1713_v43 = vld [vmem:[#allocation2 + $0xe3] sm:$0x7] }
 0x146   :  { %8757 = vst [vmem:[#allocation36_spill] sm:$0xff] %v6318_v27  ;;  %v2213_v18 = vadd.f32 %v2193_v49, %v2148_v2  ;;  %v1432_v4 = vadd.f32 %v1412_v60, %v1367_v20  ;;  %v521_v15 = vadd.f32 %v6286_v24, %v456_v57  ;;  %v632_v32 = vmul.f32 %v5844_v48, %v8758_v56  ;;  %v6333_v49 = vld [vmem:[%s7880_s1 + $0x28] ss:$0 sm:$0xff]  ;;  %v8760_v60 = vld [vmem:[#allocation78_spill] sm:$0xff]  ;;  %v1778_v56 = vld [vmem:[#allocation2 + $0xfb] sm:$0x7] }
 0x147   :  { %v2994_v10 = vadd.f32 %v6131_v54, %v2929_v11  ;;  %8759 = vst [vmem:[#allocation47_spill] sm:$0xff] %v6327_v35  ;;  %v3169_v17 = vmul.f32 %v6327_v35, %v3144_v45  ;;  %v2389_v37 = vmul.f32 %v6333_v49, %v8760_v60  ;;  %v1608_v8 = vmul.f32 %v6138_v30, %v1583_v13  ;;  %v6346_v57 = vld [vmem:[%s7880_s1 + $0x36] ss:$0 sm:$0xff]  ;;  %v8766_v60 = vld [vmem:[#allocation12_spill] sm:$0xff]  ;;  %v6366_v25 = vld [vmem:[%s7880_s1 + $0x2a] ss:$0 sm:$0xff] }
 0x148   :  { %v2278_v55 = vadd.f32 %v2258_v19, %v2213_v18  ;;  %8761 = vst [vmem:[#allocation8_spill] sm:$0xff] %v6338_v61  ;;  %v1498_v54 = vadd.f32 %v1478_v22, %v1432_v4  ;;  %v587_v2 = vadd.f32 %v567_v29, %v521_v15  ;;  %v697_v20 = vmul.f32 %v5864_v39, %v6318_v27  ;;  %v6352_v19 = vld [vmem:[%s7880_s1 + $0x29] ss:$0 sm:$0xff]  ;;  %v8763_v22 = vld [vmem:[#allocation62_spill] sm:$0xff]  ;;  %v6359_v4 = vld [vmem:[#allocation2 + $0xdd] sm:$0xff] }
 0x149   :  { %v3059_v45 = vadd.f32 %v6153_v41, %v2994_v10  ;;  %8762 = vst [vmem:[#allocation6_spill] sm:$0xff] %v6346_v57  ;;  %v3234_v11 = vmul.f32 %v6346_v57, %v3209_v26  ;;  %v2454_v13 = vmul.f32 %v6352_v19, %v8763_v22  ;;  %v1673_v29 = vmul.f32 %v6158_v59, %v1648_v5  ;;  %v6357_v18 = vld [vmem:[#allocation2 + $0xf1] sm:$0xff]  ;;  %v8767_v22 = vld [vmem:[#allocation16_spill] sm:$0xff]  ;;  %v8790_v48 = vld [vmem:[#allocation53_spill] sm:$0xff] }
 0x14a   :  { %8764 = vst [vmem:[#allocation71_spill] sm:$0xff] %v6357_v18  ;;  %v2343_v41 = vadd.f32 %v2323_v31, %v2278_v55  ;;  %8765 = vst [vmem:[#allocation72_spill] sm:$0xff] %v6359_v4  ;;  %v1563_v15 = vadd.f32 %v1543_v51, %v1498_v54  ;;  %v652_v10 = vadd.f32 %v632_v32, %v587_v2  ;;  %v6373_v54 = vld [vmem:[#allocation2 + $0x10d] sm:$0xff]  ;;  %v8771_v62 = vld [vmem:[#allocation68_spill] sm:$0xff] }
 0x14b   :  { %v762_v26 = vmul.f32 %v5886_v23, %v8766_v60  ;;  %v3124_v21 = vadd.f32 %v3104_v1, %v3059_v45  ;;  %v2519_v5 = vmul.f32 %v6366_v25, %v6338_v61  ;;  %v2584_v31 = vmul.f32 %v6048_v16, %v8767_v22  ;;  %8768 = vst [vmem:[#allocation15_spill] sm:$0xff] %v6373_v54  ;;  %v1843_v2 = vld [vmem:[#allocation2 + $0x113] sm:$0x7]  ;;  %v8770_v61 = vld [vmem:[#allocation52_spill] sm:$0xff]  ;;  %v8791_v28 = vld [vmem:[#allocation33_spill] sm:$0xff] }
 0x14c   :  { %v1738_v55 = vmul.f32 %v6165_v50, %v1713_v43  ;;  %v2409_v51 = vadd.f32 %v2389_v37, %v2343_v41  ;;  %v1628_v32 = vadd.f32 %v1608_v8, %v1563_v15  ;;  %v717_v60 = vadd.f32 %v697_v20, %v652_v10  ;;  %v8769_v24 = vld [vmem:[#allocation66_spill] sm:$0xff]  ;;  %v6382_v23 = vld [vmem:[#allocation2 + $0x121] sm:$0xff]  ;;  %v82_v30 = vld [vmem:[#allocation2 + $0x98] sm:$0x7] }
 0x14d   :  { %v827_v1 = vmul.f32 %v5904_v33, %v6357_v18  ;;  %v3189_v45 = vadd.f32 %v3169_v17, %v3124_v21  ;;  %v2649_v27 = vmul.f32 %v6066_v46, %v6359_v4  ;;  %v2714_v53 = vmul.f32 %v8770_v61, %v8769_v24  ;;  %8772 = vst [vmem:[#allocation21_spill] sm:$0xff] %v6382_v23  ;;  %v6384_v43 = vld [vmem:[#allocation2 + $0xae] sm:$0xff]  ;;  %v1908_v41 = vld [vmem:[#allocation2 + $0x84] sm:$0x7]  ;;  %v8778_v33 = vld [vmem:[#allocation67_spill] sm:$0xff] }
 0x14e   :  { %v1803_v22 = vmul.f32 %v8771_v62, %v1778_v56  ;;  %v2474_v37 = vadd.f32 %v2454_v13, %v2409_v51  ;;  %8773 = vst [vmem:[#allocation55_spill] sm:$0xff] %v6384_v43  ;;  %v1693_v8 = vadd.f32 %v1673_v29, %v1628_v32  ;;  %v782_v20 = vadd.f32 %v762_v26, %v717_v60  ;;  %v8774_v15 = vld [vmem:[#allocation42_spill] sm:$0xff]  ;;  %v8775_v10 = vld [vmem:[#allocation60_spill] sm:$0xff]  ;;  %v1974_v32 = vld [vmem:[#allocation2 + $0x9c] sm:$0x7] }
 0x14f   :  { %v892_v18 = vmul.f32 %v8775_v10, %v8774_v15  ;;  %v6388_v21 = vadd.f32 %v3234_v11, %v3189_v45  ;;  %v8777_v17 = vld [vmem:[#allocation74_spill] sm:$0xff]  ;;  %v6395_v51 = vld [vmem:[#allocation2 + $0xde] sm:$0xff]  ;;  %v8783_v11 = vld [vmem:[#allocation49_spill] sm:$0xff] }
 0x150   :  { %v2779_v4 = vmul.f32 %v8777_v17, %v6373_v54  ;;  %v8779_v24 = vld [vmem:[#allocation22_spill] sm:$0xff]  ;;  %v2539_v13 = vadd.f32 %v2519_v5, %v2474_v37  ;;  %8781 = vst [vmem:[#allocation78_spill] sm:$0xff] %v6395_v51  ;;  %v1758_v26 = vadd.f32 %v1738_v55, %v1693_v8  ;;  %v847_v60 = vadd.f32 %v827_v1, %v782_v20  ;;  %v8784_v15 = vld [vmem:[#allocation69_spill] sm:$0xff]  ;;  %v8785_v54 = vld [vmem:[#allocation23_spill] sm:$0xff] }
 0x151   :  { %8776 = vst [vmem:[#allocation4_spill] sm:$0xff] %v6388_v21  ;;  %v2845_v50 = vmul.f32 %v8779_v24, %v8778_v33  ;;  %v8780_v56 = vld [vmem:[#allocation38_spill] sm:$0xff]  ;;  %v957_v45 = vmul.f32 %v8783_v11, %v6382_v23  ;;  %3522 = vrot.lane.b32.xlu1 %v6388_v21, %s4045_s6  ;;  %v2910_v33 = vmul.f32 %v8785_v54, %v8784_v15  ;;  %v8787_v5 = vld [vmem:[#allocation59_spill] sm:$0xff]  ;;  %v2104_v11 = vld [vmem:[#allocation2 + $0xcc] sm:$0x7] }
 0x152   :  { %v1868_v62 = vmul.f32 %v8780_v56, %v1843_v2  ;;  %v997_v39 = vld [vmem:[#allocation2 + $0x92] sm:$0xff]  ;;  %v2604_v1 = vadd.f32 %v2584_v31, %v2539_v13  ;;  %v1823_v20 = vadd.f32 %v1803_v22, %v1758_v26  ;;  %v912_v23 = vadd.f32 %v892_v18, %v847_v60  ;;  %v6428_v22 = vld [vmem:[#allocation2 + $0xc2] sm:$0xff] }
 0x153   :  { %v6397_v29 = vld [vmem:[#allocation2 + $0x10e] sm:$0xff]  ;;  %v8788_v37 = vld [vmem:[#allocation39_spill] sm:$0xff]  ;;  %v1023_v21 = vmul.f32 %v8790_v48, %v997_v39  ;;  %v6417_v15 = vmul.f32 %v6307_v40, %v6395_v51  ;;  %8795 = vst [vmem:[#allocation66_spill] sm:$0xff] %v6428_v22  ;;  %v2169_v26 = vld [vmem:[#allocation2 + $0xe4] sm:$0x7] }
 0x154   :  { %8782 = vst [vmem:[#allocation62_spill] sm:$0xff] %v6397_v29  ;;  %v8786_v2 = vld [vmem:[#allocation54_spill] sm:$0xff]  ;;  %v6411_v10 = vmul.f32 %v8788_v37, %v8787_v5  ;;  %v6425_v5 = vmul.f32 %v6346_v57, %v6397_v29  ;;  %v2669_v13 = vadd.f32 %v2649_v27, %v2604_v1  ;;  %v1888_v18 = vadd.f32 %v1868_v62, %v1823_v20  ;;  %v2234_v39 = vld [vmem:[#allocation2 + $0xfc] sm:$0x7]  ;;  %v8796_v51 = vld [vmem:[#allocation17_spill] sm:$0xff] }
 0x155   :  { %v6407_v56 = vmul.f32 %v8786_v2, %v6384_v43  ;;  %v8789_v55 = vld [vmem:[#allocation14_spill] sm:$0xff]  ;;  %v6421_v43 = vmul.f32 %v6327_v35, %v8791_v28  ;;  %v977_v48 = vadd.f32 %v957_v45, %v912_v23  ;;  %v8798_v37 = vld [vmem:[#allocation11_spill] sm:$0xff]  ;;  %v8800_v54 = vld [vmem:[#allocation45_spill] sm:$0xff] }
 0x156   :  { %v1934_v8 = vmul.f32 %v8789_v55, %v1908_v41  ;;  %v2039_v59 = vld [vmem:[#allocation2 + $0xb4] sm:$0x7]  ;;  %8793 = vst [vmem:[#allocation16_spill] sm:$0xff] %v6425_v5  ;;  %v8794_v41 = vld [vmem:[#allocation27_spill] sm:$0xff]  ;;  %v8801_v29 = vld [vmem:[#allocation64_spill] sm:$0xff]  ;;  %v2734_v27 = vadd.f32 %v2714_v53, %v2669_v13 }
 0x157   :  { %8792 = vst [vmem:[#allocation12_spill] sm:$0xff] %v6421_v43  ;;  %v1999_v31 = vmul.f32 %v8794_v41, %v1974_v32  ;;  %v2299_v60 = vld [vmem:[#allocation2 + $0x114] sm:$0x7]  ;;  %v2064_v28 = vmul.f32 %v8798_v37, %v2039_v59  ;;  %v8799_v35 = vld [vmem:[#allocation43_spill] sm:$0xff]  ;;  %v108_v57 = vmul.f32 %v8801_v29, %v8800_v54  ;;  %v8803_v32 = vld [vmem:[#allocation28_spill] sm:$0xff]  ;;  %v1043_v1 = vadd.f32 %v1023_v21, %v977_v48 }
 0x158   :  { %v8797_v55 = vld [vmem:[#allocation70_spill] sm:$0xff]  ;;  %v2129_v2 = vmul.f32 %v8799_v35, %v2104_v11  ;;  %v1954_v62 = vadd.f32 %v1934_v8, %v1888_v18  ;;  %v8804_v20 = vld [vmem:[#allocation73_spill] sm:$0xff]  ;;  %v2259_v59 = vmul.f32 %v6292_v36, %v2234_v39  ;;  %v2324_v11 = vmul.f32 %v6313_v34, %v2299_v60  ;;  %v2364_v8 = vld [vmem:[#allocation2 + $0x85] sm:$0x7] }
 0x159   :  { %v1088_v40 = vmul.f32 %v8797_v55, %v8796_v51  ;;  %v8802_v5 = vld [vmem:[#allocation18_spill] sm:$0xff]  ;;  %v1153_v23 = vmul.f32 %v8804_v20, %v6428_v22  ;;  %v214_v43 = vld [vmem:[#allocation2 + $0xc8] sm:$0x7]  ;;  %v2194_v51 = vmul.f32 %v6257_v58, %v2169_v26  ;;  %v8805_v55 = vld [vmem:[#allocation75_spill] sm:$0xff]  ;;  %v107_v13 = vmul.f32 %v8801_v29, %v82_v30 }
 0x15a   :  { %v174_v41 = vmul.f32 %v8803_v32, %v8802_v5  ;;  %v148_v45 = vld [vmem:[#allocation2 + $0xb0] sm:$0x7]  ;;  %v1218_v54 = vmul.f32 %v5997_v52, %v8805_v55  ;;  %v2799_v5 = vadd.f32 %v2779_v4, %v2734_v27  ;;  %v2019_v53 = vadd.f32 %v1999_v31, %v1954_v62  ;;  %v2430_v48 = vld [vmem:[#allocation2 + $0x9d] sm:$0x7]  ;;  %v280_v18 = vld [vmem:[#allocation2 + $0xe0] sm:$0x7] }
 0x15b   :  { %v6445_v35 = vld [vmem:[#allocation2 + $0xf2] sm:$0xff]  ;;  %v1108_v21 = vadd.f32 %v1088_v40, %v1043_v1  ;;  %v240_v26 = vmul.f32 %v8747_v44, %v6233_v6  ;;  %v173_v39 = vmul.f32 %v8803_v32, %v148_v45  ;;  %v239_v60 = vmul.f32 %v8747_v44, %v214_v43  ;;  %v2560_v44 = vld [vmem:[#allocation2 + $0xcd] sm:$0x7] }
 0x15c   :  { %8806 = vst [vmem:[#allocation52_spill] sm:$0xff] %v6445_v35  ;;  %v194_v22 = vadd.f32 %v174_v41, %v108_v57  ;;  %v2865_v20 = vadd.f32 %v2845_v50, %v2799_v5  ;;  %v2084_v55 = vadd.f32 %v2064_v28, %v2019_v53  ;;  %v2495_v52 = vld [vmem:[#allocation2 + $0xb5] sm:$0x7]  ;;  %v1283_v4 = vmul.f32 %v6012_v42, %v6445_v35  ;;  %v346_v31 = vld [vmem:[#allocation2 + $0xf8] sm:$0x7]  ;;  %v6456_v57 = vld [vmem:[#allocation2 + $0x122] sm:$0xff] }
 0x15d   :  { %v1173_v34 = vadd.f32 %v1153_v23, %v1108_v21  ;;  %v2390_v40 = vmul.f32 %v6333_v49, %v2364_v8  ;;  %v2455_v30 = vmul.f32 %v6352_v19, %v2430_v48  ;;  %8807 = vst [vmem:[#allocation42_spill] sm:$0xff] %v6456_v57  ;;  %v193_v29 = vadd.f32 %v173_v39, %v107_v13  ;;  %v2625_v50 = vld [vmem:[#allocation2 + $0xe5] sm:$0x7]  ;;  %v8808_v28 = vld [vmem:[#allocation77_spill] sm:$0xff]  ;;  %v412_v62 = vld [vmem:[#allocation2 + $0x110] sm:$0x7] }
 0x15e   :  { %v305_v6 = vmul.f32 %v5743_v63, %v280_v18  ;;  %v2930_v41 = vadd.f32 %v2910_v33, %v2865_v20  ;;  %v2149_v32 = vadd.f32 %v2129_v2, %v2084_v55  ;;  %v1348_v27 = vmul.f32 %v6035_v38, %v8808_v28  ;;  %v1453_v45 = vld [vmem:[#allocation2 + $0x93] sm:$0xff]  ;;  %v2690_v63 = vld [vmem:[#allocation2 + $0xfd] sm:$0x7] }
 0x15f   :  { %v1238_v43 = vadd.f32 %v1218_v54, %v1173_v34  ;;  %v2520_v1 = vmul.f32 %v6366_v25, %v2495_v52  ;;  %v260_v23 = vadd.f32 %v240_v26, %v194_v22  ;;  %v259_v5 = vadd.f32 %v239_v60, %v193_v29  ;;  %v477_v34 = vld [vmem:[#allocation2 + $0x128] sm:$0x7]  ;;  %v8809_v22 = vld [vmem:[#allocation63_spill] sm:$0xff]  ;;  %v2755_v18 = vld [vmem:[#allocation2 + $0x115] sm:$0x7] }
 0x160   :  { %v371_v53 = vmul.f32 %v5762_v12, %v346_v31  ;;  %v2995_v8 = vadd.f32 %v6407_v56, %v2930_v41  ;;  %v2214_v48 = vadd.f32 %v2194_v51, %v2149_v32  ;;  %v1413_v2 = vmul.f32 %v6056_v47, %v6456_v57  ;;  %v2820_v56 = vld [vmem:[#allocation2 + $0x86] sm:$0x7]  ;;  %v542_v39 = vld [vmem:[#allocation2 + $0x99] sm:$0x7]  ;;  %v868_v57 = vld [vmem:[#allocation2 + $0x111] sm:$0x7] }
 0x161   :  { %v1303_v33 = vadd.f32 %v1283_v4, %v1238_v43  ;;  %v2585_v20 = vmul.f32 %v6048_v16, %v2560_v44  ;;  %v6468_v54 = vmul.f32 %v6066_v46, %v2625_v50  ;;  %v325_v52 = vadd.f32 %v305_v6, %v259_v5  ;;  %v6477_v4 = vld [vmem:[#allocation2 + $0xc3] sm:$0xff]  ;;  %v608_v50 = vld [vmem:[#allocation2 + $0xb1] sm:$0x7] }
 0x162   :  { %v437_v21 = vmul.f32 %v8809_v22, %v412_v62  ;;  %v3060_v13 = vadd.f32 %v6411_v10, %v2995_v8  ;;  %v2279_v12 = vadd.f32 %v2259_v59, %v2214_v48  ;;  %v1479_v26 = vmul.f32 %v6082_v9, %v1453_v45  ;;  %8810 = vst [vmem:[#allocation74_spill] sm:$0xff] %v6477_v4  ;;  %v2886_v59 = vld [vmem:[#allocation2 + $0x9e] sm:$0x7]  ;;  %v8811_v32 = vld [vmem:[#allocation41_spill] sm:$0xff] }
 0x163   :  { %v1368_v51 = vadd.f32 %v1348_v27, %v1303_v33  ;;  %v6474_v60 = vmul.f32 %v8770_v61, %v2690_v63  ;;  %v326_v55 = vadd.f32 %v6268_v7, %v260_v23  ;;  %v391_v31 = vadd.f32 %v371_v53, %v325_v52  ;;  %v8812_v62 = vld [vmem:[#allocation12_spill] sm:$0xff]  ;;  %v8813_v5 = vld [vmem:[#allocation29_spill] sm:$0xff]  ;;  %v8814_v48 = vld [vmem:[#allocation23_spill] sm:$0xff] }
 0x164   :  { %v502_v29 = vmul.f32 %v6019_v3, %v477_v34  ;;  %v3125_v6 = vadd.f32 %v6417_v15, %v3060_v13  ;;  %v2344_v10 = vadd.f32 %v2324_v11, %v2279_v12  ;;  %v1544_v44 = vmul.f32 %v6110_v14, %v8811_v32  ;;  %v2951_v15 = vld [vmem:[#allocation2 + $0xb6] sm:$0x7]  ;;  %v3016_v11 = vld [vmem:[#allocation2 + $0xce] sm:$0x7]  ;;  %v673_v8 = vld [vmem:[#allocation2 + $0xc9] sm:$0x7] }
 0x165   :  { %v1433_v41 = vadd.f32 %v1413_v2, %v1368_v51  ;;  %v6484_v43 = vmul.f32 %v8777_v17, %v2755_v18  ;;  %v6487_v28 = vmul.f32 %v8779_v24, %v2820_v56  ;;  %v457_v7 = vadd.f32 %v437_v21, %v391_v31  ;;  %v3081_v33 = vld [vmem:[#allocation2 + $0xe6] sm:$0x7]  ;;  %v6497_v52 = vld [vmem:[#allocation2 + $0xf3] sm:$0xff]  ;;  %v3146_v18 = vld [vmem:[#allocation2 + $0xfe] sm:$0x7] }
 0x166   :  { %v568_v27 = vmul.f32 %v5820_v0, %v542_v39  ;;  %v3190_v3 = vadd.f32 %v8812_v62, %v3125_v6  ;;  %v2410_v23 = vadd.f32 %v2390_v40, %v2344_v10  ;;  %v1609_v53 = vmul.f32 %v8813_v5, %v6477_v4  ;;  %v8815_v2 = vld [vmem:[#allocation20_spill] sm:$0xff]  ;;  %8816 = vst [vmem:[#allocation67_spill] sm:$0xff] %v6497_v52  ;;  %v8817_v0 = vld [vmem:[#allocation58_spill] sm:$0xff]  ;;  %v8843_v5 = vld [vmem:[#allocation27_spill] sm:$0xff] }
 0x167   :  { %v1499_v45 = vadd.f32 %v1479_v26, %v1433_v41  ;;  %v6494_v63 = vmul.f32 %v8814_v48, %v2886_v59  ;;  %v392_v34 = vadd.f32 %v8815_v2, %v326_v55  ;;  %v522_v22 = vadd.f32 %v502_v29, %v457_v7  ;;  %v8818_v13 = vld [vmem:[#allocation16_spill] sm:$0xff]  ;;  %v3211_v56 = vld [vmem:[#allocation2 + $0x116] sm:$0x7] }
 0x168   :  { %v633_v21 = vmul.f32 %v8817_v0, %v608_v50  ;;  %v6501_v40 = vadd.f32 %v8818_v13, %v3190_v3  ;;  %v2475_v12 = vadd.f32 %v2455_v30, %v2410_v23  ;;  %v8820_v26 = vld [vmem:[#allocation44_spill] sm:$0xff]  ;;  %v8821_v39 = vld [vmem:[#allocation34_spill] sm:$0xff]  ;;  %v8823_v55 = vld [vmem:[#allocation39_spill] sm:$0xff] }
 0x169   :  { %v1564_v51 = vadd.f32 %v1544_v44, %v1499_v45  ;;  %v1674_v31 = vmul.f32 %v8821_v39, %v8820_v26  ;;  %v738_v6 = vld [vmem:[#allocation2 + $0xe1] sm:$0x7]  ;;  %v8822_v10 = vld [vmem:[#allocation54_spill] sm:$0xff]  ;;  %v6509_v41 = vmul.f32 %v8823_v55, %v3016_v11  ;;  %v588_v29 = vadd.f32 %v568_v27, %v522_v22  ;;  %v803_v45 = vld [vmem:[#allocation2 + $0xf9] sm:$0x7] }
 0x16a   :  { %8819 = vst [vmem:[#allocation22_spill] sm:$0xff] %v6501_v40  ;;  %v6506_v59 = vmul.f32 %v8822_v10, %v2951_v15  ;;  %v8824_v32 = vld [vmem:[#allocation40_spill] sm:$0xff]  ;;  %3524 = vrot.lane.b32.xlu0 %v6501_v40, %s4045_s6  ;;  %v2540_v30 = vadd.f32 %v2520_v1, %v2475_v12  ;;  %v8826_v3 = vld [vmem:[#allocation10_spill] sm:$0xff]  ;;  %v8827_v15 = vld [vmem:[#allocation47_spill] sm:$0xff] }
 0x16b   :  { %v698_v50 = vmul.f32 %v8824_v32, %v673_v8  ;;  %v8825_v7 = vld [vmem:[#allocation56_spill] sm:$0xff]  ;;  %v1629_v44 = vadd.f32 %v1609_v53, %v1564_v51  ;;  %v1739_v23 = vmul.f32 %v8826_v3, %v6497_v52  ;;  %v6520_v0 = vmul.f32 %v8827_v15, %v3146_v18  ;;  %v8828_v11 = vld [vmem:[#allocation6_spill] sm:$0xff]  ;;  %v8830_v22 = vld [vmem:[#allocation9_spill] sm:$0xff] }
 0x16c   :  { %v6515_v62 = vmul.f32 %v8825_v7, %v3081_v33  ;;  %v6523_v13 = vmul.f32 %v8828_v11, %v3211_v56  ;;  %v6525_v27 = vld [vmem:[#allocation2 + $0x123] sm:$0xff]  ;;  %v653_v8 = vadd.f32 %v633_v21, %v588_v29  ;;  %v763_v26 = vmul.f32 %v8830_v22, %v738_v6  ;;  %v1909_v52 = vld [vmem:[#allocation2 + $0x94] sm:$0xff] }
 0x16d   :  { %8829 = vst [vmem:[#allocation69_spill] sm:$0xff] %v6525_v27  ;;  %v2605_v1 = vadd.f32 %v2585_v20, %v2540_v30  ;;  %v8831_v12 = vld [vmem:[#allocation32_spill] sm:$0xff]  ;;  %v1694_v40 = vadd.f32 %v1674_v31, %v1629_v44  ;;  %v8832_v53 = vld [vmem:[#allocation25_spill] sm:$0xff]  ;;  %v8840_v44 = vld [vmem:[#allocation38_spill] sm:$0xff] }
 0x16e   :  { %v458_v33 = vadd.f32 %v8831_v12, %v392_v34  ;;  %v8833_v51 = vld [vmem:[#allocation68_spill] sm:$0xff]  ;;  %v8834_v3 = vld [vmem:[#allocation21_spill] sm:$0xff]  ;;  %v718_v6 = vadd.f32 %v698_v50, %v653_v8  ;;  %v1869_v12 = vmul.f32 %v8840_v44, %v6525_v27 }
 0x16f   :  { %v1804_v4 = vmul.f32 %v8833_v51, %v8832_v53  ;;  %v6533_v18 = vmul.f32 %v8830_v22, %v8834_v3  ;;  %v8836_v56 = vld [vmem:[#allocation5_spill] sm:$0xff]  ;;  %v2670_v34 = vadd.f32 %v6468_v54, %v2605_v1  ;;  %v8839_v31 = vld [vmem:[#allocation60_spill] sm:$0xff]  ;;  %v1759_v30 = vadd.f32 %v1739_v23, %v1694_v40  ;;  %v8841_v51 = vld [vmem:[#allocation14_spill] sm:$0xff] }
 0x170   :  { %v6537_v39 = vmul.f32 %v8836_v56, %v8834_v3  ;;  %v6539_v21 = vld [vmem:[#allocation2 + $0xc4] sm:$0xff]  ;;  %v828_v20 = vmul.f32 %v8836_v56, %v803_v45  ;;  %v6545_v29 = vmul.f32 %v8839_v31, %v8834_v3  ;;  %v1935_v35 = vmul.f32 %v8841_v51, %v1909_v52  ;;  %v998_v40 = vld [vmem:[#allocation2 + $0x9a] sm:$0x7] }
 0x171   :  { %8835 = vst [vmem:[#allocation59_spill] sm:$0xff] %v6533_v18  ;;  %8838 = vst [vmem:[#allocation17_spill] sm:$0xff] %v6539_v21  ;;  %v933_v53 = vld [vmem:[#allocation2 + $0x129] sm:$0x7]  ;;  %v783_v50 = vadd.f32 %v763_v26, %v718_v6  ;;  %v893_v45 = vmul.f32 %v8839_v31, %v868_v57  ;;  %v2735_v54 = vadd.f32 %v6474_v60, %v2670_v34  ;;  %v8844_v23 = vld [vmem:[#allocation51_spill] sm:$0xff] }
 0x172   :  { %8837 = vst [vmem:[#allocation33_spill] sm:$0xff] %v6537_v39  ;;  %v543_v18 = vld [vmem:[#allocation2 + $0xa9] sm:$0xff]  ;;  %v1824_v8 = vadd.f32 %v1804_v4, %v1759_v30  ;;  %v2065_v3 = vmul.f32 %v8798_v37, %v6539_v21  ;;  %v6558_v1 = vadd.f32 %v8815_v2, %v8844_v23  ;;  %v6560_v27 = vld [vmem:[#allocation2 + $0xd9] sm:$0xff]  ;;  %v6569_v60 = vld [vmem:[%s7880_s1 + $0x8] ss:$0 sm:$0xff] }
 0x173   :  { %v8842_v39 = vld [vmem:[#allocation50_spill] sm:$0xff]  ;;  %8846 = vst [vmem:[#allocation64_spill] sm:$0xff] %v6560_v27  ;;  %v848_v51 = vadd.f32 %v828_v20, %v783_v50  ;;  %v8849_v6 = vld [vmem:[#allocation61_spill] sm:$0xff]  ;;  %8850 = vst [vmem:[#allocation28_spill] sm:$0xff] %v6569_v60  ;;  %v569_v4 = vmul.f32 %v6569_v60, %v543_v18  ;;  %v2800_v34 = vadd.f32 %v6484_v43, %v2735_v54 }
 0x174   :  { %v2000_v14 = vmul.f32 %v8843_v5, %v8842_v39  ;;  %8845 = vst [vmem:[#allocation45_spill] sm:$0xff] %v6558_v1  ;;  %v6562_v52 = vld [vmem:[#allocation2 + $0xf4] sm:$0xff]  ;;  %v8848_v39 = vld [vmem:[#allocation49_spill] sm:$0xff]  ;;  %v523_v57 = vadd.f32 %v8849_v6, %v458_v33  ;;  %v1889_v2 = vadd.f32 %v1869_v12, %v1824_v8  ;;  %v8854_v33 = vld [vmem:[#allocation36_spill] sm:$0xff]  ;;  %v699_v12 = vmul.f32 %v8824_v32, %v6560_v27 }
 0x175   :  { %8847 = vst [vmem:[#allocation18_spill] sm:$0xff] %v6562_v52  ;;  %v958_v26 = vmul.f32 %v8848_v39, %v933_v53  ;;  %v8851_v31 = vld [vmem:[#allocation7_spill] sm:$0xff]  ;;  %v1064_v1 = vld [vmem:[#allocation2 + $0xb2] sm:$0x7]  ;;  %v6578_v20 = vld [vmem:[%s7880_s1 + $0x9] ss:$0 sm:$0xff]  ;;  %v913_v21 = vadd.f32 %v893_v45, %v848_v51  ;;  %v2866_v54 = vadd.f32 %v6487_v28, %v2800_v34 }
 0x176   :  { %v8852_v30 = vld [vmem:[#allocation43_spill] sm:$0xff]  ;;  %8853 = vst [vmem:[#allocation75_spill] sm:$0xff] %v6578_v20  ;;  %v634_v53 = vmul.f32 %v6578_v20, %v8854_v33  ;;  %v6582_v50 = vld [vmem:[#allocation2 + $0x124] sm:$0xff]  ;;  %v589_v43 = vadd.f32 %v569_v4, %v523_v57  ;;  %v1955_v8 = vadd.f32 %v1935_v35, %v1889_v2  ;;  %v8860_v45 = vld [vmem:[#allocation70_spill] sm:$0xff] }
 0x177   :  { %v2130_v23 = vmul.f32 %v8852_v30, %v8851_v31  ;;  %8855 = vst [vmem:[#allocation77_spill] sm:$0xff] %v6582_v50  ;;  %v2365_v6 = vld [vmem:[#allocation2 + $0x95] sm:$0xff]  ;;  %v8856_v18 = vld [vmem:[#allocation53_spill] sm:$0xff]  ;;  %v2195_v31 = vmul.f32 %v6257_v58, %v6562_v52  ;;  %v978_v51 = vadd.f32 %v958_v26, %v913_v21  ;;  %v2931_v35 = vadd.f32 %v6494_v63, %v2866_v54 }
 0x178   :  { %v1024_v60 = vmul.f32 %v8856_v18, %v998_v40  ;;  %v8857_v30 = vld [vmem:[#allocation35_spill] sm:$0xff]  ;;  %v1129_v33 = vld [vmem:[#allocation2 + $0xca] sm:$0x7]  ;;  %v1089_v40 = vmul.f32 %v8860_v45, %v1064_v1  ;;  %v654_v57 = vadd.f32 %v634_v53, %v589_v43  ;;  %v2020_v28 = vadd.f32 %v2000_v14, %v1955_v8  ;;  %v1194_v18 = vld [vmem:[#allocation2 + $0xe2] sm:$0x7] }
 0x179   :  { %v2260_v37 = vmul.f32 %v6292_v36, %v8857_v30  ;;  %v6592_v20 = vld [vmem:[#allocation2 + $0x109] sm:$0xff]  ;;  %v8861_v4 = vld [vmem:[#allocation71_spill] sm:$0xff]  ;;  %v6603_v30 = vmul.f32 %v6333_v49, %v2365_v6  ;;  %v8864_v14 = vld [vmem:[#allocation8_spill] sm:$0xff] }
 0x17a   :  { %8858 = vst [vmem:[#allocation63_spill] sm:$0xff] %v6592_v20  ;;  %v6594_v5 = vld [vmem:[#allocation2 + $0xc5] sm:$0xff]  ;;  %v764_v32 = vmul.f32 %v8830_v22, %v8861_v4  ;;  %v8862_v34 = vld [vmem:[#allocation31_spill] sm:$0xff]  ;;  %v1044_v52 = vadd.f32 %v1024_v60, %v978_v51  ;;  %v719_v1 = vadd.f32 %v699_v12, %v654_v57  ;;  %v829_v53 = vmul.f32 %v8836_v56, %v6592_v20 }
 0x17b   :  { %8859 = vst [vmem:[#allocation41_spill] sm:$0xff] %v6594_v5  ;;  %v2325_v2 = vmul.f32 %v8862_v34, %v6582_v50  ;;  %v6605_v27 = vld [vmem:[#allocation2 + $0xf5] sm:$0xff]  ;;  %v8863_v21 = vld [vmem:[#allocation73_spill] sm:$0xff]  ;;  %v2996_v22 = vadd.f32 %v6506_v59, %v2931_v35  ;;  %v2085_v63 = vadd.f32 %v2065_v3, %v2020_v28  ;;  %v6613_v43 = vmul.f32 %v6352_v19, %v8864_v14  ;;  %v8865_v60 = vld [vmem:[#allocation72_spill] sm:$0xff] }
 0x17c   :  { %v1154_v26 = vmul.f32 %v8863_v21, %v1129_v33  ;;  %v6617_v6 = vmul.f32 %v6366_v25, %v6594_v5  ;;  %v1259_v54 = vld [vmem:[#allocation2 + $0xfa] sm:$0x7]  ;;  %v6623_v12 = vmul.f32 %v6048_v16, %v8865_v60  ;;  %v6625_v33 = vld [vmem:[#allocation2 + $0x125] sm:$0xff]  ;;  %v1109_v59 = vadd.f32 %v1089_v40, %v1044_v52  ;;  %v1324_v16 = vld [vmem:[#allocation2 + $0x112] sm:$0x7] }
 0x17d   :  { %v6619_v8 = vld [vmem:[#allocation2 + $0x139] sm:$0xff]  ;;  %v784_v57 = vadd.f32 %v764_v32, %v719_v1  ;;  %v3061_v4 = vadd.f32 %v6509_v41, %v2996_v22  ;;  %v2150_v35 = vadd.f32 %v2130_v23, %v2085_v63  ;;  %v6631_v28 = vmul.f32 %v6066_v46, %v6605_v27  ;;  %v999_v60 = vld [vmem:[#allocation2 + $0xaa] sm:$0xff] }
 0x17e   :  { %v2821_v56 = vld [vmem:[#allocation2 + $0x96] sm:$0xff]  ;;  %v6637_v5 = vld [vmem:[#allocation2 + $0xc6] sm:$0xff]  ;;  %v1174_v50 = vadd.f32 %v1154_v26, %v1109_v59  ;;  %v1284_v52 = vmul.f32 %v6012_v42, %v1259_v54  ;;  %v959_v41 = vmul.f32 %v8848_v39, %v6619_v8  ;;  %v6645_v46 = vmul.f32 %v8777_v17, %v6625_v33 }
 0x17f   :  { %v8866_v3 = vld [vmem:[#allocation79_spill] sm:$0xff]  ;;  %8868 = vst [vmem:[#allocation12_spill] sm:$0xff] %v6637_v5  ;;  %v849_v40 = vadd.f32 %v829_v53, %v784_v57  ;;  %v3126_v23 = vadd.f32 %v6515_v62, %v3061_v4  ;;  %v2215_v32 = vadd.f32 %v2195_v31, %v2150_v35  ;;  %v1349_v22 = vmul.f32 %v6035_v38, %v1324_v16  ;;  %v6657_v62 = vld [vmem:[%s7880_s1 + $0x10] ss:$0 sm:$0xff]  ;;  %v1520_v57 = vld [vmem:[#allocation2 + $0xb3] sm:$0x7] }
 0x180   :  { %v1219_v51 = vmul.f32 %v8866_v3, %v1194_v18  ;;  %v8867_v14 = vld [vmem:[#allocation15_spill] sm:$0xff]  ;;  %v1389_v18 = vld [vmem:[#allocation2 + $0x12a] sm:$0x7]  ;;  %v1025_v39 = vmul.f32 %v6657_v62, %v999_v60 }
 0x181   :  { %v6635_v20 = vmul.f32 %v8770_v61, %v8867_v14  ;;  %v6648_v61 = vmul.f32 %v8779_v24, %v2821_v56  ;;  %v6650_v1 = vld [vmem:[#allocation2 + $0xf6] sm:$0xff]  ;;  %v914_v53 = vadd.f32 %v6545_v29, %v849_v40  ;;  %v3191_v17 = vadd.f32 %v6520_v0, %v3126_v23  ;;  %v6671_v56 = vld [vmem:[#allocation2 + $0x126] sm:$0xff] }
 0x182   :  { %8869 = vst [vmem:[#allocation23_spill] sm:$0xff] %v6650_v1  ;;  %v1239_v26 = vadd.f32 %v1219_v51, %v1174_v50  ;;  %v2280_v31 = vadd.f32 %v2260_v37, %v2215_v32  ;;  %v8870_v24 = vld [vmem:[#allocation55_spill] sm:$0xff]  ;;  %v6667_v50 = vmul.f32 %v8822_v10, %v6637_v5  ;;  %8872 = vst [vmem:[#allocation58_spill] sm:$0xff] %v6671_v56  ;;  %v8873_v0 = vld [vmem:[#allocation66_spill] sm:$0xff] }
 0x183   :  { %v6663_v63 = vmul.f32 %v8814_v48, %v8870_v24  ;;  %v1454_v54 = vld [vmem:[#allocation2 + $0x9b] sm:$0x7]  ;;  %v1414_v51 = vmul.f32 %v6056_v47, %v1389_v18  ;;  %v979_v4 = vadd.f32 %v959_v41, %v914_v53  ;;  %v1090_v37 = vmul.f32 %v8860_v45, %v8873_v0  ;;  %v8875_v14 = vld [vmem:[#allocation78_spill] sm:$0xff]  ;;  %v1585_v60 = vld [vmem:[#allocation2 + $0xcb] sm:$0x7] }
 0x184   :  { %v6669_v29 = vld [vmem:[#allocation2 + $0xda] sm:$0xff]  ;;  %v1304_v59 = vadd.f32 %v1284_v52, %v1239_v26  ;;  %v6677_v48 = vadd.f32 %v6523_v13, %v3191_v17  ;;  %v2345_v35 = vadd.f32 %v2325_v2, %v2280_v31  ;;  %v6681_v10 = vmul.f32 %v8823_v55, %v8875_v14  ;;  %v1650_v41 = vld [vmem:[#allocation2 + $0xe3] sm:$0x7]  ;;  %v1780_v32 = vld [vmem:[#allocation2 + $0x113] sm:$0x7] }
 0x185   :  { %8871 = vst [vmem:[#allocation20_spill] sm:$0xff] %v6669_v29  ;;  %v6685_v16 = vmul.f32 %v8825_v7, %v6650_v1  ;;  %v1480_v40 = vmul.f32 %v6082_v9, %v1454_v54  ;;  %v1715_v23 = vld [vmem:[#allocation2 + $0xfb] sm:$0x7]  ;;  %v1045_v45 = vadd.f32 %v1025_v39, %v979_v4  ;;  %v1155_v13 = vmul.f32 %v8863_v21, %v6669_v29  ;;  %v8876_v2 = vld [vmem:[#allocation62_spill] sm:$0xff]  ;;  %v1845_v17 = vld [vmem:[#allocation2 + $0x12b] sm:$0x7] }
 0x186   :  { %8874 = vst [vmem:[#allocation16_spill] sm:$0xff] %v6677_v48  ;;  %v1369_v52 = vadd.f32 %v1349_v22, %v1304_v59  ;;  %3526 = vrot.lane.b32.xlu1 %v6677_v48, %s4045_s6  ;;  %v2411_v55 = vadd.f32 %v6603_v30, %v2345_v35  ;;  %v6695_v18 = vmul.f32 %v8827_v15, %v8876_v2  ;;  %v8877_v22 = vld [vmem:[#allocation48_spill] sm:$0xff]  ;;  %v6702_v39 = vld [vmem:[#allocation2 + $0x10a] sm:$0xff]  ;;  %v1910_v54 = vld [vmem:[#allocation2 + $0x9c] sm:$0x7] }
 0x187   :  { %v6699_v26 = vmul.f32 %v8828_v11, %v6671_v56  ;;  %v1545_v53 = vmul.f32 %v8877_v22, %v1520_v57  ;;  %8878 = vst [vmem:[#allocation44_spill] sm:$0xff] %v6702_v39  ;;  %v8879_v21 = vld [vmem:[#allocation29_spill] sm:$0xff]  ;;  %v1110_v59 = vadd.f32 %v1090_v37, %v1045_v45  ;;  %v8880_v4 = vld [vmem:[#allocation52_spill] sm:$0xff]  ;;  %v84_v0 = vld [vmem:[#allocation2 + $0xb0] sm:$0x7] }
 0x188   :  { %v1434_v31 = vadd.f32 %v1414_v51, %v1369_v52  ;;  %v1610_v24 = vmul.f32 %v8879_v21, %v1585_v60  ;;  %v1220_v30 = vmul.f32 %v8866_v3, %v8880_v4  ;;  %v150_v35 = vld [vmem:[#allocation2 + $0xc8] sm:$0x7]  ;;  %v2476_v14 = vadd.f32 %v6613_v43, %v2411_v55  ;;  %v8881_v2 = vld [vmem:[#allocation34_spill] sm:$0xff]  ;;  %v8883_v57 = vld [vmem:[#allocation68_spill] sm:$0xff] }
 0x189   :  { %v1675_v48 = vmul.f32 %v8881_v2, %v1650_v41  ;;  %v8882_v56 = vld [vmem:[#allocation10_spill] sm:$0xff]  ;;  %v6711_v22 = vmul.f32 %v8883_v57, %v1780_v32  ;;  %v216_v1 = vld [vmem:[#allocation2 + $0xe0] sm:$0x7]  ;;  %v6714_v60 = vmul.f32 %v8840_v44, %v1845_v17  ;;  %v1175_v52 = vadd.f32 %v1155_v13, %v1110_v59  ;;  %v282_v45 = vld [vmem:[#allocation2 + $0xf8] sm:$0x7] }
 0x18a   :  { %v1740_v29 = vmul.f32 %v8882_v56, %v1715_v23  ;;  %v1500_v51 = vadd.f32 %v1480_v40, %v1434_v31  ;;  %v1976_v37 = vld [vmem:[#allocation2 + $0xb4] sm:$0x7]  ;;  %v1285_v3 = vmul.f32 %v6012_v42, %v6702_v39  ;;  %v2541_v43 = vadd.f32 %v6617_v6, %v2476_v14  ;;  %v2041_v56 = vld [vmem:[#allocation2 + $0xcc] sm:$0x7]  ;;  %v6722_v23 = vld [vmem:[#allocation2 + $0x13a] sm:$0xff] }
 0x18b   :  { %v8884_v55 = vld [vmem:[#allocation14_spill] sm:$0xff]  ;;  %8885 = vst [vmem:[#allocation54_spill] sm:$0xff] %v6722_v23  ;;  %v6727_v40 = vld [vmem:[%s7880_s1] ss:$0 sm:$0xff]  ;;  %v6733_v42 = vld [vmem:[%s7880_s1 + $0x1] ss:$0 sm:$0xff]  ;;  %v1240_v17 = vadd.f32 %v1220_v30, %v1175_v52 }
 0x18c   :  { %v6720_v41 = vmul.f32 %v8884_v55, %v1910_v54  ;;  %8886 = vst [vmem:[#allocation39_spill] sm:$0xff] %v6727_v40  ;;  %v109_v44 = vmul.f32 %v6727_v40, %v84_v0  ;;  %8887 = vst [vmem:[#allocation40_spill] sm:$0xff] %v6733_v42  ;;  %v175_v6 = vmul.f32 %v6733_v42, %v150_v35  ;;  %v2106_v13 = vld [vmem:[#allocation2 + $0xe4] sm:$0x7]  ;;  %v8888_v31 = vld [vmem:[#allocation42_spill] sm:$0xff] }
 0x18d   :  { %v1565_v32 = vadd.f32 %v1545_v53, %v1500_v51  ;;  %v1350_v21 = vmul.f32 %v6035_v38, %v8888_v31  ;;  %v6741_v54 = vld [vmem:[%s7880_s1 + $0x2] ss:$0 sm:$0xff]  ;;  %v348_v4 = vld [vmem:[#allocation2 + $0x110] sm:$0x7]  ;;  %v2606_v0 = vadd.f32 %v6623_v12, %v2541_v43  ;;  %v8890_v14 = vld [vmem:[#allocation27_spill] sm:$0xff]  ;;  %v1305_v31 = vadd.f32 %v1285_v3, %v1240_v17 }
 0x18e   :  { %8889 = vst [vmem:[#allocation56_spill] sm:$0xff] %v6741_v54  ;;  %v241_v59 = vmul.f32 %v6741_v54, %v216_v1  ;;  %v6746_v2 = vmul.f32 %v8890_v14, %v1976_v37  ;;  %v2171_v35 = vld [vmem:[#allocation2 + $0xfc] sm:$0x7]  ;;  %v1455_v53 = vld [vmem:[#allocation2 + $0xab] sm:$0xff]  ;;  %v195_v57 = vadd.f32 %v175_v6, %v109_v44  ;;  %v6751_v38 = vld [vmem:[%s7880_s1 + $0x3] ss:$0 sm:$0xff]  ;;  %v1415_v12 = vmul.f32 %v6056_v47, %v6722_v23 }
 0x18f   :  { %8891 = vst [vmem:[#allocation47_spill] sm:$0xff] %v6751_v38  ;;  %v307_v30 = vmul.f32 %v6751_v38, %v282_v45  ;;  %v1630_v51 = vadd.f32 %v1610_v24, %v1565_v32  ;;  %v8892_v52 = vld [vmem:[#allocation11_spill] sm:$0xff]  ;;  %v2236_v1 = vld [vmem:[#allocation2 + $0x114] sm:$0x7]  ;;  %v414_v37 = vld [vmem:[#allocation2 + $0x128] sm:$0x7]  ;;  %v2671_v43 = vadd.f32 %v6631_v28, %v2606_v0  ;;  %v6770_v3 = vmul.f32 %v6257_v58, %v2171_v35 }
 0x190   :  { %v6755_v55 = vmul.f32 %v8892_v52, %v2041_v56  ;;  %v8893_v44 = vld [vmem:[#allocation43_spill] sm:$0xff]  ;;  %v2301_v14 = vld [vmem:[#allocation2 + $0x12c] sm:$0x7]  ;;  %v261_v39 = vadd.f32 %v241_v59, %v195_v57  ;;  %v6766_v24 = vld [vmem:[%s7880_s1 + $0x4] ss:$0 sm:$0xff]  ;;  %v1370_v32 = vadd.f32 %v1350_v21, %v1305_v31  ;;  %v1481_v28 = vmul.f32 %v6082_v9, %v1455_v53 }
 0x191   :  { %v6761_v6 = vmul.f32 %v8893_v44, %v2106_v13  ;;  %8894 = vst [vmem:[#allocation6_spill] sm:$0xff] %v6766_v24  ;;  %v373_v45 = vmul.f32 %v6766_v24, %v348_v4  ;;  %v1695_v56 = vadd.f32 %v1675_v48, %v1630_v51  ;;  %v2366_v47 = vld [vmem:[#allocation2 + $0x9d] sm:$0x7]  ;;  %v479_v17 = vld [vmem:[#allocation2 + $0x140] sm:$0x7]  ;;  %v2736_v13 = vadd.f32 %v6635_v20, %v2671_v43  ;;  %v8897_v35 = vld [vmem:[#allocation74_spill] sm:$0xff] }
 0x192   :  { %v6775_v59 = vmul.f32 %v6292_v36, %v2236_v1  ;;  %v2432_v0 = vld [vmem:[#allocation2 + $0xb5] sm:$0x7]  ;;  %v6777_v57 = vld [vmem:[#allocation2 + $0xdb] sm:$0xff]  ;;  %v327_v52 = vadd.f32 %v307_v30, %v261_v39  ;;  %v6782_v48 = vld [vmem:[%s7880_s1 + $0x5] ss:$0 sm:$0xff]  ;;  %v6786_v9 = vmul.f32 %v8862_v34, %v2301_v14  ;;  %v1435_v20 = vadd.f32 %v1415_v12, %v1370_v32 }
 0x193   :  { %8895 = vst [vmem:[#allocation9_spill] sm:$0xff] %v6777_v57  ;;  %8896 = vst [vmem:[#allocation32_spill] sm:$0xff] %v6782_v48  ;;  %v439_v58 = vmul.f32 %v6782_v48, %v414_v37  ;;  %v1760_v21 = vadd.f32 %v1740_v29, %v1695_v56  ;;  %v2497_v4 = vld [vmem:[#allocation2 + $0xcd] sm:$0x7]  ;;  %v6791_v36 = vld [vmem:[%s7880_s1 + $0x19] ss:$0 sm:$0xff]  ;;  %v2801_v30 = vadd.f32 %v6645_v46, %v2736_v13 }
 0x194   :  { %v1546_v39 = vmul.f32 %v6791_v36, %v8897_v35  ;;  %v544_v53 = vld [vmem:[#allocation2 + $0xb1] sm:$0x7]  ;;  %v6797_v51 = vmul.f32 %v6333_v49, %v2366_v47  ;;  %v2562_v29 = vld [vmem:[#allocation2 + $0xe5] sm:$0x7]  ;;  %v393_v1 = vadd.f32 %v373_v45, %v327_v52  ;;  %v6807_v37 = vmul.f32 %v6352_v19, %v2432_v0  ;;  %v2627_v43 = vld [vmem:[#allocation2 + $0xfd] sm:$0x7] }
 0x195   :  { %v6802_v34 = vld [vmem:[%s7880_s1 + $0x6] ss:$0 sm:$0xff]  ;;  %v1825_v12 = vadd.f32 %v6711_v22, %v1760_v21  ;;  %v1501_v44 = vadd.f32 %v1481_v28, %v1435_v20  ;;  %v6812_v46 = vld [vmem:[%s7880_s1 + $0x1a] ss:$0 sm:$0xff]  ;;  %v610_v45 = vld [vmem:[#allocation2 + $0xc9] sm:$0x7]  ;;  %v2867_v56 = vadd.f32 %v6648_v61, %v2801_v30  ;;  %v6818_v47 = vmul.f32 %v6366_v25, %v2497_v4 }
 0x196   :  { %8898 = vst [vmem:[#allocation25_spill] sm:$0xff] %v6802_v34  ;;  %v504_v31 = vmul.f32 %v6802_v34, %v479_v17  ;;  %8899 = vst [vmem:[#allocation21_spill] sm:$0xff] %v6812_v46  ;;  %v1611_v14 = vmul.f32 %v6812_v46, %v6777_v57  ;;  %v2692_v22 = vld [vmem:[#allocation2 + $0x115] sm:$0x7]  ;;  %v6820_v32 = vld [vmem:[#allocation2 + $0x10b] sm:$0xff]  ;;  %v459_v17 = vadd.f32 %v439_v58, %v393_v1 }
 0x197   :  { %8900 = vst [vmem:[#allocation5_spill] sm:$0xff] %v6820_v32  ;;  %v8901_v13 = vld [vmem:[#allocation28_spill] sm:$0xff]  ;;  %v1890_v0 = vadd.f32 %v6714_v60, %v1825_v12  ;;  %v6827_v52 = vld [vmem:[%s7880_s1 + $0x2b] ss:$0 sm:$0xff]  ;;  %v2757_v61 = vld [vmem:[#allocation2 + $0x12d] sm:$0x7]  ;;  %v1566_v20 = vadd.f32 %v1546_v39, %v1501_v44  ;;  %v2932_v60 = vadd.f32 %v6663_v63, %v2867_v56 }
 0x198   :  { %v570_v28 = vmul.f32 %v8901_v13, %v544_v53  ;;  %v6830_v21 = vmul.f32 %v6827_v52, %v2562_v29  ;;  %v6835_v4 = vld [vmem:[%s7880_s1 + $0x1b] ss:$0 sm:$0xff]  ;;  %v675_v53 = vld [vmem:[#allocation2 + $0xe1] sm:$0x7]  ;;  %v6843_v30 = vld [vmem:[%s7880_s1 + $0x2c] ss:$0 sm:$0xff]  ;;  %v524_v1 = vadd.f32 %v504_v31, %v459_v17 }
 0x199   :  { %8902 = vst [vmem:[#allocation60_spill] sm:$0xff] %v6835_v4  ;;  %v8903_v58 = vld [vmem:[#allocation67_spill] sm:$0xff]  ;;  %v6846_v29 = vmul.f32 %v6843_v30, %v2627_v43  ;;  %v1956_v57 = vadd.f32 %v6720_v41, %v1890_v0  ;;  %v1631_v23 = vadd.f32 %v1611_v14, %v1566_v20  ;;  %v2997_v41 = vadd.f32 %v6667_v50, %v2932_v60  ;;  %v6869_v17 = vld [vmem:[%s7880_s1 + $0x2e] ss:$0 sm:$0xff]  ;;  %v6886_v60 = vld [vmem:[%s7880_s1 + $0x30] ss:$0 sm:$0xff] }
 0x19a   :  { %v1676_v35 = vmul.f32 %v6835_v4, %v8903_v58  ;;  %v2822_v39 = vld [vmem:[#allocation2 + $0x9e] sm:$0x7]  ;;  %v6853_v58 = vld [vmem:[%s7880_s1 + $0x2d] ss:$0 sm:$0xff]  ;;  %v2888_v56 = vld [vmem:[#allocation2 + $0xb6] sm:$0x7]  ;;  %v590_v20 = vadd.f32 %v570_v28, %v524_v1 }
 0x19b   :  { %v8904_v12 = vld [vmem:[#allocation75_spill] sm:$0xff]  ;;  %8905 = vst [vmem:[#allocation38_spill] sm:$0xff] %v6853_v58  ;;  %v6856_v63 = vmul.f32 %v6853_v58, %v2692_v22  ;;  %8907 = vst [vmem:[#allocation51_spill] sm:$0xff] %v6869_v17  ;;  %v6872_v22 = vmul.f32 %v6869_v17, %v2757_v61  ;;  %v2953_v14 = vld [vmem:[#allocation2 + $0xce] sm:$0x7]  ;;  %v2021_v50 = vadd.f32 %v6746_v2, %v1956_v57 }
 0x19c   :  { %v635_v44 = vmul.f32 %v8904_v12, %v610_v45  ;;  %v6861_v43 = vld [vmem:[%s7880_s1 + $0x1c] ss:$0 sm:$0xff]  ;;  %v740_v45 = vld [vmem:[#allocation2 + $0xf9] sm:$0x7]  ;;  %v6879_v4 = vld [vmem:[%s7880_s1 + $0xa] ss:$0 sm:$0xff]  ;;  %v6889_v61 = vmul.f32 %v6886_v60, %v2822_v39  ;;  %v1696_v46 = vadd.f32 %v1676_v35, %v1631_v23  ;;  %v3062_v2 = vadd.f32 %v6681_v10, %v2997_v41 }
 0x19d   :  { %8906 = vst [vmem:[#allocation50_spill] sm:$0xff] %v6861_v43  ;;  %v1741_v31 = vmul.f32 %v6861_v43, %v6820_v32  ;;  %v6874_v0 = vld [vmem:[#allocation2 + $0x13b] sm:$0xff]  ;;  %8909 = vst [vmem:[#allocation61_spill] sm:$0xff] %v6879_v4  ;;  %v700_v32 = vmul.f32 %v6879_v4, %v675_v53  ;;  %v3018_v43 = vld [vmem:[#allocation2 + $0xe6] sm:$0x7] }
 0x19e   :  { %8908 = vst [vmem:[#allocation49_spill] sm:$0xff] %v6874_v0  ;;  %8910 = vst [vmem:[#allocation7_spill] sm:$0xff] %v6886_v60  ;;  %v6894_v28 = vld [vmem:[%s7880_s1 + $0x1d] ss:$0 sm:$0xff]  ;;  %v8912_v1 = vld [vmem:[#allocation69_spill] sm:$0xff]  ;;  %v655_v35 = vadd.f32 %v635_v44, %v590_v20 }
 0x19f   :  { %8911 = vst [vmem:[#allocation36_spill] sm:$0xff] %v6894_v28  ;;  %v1806_v53 = vmul.f32 %v6894_v28, %v8912_v1  ;;  %v805_v5 = vld [vmem:[#allocation2 + $0x111] sm:$0x7]  ;;  %v6910_v60 = vld [vmem:[%s7880_s1 + $0xb] ss:$0 sm:$0xff]  ;;  %v2086_v28 = vadd.f32 %v6755_v55, %v2021_v50  ;;  %v3127_v55 = vadd.f32 %v6685_v16, %v3062_v2  ;;  %v6945_v2 = vld [vmem:[#allocation2] sm:$0xff] }
 0x1a0   :  { %v6902_v57 = vld [vmem:[%s7880_s1 + $0x31] ss:$0 sm:$0xff]  ;;  %8915 = vst [vmem:[#allocation70_spill] sm:$0xff] %v6910_v60  ;;  %v765_v1 = vmul.f32 %v6910_v60, %v740_v45  ;;  %v6917_v10 = vld [vmem:[%s7880_s1 + $0x32] ss:$0 sm:$0xff] }
 0x1a1   :  { %8913 = vst [vmem:[#allocation53_spill] sm:$0xff] %v6902_v57  ;;  %v6905_v39 = vmul.f32 %v6902_v57, %v2888_v56  ;;  %v1911_v23 = vld [vmem:[#allocation2 + $0xac] sm:$0xff]  ;;  %8916 = vst [vmem:[#allocation71_spill] sm:$0xff] %v6917_v10  ;;  %v6920_v41 = vmul.f32 %v6917_v10, %v2953_v14  ;;  %v3083_v56 = vld [vmem:[#allocation2 + $0xfe] sm:$0x7]  ;;  %v6949_v10 = vmul.f32 %v6945_v2, %v6782_v48 }
 0x1a2   :  { %v6925_v44 = vld [vmem:[%s7880_s1 + $0x1e] ss:$0 sm:$0xff]  ;;  %v870_v20 = vld [vmem:[#allocation2 + $0x129] sm:$0x7]  ;;  %v6933_v50 = vld [vmem:[%s7880_s1 + $0x33] ss:$0 sm:$0xff] }
 0x1a3   :  { %8914 = vst [vmem:[#allocation35_spill] sm:$0xff] %v6905_v39  ;;  %8917 = vst [vmem:[#allocation31_spill] sm:$0xff] %v6920_v41  ;;  %v1761_v39 = vadd.f32 %v1741_v31, %v1696_v46  ;;  %v1871_v45 = vmul.f32 %v6925_v44, %v6874_v0  ;;  %v6936_v14 = vmul.f32 %v6933_v50, %v3018_v43  ;;  %v3148_v46 = vld [vmem:[#allocation2 + $0x116] sm:$0x7]  ;;  %v6941_v41 = vld [vmem:[%s7880_s1 + $0xc] ss:$0 sm:$0xff] }
 0x1a4   :  { %8918 = vst [vmem:[#allocation73_spill] sm:$0xff] %v6925_v44  ;;  %8919 = vst [vmem:[#allocation8_spill] sm:$0xff] %v6933_v50  ;;  %v720_v31 = vadd.f32 %v700_v32, %v655_v35  ;;  %v830_v0 = vmul.f32 %v6941_v41, %v805_v5  ;;  %v2151_v44 = vadd.f32 %v6761_v6, %v2086_v28  ;;  %v3213_v16 = vld [vmem:[#allocation2 + $0x12e] sm:$0x7]  ;;  %v6954_v32 = vld [vmem:[%s7880_s1 + $0x20] ss:$0 sm:$0xff] }
 0x1a5   :  { %8920 = vst [vmem:[#allocation72_spill] sm:$0xff] %v6936_v14  ;;  %8921 = vst [vmem:[#allocation79_spill] sm:$0xff] %v6941_v41  ;;  %v1826_v43 = vadd.f32 %v1806_v53, %v1761_v39  ;;  %v1937_v35 = vmul.f32 %v6954_v32, %v1911_v23  ;;  %v935_v14 = vld [vmem:[#allocation2 + $0x141] sm:$0x7]  ;;  %v3192_v5 = vadd.f32 %v6695_v18, %v3127_v55  ;;  %v6966_v53 = vld [vmem:[%s7880_s1 + $0xd] ss:$0 sm:$0xff] }
 0x1a6   :  { %8922 = vst [vmem:[#allocation15_spill] sm:$0xff] %v6949_v10  ;;  %8923 = vst [vmem:[#allocation55_spill] sm:$0xff] %v6954_v32  ;;  %v6959_v6 = vmul.f32 %v8825_v7, %v3083_v56  ;;  %v6961_v28 = vld [vmem:[#allocation2 + $0xdc] sm:$0xff]  ;;  %v785_v50 = vadd.f32 %v765_v1, %v720_v31  ;;  %v895_v39 = vmul.f32 %v6966_v53, %v870_v20  ;;  %v8926_v18 = vld [vmem:[#allocation17_spill] sm:$0xff] }
 0x1a7   :  { %8924 = vst [vmem:[#allocation66_spill] sm:$0xff] %v6961_v28  ;;  %8925 = vst [vmem:[#allocation78_spill] sm:$0xff] %v6966_v53  ;;  %v2216_v57 = vadd.f32 %v6770_v3, %v2151_v44  ;;  %v6971_v23 = vmul.f32 %v8827_v15, %v3148_v46  ;;  %v1891_v32 = vadd.f32 %v1871_v45, %v1826_v43  ;;  %v6976_v7 = vld [vmem:[%s7880_s1 + $0x21] ss:$0 sm:$0xff]  ;;  %v1000_v56 = vld [vmem:[#allocation2 + $0xb2] sm:$0x7] }
 0x1a8   :  { %v2002_v1 = vmul.f32 %v6976_v7, %v8926_v18  ;;  %v86_v55 = vld [vmem:[#allocation2 + $0xc8] sm:$0x7]  ;;  %v6981_v31 = vadd.f32 %v6699_v26, %v3192_v5  ;;  %v6984_v20 = vmul.f32 %v8828_v11, %v3213_v16  ;;  %v850_v3 = vadd.f32 %v830_v0, %v785_v50  ;;  %v6989_v15 = vld [vmem:[%s7880_s1 + $0xe] ss:$0 sm:$0xff]  ;;  %v152_v45 = vld [vmem:[#allocation2 + $0xe0] sm:$0x7] }
 0x1a9   :  { %v960_v44 = vmul.f32 %v6989_v15, %v935_v14  ;;  %v2281_v46 = vadd.f32 %v6775_v59, %v2216_v57  ;;  %v8928_v43 = vld [vmem:[#allocation30_spill] sm:$0xff]  ;;  %v1957_v26 = vadd.f32 %v1937_v35, %v1891_v32  ;;  %v7000_v11 = vld [vmem:[%s7880_s1 + $0x22] ss:$0 sm:$0xff]  ;;  %v1066_v50 = vld [vmem:[#allocation2 + $0xca] sm:$0x7]  ;;  %v7008_v59 = vmul.f32 %v6941_v41, %v6619_v8 }
 0x1aa   :  { %8927 = vst [vmem:[#allocation62_spill] sm:$0xff] %v6981_v31  ;;  %v6995_v18 = vadd.f32 %v6949_v10, %v8928_v43  ;;  %8929 = vst [vmem:[#allocation48_spill] sm:$0xff] %v7000_v11  ;;  %v2067_v0 = vmul.f32 %v7000_v11, %v6961_v28  ;;  %v218_v16 = vld [vmem:[#allocation2 + $0xf8] sm:$0x7]  ;;  %3528 = vrot.lane.b32.xlu0 %v6981_v31, %s4045_s6  ;;  %v7010_v57 = vld [vmem:[#allocation2 + $0x10c] sm:$0xff]  ;;  %v915_v14 = vadd.f32 %v895_v39, %v850_v3 }
 0x1ab   :  { %8930 = vst [vmem:[#allocation29_spill] sm:$0xff] %v7008_v59  ;;  %8931 = vst [vmem:[#allocation52_spill] sm:$0xff] %v7010_v57  ;;  %v1026_v32 = vmul.f32 %v6657_v62, %v1000_v56  ;;  %v111_v35 = vmul.f32 %v6727_v40, %v86_v55  ;;  %v2346_v5 = vadd.f32 %v6786_v9, %v2281_v46  ;;  %v7018_v28 = vld [vmem:[%s7880_s1 + $0x23] ss:$0 sm:$0xff]  ;;  %v8932_v31 = vld [vmem:[#allocation18_spill] sm:$0xff] }
 0x1ac   :  { %v2022_v43 = vadd.f32 %v2002_v1, %v1957_v26  ;;  %v2132_v10 = vmul.f32 %v7018_v28, %v8932_v31  ;;  %v1131_v41 = vld [vmem:[#allocation2 + $0xe2] sm:$0x7]  ;;  %v177_v59 = vmul.f32 %v6733_v42, %v152_v45  ;;  %v284_v11 = vld [vmem:[#allocation2 + $0x110] sm:$0x7]  ;;  %v7025_v39 = vmul.f32 %v6966_v53, %v6619_v8  ;;  %v1196_v26 = vld [vmem:[#allocation2 + $0xfa] sm:$0x7] }
 0x1ad   :  { %v7027_v56 = vld [vmem:[#allocation2 + $0x13c] sm:$0xff]  ;;  %v980_v9 = vadd.f32 %v960_v44, %v915_v14  ;;  %v7032_v1 = vld [vmem:[%s7880_s1 + $0x11] ss:$0 sm:$0xff]  ;;  %v243_v31 = vmul.f32 %v6741_v54, %v218_v16  ;;  %v2412_v3 = vadd.f32 %v6797_v51, %v2346_v5  ;;  %v7040_v8 = vld [vmem:[%s7880_s1 + $0x24] ss:$0 sm:$0xff]  ;;  %v309_v54 = vmul.f32 %v6751_v38, %v284_v11 }
 0x1ae   :  { %8933 = vst [vmem:[#allocation34_spill] sm:$0xff] %v7027_v56  ;;  %v1091_v55 = vmul.f32 %v7032_v1, %v1066_v50  ;;  %v2087_v45 = vadd.f32 %v2067_v0, %v2022_v43  ;;  %8934 = vst [vmem:[#allocation10_spill] sm:$0xff] %v7040_v8  ;;  %v2197_v44 = vmul.f32 %v7040_v8, %v7010_v57  ;;  %v2367_v46 = vld [vmem:[#allocation2 + $0xad] sm:$0xff]  ;;  %v7047_v50 = vld [vmem:[%s7880_s1 + $0x25] ss:$0 sm:$0xff] }
 0x1af   :  { %v197_v14 = vadd.f32 %v177_v59, %v111_v35  ;;  %8935 = vst [vmem:[#allocation68_spill] sm:$0xff] %v7047_v50  ;;  %v8936_v16 = vld [vmem:[#allocation77_spill] sm:$0xff]  ;;  %v1046_v0 = vadd.f32 %v1026_v32, %v980_v9  ;;  %v7054_v5 = vld [vmem:[%s7880_s1 + $0x12] ss:$0 sm:$0xff]  ;;  %v2477_v35 = vadd.f32 %v6807_v37, %v2412_v3  ;;  %v7062_v42 = vld [vmem:[%s7880_s1 + $0x26] ss:$0 sm:$0xff]  ;;  %v2393_v40 = vmul.f32 %v6333_v49, %v2367_v46 }
 0x1b0   :  { %v2262_v51 = vmul.f32 %v7047_v50, %v8936_v16  ;;  %v1156_v43 = vmul.f32 %v7054_v5, %v1131_v41  ;;  %v1261_v57 = vld [vmem:[#allocation2 + $0x112] sm:$0x7]  ;;  %v350_v59 = vld [vmem:[#allocation2 + $0x128] sm:$0x7]  ;;  %v2152_v53 = vadd.f32 %v2132_v10, %v2087_v45  ;;  %8937 = vst [vmem:[#allocation14_spill] sm:$0xff] %v7062_v42  ;;  %v2327_v32 = vmul.f32 %v7062_v42, %v7027_v56  ;;  %v7069_v11 = vld [vmem:[#allocation2 + $0xdd] sm:$0xff] }
 0x1b1   :  { %v263_v9 = vadd.f32 %v243_v31, %v197_v14  ;;  %v545_v16 = vld [vmem:[#allocation2 + $0xc1] sm:$0xff]  ;;  %8939 = vst [vmem:[#allocation42_spill] sm:$0xff] %v7069_v11  ;;  %v1111_v38 = vadd.f32 %v1091_v55, %v1046_v0  ;;  %v7074_v37 = vld [vmem:[%s7880_s1 + $0x13] ss:$0 sm:$0xff]  ;;  %v2542_v3 = vadd.f32 %v6818_v47, %v2477_v35  ;;  %v7081_v49 = vld [vmem:[%s7880_s1 + $0x14] ss:$0 sm:$0xff]  ;;  %v375_v55 = vmul.f32 %v6766_v24, %v350_v59 }
 0x1b2   :  { %v8938_v41 = vld [vmem:[#allocation41_spill] sm:$0xff]  ;;  %v1221_v10 = vmul.f32 %v7074_v37, %v1196_v26  ;;  %v2217_v45 = vadd.f32 %v2197_v44, %v2152_v53  ;;  %v1391_v14 = vld [vmem:[#allocation2 + $0x142] sm:$0x7]  ;;  %v7087_v26 = vmul.f32 %v6945_v2, %v6802_v34  ;;  %v571_v47 = vmul.f32 %v8901_v13, %v545_v16  ;;  %v7095_v59 = vld [vmem:[#allocation2 + $0xf1] sm:$0xff] }
 0x1b3   :  { %v2458_v50 = vmul.f32 %v6352_v19, %v8938_v41  ;;  %v1286_v19 = vmul.f32 %v7081_v49, %v1261_v57  ;;  %v1326_v31 = vld [vmem:[#allocation2 + $0x12a] sm:$0x7]  ;;  %v1176_v46 = vadd.f32 %v1156_v43, %v1111_v38  ;;  %v329_v0 = vadd.f32 %v309_v54, %v263_v9  ;;  %v416_v41 = vld [vmem:[#allocation2 + $0x140] sm:$0x7]  ;;  %8941 = vst [vmem:[#allocation11_spill] sm:$0xff] %v7095_v59  ;;  %v7097_v38 = vld [vmem:[#allocation2 + $0x10d] sm:$0xff] }
 0x1b4   :  { %8940 = vst [vmem:[#allocation27_spill] sm:$0xff] %v7087_v26  ;;  %v2607_v53 = vadd.f32 %v6830_v21, %v2542_v3  ;;  %v2282_v44 = vadd.f32 %v2262_v51, %v2217_v45  ;;  %v2523_v35 = vmul.f32 %v6366_v25, %v7069_v11  ;;  %v2588_v57 = vmul.f32 %v6827_v52, %v6605_v27  ;;  %v7102_v2 = vld [vmem:[%s7880_s1 + $0x15] ss:$0 sm:$0xff]  ;;  %v8944_v51 = vld [vmem:[#allocation64_spill] sm:$0xff]  ;;  %v7113_v16 = vld [vmem:[%s7880_s1 + $0x16] ss:$0 sm:$0xff] }
 0x1b5   :  { %8942 = vst [vmem:[#allocation43_spill] sm:$0xff] %v7097_v38  ;;  %v1241_v54 = vadd.f32 %v1221_v10, %v1176_v46  ;;  %8943 = vst [vmem:[#allocation74_spill] sm:$0xff] %v7102_v2  ;;  %v1351_v43 = vmul.f32 %v7102_v2, %v1326_v31  ;;  %v525_v21 = vadd.f32 %v7087_v26, %v6995_v18  ;;  %v1456_v3 = vld [vmem:[#allocation2 + $0xb3] sm:$0x7]  ;;  %v7117_v31 = vld [vmem:[#allocation2 + $0x13d] sm:$0xff] }
 0x1b6   :  { %v636_v25 = vmul.f32 %v8904_v12, %v8944_v51  ;;  %v2672_v27 = vadd.f32 %v6846_v29, %v2607_v53  ;;  %v2347_v9 = vadd.f32 %v2327_v32, %v2282_v44  ;;  %8945 = vst [vmem:[#allocation28_spill] sm:$0xff] %v7113_v16  ;;  %v1416_v10 = vmul.f32 %v7113_v16, %v1391_v14  ;;  %v1522_v18 = vld [vmem:[#allocation2 + $0xcb] sm:$0x7]  ;;  %v481_v51 = vld [vmem:[#allocation2 + $0x158] sm:$0x7] }
 0x1b7   :  { %v441_v45 = vmul.f32 %v6782_v48, %v416_v41  ;;  %8946 = vst [vmem:[#allocation67_spill] sm:$0xff] %v7117_v31  ;;  %v1306_v46 = vadd.f32 %v1286_v19, %v1241_v54  ;;  %v395_v11 = vadd.f32 %v375_v55, %v329_v0  ;;  %v591_v56 = vadd.f32 %v571_v47, %v525_v21  ;;  %v2823_v41 = vld [vmem:[#allocation2 + $0xae] sm:$0xff]  ;;  %v7129_v19 = vld [vmem:[%s7880_s1 + $0x18] ss:$0 sm:$0xff]  ;;  %v7137_v21 = vld [vmem:[#allocation2 + $0xde] sm:$0xff] }
 0x1b8   :  { %v701_v29 = vmul.f32 %v6879_v4, %v7095_v59  ;;  %v2737_v32 = vadd.f32 %v6856_v63, %v2672_v27  ;;  %v2413_v53 = vadd.f32 %v2393_v40, %v2347_v9  ;;  %v2653_v44 = vmul.f32 %v6843_v30, %v7097_v38  ;;  %8947 = vst [vmem:[#allocation75_spill] sm:$0xff] %v7129_v19  ;;  %v8948_v47 = vld [vmem:[#allocation63_spill] sm:$0xff]  ;;  %v1587_v27 = vld [vmem:[#allocation2 + $0xe3] sm:$0x7] }
 0x1b9   :  { %v2718_v14 = vmul.f32 %v6853_v58, %v6625_v33  ;;  %v1371_v26 = vadd.f32 %v1351_v43, %v1306_v46  ;;  %v1482_v55 = vmul.f32 %v7129_v19, %v1456_v3  ;;  %v656_v0 = vadd.f32 %v636_v25, %v591_v56  ;;  %8949 = vst [vmem:[#allocation69_spill] sm:$0xff] %v7137_v21  ;;  %v1652_v46 = vld [vmem:[#allocation2 + $0xfb] sm:$0x7]  ;;  %v546_v56 = vld [vmem:[#allocation2 + $0xc9] sm:$0x7]  ;;  %v7147_v48 = vld [vmem:[#allocation2 + $0x151] sm:$0xff] }
 0x1ba   :  { %v766_v40 = vmul.f32 %v6910_v60, %v8948_v47  ;;  %v2802_v63 = vadd.f32 %v6872_v22, %v2737_v32  ;;  %v2478_v54 = vadd.f32 %v2458_v50, %v2413_v53  ;;  %v2783_v33 = vmul.f32 %v6869_v17, %v7117_v31  ;;  %v8950_v22 = vld [vmem:[#allocation7_spill] sm:$0xff]  ;;  %v8951_v32 = vld [vmem:[#allocation12_spill] sm:$0xff]  ;;  %v8952_v53 = vld [vmem:[#allocation53_spill] sm:$0xff]  ;;  %8953 = vst [vmem:[#allocation17_spill] sm:$0xff] %v7147_v48 }
 0x1bb   :  { %v1547_v43 = vmul.f32 %v6791_v36, %v1522_v18  ;;  %v1436_v9 = vadd.f32 %v1416_v10, %v1371_v26  ;;  %v461_v38 = vadd.f32 %v441_v45, %v395_v11  ;;  %v506_v3 = vmul.f32 %v6802_v34, %v481_v51  ;;  %v8954_v18 = vld [vmem:[#allocation71_spill] sm:$0xff]  ;;  %v7153_v11 = vld [vmem:[#allocation2 + $0x10e] sm:$0xff]  ;;  %v1001_v34 = vld [vmem:[#allocation2 + $0xc2] sm:$0xff] }
 0x1bc   :  { %v721_v25 = vadd.f32 %v701_v29, %v656_v0  ;;  %v2868_v47 = vadd.f32 %v6889_v61, %v2802_v63  ;;  %v2543_v59 = vadd.f32 %v2523_v35, %v2478_v54  ;;  %v2849_v50 = vmul.f32 %v8950_v22, %v2823_v41  ;;  %8955 = vst [vmem:[#allocation30_spill] sm:$0xff] %v7153_v11  ;;  %v8956_v45 = vld [vmem:[#allocation21_spill] sm:$0xff]  ;;  %v8957_v61 = vld [vmem:[#allocation35_spill] sm:$0xff]  ;;  %v8958_v41 = vld [vmem:[#allocation60_spill] sm:$0xff] }
 0x1bd   :  { %v7145_v31 = vmul.f32 %v8952_v53, %v8951_v32  ;;  %v7151_v26 = vmul.f32 %v8954_v18, %v7137_v21  ;;  %v1502_v10 = vadd.f32 %v1482_v55, %v1436_v9  ;;  %v1612_v29 = vmul.f32 %v8956_v45, %v1587_v27  ;;  %v1717_v54 = vld [vmem:[#allocation2 + $0x113] sm:$0x7]  ;;  %v1782_v53 = vld [vmem:[#allocation2 + $0x12b] sm:$0x7]  ;;  %v612_v21 = vld [vmem:[#allocation2 + $0xe1] sm:$0x7] }
 0x1be   :  { %v786_v51 = vadd.f32 %v766_v40, %v721_v25  ;;  %v2933_v35 = vadd.f32 %v8957_v61, %v2868_v47  ;;  %v2608_v0 = vadd.f32 %v2588_v57, %v2543_v59  ;;  %v1677_v63 = vmul.f32 %v8958_v41, %v1652_v46  ;;  %v8959_v18 = vld [vmem:[#allocation33_spill] sm:$0xff]  ;;  %v8960_v27 = vld [vmem:[#allocation31_spill] sm:$0xff]  ;;  %v8962_v57 = vld [vmem:[#allocation8_spill] sm:$0xff] }
 0x1bf   :  { %v572_v32 = vmul.f32 %v8901_v13, %v546_v56  ;;  %v1567_v24 = vadd.f32 %v1547_v43, %v1502_v10  ;;  %v526_v22 = vadd.f32 %v506_v3, %v461_v38  ;;  %v961_v55 = vmul.f32 %v6989_v15, %v7147_v48  ;;  %v8961_v25 = vld [vmem:[#allocation23_spill] sm:$0xff]  ;;  %v7170_v13 = vld [vmem:[%s7880_s1 + $0x34] ss:$0 sm:$0xff]  ;;  %v8967_v61 = vld [vmem:[#allocation36_spill] sm:$0xff] }
 0x1c0   :  { %v851_v17 = vadd.f32 %v8959_v18, %v786_v51  ;;  %v2998_v40 = vadd.f32 %v8960_v27, %v2933_v35  ;;  %v2673_v9 = vadd.f32 %v2653_v44, %v2608_v0  ;;  %v7165_v59 = vmul.f32 %v8962_v57, %v8961_v25  ;;  %8963 = vst [vmem:[#allocation18_spill] sm:$0xff] %v7170_v13  ;;  %v7176_v43 = vld [vmem:[#allocation2 + $0x13e] sm:$0xff]  ;;  %v8965_v3 = vld [vmem:[#allocation50_spill] sm:$0xff] }
 0x1c1   :  { %v7174_v38 = vmul.f32 %v7170_v13, %v7153_v11  ;;  %8964 = vst [vmem:[#allocation77_spill] sm:$0xff] %v7176_v43  ;;  %v1632_v46 = vadd.f32 %v1612_v29, %v1567_v24  ;;  %v1742_v56 = vmul.f32 %v8965_v3, %v1717_v54  ;;  %v1027_v47 = vmul.f32 %v6657_v62, %v1001_v34  ;;  %v8966_v18 = vld [vmem:[#allocation72_spill] sm:$0xff]  ;;  %v7184_v25 = vld [vmem:[#allocation2 + $0xf2] sm:$0xff] }
 0x1c2   :  { %v916_v44 = vadd.f32 %v7025_v39, %v851_v17  ;;  %v3063_v10 = vadd.f32 %v8966_v18, %v2998_v40  ;;  %v2738_v51 = vadd.f32 %v2718_v14, %v2673_v9  ;;  %v1807_v35 = vmul.f32 %v8967_v61, %v1782_v53  ;;  %v1847_v0 = vld [vmem:[#allocation2 + $0x143] sm:$0x7]  ;;  %8968 = vst [vmem:[#allocation41_spill] sm:$0xff] %v7184_v25  ;;  %v1912_v48 = vld [vmem:[#allocation2 + $0xb4] sm:$0x7]  ;;  %v8974_v18 = vld [vmem:[#allocation55_spill] sm:$0xff] }
 0x1c3   :  { %v637_v27 = vmul.f32 %v8904_v12, %v612_v21  ;;  %v1697_v11 = vadd.f32 %v1677_v63, %v1632_v46  ;;  %v592_v13 = vadd.f32 %v572_v32, %v526_v22  ;;  %v677_v24 = vld [vmem:[#allocation2 + $0xf9] sm:$0x7]  ;;  %v8969_v54 = vld [vmem:[#allocation20_spill] sm:$0xff]  ;;  %v7192_v14 = vld [vmem:[%s7880_s1 + $0x35] ss:$0 sm:$0xff]  ;;  %v1157_v9 = vmul.f32 %v7054_v5, %v7184_v25 }
 0x1c4   :  { %v981_v29 = vadd.f32 %v961_v55, %v916_v44  ;;  %v1092_v17 = vmul.f32 %v7032_v1, %v8969_v54  ;;  %v3128_v34 = vadd.f32 %v6959_v6, %v3063_v10  ;;  %v2803_v39 = vadd.f32 %v2783_v33, %v2738_v51  ;;  %8970 = vst [vmem:[#allocation64_spill] sm:$0xff] %v7192_v14  ;;  %v8971_v53 = vld [vmem:[#allocation58_spill] sm:$0xff]  ;;  %v8973_v33 = vld [vmem:[#allocation73_spill] sm:$0xff]  ;;  %v2043_v55 = vld [vmem:[#allocation2 + $0xe4] sm:$0x7] }
 0x1c5   :  { %v7196_v12 = vmul.f32 %v7192_v14, %v8971_v53  ;;  %v7201_v21 = vld [vmem:[%s7880_s1 + $0x36] ss:$0 sm:$0xff]  ;;  %v1762_v6 = vadd.f32 %v1742_v56, %v1697_v11  ;;  %v1872_v63 = vmul.f32 %v8973_v33, %v1847_v0  ;;  %v1978_v32 = vld [vmem:[#allocation2 + $0xcc] sm:$0x7]  ;;  %v1938_v10 = vmul.f32 %v8974_v18, %v1912_v48  ;;  %v2108_v51 = vld [vmem:[#allocation2 + $0xfc] sm:$0x7] }
 0x1c6   :  { %8972 = vst [vmem:[#allocation63_spill] sm:$0xff] %v7201_v21  ;;  %v7205_v22 = vmul.f32 %v7201_v21, %v7176_v43  ;;  %v1047_v40 = vadd.f32 %v1027_v47, %v981_v29  ;;  %v3193_v46 = vadd.f32 %v6971_v23, %v3128_v34  ;;  %v2869_v44 = vadd.f32 %v2849_v50, %v2803_v39  ;;  %v7213_v53 = vld [vmem:[#allocation2 + $0x122] sm:$0xff]  ;;  %v2173_v11 = vld [vmem:[#allocation2 + $0x114] sm:$0x7]  ;;  %v2238_v56 = vld [vmem:[#allocation2 + $0x12c] sm:$0x7] }
 0x1c7   :  { %v702_v54 = vmul.f32 %v6879_v4, %v677_v24  ;;  %8975 = vst [vmem:[#allocation12_spill] sm:$0xff] %v7213_v53  ;;  %v1827_v43 = vadd.f32 %v1807_v35, %v1762_v6  ;;  %v2303_v0 = vld [vmem:[#allocation2 + $0x144] sm:$0x7]  ;;  %v657_v21 = vadd.f32 %v637_v27, %v592_v13  ;;  %v2003_v48 = vmul.f32 %v6976_v7, %v1978_v32  ;;  %v2368_v39 = vld [vmem:[#allocation2 + $0xb5] sm:$0x7] }
 0x1c8   :  { %v1112_v14 = vadd.f32 %v1092_v17, %v1047_v40  ;;  %v8976_v47 = vld [vmem:[#allocation44_spill] sm:$0xff]  ;;  %v7218_v25 = vadd.f32 %v6984_v20, %v3193_v46  ;;  %v2934_v23 = vadd.f32 %v7145_v31, %v2869_v44  ;;  %v2133_v35 = vmul.f32 %v7018_v28, %v2108_v51  ;;  %v154_v4 = vld [vmem:[#allocation2 + $0xf8] sm:$0x7]  ;;  %v2434_v40 = vld [vmem:[#allocation2 + $0xcd] sm:$0x7] }
 0x1c9   :  { %v1222_v29 = vmul.f32 %v7074_v37, %v8976_v47  ;;  %v8978_v50 = vld [vmem:[#allocation48_spill] sm:$0xff]  ;;  %v1892_v34 = vadd.f32 %v1872_v63, %v1827_v43  ;;  %v1287_v27 = vmul.f32 %v7081_v49, %v7213_v53  ;;  %v2198_v31 = vmul.f32 %v7040_v8, %v2173_v11  ;;  %v7236_v63 = vld [vmem:[#allocation2 + $0x152] sm:$0xff] }
 0x1ca   :  { %8977 = vst [vmem:[#allocation21_spill] sm:$0xff] %v7218_v25  ;;  %v2068_v24 = vmul.f32 %v8978_v50, %v2043_v55  ;;  %v88_v6 = vld [vmem:[#allocation2 + $0xe0] sm:$0x7]  ;;  %v1177_v13 = vadd.f32 %v1157_v9, %v1112_v14  ;;  %3530 = vrot.lane.b32.xlu1 %v7218_v25, %s4045_s6  ;;  %v2999_v20 = vadd.f32 %v7151_v26, %v2934_v23  ;;  %8980 = vst [vmem:[#allocation35_spill] sm:$0xff] %v7236_v63  ;;  %v742_v55 = vld [vmem:[#allocation2 + $0x111] sm:$0x7] }
 0x1cb   :  { %v8979_v17 = vld [vmem:[#allocation68_spill] sm:$0xff]  ;;  %v7234_v43 = vmul.f32 %v7062_v42, %v2303_v0  ;;  %v1958_v14 = vadd.f32 %v1938_v10, %v1892_v34  ;;  %v722_v9 = vadd.f32 %v702_v54, %v657_v21  ;;  %v8981_v44 = vld [vmem:[#allocation54_spill] sm:$0xff]  ;;  %v807_v26 = vld [vmem:[#allocation2 + $0x129] sm:$0x7] }
 0x1cc   :  { %v7231_v32 = vmul.f32 %v8979_v17, %v2238_v56  ;;  %v1242_v46 = vadd.f32 %v1222_v29, %v1177_v13  ;;  %v1352_v51 = vmul.f32 %v7102_v2, %v8981_v44  ;;  %v1457_v47 = vld [vmem:[#allocation2 + $0xc3] sm:$0xff]  ;;  %v3064_v11 = vadd.f32 %v7165_v59, %v2999_v20  ;;  %v8983_v23 = vld [vmem:[#allocation39_spill] sm:$0xff]  ;;  %v220_v13 = vld [vmem:[#allocation2 + $0x110] sm:$0x7] }
 0x1cd   :  { %v7244_v56 = vld [vmem:[%s7880_s1 + $0x28] ss:$0 sm:$0xff]  ;;  %v113_v10 = vmul.f32 %v8983_v23, %v88_v6  ;;  %v8984_v34 = vld [vmem:[#allocation40_spill] sm:$0xff]  ;;  %v2023_v29 = vadd.f32 %v2003_v48, %v1958_v14  ;;  %v937_v44 = vld [vmem:[#allocation2 + $0x159] sm:$0x7]  ;;  %v1417_v59 = vmul.f32 %v7113_v16, %v7236_v63  ;;  %v767_v20 = vmul.f32 %v6910_v60, %v742_v55 }
 0x1ce   :  { %8982 = vst [vmem:[#allocation60_spill] sm:$0xff] %v7244_v56  ;;  %v7247_v0 = vmul.f32 %v7244_v56, %v2368_v39  ;;  %v179_v21 = vmul.f32 %v8984_v34, %v154_v4  ;;  %v872_v54 = vld [vmem:[#allocation2 + $0x141] sm:$0x7]  ;;  %v1307_v25 = vadd.f32 %v1287_v27, %v1242_v46  ;;  %v3129_v53 = vadd.f32 %v7174_v38, %v3064_v11  ;;  %v7258_v39 = vld [vmem:[%s7880_s1 + $0x29] ss:$0 sm:$0xff]  ;;  %v8986_v48 = vld [vmem:[#allocation79_spill] sm:$0xff] }
 0x1cf   :  { %8985 = vst [vmem:[#allocation33_spill] sm:$0xff] %v7258_v39  ;;  %v7261_v6 = vmul.f32 %v7258_v39, %v2434_v40  ;;  %v1483_v4 = vmul.f32 %v7129_v19, %v1457_v47  ;;  %v832_v14 = vmul.f32 %v8986_v48, %v807_v26  ;;  %v2088_v27 = vadd.f32 %v2068_v24, %v2023_v29  ;;  %v2499_v46 = vld [vmem:[#allocation2 + $0xe5] sm:$0x7]  ;;  %v2564_v23 = vld [vmem:[#allocation2 + $0xfd] sm:$0x7]  ;;  %v7265_v63 = vld [vmem:[#allocation2 + $0xf3] sm:$0xff] }
 0x1d0   :  { %v1372_v34 = vadd.f32 %v1352_v51, %v1307_v25  ;;  %8987 = vst [vmem:[#allocation31_spill] sm:$0xff] %v7265_v63  ;;  %v787_v55 = vadd.f32 %v767_v20, %v722_v9  ;;  %v8988_v38 = vld [vmem:[#allocation78_spill] sm:$0xff]  ;;  %v3194_v60 = vadd.f32 %v7196_v12, %v3129_v53  ;;  %v199_v56 = vadd.f32 %v179_v21, %v113_v10  ;;  %v8989_v42 = vld [vmem:[#allocation56_spill] sm:$0xff]  ;;  %v1002_v39 = vld [vmem:[#allocation2 + $0xca] sm:$0x7] }
 0x1d1   :  { %v897_v11 = vmul.f32 %v8988_v38, %v872_v54  ;;  %v245_v17 = vmul.f32 %v8989_v42, %v220_v13  ;;  %v962_v40 = vmul.f32 %v6989_v15, %v937_v44  ;;  %v2153_v47 = vadd.f32 %v2133_v35, %v2088_v27  ;;  %v2629_v8 = vld [vmem:[#allocation2 + $0x115] sm:$0x7]  ;;  %v286_v26 = vld [vmem:[#allocation2 + $0x128] sm:$0x7]  ;;  %v1068_v21 = vld [vmem:[#allocation2 + $0xe2] sm:$0x7] }
 0x1d2   :  { %v1437_v24 = vadd.f32 %v1417_v59, %v1372_v34  ;;  %v8990_v29 = vld [vmem:[#allocation9_spill] sm:$0xff]  ;;  %v852_v51 = vadd.f32 %v832_v14, %v787_v55  ;;  %v7274_v9 = vadd.f32 %v7205_v22, %v3194_v60  ;;  %v7285_v53 = vmul.f32 %v6827_v52, %v2564_v23  ;;  %v2759_v22 = vld [vmem:[#allocation2 + $0x145] sm:$0x7]  ;;  %v2824_v13 = vld [vmem:[#allocation2 + $0xb6] sm:$0x7] }
 0x1d3   :  { %v1548_v25 = vmul.f32 %v6791_v36, %v8990_v29  ;;  %v7279_v12 = vld [vmem:[%s7880_s1 + $0x2a] ss:$0 sm:$0xff]  ;;  %v1613_v35 = vmul.f32 %v8956_v45, %v7265_v63  ;;  %v2218_v54 = vadd.f32 %v2198_v31, %v2153_v47  ;;  %v2694_v60 = vld [vmem:[#allocation2 + $0x12d] sm:$0x7]  ;;  %v1028_v20 = vmul.f32 %v6657_v62, %v1002_v39  ;;  %v1133_v31 = vld [vmem:[#allocation2 + $0xfa] sm:$0x7] }
 0x1d4   :  { %8991 = vst [vmem:[#allocation23_spill] sm:$0xff] %v7274_v9  ;;  %v7282_v42 = vmul.f32 %v7279_v12, %v2499_v46  ;;  %v7289_v10 = vld [vmem:[#allocation2 + $0x123] sm:$0xff]  ;;  %v1503_v44 = vadd.f32 %v1483_v4, %v1437_v24  ;;  %v917_v59 = vadd.f32 %v897_v11, %v852_v51  ;;  %3532 = vrot.lane.b32.xlu0 %v7274_v9, %s4045_s6  ;;  %v8993_v46 = vld [vmem:[#allocation47_spill] sm:$0xff]  ;;  %v2890_v29 = vld [vmem:[#allocation2 + $0xce] sm:$0x7] }
 0x1d5   :  { %8992 = vst [vmem:[#allocation50_spill] sm:$0xff] %v7289_v10  ;;  %v7295_v14 = vmul.f32 %v6843_v30, %v2629_v8  ;;  %v265_v27 = vadd.f32 %v245_v17, %v199_v56  ;;  %v311_v23 = vmul.f32 %v8993_v46, %v286_v26  ;;  %v8994_v34 = vld [vmem:[#allocation5_spill] sm:$0xff]  ;;  %v2283_v47 = vadd.f32 %v7231_v32, %v2218_v54  ;;  %v352_v4 = vld [vmem:[#allocation2 + $0x140] sm:$0x7]  ;;  %v8995_v8 = vld [vmem:[#allocation51_spill] sm:$0xff] }
 0x1d6   :  { %v1678_v55 = vmul.f32 %v8958_v41, %v8994_v34  ;;  %v1568_v11 = vadd.f32 %v1548_v25, %v1503_v44  ;;  %v982_v24 = vadd.f32 %v962_v40, %v917_v59  ;;  %v1093_v62 = vmul.f32 %v7032_v1, %v1068_v21  ;;  %v8996_v17 = vld [vmem:[#allocation7_spill] sm:$0xff]  ;;  %v1198_v46 = vld [vmem:[#allocation2 + $0x112] sm:$0x7]  ;;  %v2955_v54 = vld [vmem:[#allocation2 + $0xe6] sm:$0x7] }
 0x1d7   :  { %v7303_v39 = vmul.f32 %v6853_v58, %v2694_v60  ;;  %v7306_v51 = vmul.f32 %v8995_v8, %v2759_v22  ;;  %v7309_v56 = vmul.f32 %v8996_v17, %v2824_v13  ;;  %v1743_v26 = vmul.f32 %v8965_v3, %v7289_v10  ;;  %v3020_v25 = vld [vmem:[#allocation2 + $0xfe] sm:$0x7]  ;;  %v7314_v44 = vld [vmem:[#allocation2 + $0x153] sm:$0xff]  ;;  %v8998_v59 = vld [vmem:[#allocation53_spill] sm:$0xff] }
 0x1d8   :  { %v2348_v32 = vadd.f32 %v7234_v43, %v2283_v47  ;;  %v1633_v40 = vadd.f32 %v1613_v35, %v1568_v11  ;;  %8997 = vst [vmem:[#allocation72_spill] sm:$0xff] %v7314_v44  ;;  %v1048_v21 = vadd.f32 %v1028_v20, %v982_v24  ;;  %v1158_v60 = vmul.f32 %v7054_v5, %v1133_v31  ;;  %v8999_v13 = vld [vmem:[#allocation6_spill] sm:$0xff]  ;;  %v9000_v63 = vld [vmem:[#allocation49_spill] sm:$0xff]  ;;  %v418_v48 = vld [vmem:[#allocation2 + $0x158] sm:$0x7] }
 0x1d9   :  { %v7318_v22 = vmul.f32 %v8998_v59, %v2890_v29  ;;  %v331_v34 = vadd.f32 %v311_v23, %v265_v27  ;;  %v377_v9 = vmul.f32 %v8999_v13, %v352_v4  ;;  %v1808_v10 = vmul.f32 %v8967_v61, %v9000_v63  ;;  %v1263_v17 = vld [vmem:[#allocation2 + $0x12a] sm:$0x7]  ;;  %v3085_v47 = vld [vmem:[#allocation2 + $0x116] sm:$0x7] }
 0x1da   :  { %v2414_v43 = vadd.f32 %v7247_v0, %v2348_v32  ;;  %v1698_v35 = vadd.f32 %v1678_v55, %v1633_v40  ;;  %v1913_v11 = vld [vmem:[#allocation2 + $0xc4] sm:$0xff]  ;;  %v1113_v8 = vadd.f32 %v1093_v62, %v1048_v21  ;;  %v1223_v20 = vmul.f32 %v7074_v37, %v1198_v46  ;;  %v9001_v31 = vld [vmem:[#allocation71_spill] sm:$0xff] }
 0x1db   :  { %v7326_v24 = vmul.f32 %v9001_v31, %v2955_v54  ;;  %v7329_v27 = vmul.f32 %v8962_v57, %v3020_v25  ;;  %v9002_v23 = vld [vmem:[#allocation45_spill] sm:$0xff]  ;;  %v9003_v29 = vld [vmem:[#allocation15_spill] sm:$0xff]  ;;  %v1873_v63 = vmul.f32 %v8973_v33, %v7314_v44  ;;  %v1328_v0 = vld [vmem:[#allocation2 + $0x142] sm:$0x7]  ;;  %v1288_v62 = vmul.f32 %v7081_v49, %v1263_v17 }
 0x1dc   :  { %v462_v4 = vadd.f32 %v9003_v29, %v9002_v23  ;;  %v2479_v32 = vadd.f32 %v7261_v6, %v2414_v43  ;;  %v1763_v55 = vadd.f32 %v1743_v26, %v1698_v35  ;;  %v1178_v40 = vadd.f32 %v1158_v60, %v1113_v8  ;;  %v1393_v46 = vld [vmem:[#allocation2 + $0x15a] sm:$0x7]  ;;  %v9004_v54 = vld [vmem:[#allocation18_spill] sm:$0xff]  ;;  %v9005_v57 = vld [vmem:[#allocation32_spill] sm:$0xff] }
 0x1dd   :  { %v547_v21 = vld [vmem:[#allocation2 + $0xd9] sm:$0xff]  ;;  %v7338_v13 = vmul.f32 %v9004_v54, %v3085_v47  ;;  %v397_v25 = vadd.f32 %v377_v9, %v331_v34  ;;  %v443_v31 = vmul.f32 %v9005_v57, %v418_v48  ;;  %v1939_v23 = vmul.f32 %v8974_v18, %v1913_v11  ;;  %v3150_v44 = vld [vmem:[#allocation2 + $0x12e] sm:$0x7]  ;;  %v1458_v9 = vld [vmem:[#allocation2 + $0xcb] sm:$0x7] }
 0x1de   :  { %v2544_v29 = vadd.f32 %v7282_v42, %v2479_v32  ;;  %v1828_v59 = vadd.f32 %v1808_v10, %v1763_v55  ;;  %v7343_v58 = vld [vmem:[#allocation2 + $0xf4] sm:$0xff]  ;;  %v1243_v6 = vadd.f32 %v1223_v20, %v1178_v40  ;;  %v1353_v8 = vmul.f32 %v7102_v2, %v1328_v0  ;;  %v678_v17 = vld [vmem:[#allocation2 + $0x109] sm:$0xff]  ;;  %v4017_v48 = vld [vmem:[%s7880_s1 + $0x8] ss:$0 sm:$0xff] }
 0x1df   :  { %9006 = vst [vmem:[#allocation36_spill] sm:$0xff] %v7343_v58  ;;  %v9007_v26 = vld [vmem:[#allocation66_spill] sm:$0xff]  ;;  %v1418_v43 = vmul.f32 %v7113_v16, %v1393_v46  ;;  %v9008_v34 = vld [vmem:[#allocation27_spill] sm:$0xff]  ;;  %v573_v42 = vmul.f32 %v4017_v48, %v547_v21  ;;  %v1524_v11 = vld [vmem:[#allocation2 + $0xe3] sm:$0x7] }
 0x1e0   :  { %v2004_v60 = vmul.f32 %v6976_v7, %v9007_v26  ;;  %v527_v57 = vadd.f32 %v9008_v34, %v462_v4  ;;  %v2609_v10 = vadd.f32 %v7285_v53, %v2544_v29  ;;  %v1893_v47 = vadd.f32 %v1873_v63, %v1828_v59  ;;  %v4018_v20 = vld [vmem:[%s7880_s1 + $0x9] ss:$0 sm:$0xff]  ;;  %v9009_v0 = vld [vmem:[#allocation11_spill] sm:$0xff]  ;;  %v9010_v55 = vld [vmem:[#allocation64_spill] sm:$0xff] }
 0x1e1   :  { %v1308_v35 = vadd.f32 %v1288_v62, %v1243_v6  ;;  %v638_v32 = vmul.f32 %v4018_v20, %v9009_v0  ;;  %v7359_v40 = vmul.f32 %v9010_v55, %v3150_v44  ;;  %v2069_v4 = vmul.f32 %v8978_v50, %v7343_v58  ;;  %v483_v46 = vld [vmem:[#allocation2 + $0x170] sm:$0x7]  ;;  %v9011_v21 = vld [vmem:[#allocation61_spill] sm:$0xff]  ;;  %v9013_v54 = vld [vmem:[#allocation52_spill] sm:$0xff] }
 0x1e2   :  { %v593_v26 = vadd.f32 %v573_v42, %v527_v57  ;;  %v703_v34 = vmul.f32 %v9011_v21, %v678_v17  ;;  %v2674_v53 = vadd.f32 %v7295_v14, %v2609_v10  ;;  %v3215_v59 = vld [vmem:[#allocation2 + $0x146] sm:$0x7]  ;;  %v1959_v63 = vadd.f32 %v1939_v23, %v1893_v47  ;;  %v1589_v58 = vld [vmem:[#allocation2 + $0xfb] sm:$0x7]  ;;  %v1654_v14 = vld [vmem:[#allocation2 + $0x113] sm:$0x7] }
 0x1e3   :  { %v7365_v62 = vld [vmem:[#allocation2 + $0x124] sm:$0xff]  ;;  %v1373_v29 = vadd.f32 %v1353_v8, %v1308_v35  ;;  %v1484_v6 = vmul.f32 %v7129_v19, %v1458_v9  ;;  %v463_v0 = vadd.f32 %v443_v31, %v397_v25  ;;  %v2134_v44 = vmul.f32 %v7018_v28, %v9013_v54  ;;  %v548_v47 = vld [vmem:[#allocation2 + $0xe1] sm:$0x7]  ;;  %v9015_v2 = vld [vmem:[#allocation63_spill] sm:$0xff] }
 0x1e4   :  { %9012 = vst [vmem:[#allocation20_spill] sm:$0xff] %v7365_v62  ;;  %v1549_v55 = vmul.f32 %v6791_v36, %v1524_v11  ;;  %v658_v16 = vadd.f32 %v638_v32, %v593_v26  ;;  %v2739_v57 = vadd.f32 %v7303_v39, %v2674_v53  ;;  %v2024_v17 = vadd.f32 %v2004_v60, %v1959_v63  ;;  %v9014_v10 = vld [vmem:[#allocation25_spill] sm:$0xff]  ;;  %v9017_v54 = vld [vmem:[#allocation10_spill] sm:$0xff]  ;;  %v9019_v53 = vld [vmem:[#allocation68_spill] sm:$0xff] }
 0x1e5   :  { %v1438_v42 = vadd.f32 %v1418_v43, %v1373_v29  ;;  %v508_v23 = vmul.f32 %v9014_v10, %v483_v46  ;;  %v7374_v8 = vmul.f32 %v9015_v2, %v3215_v59  ;;  %v9016_v9 = vld [vmem:[#allocation17_spill] sm:$0xff]  ;;  %v2199_v25 = vmul.f32 %v9017_v54, %v7365_v62  ;;  %v7381_v39 = vld [vmem:[#allocation2 + $0x154] sm:$0xff] }
 0x1e6   :  { %v898_v31 = vmul.f32 %v8988_v38, %v9016_v9  ;;  %v723_v36 = vadd.f32 %v703_v34, %v658_v16  ;;  %v2804_v35 = vadd.f32 %v7306_v51, %v2739_v57  ;;  %v2089_v11 = vadd.f32 %v2069_v4, %v2024_v17  ;;  %v2369_v60 = vld [vmem:[#allocation2 + $0xc5] sm:$0xff]  ;;  %v9018_v26 = vld [vmem:[#allocation34_spill] sm:$0xff]  ;;  %v9020_v9 = vld [vmem:[#allocation59_spill] sm:$0xff] }
 0x1e7   :  { %v1504_v43 = vadd.f32 %v1484_v6, %v1438_v42  ;;  %v1614_v32 = vmul.f32 %v8956_v45, %v1589_v58  ;;  %v938_v46 = vld [vmem:[#allocation2 + $0x169] sm:$0xff]  ;;  %v2264_v59 = vmul.f32 %v9019_v53, %v9018_v26  ;;  %v1679_v63 = vmul.f32 %v8958_v41, %v1654_v14  ;;  %v1784_v34 = vld [vmem:[#allocation2 + $0x143] sm:$0x7]  ;;  %v614_v17 = vld [vmem:[#allocation2 + $0xf9] sm:$0x7] }
 0x1e8   :  { %v1719_v29 = vld [vmem:[#allocation2 + $0x12b] sm:$0x7]  ;;  %v574_v10 = vmul.f32 %v4017_v48, %v548_v47  ;;  %v788_v62 = vadd.f32 %v9020_v9, %v723_v36  ;;  %v2870_v16 = vadd.f32 %v7309_v56, %v2804_v35  ;;  %v2154_v51 = vadd.f32 %v2134_v44, %v2089_v11  ;;  %v1003_v6 = vld [vmem:[#allocation2 + $0xda] sm:$0xff]  ;;  %v9021_v58 = vld [vmem:[#allocation14_spill] sm:$0xff] }
 0x1e9   :  { %v1569_v4 = vadd.f32 %v1549_v55, %v1504_v43  ;;  %v528_v57 = vadd.f32 %v508_v23, %v463_v0  ;;  %v2329_v45 = vmul.f32 %v9021_v58, %v7381_v39  ;;  %v9022_v42 = vld [vmem:[#allocation60_spill] sm:$0xff]  ;;  %v9023_v26 = vld [vmem:[#allocation29_spill] sm:$0xff]  ;;  %v963_v41 = vmul.f32 %v6989_v15, %v938_v46  ;;  %v7395_v47 = vld [vmem:[#allocation2 + $0xf5] sm:$0xff] }
 0x1ea   :  { %v2395_v2 = vmul.f32 %v9022_v42, %v2369_v60  ;;  %v853_v19 = vadd.f32 %v9023_v26, %v788_v62  ;;  %v2935_v48 = vadd.f32 %v7318_v22, %v2870_v16  ;;  %v2219_v14 = vadd.f32 %v2199_v25, %v2154_v51  ;;  %v1849_v44 = vld [vmem:[#allocation2 + $0x15b] sm:$0x7]  ;;  %v7402_v35 = vld [vmem:[%s7880_s1 + $0x10] ss:$0 sm:$0xff]  ;;  %v1914_v60 = vld [vmem:[#allocation2 + $0xcc] sm:$0x7] }
 0x1eb   :  { %v1634_v56 = vadd.f32 %v1614_v32, %v1569_v4  ;;  %v1744_v55 = vmul.f32 %v8965_v3, %v1719_v29  ;;  %v1809_v0 = vmul.f32 %v8967_v61, %v1784_v34  ;;  %v639_v23 = vmul.f32 %v4018_v20, %v614_v17  ;;  %v679_v32 = vld [vmem:[#allocation2 + $0x111] sm:$0x7]  ;;  %v9025_v61 = vld [vmem:[#allocation33_spill] sm:$0xff] }
 0x1ec   :  { %v918_v36 = vadd.f32 %v898_v31, %v853_v19  ;;  %v1029_v62 = vmul.f32 %v7402_v35, %v1003_v6  ;;  %v3000_v22 = vadd.f32 %v7326_v24, %v2935_v48  ;;  %v2284_v25 = vadd.f32 %v2264_v59, %v2219_v14  ;;  %v1134_v3 = vld [vmem:[#allocation2 + $0x10a] sm:$0xff]  ;;  %v2045_v48 = vld [vmem:[#allocation2 + $0xfc] sm:$0x7] }
 0x1ed   :  { %v1699_v11 = vadd.f32 %v1679_v63, %v1634_v56  ;;  %v594_v43 = vadd.f32 %v574_v10, %v528_v57  ;;  %v9024_v46 = vld [vmem:[#allocation42_spill] sm:$0xff]  ;;  %v2525_v19 = vmul.f32 %v7279_v12, %v7395_v47  ;;  %v9026_v31 = vld [vmem:[#allocation41_spill] sm:$0xff]  ;;  %v1874_v59 = vmul.f32 %v8973_v33, %v1849_v44  ;;  %v1980_v10 = vld [vmem:[#allocation2 + $0xe4] sm:$0x7] }
 0x1ee   :  { %v2460_v29 = vmul.f32 %v9025_v61, %v9024_v46  ;;  %v983_v20 = vadd.f32 %v963_v41, %v918_v36  ;;  %v1094_v9 = vmul.f32 %v7032_v1, %v9026_v31  ;;  %v3065_v16 = vadd.f32 %v7329_v27, %v3000_v22  ;;  %v7418_v26 = vld [vmem:[#allocation2 + $0x125] sm:$0xff]  ;;  %v9027_v14 = vld [vmem:[#allocation43_spill] sm:$0xff] }
 0x1ef   :  { %v2349_v51 = vadd.f32 %v2329_v45, %v2284_v25  ;;  %v1764_v24 = vadd.f32 %v1744_v55, %v1699_v11  ;;  %v1940_v63 = vmul.f32 %v8974_v18, %v1914_v60  ;;  %v704_v4 = vmul.f32 %v9011_v21, %v679_v32  ;;  %v1264_v45 = vld [vmem:[#allocation2 + $0x13a] sm:$0xff]  ;;  %v744_v25 = vld [vmem:[#allocation2 + $0x129] sm:$0x7] }
 0x1f0   :  { %v1049_v34 = vadd.f32 %v1029_v62, %v983_v20  ;;  %v1159_v57 = vmul.f32 %v7054_v5, %v1134_v3  ;;  %v3130_v17 = vadd.f32 %v7338_v13, %v3065_v16  ;;  %v659_v27 = vadd.f32 %v639_v23, %v594_v43  ;;  %v9028_v18 = vld [vmem:[#allocation12_spill] sm:$0xff]  ;;  %v874_v44 = vld [vmem:[#allocation2 + $0x159] sm:$0x7]  ;;  %v2110_v23 = vld [vmem:[#allocation2 + $0x114] sm:$0x7] }
 0x1f1   :  { %v2415_v6 = vadd.f32 %v2395_v2, %v2349_v51  ;;  %v1829_v41 = vadd.f32 %v1809_v0, %v1764_v24  ;;  %v2590_v33 = vmul.f32 %v6827_v52, %v9027_v14  ;;  %v1224_v55 = vmul.f32 %v7074_v37, %v9028_v18  ;;  %v1394_v3 = vld [vmem:[#allocation2 + $0x16a] sm:$0xff]  ;;  %v2305_v18 = vld [vmem:[#allocation2 + $0x15c] sm:$0x7] }
 0x1f2   :  { %v1114_v56 = vadd.f32 %v1094_v9, %v1049_v34  ;;  %v3195_v21 = vadd.f32 %v7359_v40, %v3130_v17  ;;  %v2005_v2 = vmul.f32 %v6976_v7, %v1980_v10  ;;  %v2655_v13 = vmul.f32 %v6843_v30, %v7418_v26  ;;  %v7433_v40 = vld [vmem:[#allocation2 + $0x155] sm:$0xff]  ;;  %v809_v7 = vld [vmem:[#allocation2 + $0x141] sm:$0x7]  ;;  %v2175_v20 = vld [vmem:[#allocation2 + $0x12c] sm:$0x7] }
 0x1f3   :  { %v2480_v36 = vadd.f32 %v2460_v29, %v2415_v6  ;;  %v1894_v62 = vadd.f32 %v1874_v59, %v1829_v41  ;;  %v2070_v0 = vmul.f32 %v8978_v50, %v2045_v48  ;;  %v1289_v52 = vmul.f32 %v7081_v49, %v1264_v45  ;;  %v9029_v30 = vld [vmem:[#allocation67_spill] sm:$0xff]  ;;  %v9030_v29 = vld [vmem:[#allocation38_spill] sm:$0xff]  ;;  %v9035_v41 = vld [vmem:[#allocation28_spill] sm:$0xff] }
 0x1f4   :  { %v1179_v22 = vadd.f32 %v1159_v57, %v1114_v56  ;;  %v7431_v11 = vadd.f32 %v7374_v8, %v3195_v21  ;;  %v724_v32 = vadd.f32 %v704_v4, %v659_v27  ;;  %v899_v46 = vmul.f32 %v8988_v38, %v874_v44  ;;  %v9031_v9 = vld [vmem:[#allocation35_spill] sm:$0xff]  ;;  %v9032_v16 = vld [vmem:[#allocation74_spill] sm:$0xff] }
 0x1f5   :  { %v2545_v60 = vadd.f32 %v2525_v19, %v2480_v36  ;;  %v1960_v43 = vadd.f32 %v1940_v63, %v1894_v62  ;;  %v2720_v50 = vmul.f32 %v9030_v29, %v9029_v30  ;;  %v1354_v51 = vmul.f32 %v9032_v16, %v9031_v9  ;;  %v2825_v19 = vld [vmem:[#allocation2 + $0xc6] sm:$0xff]  ;;  %v1459_v10 = vld [vmem:[#allocation2 + $0xdb] sm:$0xff]  ;;  %v9033_v4 = vld [vmem:[#allocation70_spill] sm:$0xff] }
 0x1f6   :  { %v1244_v31 = vadd.f32 %v1224_v55, %v1179_v22  ;;  %3534 = vrot.lane.b32.xlu1 %v7431_v11, %s4045_s6  ;;  %v2135_v59 = vmul.f32 %v7018_v28, %v2110_v23  ;;  %v2240_v63 = vld [vmem:[#allocation2 + $0x144] sm:$0x7]  ;;  %v769_v38 = vmul.f32 %v9033_v4, %v744_v25  ;;  %v9034_v34 = vld [vmem:[#allocation51_spill] sm:$0xff]  ;;  %v939_v17 = vld [vmem:[#allocation2 + $0x171] sm:$0x7]  ;;  %v1419_v48 = vmul.f32 %v9035_v41, %v1394_v3 }
 0x1f7   :  { %v2610_v8 = vadd.f32 %v2590_v33, %v2545_v60  ;;  %v2025_v24 = vadd.f32 %v2005_v2, %v1960_v43  ;;  %v2785_v57 = vmul.f32 %v9034_v34, %v7433_v40  ;;  %v9036_v27 = vld [vmem:[#allocation79_spill] sm:$0xff]  ;;  %v2200_v33 = vmul.f32 %v9017_v54, %v2175_v20  ;;  %v1004_v23 = vld [vmem:[#allocation2 + $0xe2] sm:$0x7]  ;;  %v2370_v60 = vld [vmem:[#allocation2 + $0xcd] sm:$0x7] }
 0x1f8   :  { %v1309_v6 = vadd.f32 %v1289_v52, %v1244_v31  ;;  %v834_v45 = vmul.f32 %v9036_v27, %v809_v7  ;;  %v789_v55 = vadd.f32 %v769_v38, %v724_v32  ;;  %v9037_v28 = vld [vmem:[#allocation7_spill] sm:$0xff]  ;;  %v2265_v44 = vmul.f32 %v9019_v53, %v2240_v63  ;;  %v9039_v54 = vld [vmem:[#allocation69_spill] sm:$0xff]  ;;  %v1135_v4 = vld [vmem:[#allocation2 + $0x112] sm:$0x7] }
 0x1f9   :  { %v2675_v14 = vadd.f32 %v2655_v13, %v2610_v8  ;;  %v2090_v56 = vadd.f32 %v2070_v0, %v2025_v24  ;;  %v2851_v21 = vmul.f32 %v9037_v28, %v2825_v19  ;;  %v9038_v62 = vld [vmem:[#allocation75_spill] sm:$0xff]  ;;  %v964_v13 = vmul.f32 %v6989_v15, %v939_v17  ;;  %v1590_v0 = vld [vmem:[#allocation2 + $0x10b] sm:$0xff]  ;;  %v2436_v15 = vld [vmem:[#allocation2 + $0xe5] sm:$0x7] }
 0x1fa   :  { %v1374_v36 = vadd.f32 %v1354_v51, %v1309_v6  ;;  %v1485_v2 = vmul.f32 %v9038_v62, %v1459_v10  ;;  %v7452_v52 = vld [vmem:[#allocation2 + $0xf6] sm:$0xff]  ;;  %v854_v43 = vadd.f32 %v834_v45, %v789_v55  ;;  %v9040_v3 = vld [vmem:[#allocation53_spill] sm:$0xff]  ;;  %v2330_v7 = vmul.f32 %v9021_v58, %v2305_v18  ;;  %v9044_v27 = vld [vmem:[#allocation8_spill] sm:$0xff] }
 0x1fb   :  { %v2740_v22 = vadd.f32 %v2720_v50, %v2675_v14  ;;  %v2155_v25 = vadd.f32 %v2135_v59, %v2090_v56  ;;  %v2916_v32 = vmul.f32 %v9040_v3, %v9039_v54  ;;  %v7461_v53 = vld [vmem:[%s7880_s1 + $0x19] ss:$0 sm:$0xff]  ;;  %v1070_v20 = vld [vmem:[#allocation2 + $0xfa] sm:$0x7]  ;;  %v1030_v8 = vmul.f32 %v7402_v35, %v1004_v23  ;;  %v7475_v34 = vld [vmem:[#allocation2 + $0x126] sm:$0xff] }
 0x1fc   :  { %v1439_v30 = vadd.f32 %v1419_v48, %v1374_v36  ;;  %v9041_v29 = vld [vmem:[#allocation31_spill] sm:$0xff]  ;;  %v919_v51 = vadd.f32 %v899_v46, %v854_v43  ;;  %v2396_v58 = vmul.f32 %v9022_v42, %v2370_v60  ;;  %v1095_v6 = vmul.f32 %v7032_v1, %v1070_v20  ;;  %v9043_v48 = vld [vmem:[#allocation30_spill] sm:$0xff]  ;;  %v1200_v28 = vld [vmem:[#allocation2 + $0x12a] sm:$0x7] }
 0x1fd   :  { %v1550_v50 = vmul.f32 %v7461_v53, %v9041_v29  ;;  %v2805_v31 = vadd.f32 %v2785_v57, %v2740_v22  ;;  %v2220_v9 = vadd.f32 %v2200_v33, %v2155_v25  ;;  %v9042_v19 = vld [vmem:[#allocation71_spill] sm:$0xff]  ;;  %v3046_v45 = vmul.f32 %v9044_v27, %v9043_v48  ;;  %v9045_v18 = vld [vmem:[#allocation50_spill] sm:$0xff]  ;;  %v1265_v43 = vld [vmem:[#allocation2 + $0x142] sm:$0x7] }
 0x1fe   :  { %v2981_v24 = vmul.f32 %v9042_v19, %v7452_v52  ;;  %v1505_v59 = vadd.f32 %v1485_v2, %v1439_v30  ;;  %v7472_v63 = vld [vmem:[%s7880_s1 + $0x1a] ss:$0 sm:$0xff]  ;;  %v2501_v57 = vld [vmem:[#allocation2 + $0xfd] sm:$0x7]  ;;  %v984_v17 = vadd.f32 %v964_v13, %v919_v51  ;;  %v2461_v14 = vmul.f32 %v9025_v61, %v2436_v15  ;;  %v7484_v33 = vld [vmem:[%s7880_s1 + $0x1b] ss:$0 sm:$0xff] }
 0x1ff   :  { %v1615_v10 = vmul.f32 %v7472_v63, %v1590_v0  ;;  %v2871_v38 = vadd.f32 %v2851_v21, %v2805_v31  ;;  %v2285_v46 = vadd.f32 %v2265_v44, %v2220_v9  ;;  %v1720_v35 = vld [vmem:[#allocation2 + $0x13b] sm:$0xff]  ;;  %v1680_v55 = vmul.f32 %v7484_v33, %v9045_v18  ;;  %v2566_v36 = vld [vmem:[#allocation2 + $0x115] sm:$0x7]  ;;  %v7506_v9 = vld [vmem:[%s7880_s1 + $0x2b] ss:$0 sm:$0xff] }
 0x200   :  { %v1570_v56 = vadd.f32 %v1550_v50, %v1505_v59  ;;  %v1050_v2 = vadd.f32 %v1030_v8, %v984_v17  ;;  %v1160_v1 = vmul.f32 %v7054_v5, %v1135_v4  ;;  %v9046_v23 = vld [vmem:[#allocation18_spill] sm:$0xff]  ;;  %v2526_v25 = vmul.f32 %v7279_v12, %v2501_v57  ;;  %v7495_v13 = vld [vmem:[%s7880_s1 + $0x1c] ss:$0 sm:$0xff]  ;;  %v9047_v50 = vld [vmem:[#allocation77_spill] sm:$0xff] }
 0x201   :  { %v2936_v21 = vadd.f32 %v2916_v32, %v2871_v38  ;;  %v2350_v44 = vadd.f32 %v2330_v7, %v2285_v46  ;;  %v3111_v22 = vmul.f32 %v9046_v23, %v7475_v34  ;;  %v1745_v0 = vmul.f32 %v7495_v13, %v1720_v35  ;;  %v7498_v3 = vld [vmem:[#allocation2 + $0x156] sm:$0xff]  ;;  %v2631_v7 = vld [vmem:[#allocation2 + $0x12d] sm:$0x7]  ;;  %v9048_v20 = vld [vmem:[#allocation64_spill] sm:$0xff] }
 0x202   :  { %v1635_v60 = vadd.f32 %v1615_v10, %v1570_v56  ;;  %v1850_v5 = vld [vmem:[#allocation2 + $0x16b] sm:$0xff]  ;;  %v1115_v30 = vadd.f32 %v1095_v6, %v1050_v2  ;;  %v1225_v29 = vmul.f32 %v7074_v37, %v1200_v28  ;;  %v3176_v31 = vmul.f32 %v9048_v20, %v9047_v50  ;;  %v7512_v8 = vld [vmem:[%s7880_s1 + $0x1d] ss:$0 sm:$0xff]  ;;  %v9049_v19 = vld [vmem:[#allocation72_spill] sm:$0xff] }
 0x203   :  { %v3001_v54 = vadd.f32 %v2981_v24, %v2936_v21  ;;  %v2416_v32 = vadd.f32 %v2396_v58, %v2350_v44  ;;  %v2591_v15 = vmul.f32 %v7506_v9, %v2566_v36  ;;  %v1810_v24 = vmul.f32 %v7512_v8, %v9049_v19  ;;  %v1330_v37 = vld [vmem:[#allocation2 + $0x15a] sm:$0x7]  ;;  %v2696_v10 = vld [vmem:[#allocation2 + $0x145] sm:$0x7]  ;;  %v7522_v17 = vld [vmem:[%s7880_s1 + $0x2c] ss:$0 sm:$0xff] }
 0x204   :  { %v1700_v51 = vadd.f32 %v1680_v55, %v1635_v60  ;;  %v1915_v4 = vld [vmem:[#allocation2 + $0xdc] sm:$0xff]  ;;  %v1180_v38 = vadd.f32 %v1160_v1, %v1115_v30  ;;  %v1290_v46 = vmul.f32 %v7081_v49, %v1265_v43  ;;  %v2656_v6 = vmul.f32 %v7522_v17, %v2631_v7  ;;  %v7535_v21 = vld [vmem:[%s7880_s1 + $0x2d] ss:$0 sm:$0xff]  ;;  %v2826_v7 = vld [vmem:[#allocation2 + $0xce] sm:$0x7] }
 0x205   :  { %v3066_v58 = vadd.f32 %v3046_v45, %v3001_v54  ;;  %v2481_v59 = vadd.f32 %v2461_v14, %v2416_v32  ;;  %v9050_v57 = vld [vmem:[#allocation63_spill] sm:$0xff]  ;;  %v1395_v14 = vld [vmem:[#allocation2 + $0x172] sm:$0x7]  ;;  %v1355_v28 = vmul.f32 %v9032_v16, %v1330_v37  ;;  %v2721_v44 = vmul.f32 %v7535_v21, %v2696_v10  ;;  %v7541_v2 = vld [vmem:[%s7880_s1 + $0x20] ss:$0 sm:$0xff] }
 0x206   :  { %v3241_v35 = vmul.f32 %v9050_v57, %v7498_v3  ;;  %v1765_v48 = vadd.f32 %v1745_v0, %v1700_v51  ;;  %v7528_v27 = vld [vmem:[%s7880_s1 + $0x1e] ss:$0 sm:$0xff]  ;;  %v1245_v55 = vadd.f32 %v1225_v29, %v1180_v38  ;;  %v1941_v1 = vmul.f32 %v7541_v2, %v1915_v4  ;;  %v2046_v0 = vld [vmem:[#allocation2 + $0x10c] sm:$0xff]  ;;  %v7554_v30 = vld [vmem:[%s7880_s1 + $0x21] ss:$0 sm:$0xff] }
 0x207   :  { %v1875_v45 = vmul.f32 %v7528_v27, %v1850_v5  ;;  %v3131_v49 = vadd.f32 %v3111_v22, %v3066_v58  ;;  %v2546_v56 = vadd.f32 %v2526_v25, %v2481_v59  ;;  %v2761_v18 = vld [vmem:[#allocation2 + $0x15d] sm:$0x7]  ;;  %v1460_v22 = vld [vmem:[#allocation2 + $0xe3] sm:$0x7]  ;;  %v1420_v43 = vmul.f32 %v9035_v41, %v1395_v14  ;;  %v7548_v54 = vld [vmem:[%s7880_s1 + $0x2e] ss:$0 sm:$0xff] }
 0x208   :  { %v1830_v36 = vadd.f32 %v1810_v24, %v1765_v48  ;;  %v1310_v16 = vadd.f32 %v1290_v46, %v1245_v55  ;;  %v2786_v32 = vmul.f32 %v7548_v54, %v2761_v18  ;;  %v9051_v29 = vld [vmem:[#allocation36_spill] sm:$0xff]  ;;  %v1486_v19 = vmul.f32 %v9038_v62, %v1460_v22  ;;  %v1591_v10 = vld [vmem:[#allocation2 + $0x113] sm:$0x7]  ;;  %v7572_v38 = vld [vmem:[%s7880_s1 + $0x30] ss:$0 sm:$0xff] }
 0x209   :  { %v3196_v25 = vadd.f32 %v3176_v31, %v3131_v49  ;;  %v2611_v60 = vadd.f32 %v2591_v15, %v2546_v56  ;;  %v2006_v50 = vmul.f32 %v7554_v30, %v9051_v29  ;;  %v1526_v31 = vld [vmem:[#allocation2 + $0xfb] sm:$0x7]  ;;  %v2892_v24 = vld [vmem:[#allocation2 + $0xe6] sm:$0x7]  ;;  %v7564_v58 = vld [vmem:[%s7880_s1 + $0x22] ss:$0 sm:$0xff]  ;;  %v2852_v62 = vmul.f32 %v7572_v38, %v2826_v7 }
 0x20a   :  { %v1895_v5 = vadd.f32 %v1875_v45, %v1830_v36  ;;  %v1375_v51 = vadd.f32 %v1355_v28, %v1310_v16  ;;  %v2071_v59 = vmul.f32 %v7564_v58, %v2046_v0  ;;  %v2176_v46 = vld [vmem:[#allocation2 + $0x13c] sm:$0xff]  ;;  %v1656_v18 = vld [vmem:[#allocation2 + $0x12b] sm:$0x7]  ;;  %v7586_v28 = vld [vmem:[%s7880_s1 + $0x31] ss:$0 sm:$0xff]  ;;  %v1616_v36 = vmul.f32 %v7472_v63, %v1591_v10 }
 0x20b   :  { %v7558_v15 = vadd.f32 %v3241_v35, %v3196_v25  ;;  %v2676_v41 = vadd.f32 %v2656_v6, %v2611_v60  ;;  %v1551_v6 = vmul.f32 %v7461_v53, %v1526_v31  ;;  %v2957_v48 = vld [vmem:[#allocation2 + $0xfe] sm:$0x7]  ;;  %v7579_v14 = vld [vmem:[%s7880_s1 + $0x23] ss:$0 sm:$0xff]  ;;  %v7593_v25 = vld [vmem:[%s7880_s1 + $0x24] ss:$0 sm:$0xff] }
 0x20c   :  { %v1961_v37 = vadd.f32 %v1941_v1, %v1895_v5  ;;  %v1440_v35 = vadd.f32 %v1420_v43, %v1375_v51  ;;  %v9052_v49 = vld [vmem:[#allocation20_spill] sm:$0xff]  ;;  %v3022_v1 = vld [vmem:[#allocation2 + $0x116] sm:$0x7]  ;;  %v2201_v60 = vmul.f32 %v7593_v25, %v2176_v46  ;;  %v7599_v43 = vld [vmem:[%s7880_s1 + $0x32] ss:$0 sm:$0xff]  ;;  %v1681_v5 = vmul.f32 %v7484_v33, %v1656_v18 }
 0x20d   :  { %3536 = vrot.lane.b32.xlu0 %v7558_v15, %s4045_s6  ;;  %v2741_v4 = vadd.f32 %v2721_v44, %v2676_v41  ;;  %v2136_v56 = vmul.f32 %v7579_v14, %v9052_v49  ;;  %v2917_v44 = vmul.f32 %v7586_v28, %v2892_v24  ;;  %v1721_v0 = vld [vmem:[#allocation2 + $0x143] sm:$0x7]  ;;  %v2306_v7 = vld [vmem:[#allocation2 + $0x16c] sm:$0xff]  ;;  %v1786_v51 = vld [vmem:[#allocation2 + $0x15b] sm:$0x7] }
 0x20e   :  { %v2026_v45 = vadd.f32 %v2006_v50, %v1961_v37  ;;  %v1506_v53 = vadd.f32 %v1486_v19, %v1440_v35  ;;  %v3087_v29 = vld [vmem:[#allocation2 + $0x12e] sm:$0x7]  ;;  %v7606_v31 = vld [vmem:[%s7880_s1 + $0x25] ss:$0 sm:$0xff]  ;;  %v7613_v24 = vld [vmem:[%s7880_s1 + $0x33] ss:$0 sm:$0xff]  ;;  %v1746_v10 = vmul.f32 %v7495_v13, %v1721_v0  ;;  %v1811_v49 = vmul.f32 %v7512_v8, %v1786_v51 }
 0x20f   :  { %v2806_v55 = vadd.f32 %v2786_v32, %v2741_v4  ;;  %v2982_v32 = vmul.f32 %v7599_v43, %v2957_v48  ;;  %v2266_v41 = vmul.f32 %v7606_v31, %v7381_v39  ;;  %v3047_v37 = vmul.f32 %v7613_v24, %v3022_v1  ;;  %v2371_v33 = vld [vmem:[#allocation2 + $0xdd] sm:$0xff]  ;;  %v3152_v4 = vld [vmem:[#allocation2 + $0x146] sm:$0x7]  ;;  %v1851_v35 = vld [vmem:[#allocation2 + $0x173] sm:$0x7] }
 0x210   :  { %v2091_v22 = vadd.f32 %v2071_v59, %v2026_v45  ;;  %v1571_v63 = vadd.f32 %v1551_v6, %v1506_v53  ;;  %v4040_v46 = vld [vmem:[%s7880_s1 + $0x26] ss:$0 sm:$0xff]  ;;  %v3112_v48 = vmul.f32 %v9046_v23, %v3087_v29  ;;  %v3177_v53 = vmul.f32 %v9048_v20, %v3152_v4  ;;  %v1982_v23 = vld [vmem:[#allocation2 + $0xfc] sm:$0x7]  ;;  %v2047_v29 = vld [vmem:[#allocation2 + $0x114] sm:$0x7] }
 0x211   :  { %v2872_v16 = vadd.f32 %v2852_v62, %v2806_v55  ;;  %v2331_v39 = vmul.f32 %v4040_v46, %v2306_v7  ;;  %v2397_v55 = vmul.f32 %v9022_v42, %v2371_v33  ;;  %v2462_v0 = vmul.f32 %v9025_v61, %v7395_v47 }
 0x212   :  { %v2156_v50 = vadd.f32 %v2136_v56, %v2091_v22  ;;  %v1636_v59 = vadd.f32 %v1616_v36, %v1571_v63  ;;  %v3217_v56 = vld [vmem:[#allocation2 + $0x15e] sm:$0x7]  ;;  %v2502_v36 = vld [vmem:[#allocation2 + $0x10d] sm:$0xff]  ;;  %v1876_v22 = vmul.f32 %v7528_v27, %v1851_v35  ;;  %v2007_v27 = vmul.f32 %v7554_v30, %v1982_v23 }
 0x213   :  { %v2937_v19 = vadd.f32 %v2917_v44, %v2872_v16  ;;  %v1916_v44 = vld [vmem:[#allocation2 + $0xe4] sm:$0x7]  ;;  %v3242_v8 = vmul.f32 %v9050_v57, %v3217_v56  ;;  %v2592_v47 = vmul.f32 %v7506_v9, %v7418_v26  ;;  %v2722_v26 = vmul.f32 %v7535_v21, %v7433_v40  ;;  %v2438_v23 = vld [vmem:[#allocation2 + $0xfd] sm:$0x7] }
 0x214   :  { %v2221_v62 = vadd.f32 %v2201_v60, %v2156_v50  ;;  %v1701_v45 = vadd.f32 %v1681_v5, %v1636_v59  ;;  %v1942_v7 = vmul.f32 %v7541_v2, %v1916_v44  ;;  %v2527_v5 = vmul.f32 %v7279_v12, %v2502_v36 }
 0x215   :  { %v3002_v6 = vadd.f32 %v2982_v32, %v2937_v19 }
 0x216   :  { %v2286_v18 = vadd.f32 %v2266_v41, %v2221_v62  ;;  %v1766_v1 = vadd.f32 %v1746_v10, %v1701_v45  ;;  %v2632_v41 = vld [vmem:[#allocation2 + $0x13d] sm:$0xff]  ;;  %v2072_v10 = vmul.f32 %v7564_v58, %v2047_v29 }
 0x217   :  { %v3067_v13 = vadd.f32 %v3047_v37, %v3002_v6  ;;  %v2112_v37 = vld [vmem:[#allocation2 + $0x12c] sm:$0x7]  ;;  %v2657_v4 = vmul.f32 %v7522_v17, %v2632_v41  ;;  %v2177_v62 = vld [vmem:[#allocation2 + $0x144] sm:$0x7] }
 0x218   :  { %v2351_v60 = vadd.f32 %v2331_v39, %v2286_v18  ;;  %v1831_v32 = vadd.f32 %v1811_v49, %v1766_v1  ;;  %v2762_v39 = vld [vmem:[#allocation2 + $0x16d] sm:$0xff]  ;;  %v2137_v30 = vmul.f32 %v7579_v14, %v2112_v37  ;;  %v2827_v45 = vld [vmem:[#allocation2 + $0xde] sm:$0xff]  ;;  %v2202_v58 = vmul.f32 %v7593_v25, %v2177_v62 }
 0x219   :  { %v3132_v16 = vadd.f32 %v3112_v48, %v3067_v13  ;;  %v2242_v48 = vld [vmem:[#allocation2 + $0x15c] sm:$0x7]  ;;  %v2787_v18 = vmul.f32 %v7548_v54, %v2762_v39  ;;  %v2853_v36 = vmul.f32 %v7572_v38, %v2827_v45  ;;  %v2372_v14 = vld [vmem:[#allocation2 + $0xe5] sm:$0x7]  ;;  %v2958_v1 = vld [vmem:[#allocation2 + $0x10e] sm:$0xff] }
 0x21a   :  { %v2417_v63 = vadd.f32 %v2397_v55, %v2351_v60  ;;  %v1896_v51 = vadd.f32 %v1876_v22, %v1831_v32  ;;  %v2307_v55 = vld [vmem:[#allocation2 + $0x174] sm:$0x7]  ;;  %v2267_v13 = vmul.f32 %v7606_v31, %v2242_v48  ;;  %v2983_v32 = vmul.f32 %v7599_v43, %v2958_v1  ;;  %v3088_v31 = vld [vmem:[#allocation2 + $0x13e] sm:$0xff] }
 0x21b   :  { %v3197_v50 = vadd.f32 %v3177_v53, %v3132_v16  ;;  %v2332_v60 = vmul.f32 %v4040_v46, %v2307_v55  ;;  %v2398_v16 = vmul.f32 %v9022_v42, %v2372_v14  ;;  %v3048_v46 = vmul.f32 %v7613_v24, %v7475_v34  ;;  %v4041_v42 = vld [vmem:[%s7880_s1 + $0x34] ss:$0 sm:$0xff]  ;;  %v2698_v34 = vld [vmem:[#allocation2 + $0x15d] sm:$0x7]  ;;  %v2763_v39 = vld [vmem:[#allocation2 + $0x175] sm:$0x7] }
 0x21c   :  { %v2482_v19 = vadd.f32 %v2462_v0, %v2417_v63  ;;  %v1962_v59 = vadd.f32 %v1942_v7, %v1896_v51  ;;  %v2918_v0 = vmul.f32 %v7586_v28, %v7452_v52  ;;  %v2503_v7 = vld [vmem:[#allocation2 + $0x115] sm:$0x7]  ;;  %v3089_v55 = vld [vmem:[#allocation2 + $0x146] sm:$0x7] }
 0x21d   :  { %v7633_v33 = vadd.f32 %v3242_v8, %v3197_v50  ;;  %v2568_v50 = vld [vmem:[#allocation2 + $0x12d] sm:$0x7]  ;;  %v2528_v52 = vmul.f32 %v7279_v12, %v2503_v7  ;;  %v3219_v14 = vld [vmem:[#allocation2 + $0x176] sm:$0x7]  ;;  %v4042_v1 = vld [vmem:[%s7880_s1 + $0x35] ss:$0 sm:$0xff] }
 0x21e   :  { %v2547_v2 = vadd.f32 %v2527_v5, %v2482_v19  ;;  %v2027_v35 = vadd.f32 %v2007_v27, %v1962_v59  ;;  %v2463_v5 = vmul.f32 %v9025_v61, %v2438_v23  ;;  %v3113_v27 = vmul.f32 %v4041_v42, %v3088_v31  ;;  %v2633_v19 = vld [vmem:[#allocation2 + $0x145] sm:$0x7]  ;;  %v9056_v7 = vld [vmem:[#allocation57_spill] sm:$0xff] }
 0x21f   :  { %3538 = vrot.lane.b32.xlu1 %v7633_v33, %s4045_s6  ;;  %v2593_v59 = vmul.f32 %v7506_v9, %v2568_v50  ;;  %v2788_v9 = vmul.f32 %v7548_v54, %v2763_v39  ;;  %v3283_v31 = vsel %vm3270_vm1, %v9056_v7, 0.0  ;;  %v9059_v50 = vld [vmem:[#allocation46_spill] sm:$0xff] }
 0x220   :  { %v2612_v6 = vadd.f32 %v2592_v47, %v2547_v2  ;;  %v2092_v49 = vadd.f32 %v2072_v10, %v2027_v35  ;;  %v3218_v47 = vld [vmem:[#allocation2 + $0x16e] sm:$0xff]  ;;  %v3178_v10 = vmul.f32 %v9048_v20, %v7498_v3 }
 0x221   :  { %v3243_v62 = vmul.f32 %v9050_v57, %v3218_v47  ;;  %v9062_v47 = vld [vmem:[#allocation21_spill] sm:$0xff] }
 0x222   :  { %v2677_v56 = vadd.f32 %v2657_v4, %v2612_v6  ;;  %v2157_v44 = vadd.f32 %v2137_v30, %v2092_v49  ;;  %v2658_v4 = vmul.f32 %v7522_v17, %v2633_v19  ;;  %v2723_v30 = vmul.f32 %v7535_v21, %v2698_v34  ;;  %v2894_v49 = vld [vmem:[#allocation2 + $0xfe] sm:$0x7]  ;;  %v2959_v17 = vld [vmem:[#allocation2 + $0x116] sm:$0x7] }
 0x223   :  { %v3313_v34 = vsel %vm3270_vm1, %v7431_v11, 0.0  ;;  %v9066_v11 = vld [vmem:[#allocation62_spill] sm:$0xff] }
 0x224   :  { %v2742_v53 = vadd.f32 %v2722_v26, %v2677_v56  ;;  %v2222_v22 = vadd.f32 %v2202_v58, %v2157_v44  ;;  %v2828_v26 = vld [vmem:[#allocation2 + $0xe6] sm:$0x7]  ;;  %v2919_v58 = vmul.f32 %v7586_v28, %v2894_v49  ;;  %v3024_v56 = vld [vmem:[#allocation2 + $0x12e] sm:$0x7]  ;;  %v4043_v28 = vld [vmem:[%s7880_s1 + $0x36] ss:$0 sm:$0xff] }
 0x225   :  { %v2854_v20 = vmul.f32 %v7572_v38, %v2828_v26  ;;  %v3049_v54 = vmul.f32 %v7613_v24, %v3024_v56  ;;  %v9053_v24 = vld [vmem:[#allocation19_spill] sm:$0xff] }
 0x226   :  { %v2807_v40 = vadd.f32 %v2787_v18, %v2742_v53  ;;  %v2287_v25 = vadd.f32 %v2267_v13, %v2222_v22  ;;  %v2984_v18 = vmul.f32 %v7599_v43, %v2959_v17  ;;  %v3154_v13 = vld [vmem:[#allocation2 + $0x15e] sm:$0x7]  ;;  %v3244_v43 = vmul.f32 %v4043_v28, %v3219_v14 }
 0x227   :  { %v3179_v22 = vmul.f32 %v4042_v1, %v3154_v13  ;;  %v3267_v23 = vsel %vm3266_vm0, %v9053_v24, 0.0 }
 0x228   :  { %v2873_v8 = vadd.f32 %v2853_v36, %v2807_v40  ;;  %v2352_v63 = vadd.f32 %v2332_v60, %v2287_v25  ;;  %v3114_v36 = vmul.f32 %v4041_v42, %v3089_v55  ;;  %v9054_v25 = vld [vmem:[#allocation24_spill] sm:$0xff]  ;;  %v3509_v42 = vpop.permute.xlu1 %3508 }
 0x22a   :  { %v2938_v29 = vadd.f32 %v2918_v0, %v2873_v8  ;;  %v2418_v41 = vadd.f32 %v2398_v16, %v2352_v63  ;;  %v3274_v16 = vsel %vm3266_vm0, %v9054_v25, 0.0  ;;  %v9055_v8 = vld [vmem:[#allocation37_spill] sm:$0xff]  ;;  %v9057_v63 = vld [vmem:[#allocation76_spill] sm:$0xff] }
 0x22c   :  { %v3003_v51 = vadd.f32 %v2983_v32, %v2938_v29  ;;  %v2483_v37 = vadd.f32 %v2463_v5, %v2418_v41  ;;  %v3277_v32 = vsel %vm3270_vm1, %v9055_v8, 0.0  ;;  %v3289_v5 = vsel %vm3270_vm1, %v9057_v63, 0.0  ;;  %v9058_v29 = vld [vmem:[#allocation4_spill] sm:$0xff] }
 0x22d   :  { %v3271_v41 = vsel %vm3270_vm1, %v9059_v50, 0.0 }
 0x22e   :  { %v3068_v61 = vadd.f32 %v3048_v46, %v3003_v51  ;;  %v2548_v2 = vadd.f32 %v2528_v52, %v2483_v37  ;;  %v3295_v46 = vsel %vm3270_vm1, %v9058_v29, 0.0  ;;  %v9060_v52 = vld [vmem:[#allocation16_spill] sm:$0xff]  ;;  %v3307_v37 = vsel %vm3270_vm1, %v9062_v47, 0.0 }
 0x22f   :  { %v3301_v51 = vsel %vm3270_vm1, %v9060_v52, 0.0 }
 0x230   :  { %v3133_v12 = vadd.f32 %v3113_v27, %v3068_v61  ;;  %v2613_v35 = vadd.f32 %v2593_v59, %v2548_v2  ;;  %v9061_v27 = vld [vmem:[#allocation65_spill] sm:$0xff]  ;;  %v9063_v59 = vld [vmem:[#allocation26_spill] sm:$0xff] }
 0x231   :  { %v3280_v19 = vsel %vm3266_vm0, %v9061_v27, 0.0  ;;  %v3286_v61 = vsel %vm3266_vm0, %v9063_v59, 0.0  ;;  %v9064_v2 = vld [vmem:[#allocation13_spill] sm:$0xff]  ;;  %v3369_v27 = vlaneseq }
 0x232   :  { %v3198_v6 = vadd.f32 %v3178_v10, %v3133_v12  ;;  %v2678_v48 = vadd.f32 %v2658_v4, %v2613_v35  ;;  %v3511_v10 = vpop.permute.xlu1 %3510  ;;  %v3292_v4 = vsel %vm3266_vm0, %v9064_v2, 0.0  ;;  %v3505_v12 = vpop.permute.xlu0 %3504  ;;  %v9065_v35 = vld [vmem:[#allocation22_spill] sm:$0xff] }
 0x234   :  { %v7664_v45 = vadd.f32 %v3243_v62, %v3198_v6  ;;  %v2743_v3 = vadd.f32 %v2723_v30, %v2678_v48  ;;  %v3319_v62 = vsel %vm3270_vm1, %v7633_v33, 0.0  ;;  %v3298_v30 = vsel %vm3266_vm0, %v9065_v35, 0.0 }
 0x235   :  { %v3304_v48 = vsel %vm3266_vm0, %v9066_v11, 0.0 }
 0x236   :  { %3540 = vrot.lane.b32.xlu0 %v7664_v45, %s4045_s6  ;;  %v2808_v57 = vadd.f32 %v2788_v9, %v2743_v3  ;;  %v3515_v39 = vpop.permute.xlu1 %3514  ;;  %v3507_v26 = vpop.permute.xlu0 %3506  ;;  %v9067_v3 = vld [vmem:[#allocation23_spill] sm:$0xff] }
 0x237   :  { %v3567_v49 = vsel %vm3270_vm1, %v3507_v26, 0.0  ;;  %v3310_v33 = vsel %vm3266_vm0, %v9067_v3, 0.0  ;;  %v3579_v56 = vsel %vm3270_vm1, %v3515_v39, 0.0 }
 0x238   :  { %v2874_v21 = vadd.f32 %v2854_v20, %v2808_v57  ;;  %v3573_v20 = vsel %vm3270_vm1, %v3511_v10, 0.0  ;;  %v3372_v10 = vshrl.u32 %v3369_v27, 7 }
 0x23a   :  { %v2939_v44 = vadd.f32 %v2919_v58, %v2874_v21  ;;  %v3519_v9 = vpop.permute.xlu1 %3518  ;;  %v3513_v17 = vpop.permute.xlu0 %3512  ;;  %v3316_v58 = vsel %vm3266_vm0, %v7558_v15, 0.0  ;;  %v3322_v21 = vsel %vm3266_vm0, %v7664_v45, 0.0 }
 0x23b   :  { %v3576_v45 = vsel %vm3266_vm0, %v3513_v17, 0.0 }
 0x23c   :  { %v3004_v53 = vadd.f32 %v2984_v18, %v2939_v44  ;;  %v3585_v44 = vsel %vm3270_vm1, %v3519_v9, 0.0 }
 0x23e   :  { %v3069_v38 = vadd.f32 %v3049_v54, %v3004_v53  ;;  %v3523_v57 = vpop.permute.xlu1 %3522  ;;  %v3517_v18 = vpop.permute.xlu0 %3516  ;;  %v3564_v54 = vsel %vm3266_vm0, %v3505_v12, 0.0 }
 0x23f   :  { %v3591_v13 = vsel %vm3270_vm1, %v3523_v57, 0.0 }
 0x240   :  { %v3134_v60 = vadd.f32 %v3114_v36, %v3069_v38  ;;  %v3570_v36 = vsel %vm3266_vm0, %v3509_v42, 0.0 }
 0x242   :  { %v3199_v40 = vadd.f32 %v3179_v22, %v3134_v60  ;;  %v3527_v55 = vpop.permute.xlu1 %3526  ;;  %v3521_v15 = vpop.permute.xlu0 %3520  ;;  %v3582_v60 = vsel %vm3266_vm0, %v3517_v18, 0.0 }
 0x243   :  { %v3597_v14 = vsel %vm3270_vm1, %v3527_v55, 0.0 }
 0x244   :  { %v3264_v0 = vadd.f32 %v3244_v43, %v3199_v40 }
 0x246   :  { %3542 = vrot.lane.b32.xlu1 %v3264_v0, %s4045_s6  ;;  %v3325_v6 = vsel %vm3270_vm1, %v3264_v0, 0.0  ;;  %v3531_v53 = vpop.permute.xlu1 %3530  ;;  %v3525_v38 = vpop.permute.xlu0 %3524  ;;  %v3588_v0 = vsel %vm3266_vm0, %v3521_v15, 0.0 }
 0x247   :  { %v3603_v22 = vsel %vm3270_vm1, %v3531_v53, 0.0 }
 0x24a   :  { %v3529_v43 = vpop.permute.xlu0 %3528 }
 0x24e   :  { %v3533_v25 = vpop.permute.xlu0 %3532 }
 0x255   :  { %3268 = vadd.xlane.f32.xlu0 %v3267_v23  ;;  %v3594_v23 = vsel %vm3266_vm0, %v3525_v38, 0.0 }
 0x259   :  { %3275 = vadd.xlane.f32.xlu0 %v3274_v16  ;;  %v3600_v16 = vsel %vm3266_vm0, %v3529_v43, 0.0 }
 0x25d   :  { %3278 = vadd.xlane.f32.xlu0 %v3277_v32  ;;  %v3606_v32 = vsel %vm3266_vm0, %v3533_v25, 0.0 }
 0x261   :  { %3284 = vadd.xlane.f32.xlu0 %v3283_v31 }
 0x265   :  { %3290 = vadd.xlane.f32.xlu0 %v3289_v5 }
 0x268   :  { %v3535_v1 = vpop.permute.xlu1 %3534 }
 0x269   :  { %3296 = vadd.xlane.f32.xlu0 %v3295_v46  ;;  %v3609_v28 = vsel %vm3270_vm1, %v3535_v1, 0.0 }
 0x26a   :  { %3272 = vadd.xlane.f32.xlu1 %v3271_v41 }
 0x26d   :  { %3302 = vadd.xlane.f32.xlu0 %v3301_v51 }
 0x26e   :  { %3281 = vadd.xlane.f32.xlu1 %v3280_v19 }
 0x271   :  { %3308 = vadd.xlane.f32.xlu0 %v3307_v37  ;;  %v3370_v37 = vand.u32 127, %v3369_v27 }
 0x272   :  { %3287 = vadd.xlane.f32.xlu1 %v3286_v61 }
 0x273   :  { %v3375_v2 = vadd.s32 4294967288, %v3370_v37 }
 0x275   :  { %3314 = vadd.xlane.f32.xlu0 %v3313_v34  ;;  %v7741_v34 = vstv %s7881_s2 }
 0x276   :  { %3293 = vadd.xlane.f32.xlu1 %v3292_v4 }
 0x279   :  { %3320 = vadd.xlane.f32.xlu0 %v3319_v62  ;;  %v7743_v62 = vsub.s32 %v3370_v37, %v3372_v10 }
 0x27a   :  { %3299 = vadd.xlane.f32.xlu1 %v3298_v30  ;;  %v7747_v30 = vsub.s32 %v3375_v2, %v3372_v10 }
 0x27d   :  { %3326 = vadd.xlane.f32.xlu0 %v3325_v6 }
 0x27e   :  { %3305 = vadd.xlane.f32.xlu1 %v3304_v48 }
 0x27f   :  { %v3537_v8 = vpop.permute.xlu0 %3536 }
 0x280   :  { %v3612_v7 = vsel %vm3266_vm0, %v3537_v8, 0.0 }
 0x281   :  { %3568 = vadd.xlane.f32.xlu0 %v3567_v49 }
 0x282   :  { %3311 = vadd.xlane.f32.xlu1 %v3310_v33 }
 0x285   :  { %3574 = vadd.xlane.f32.xlu0 %v3573_v20 }
 0x286   :  { %3317 = vadd.xlane.f32.xlu1 %v3316_v58 }
 0x289   :  { %3580 = vadd.xlane.f32.xlu0 %v3579_v56 }
 0x28a   :  { %3323 = vadd.xlane.f32.xlu1 %v3322_v21 }
 0x28d   :  { %3586 = vadd.xlane.f32.xlu0 %v3585_v44 }
 0x28e   :  { %3565 = vadd.xlane.f32.xlu1 %v3564_v54 }
 0x291   :  { %3592 = vadd.xlane.f32.xlu0 %v3591_v13  ;;  %v3539_v40 = vpop.permute.xlu1 %3538 }
 0x292   :  { %3571 = vadd.xlane.f32.xlu1 %v3570_v36  ;;  %v3615_v24 = vsel %vm3270_vm1, %v3539_v40, 0.0 }
 0x295   :  { %3598 = vadd.xlane.f32.xlu0 %v3597_v14 }
 0x296   :  { %3577 = vadd.xlane.f32.xlu1 %v3576_v45 }
 0x299   :  { %3604 = vadd.xlane.f32.xlu0 %v3603_v22 }
 0x29a   :  { %3583 = vadd.xlane.f32.xlu1 %v3582_v60 }
 0x29d   :  { %3610 = vadd.xlane.f32.xlu0 %v3609_v28 }
 0x29e   :  { %3589 = vadd.xlane.f32.xlu1 %v3588_v0 }
 0x2a1   :  { %3616 = vadd.xlane.f32.xlu0 %v3615_v24 }
 0x2a2   :  { %3595 = vadd.xlane.f32.xlu1 %v3594_v23 }
 0x2a6   :  { %3601 = vadd.xlane.f32.xlu1 %v3600_v16 }
 0x2a8   :  { %v3541_v31 = vpop.permute.xlu0 %3540 }
 0x2a9   :  { %v3618_v63 = vsel %vm3266_vm0, %v3541_v31, 0.0 }
 0x2aa   :  { %3607 = vadd.xlane.f32.xlu1 %v3606_v32 }
 0x2ae   :  { %3613 = vadd.xlane.f32.xlu1 %v3612_v7 }
 0x2b2   :  { %3619 = vadd.xlane.f32.xlu1 %v3618_v63 }
 0x2b8   :  { %v3543_v5 = vpop.permute.xlu1 %3542 }
 0x2b9   :  { %v3621_v29 = vsel %vm3270_vm1, %v3543_v5, 0.0 }
 0x2ba   :  { %3622 = vadd.xlane.f32.xlu0 %v3621_v29 }
 0x2de   :  { %v3269_v46 = vpop.xlane.xlu0 %3268 }
 0x2df   :  { %v3329_v39 = vadd.f32 %v7741_v34, %v3269_v46 }
 0x2e1   :  { %v3374_v3 = vrot.slane %v3329_v39, %v7743_v62 }
 0x2e2   :  { %v3276_v50 = vpop.xlane.xlu0 %3275 }
 0x2e3   :  { %v3331_v35 = vadd.f32 %v7741_v34, %v3276_v50 }
 0x2e5   :  { %v3385_v33 = vrot.slane %v3331_v35, %v7743_v62 }
 0x2e6   :  { %v3279_v41 = vpop.xlane.xlu0 %3278 }
 0x2e7   :  { %v3332_v26 = vadd.f32 %v7741_v34, %v3279_v41 }
 0x2e9   :  { %v3389_v58 = vrot.slane %v3332_v26, %v7747_v30 }
 0x2ea   :  { %v3285_v52 = vpop.xlane.xlu0 %3284 }
 0x2eb   :  { %v3334_v9 = vadd.f32 %v7741_v34, %v3285_v52  ;;  %v3390_v38 = vsel %vm3380_vm2, %v3389_v58, %v3385_v33 }
 0x2ed   :  { %v3398_v13 = vrot.slane %v3334_v9, %v7747_v30 }
 0x2ee   :  { %v3291_v51 = vpop.xlane.xlu0 %3290 }
 0x2ef   :  { %v3336_v17 = vadd.f32 %v7741_v34, %v3291_v51 }
 0x2f1   :  { %v3407_v14 = vrot.slane %v3336_v17, %v7747_v30 }
 0x2f2   :  { %v3297_v42 = vpop.xlane.xlu0 %3296 }
 0x2f3   :  { %v3273_v19 = vpop.xlane.xlu1 %3272  ;;  %v3338_v21 = vadd.f32 %v7741_v34, %v3297_v42 }
 0x2f4   :  { %v3330_v6 = vadd.f32 %v7741_v34, %v3273_v19 }
 0x2f5   :  { %v3416_v22 = vrot.slane %v3338_v21, %v7747_v30 }
 0x2f6   :  { %v3303_v47 = vpop.xlane.xlu0 %3302  ;;  %v3379_v57 = vrot.slane %v3330_v6, %v7747_v30 }
 0x2f7   :  { %v3282_v59 = vpop.xlane.xlu1 %3281  ;;  %v3340_v44 = vadd.f32 %v7741_v34, %v3303_v47 }
 0x2f8   :  { %v3333_v48 = vadd.f32 %v7741_v34, %v3282_v59  ;;  %v3381_v45 = vsel %vm3380_vm2, %v3379_v57, %v3374_v3 }
 0x2f9   :  { %v3425_v43 = vrot.slane %v3340_v44, %v7747_v30  ;;  %v3464_v32 = vsel %vm3463_vm3, %v3390_v38, %v3381_v45 }
 0x2fa   :  { %v3309_v61 = vpop.xlane.xlu0 %3308  ;;  %v3394_v54 = vrot.slane %v3333_v48, %v7743_v62 }
 0x2fb   :  { %v3288_v4 = vpop.xlane.xlu1 %3287  ;;  %v3342_v15 = vadd.f32 %v7741_v34, %v3309_v61 }
 0x2fc   :  { %v3335_v20 = vadd.f32 %v7741_v34, %v3288_v4  ;;  %v3399_v24 = vsel %vm3380_vm2, %v3398_v13, %v3394_v54 }
 0x2fd   :  { %v3434_v23 = vrot.slane %v3342_v15, %v7747_v30  ;;  %v3466_v63 = vsel %vm3465_vm4, %v3399_v24, %v3464_v32 }
 0x2fe   :  { %v3315_v12 = vpop.xlane.xlu0 %3314  ;;  %v3403_v36 = vrot.slane %v3335_v20, %v7743_v62 }
 0x2ff   :  { %v3294_v11 = vpop.xlane.xlu1 %3293  ;;  %v3344_v0 = vadd.f32 %v7741_v34, %v3315_v12 }
 0x300   :  { %v3337_v56 = vadd.f32 %v7741_v34, %v3294_v11  ;;  %v3408_v16 = vsel %vm3380_vm2, %v3407_v14, %v3403_v36 }
 0x301   :  { %v3443_v29 = vrot.slane %v3344_v0, %v7747_v30  ;;  %v3468_v50 = vsel %vm3467_vm5, %v3408_v16, %v3466_v63 }
 0x302   :  { %v3321_v49 = vpop.xlane.xlu0 %3320  ;;  %v3412_v1 = vrot.slane %v3337_v56, %v7743_v62 }
 0x303   :  { %v3300_v18 = vpop.xlane.xlu1 %3299  ;;  %v3346_v27 = vadd.f32 %v7741_v34, %v3321_v49 }
 0x304   :  { %v3339_v55 = vadd.f32 %v7741_v34, %v3300_v18  ;;  %v3417_v7 = vsel %vm3380_vm2, %v3416_v22, %v3412_v1 }
 0x305   :  { %v3470_v51 = vsel %vm3469_vm6, %v3417_v7, %v3468_v50  ;;  %v3452_v12 = vrot.slane %v3346_v27, %v7747_v30 }
 0x306   :  { %v3327_v53 = vpop.xlane.xlu0 %3326  ;;  %v3421_v28 = vrot.slane %v3339_v55, %v7743_v62 }
 0x307   :  { %v3306_v60 = vpop.xlane.xlu1 %3305  ;;  %v3348_v10 = vadd.f32 %v7741_v34, %v3327_v53 }
 0x308   :  { %v3341_v40 = vadd.f32 %v7741_v34, %v3306_v60  ;;  %v3426_v5 = vsel %vm3380_vm2, %v3425_v43, %v3421_v28 }
 0x309   :  { %v3472_v19 = vsel %vm3471_vm7, %v3426_v5, %v3470_v51  ;;  %v3461_v6 = vrot.slane %v3348_v10, %v7747_v30 }
 0x30a   :  { %v3569_v25 = vpop.xlane.xlu0 %3568  ;;  %v3430_v8 = vrot.slane %v3341_v40, %v7743_v62 }
 0x30b   :  { %v3312_v31 = vpop.xlane.xlu1 %3311  ;;  %v3625_v15 = vadd.f32 %v3569_v25, %v7741_v34 }
 0x30c   :  { %v3343_v46 = vadd.f32 %v7741_v34, %v3312_v31  ;;  %v3435_v41 = vsel %vm3380_vm2, %v3434_v23, %v3430_v8 }
 0x30d   :  { %v3474_v37 = vsel %vm3473_vm8, %v3435_v41, %v3472_v19  ;;  %v3671_v25 = vrot.slane %v3625_v15, %v7747_v30 }
 0x30e   :  { %v3575_v52 = vpop.xlane.xlu0 %3574  ;;  %v3439_v42 = vrot.slane %v3343_v46, %v7743_v62 }
 0x30f   :  { %v3318_v47 = vpop.xlane.xlu1 %3317  ;;  %v3627_v21 = vadd.f32 %v3575_v52, %v7741_v34 }
 0x310   :  { %v3444_v59 = vsel %vm3380_vm2, %v3443_v29, %v3439_v42  ;;  %v3345_v61 = vadd.f32 %v7741_v34, %v3318_v47 }
 0x311   :  { %v3476_v2 = vsel %vm3475_vm9, %v3444_v59, %v3474_v37  ;;  %v3680_v45 = vrot.slane %v3627_v21, %v7747_v30 }
 0x312   :  { %v3581_v4 = vpop.xlane.xlu0 %3580  ;;  %3481 = vst.msk [vmem:[%s7882_s3] sm:$0xff] %vm3480_vm10, %v3476_v2  ;;  %v3448_v39 = vrot.slane %v3345_v61, %v7743_v62 }
 0x313   :  { %v3324_v35 = vpop.xlane.xlu1 %3323  ;;  %v3629_v54 = vadd.f32 %v3581_v4, %v7741_v34 }
 0x314   :  { %v3347_v26 = vadd.f32 %v7741_v34, %v3324_v35  ;;  %v3453_v48 = vsel %vm3380_vm2, %v3452_v12, %v3448_v39 }
 0x315   :  { %v3689_v40 = vrot.slane %v3629_v54, %v7747_v30 }
 0x316   :  { %v3587_v11 = vpop.xlane.xlu0 %3586  ;;  %v3457_v9 = vrot.slane %v3347_v26, %v7743_v62 }
 0x317   :  { %v3566_v49 = vpop.xlane.xlu1 %3565  ;;  %v3631_v53 = vadd.f32 %v3587_v11, %v7741_v34 }
 0x318   :  { %v3462_v3 = vsel %vm3380_vm2, %v3461_v6, %v3457_v9  ;;  %v3624_v14 = vadd.f32 %v3566_v49, %v7741_v34 }
 0x319   :  { %v3477_v33 = vsel %vm3463_vm3, %v3462_v3, %v3453_v48  ;;  %v3698_v16 = vrot.slane %v3631_v53, %v7747_v30 }
 0x31a   :  { %3483 = vst.msk [vmem:[%s7882_s3 + $0x8] sm:$0x3] %vm3482_vm11, %v3477_v33  ;;  %v3593_v17 = vpop.xlane.xlu0 %3592  ;;  %v3667_v32 = vrot.slane %v3624_v14, %v7743_v62 }
 0x31b   :  { %v3572_v20 = vpop.xlane.xlu1 %3571  ;;  %v3633_v38 = vadd.f32 %v3593_v17, %v7741_v34 }
 0x31c   :  { %v3626_v44 = vadd.f32 %v3572_v20, %v7741_v34  ;;  %v3672_v42 = vsel %vm3380_vm2, %v3671_v25, %v3667_v32 }
 0x31d   :  { %v3707_v31 = vrot.slane %v3633_v38, %v7747_v30 }
 0x31e   :  { %v3599_v58 = vpop.xlane.xlu0 %3598  ;;  %v3676_v43 = vrot.slane %v3626_v44, %v7743_v62 }
 0x31f   :  { %v3578_v57 = vpop.xlane.xlu1 %3577  ;;  %v3635_v60 = vadd.f32 %v3599_v58, %v7741_v34 }
 0x320   :  { %v3628_v13 = vadd.f32 %v3578_v57, %v7741_v34  ;;  %v3681_v7 = vsel %vm3380_vm2, %v3680_v45, %v3676_v43 }
 0x321   :  { %v3716_v29 = vrot.slane %v3635_v60, %v7747_v30  ;;  %v3754_v47 = vsel %vm3463_vm3, %v3681_v7, %v3672_v42 }
 0x322   :  { %v3605_v55 = vpop.xlane.xlu0 %3604  ;;  %v3685_v0 = vrot.slane %v3628_v13, %v7743_v62 }
 0x323   :  { %v3584_v56 = vpop.xlane.xlu1 %3583  ;;  %v3637_v24 = vadd.f32 %v3605_v55, %v7741_v34 }
 0x324   :  { %v3630_v36 = vadd.f32 %v3584_v56, %v7741_v34  ;;  %v3690_v52 = vsel %vm3380_vm2, %v3689_v40, %v3685_v0 }
 0x325   :  { %v3725_v51 = vrot.slane %v3637_v24, %v7747_v30  ;;  %v3755_v61 = vsel %vm3465_vm4, %v3690_v52, %v3754_v47 }
 0x326   :  { %v3611_v23 = vpop.xlane.xlu0 %3610  ;;  %v3694_v8 = vrot.slane %v3630_v36, %v7743_v62 }
 0x327   :  { %v3590_v18 = vpop.xlane.xlu1 %3589  ;;  %v3639_v41 = vadd.f32 %v3611_v23, %v7741_v34 }
 0x328   :  { %v3632_v1 = vadd.f32 %v3590_v18, %v7741_v34  ;;  %v3699_v27 = vsel %vm3380_vm2, %v3698_v16, %v3694_v8 }
 0x329   :  { %v3734_v2 = vrot.slane %v3639_v41, %v7747_v30  ;;  %v3756_v12 = vsel %vm3467_vm5, %v3699_v27, %v3755_v61 }
 0x32a   :  { %v3703_v63 = vrot.slane %v3632_v1, %v7743_v62  ;;  %v3617_v3 = vpop.xlane.xlu0 %3616 }
 0x32b   :  { %v3596_v22 = vpop.xlane.xlu1 %3595  ;;  %v3641_v20 = vadd.f32 %v3617_v3, %v7741_v34 }
 0x32c   :  { %v3634_v28 = vadd.f32 %v3596_v22, %v7741_v34  ;;  %v3708_v37 = vsel %vm3380_vm2, %v3707_v31, %v3703_v63 }
 0x32d   :  { %v3757_v35 = vsel %vm3469_vm6, %v3708_v37, %v3756_v12  ;;  %v3743_v56 = vrot.slane %v3641_v20, %v7747_v30 }
 0x32e   :  { %v3712_v46 = vrot.slane %v3634_v28, %v7743_v62 }
 0x32f   :  { %v3602_v5 = vpop.xlane.xlu1 %3601 }
 0x330   :  { %v3636_v50 = vadd.f32 %v3602_v5, %v7741_v34  ;;  %v3717_v10 = vsel %vm3380_vm2, %v3716_v29, %v3712_v46 }
 0x331   :  { %v3758_v26 = vsel %vm3471_vm7, %v3717_v10, %v3757_v35 }
 0x332   :  { %v3721_v19 = vrot.slane %v3636_v50, %v7743_v62 }
 0x333   :  { %v3608_v59 = vpop.xlane.xlu1 %3607 }
 0x334   :  { %v3638_v4 = vadd.f32 %v3608_v59, %v7741_v34  ;;  %v3726_v39 = vsel %vm3380_vm2, %v3725_v51, %v3721_v19 }
 0x335   :  { %v3759_v48 = vsel %vm3473_vm8, %v3726_v39, %v3758_v26 }
 0x336   :  { %v3730_v6 = vrot.slane %v3638_v4, %v7743_v62 }
 0x337   :  { %v3614_v11 = vpop.xlane.xlu1 %3613 }
 0x338   :  { %v3735_v9 = vsel %vm3380_vm2, %v3734_v2, %v3730_v6  ;;  %v3640_v17 = vadd.f32 %v3614_v11, %v7741_v34 }
 0x339   :  { %v3760_v49 = vsel %vm3475_vm9, %v3735_v9, %v3759_v48 }
 0x33a   :  { %3862 = vst.msk [vmem:[%s7882_s3 + $0x10] sm:$0xff] %vm3480_vm10, %v3760_v49  ;;  %v3739_v21 = vrot.slane %v3640_v17, %v7743_v62 }
 0x33b   :  { %v3620_v33 = vpop.xlane.xlu1 %3619 }
 0x33c   :  { %v3642_v57 = vadd.f32 %v3620_v33, %v7741_v34  ;;  %v3744_v54 = vsel %vm3380_vm2, %v3743_v56, %v3739_v21 }
 0x33e   :  { %v3748_v55 = vrot.slane %v3642_v57, %v7743_v62 }
 0x343   :  { %v3623_v58 = vpop.xlane.xlu0 %3622 }
 0x344   :  { %v3643_v18 = vadd.f32 %v3623_v58, %v7741_v34 }
 0x346   :  { %v3752_v44 = vrot.slane %v3643_v18, %v7747_v30 }
 0x348   :  { %v3753_v13 = vsel %vm3380_vm2, %v3752_v44, %v3748_v55 }
 0x349   :  { %v3761_v15 = vsel %vm3463_vm3, %v3753_v13, %v3744_v54 }
 0x34a   :  { %3863 = vst.msk [vmem:[%s7882_s3 + $0x18] sm:$0x3] %vm3482_vm11, %v3761_v15 }

</bundles_post_ra>
